<compile_context>
chip_gen: v7x
topology: tpu7x:2x2x1
jax: 0.10.0
libtpu: 0.0.40
codegen_flags: <defaults>
</compile_context>

<pallas_src>
import jax
import jax.numpy as jnp
from jax import lax
from jax.experimental import pallas as pl
from jax.experimental.pallas import tpu as pltpu

EPS_GN = 1e-5
NUM_GROUPS = 4
LANE = 128
SUBLANE = 8


def _round_up(x, n):
    return ((x + n - 1) // n) * n


def _physical_vmem_bytes():
    """Best-effort query of per-core VMEM; conservative v7x default on failure."""
    try:
        info = pltpu.get_tpu_info()
        for attr in ("vmem_capacity_bytes", "vmem_bytes", "vmem_size_bytes"):
            v = getattr(info, attr, None)
            if v:
                return int(v)
    except Exception:
        pass
    return 64 << 20


# ---------------------------------------------------------------------------
# Fused DEQFusion + Anderson solver kernel
# ---------------------------------------------------------------------------
def _make_solver_kernel(*, num_modals, d_pad, b_tile, threshold, m_depth,
                        lam, beta, eps, stop_mode, matmul_dtype):
    M = num_modals
    Dp = d_pad
    Bt = b_tile
    L = (M + 1) * Dp
    PIV_FLOOR = 1e-8          # only binds if f32 cancellation corrupts the SPD solve
    ALPHA_CLIP = 1e4          # never binds on sane trajectories
    EPS2 = float(eps) * float(eps)
    ONE_M_BETA = 1.0 - float(beta)

    def kernel(inj_ref, mask_ref, proj_ref,
               w1_ref, b1_ref, w2_ref, b2_ref,
               g1w_ref, g1b_ref, g2w_ref, g2b_ref, g3w_ref, g3b_ref,
               gate_w_ref, gate_b_ref, fuse_w_ref, fuse_b_ref,
               fgn_w_ref, fgn_b_ref,
               z_out_ref, info_ref,
               fh_ref, gh_ref, xk_ref, gram_ref, res_ref,
               babs_sm, brel_sm, bstep_sm, done_sm):

        lane_m = lax.broadcasted_iota(jnp.int32, (Bt, m_depth), 1)

        # ---------- one DEQFusionLayer evaluation: xk_ref -> fh_ref[dst_slot] ----------
        def layer(dst_slot):
            proj = proj_ref[...]                       # bf16 projector, loaded once/eval

            def gnorm(x, gamma, beta_p):
                mean = jnp.dot(x.astype(matmul_dtype), proj,
                               preferred_element_type=jnp.float32)
                cent = x - mean
                var = jnp.dot((cent * cent).astype(matmul_dtype), proj,
                              preferred_element_type=jnp.float32)
                return cent * lax.rsqrt(var + EPS_GN) * gamma + beta_p

            def linear(x, w, b):
                return jnp.dot(x.astype(matmul_dtype), w,
                               preferred_element_type=jnp.float32) + b

            zf = xk_ref[:, M * Dp:(M + 1) * Dp]
            branch_sum = jnp.zeros((Bt, Dp), jnp.float32)
            for i in range(M):                          # SimpleResidualBlock branches
                lo = i * Dp
                z_i = xk_ref[:, lo:lo + Dp]
                inj_i = inj_ref[:, lo:lo + Dp]
                h = jnp.maximum(gnorm(linear(z_i, w1_ref[i], b1_ref[i]),
                                      g1w_ref[i], g1b_ref[i]), 0.0)
                h = linear(h, w2_ref[i], b2_ref[i]) + inj_i
                h = gnorm(h, g2w_ref[i], g2b_ref[i]) + z_i
                h = gnorm(jnp.maximum(h, 0.0), g3w_ref[i], g3b_ref[i])
                fh_ref[pl.ds(dst_slot, 1), :, lo:lo + Dp] = h[None]   # direct slot write
                branch_sum = branch_sum + h
            # gate is a pure nn.Linear:
            #   sum_i zf*gate(h_i+zf) == zf * ((sum_i h_i + M*zf) @ Wg + M*bg)
            s = branch_sum + float(M) * zf
            gate_sum = (jnp.dot(s.astype(matmul_dtype), gate_w_ref[...],
                                preferred_element_type=jnp.float32)
                        + float(M) * gate_b_ref[...])
            fused = (linear(zf * gate_sum, fuse_w_ref[...], fuse_b_ref[...])
                     + inj_ref[:, M * Dp:(M + 1) * Dp])
            fused = gnorm(jnp.maximum(fused, 0.0), fgn_w_ref[...], fgn_b_ref[...])
            fh_ref[pl.ds(dst_slot, 1), :, M * Dp:(M + 1) * Dp] = fused[None]

        # ---------- store G[slot] = F[slot]-xk and refresh Gram row/col `slot` ----------
        def finish_slot(slot, with_res):
            slot_i = jnp.asarray(slot, jnp.int32)
            vs = [jnp.zeros((Bt, 1), jnp.float32) for _ in range(m_depth)]
            fsq = jnp.zeros((Bt, 1), jnp.float32)
            for c in range(M + 1):                      # chunk-wise: bounded vreg live set
                lo = c * Dp
                fkc = fh_ref[pl.ds(slot, 1), :, lo:lo + Dp][0]
                gc = fkc - xk_ref[:, lo:lo + Dp]
                gh_ref[pl.ds(slot, 1), :, lo:lo + Dp] = gc[None]
                for j in range(m_depth):                # m dot products (incremental Gram)
                    vs[j] = vs[j] + jnp.sum(gc * gh_ref[j, :, lo:lo + Dp],
                                            axis=1, keepdims=True)
                if with_res:
                    fsq = fsq + jnp.sum(fkc * fkc, axis=1, keepdims=True)
            new_row = jnp.concatenate(vs, axis=1)       # (Bt, m)
            col_hot = (lane_m == slot_i)
            for i in range(m_depth):
                upd = jnp.where(col_hot, vs[i], gram_ref[i])          # column `slot`
                sel = (jnp.asarray(i, jnp.int32) == slot_i).astype(jnp.float32)
                gram_ref[i] = sel * new_row + (1.0 - sel) * upd       # row `slot`
            if not with_res:
                return None
            gsq = jnp.zeros((Bt, 1), jnp.float32)
            for j in range(m_depth):
                sel_j = (jnp.asarray(j, jnp.int32) == slot_i).astype(jnp.float32)
                gsq = gsq + sel_j * vs[j]               # per-row ||g_new||^2
            return gsq, fsq

        # ---------- init resident state ----------
        fh_ref[...] = jnp.zeros_like(fh_ref)
        gh_ref[...] = jnp.zeros_like(gh_ref)
        gram_ref[...] = jnp.zeros_like(gram_ref)
        xk_ref[...] = jnp.zeros_like(xk_ref)
        z_out_ref[...] = jnp.zeros_like(z_out_ref)
        babs_sm[0] = jnp.float32(1e16)                  # squared: sqrt -> 1e8 (ref init)
        brel_sm[0] = jnp.float32(1e16)
        bstep_sm[0] = jnp.int32(0)
        done_sm[0] = jnp.int32(0)

        # ---------- priming: X0 = 0, F0 = f(X0); X1 = F0, F1 = f(F0) ----------
        layer(0)
        finish_slot(0, with_res=False)
        xk_ref[...] = fh_ref[0]
        layer(1)
        finish_slot(1, with_res=False)

        # ---------- Anderson iterations k = 2 .. threshold-1 ----------
        def step(k, carry):
            @pl.when(done_sm[0] == 0)                   # emulates the reference `break`
            def _():
                # per-row m x m solve:  (G G^T + lam I) a = 1,  alpha = a / sum(a)
                rows = []
                rhs = []
                for i in range(m_depth):
                    act_i = (jnp.asarray(i, jnp.int32) < k).astype(jnp.float32)
                    onehot = (lane_m == i).astype(jnp.float32)
                    diag_add = act_i * lam + (1.0 - act_i)   # identity on inactive slots
                    rows.append(gram_ref[i] + onehot * diag_add)
                    rhs.append(act_i * jnp.ones((Bt, 1), jnp.float32))
                for j in range(m_depth):                # unrolled Gauss-Jordan (SPD)
                    pr = rows[j]
                    inv_p = 1.0 / jnp.maximum(pr[:, j:j + 1], PIV_FLOOR)
                    for i in range(m_depth):
                        if i == j:
                            continue
                        f_ij = rows[i][:, j:j + 1] * inv_p
                        rows[i] = rows[i] - f_ij * pr
                        rhs[i] = rhs[i] - f_ij * rhs[j]
                x_sol = [rhs[i] / jnp.maximum(rows[i][:, i:i + 1], PIV_FLOOR)
                         for i in range(m_depth)]
                denom = x_sol[0]
                for i in range(1, m_depth):
                    denom = denom + x_sol[i]
                inv_den = 1.0 / jnp.maximum(denom, PIV_FLOOR)
                alpha = [jnp.clip(x_sol[i] * inv_den, -ALPHA_CLIP, ALPHA_CLIP)
                         for i in range(m_depth)]

                # xk = sum_i alpha_i (F_i - (1-beta) G_i), streamed chunk-wise into xk_ref
                for c in range(M + 1):
                    lo = c * Dp
                    acc = jnp.zeros((Bt, Dp), jnp.float32)
                    for i in range(m_depth):
                        term = fh_ref[i, :, lo:lo + Dp]
                        if ONE_M_BETA != 0.0:
                            term = term - ONE_M_BETA * gh_ref[i, :, lo:lo + Dp]
                        acc = acc + alpha[i] * term
                    xk_ref[:, lo:lo + Dp] = acc

                slot = k % m_depth
                layer(slot)                             # F[slot] = f(xk), written in place
                gsq, fsq = finish_slot(slot, with_res=True)

                # residual norms (squared) over the real batch rows only
                mask = mask_ref[...]
                abs2 = jnp.sum(gsq * mask, axis=0, keepdims=True)      # (1,1)
                fn2 = jnp.sum(fsq * mask, axis=0, keepdims=True)
                den = 1e-5 + jnp.sqrt(fn2)
                rel2 = abs2 / (den * den)
                res_ref[0:1, :] = abs2
                res_ref[1:2, :] = rel2
                abs2_s = res_ref[0, 0]
                rel2_s = res_ref[1, 0]

                imp_abs = abs2_s < babs_sm[0]
                imp_rel = rel2_s < brel_sm[0]
                babs_sm[0] = jnp.where(imp_abs, abs2_s, babs_sm[0])
                brel_sm[0] = jnp.where(imp_rel, rel2_s, brel_sm[0])
                imp_stop = imp_abs if stop_mode == 'abs' else imp_rel
                stop2_s = abs2_s if stop_mode == 'abs' else rel2_s

                @pl.when(imp_stop)
                def _():
                    z_out_ref[...] = xk_ref[...]        # best iterate straight to output
                    bstep_sm[0] = k

                done_sm[0] = (stop2_s < EPS2).astype(jnp.int32)
            return carry

        lax.fori_loop(2, threshold, step, jnp.int32(0))

        # ---------- epilogue: diagnostics row (sqrt once, here) ----------
        row_abs = jnp.sqrt(jnp.full((1, LANE), babs_sm[0], jnp.float32))
        row_rel = jnp.sqrt(jnp.full((1, LANE), brel_sm[0], jnp.float32))
        row_stp = jnp.full((1, LANE), bstep_sm[0].astype(jnp.float32), jnp.float32)
        pad = jnp.zeros((SUBLANE - 3, LANE), jnp.float32)
        info_ref[0] = jnp.concatenate([row_abs, row_rel, row_stp, pad], axis=0)

    return kernel


# ---------------------------------------------------------------------------
# Parameter helpers (deterministic in-script init, PyTorch-style uniform bounds)
# ---------------------------------------------------------------------------
def _linear_params(key, in_dim, out_dim):
    k1, k2 = jax.random.split(key)
    bound = 1.0 / (in_dim ** 0.5)
    w = jax.random.uniform(k1, (in_dim, out_dim), jnp.float32, -bound, bound)  # (in, out)
    b = jax.random.uniform(k2, (1, out_dim), jnp.float32, -bound, bound)
    return w, b


def _pad_weight(w, d_pad, dtype):
    d_in, d_out = w.shape
    out = jnp.zeros((d_pad, d_pad), jnp.float32).at[:d_in, :d_out].set(w)
    return out.astype(dtype)


def _pad_row(v, d_pad):
    return jnp.zeros((1, d_pad), jnp.float32).at[:, :v.shape[1]].set(v)


# ---------------------------------------------------------------------------
# DEQFusion module
# ---------------------------------------------------------------------------
class DEQFusionPallas:
    def __init__(self, channel_dim, num_modals, key, f_thres=55, b_thres=56,
                 stop_mode='abs', anderson_m=6, anderson_lam=1e-4, anderson_beta=1.0,
                 f_eps=1e-3, matmul_dtype=jnp.bfloat16):
        assert channel_dim % NUM_GROUPS == 0
        self.D = channel_dim
        self.M = num_modals
        self.Dp = _round_up(channel_dim, LANE)
        self.f_thres = int(f_thres)
        self.b_thres = int(b_thres)          # backward solver budget (unused at inference)
        self.stop_mode = stop_mode
        self.anderson_m = int(anderson_m)
        self.lam = float(anderson_lam)
        self.beta = float(anderson_beta)
        self.eps = float(f_eps)
        self.matmul_dtype = matmul_dtype

        Dp = self.Dp
        keys = jax.random.split(key, 2 * num_modals + 2)
        w1, b1, w2, b2 = [], [], [], []
        for i in range(num_modals):
            w, b = _linear_params(keys[2 * i], channel_dim, channel_dim)
            w1.append(_pad_weight(w, Dp, matmul_dtype)); b1.append(_pad_row(b, Dp))
            w, b = _linear_params(keys[2 * i + 1], channel_dim, channel_dim)
            w2.append(_pad_weight(w, Dp, matmul_dtype)); b2.append(_pad_row(b, Dp))
        self.w1 = jnp.stack(w1); self.b1 = jnp.stack(b1)
        self.w2 = jnp.stack(w2); self.b2 = jnp.stack(b2)

        # GroupNorm affine: gamma=1 / beta=0 on real channels, 0 on padded tail
        gamma = _pad_row(jnp.ones((1, channel_dim), jnp.float32), Dp)
        beta0 = jnp.zeros((1, Dp), jnp.float32)
        gm = jnp.tile(gamma[None], (num_modals, 1, 1))
        bm = jnp.tile(beta0[None], (num_modals, 1, 1))
        self.g1w, self.g1b = gm, bm
        self.g2w, self.g2b = gm, bm
        self.g3w, self.g3b = gm, bm
        self.fgn_w, self.fgn_b = gamma, beta0

        gw, gb = _linear_params(keys[2 * num_modals], channel_dim, channel_dim)
        self.gate_w, self.gate_b = _pad_weight(gw, Dp, matmul_dtype), _pad_row(gb, Dp)
        fw, fb = _linear_params(keys[2 * num_modals + 1], channel_dim, channel_dim)
        self.fuse_w, self.fuse_b = _pad_weight(fw, Dp, matmul_dtype), _pad_row(fb, Dp)

        # Block-diagonal group-averaging projector (acts only on real channels), bf16 so
        # the GroupNorm mean/var matmuls run single-pass on the MXU (1/gsize exact for
        # power-of-two group sizes).
        gsize = channel_dim // NUM_GROUPS
        idx = jnp.arange(Dp)
        real = idx < channel_dim
        same_group = (idx[:, None] // gsize) == (idx[None, :] // gsize)
        self.proj = jnp.where(same_group & real[:, None] & real[None, :],
                              1.0 / gsize, 0.0).astype(matmul_dtype)

        # DEQFusion scalar modality weights (init 1) and bias (init 0)
        self.fusion_w = jnp.ones((num_modals,), jnp.float32)
        self.fusion_b = jnp.zeros((), jnp.float32)

        self._calls = {}
        self._jit_forward = jax.jit(self._forward_impl)

    # -------------------------------------------------------------------
    def _pick_batch_tile(self, b_pad):
        if b_pad <= SUBLANE:
            return SUBLANE
        # >=2 tiles so a v7x chip can run one per TensorCore; cap the tile so the
        # 2*m history slabs stay well inside a 64 MiB VMEM budget.
        bt = _round_up(pl.cdiv(b_pad, 2), SUBLANE)
        return min(bt, 64)

    def _get_call(self, b_pad, b_tile):
        key = (b_pad, b_tile)
        if key in self._calls:
            return self._calls[key]
        M, Dp, m = self.M, self.Dp, self.anderson_m
        L = (M + 1) * Dp
        n_tiles = b_pad // b_tile
        kernel = _make_solver_kernel(
            num_modals=M, d_pad=Dp, b_tile=b_tile, threshold=self.f_thres,
            m_depth=m, lam=self.lam, beta=self.beta, eps=self.eps,
            stop_mode=self.stop_mode, matmul_dtype=self.matmul_dtype)

        itemsize = jnp.dtype(self.matmul_dtype).itemsize
        weight_bytes = ((2 * M + 3) * Dp * Dp * itemsize       # w1,w2,gate,fuse,proj
                        + (2 * M + 2) * Dp * 4                 # biases
                        + (6 * M + 2) * Dp * 4)                # gn affine rows
        stream_bytes = 2 * (b_tile * (L + 1) * 4 + b_tile * L * 4 + SUBLANE * LANE * 4)
        scratch_bytes = ((2 * m + 1) * b_tile * L + m * b_tile * m + 256) * 4
        footprint = weight_bytes + stream_bytes + scratch_bytes
        phys = _physical_vmem_bytes()
        vmem_limit = int(max(32 << 20, min(2 * footprint + (4 << 20), phys - (8 << 20))))

        cost = pl.CostEstimate(
            flops=int(self.f_thres * (8 * M + 4) * 2 * b_pad * Dp * Dp),
            transcendentals=int(self.f_thres * (3 * M + 1) * b_pad * Dp),
            bytes_accessed=int(b_pad * L * 8 + weight_bytes))

        batched = lambda t: (t, 0)
        vmem_full = pl.BlockSpec(memory_space=pltpu.MemorySpace.VMEM)
        call = pl.pallas_call(
            kernel,
            grid=(n_tiles,),
            out_shape=(jax.ShapeDtypeStruct((b_pad, L), jnp.float32),
                       jax.ShapeDtypeStruct((n_tiles, SUBLANE, LANE), jnp.float32)),
            in_specs=([pl.BlockSpec((b_tile, L), batched),
                       pl.BlockSpec((b_tile, 1), batched)]
                      + [vmem_full] * 17),
            out_specs=(pl.BlockSpec((b_tile, L), batched),
                       pl.BlockSpec((1, SUBLANE, LANE), lambda t: (t, 0, 0))),
            scratch_shapes=[
                pltpu.VMEM((m, b_tile, L), jnp.float32),    # F history
                pltpu.VMEM((m, b_tile, L), jnp.float32),    # G = F - X history
                pltpu.VMEM((b_tile, L), jnp.float32),       # current iterate x_k
                pltpu.VMEM((m, b_tile, m), jnp.float32),    # per-row Gram (incremental)
                pltpu.VMEM((2, 1), jnp.float32),            # [abs^2, rel^2] staging
                pltpu.SMEM((1,), jnp.float32),              # best abs^2
                pltpu.SMEM((1,), jnp.float32),              # best rel^2
                pltpu.SMEM((1,), jnp.int32),                # best step
                pltpu.SMEM((1,), jnp.int32),                # done flag
            ],
            compiler_params=pltpu.CompilerParams(
                dimension_semantics=("parallel",),
                vmem_limit_bytes=vmem_limit),
            cost_estimate=cost,
        )
        self._calls[key] = call
        return call

    # -------------------------------------------------------------------
    def _forward_impl(self, feats):
        M, B, D = feats.shape
        assert M == self.M and D == self.D
        Dp = self.Dp
        Mp1 = M + 1
        b_pad0 = _round_up(B, SUBLANE)
        b_tile = self._pick_batch_tile(b_pad0)
        b_pad = _round_up(b_pad0, b_tile)

        # fusion_feature = sum_i w_i * f_i + bias
        fusion_feature = jnp.einsum('m,mbd->bd', self.fusion_w, feats) + self.fusion_b

        inj = jnp.concatenate([jnp.transpose(feats, (1, 0, 2)),
                               fusion_feature[:, None, :]], axis=1)      # (B, M+1, D)
        inj_p = jnp.zeros((b_pad, Mp1, Dp), jnp.float32).at[:B, :, :D].set(inj)
        inj_p = inj_p.reshape(b_pad, Mp1 * Dp)
        row_mask = (jnp.arange(b_pad) < B).astype(jnp.float32).reshape(b_pad, 1)

        call = self._get_call(b_pad, b_tile)
        z_out, info = call(inj_p, row_mask, self.proj,
                           self.w1, self.b1, self.w2, self.b2,
                           self.g1w, self.g1b, self.g2w, self.g2b, self.g3w, self.g3b,
                           self.gate_w, self.gate_b, self.fuse_w, self.fuse_b,
                           self.fgn_w, self.fgn_b)

        z_full = z_out[:B].reshape(B, Mp1, Dp)[:, :, :D]
        fused_feat = z_full[:, M, :]                                     # net[-1]
        jac_loss = jnp.zeros((1, 1), jnp.float32)                        # eval mode: 0
        lowest_abs = jnp.max(info[:, 0, 0])
        lowest_rel = jnp.max(info[:, 1, 0])
        nstep = jnp.max(info[:, 2, 0]).astype(jnp.int32)
        return fused_feat, jac_loss, z_full.reshape(B, Mp1 * D), lowest_abs, lowest_rel, nstep

    def forward(self, features):
        feats = jnp.stack(features, axis=0).astype(jnp.float32)          # (M, B, D)
        fused_feat, jac_loss, z_vec, lo_abs, lo_rel, nstep = self._jit_forward(feats)
        lowest = lo_abs if self.stop_mode == 'abs' else lo_rel
        result = {'result': z_vec,                                       # list2vec layout
                  'lowest': lowest,                                      # device scalar
                  'nstep': nstep,                                        # device scalar
                  'lowest_abs': lo_abs,
                  'lowest_rel': lo_rel,
                  'abs_trace': [],
                  'rel_trace': []}
        return fused_feat, jac_loss, result


if __name__ == "__main__":
    B, D, M = 4, 32, 2     # batch, channel_dim, num_modals
    key = jax.random.PRNGKey(0)
    k_feat, k_param = jax.random.split(key)
    feat_keys = jax.random.split(k_feat, M)
    features = [jax.random.normal(feat_keys[i], (B, D), jnp.float32) for i in range(M)]

    model = DEQFusionPallas(channel_dim=D, num_modals=M, key=k_param,
                            f_thres=55, stop_mode='abs')
    fused_feat, jac_loss, result = model.forward(features)
    jax.block_until_ready((fused_feat, jac_loss, result['result'],
                           result['lowest'], result['nstep']))
    assert fused_feat.shape == (B, D)
    assert jac_loss.shape == (1, 1)
    assert bool(jnp.all(jnp.isfinite(fused_feat)))
    print("KERNEL_OK")
</pallas_src>

<mosaic_0001>
module attributes {stable_mosaic.version = 11 : i64} {
  func.func @kernel(%arg0: i32, %arg1: memref<8x384xf32, #tpu.memory_space<vmem>>, %arg2: memref<8x1xf32, #tpu.memory_space<vmem>>, %arg3: memref<128x128xbf16, #tpu.memory_space<vmem>>, %arg4: memref<2x128x128xbf16, #tpu.memory_space<vmem>>, %arg5: memref<2x1x128xf32, #tpu.memory_space<vmem>>, %arg6: memref<2x128x128xbf16, #tpu.memory_space<vmem>>, %arg7: memref<2x1x128xf32, #tpu.memory_space<vmem>>, %arg8: memref<2x1x128xf32, #tpu.memory_space<vmem>>, %arg9: memref<2x1x128xf32, #tpu.memory_space<vmem>>, %arg10: memref<2x1x128xf32, #tpu.memory_space<vmem>>, %arg11: memref<2x1x128xf32, #tpu.memory_space<vmem>>, %arg12: memref<2x1x128xf32, #tpu.memory_space<vmem>>, %arg13: memref<2x1x128xf32, #tpu.memory_space<vmem>>, %arg14: memref<128x128xbf16, #tpu.memory_space<vmem>>, %arg15: memref<1x128xf32, #tpu.memory_space<vmem>>, %arg16: memref<128x128xbf16, #tpu.memory_space<vmem>>, %arg17: memref<1x128xf32, #tpu.memory_space<vmem>>, %arg18: memref<1x128xf32, #tpu.memory_space<vmem>>, %arg19: memref<1x128xf32, #tpu.memory_space<vmem>>, %arg20: memref<8x384xf32, #tpu.memory_space<vmem>>, %arg21: memref<1x8x128xf32, #tpu.memory_space<vmem>>, %arg22: memref<6x8x384xf32, #tpu.memory_space<vmem>>, %arg23: memref<6x8x384xf32, #tpu.memory_space<vmem>>, %arg24: memref<8x384xf32, #tpu.memory_space<vmem>>, %arg25: memref<6x8x6xf32, #tpu.memory_space<vmem>>, %arg26: memref<2x1xf32, #tpu.memory_space<vmem>>, %arg27: memref<1xf32, #tpu.memory_space<smem>>, %arg28: memref<1xf32, #tpu.memory_space<smem>>, %arg29: memref<1xi32, #tpu.memory_space<smem>>, %arg30: memref<1xi32, #tpu.memory_space<smem>>) attributes {dimension_semantics = [#tpu.dimension_semantics<parallel>], iteration_bounds = array<i64: 1>, scalar_prefetch = 0 : i64, scratch_operands = 9 : i64, tpu.core_type = #tpu.core_type<tc>, window_params = [{transform_indices = @transform_0, window_bounds = array<i64: 8, 384>}, {transform_indices = @transform_1, window_bounds = array<i64: 8, 1>}, {pipeline_mode = #tpu.pipeline_mode<synchronous>, transform_indices = @transform_2, window_bounds = array<i64: 128, 128>}, {pipeline_mode = #tpu.pipeline_mode<synchronous>, transform_indices = @transform_3, window_bounds = array<i64: 2, 128, 128>}, {pipeline_mode = #tpu.pipeline_mode<synchronous>, transform_indices = @transform_4, window_bounds = array<i64: 2, 1, 128>}, {pipeline_mode = #tpu.pipeline_mode<synchronous>, transform_indices = @transform_5, window_bounds = array<i64: 2, 128, 128>}, {pipeline_mode = #tpu.pipeline_mode<synchronous>, transform_indices = @transform_6, window_bounds = array<i64: 2, 1, 128>}, {pipeline_mode = #tpu.pipeline_mode<synchronous>, transform_indices = @transform_7, window_bounds = array<i64: 2, 1, 128>}, {pipeline_mode = #tpu.pipeline_mode<synchronous>, transform_indices = @transform_8, window_bounds = array<i64: 2, 1, 128>}, {pipeline_mode = #tpu.pipeline_mode<synchronous>, transform_indices = @transform_9, window_bounds = array<i64: 2, 1, 128>}, {pipeline_mode = #tpu.pipeline_mode<synchronous>, transform_indices = @transform_10, window_bounds = array<i64: 2, 1, 128>}, {pipeline_mode = #tpu.pipeline_mode<synchronous>, transform_indices = @transform_11, window_bounds = array<i64: 2, 1, 128>}, {pipeline_mode = #tpu.pipeline_mode<synchronous>, transform_indices = @transform_12, window_bounds = array<i64: 2, 1, 128>}, {pipeline_mode = #tpu.pipeline_mode<synchronous>, transform_indices = @transform_13, window_bounds = array<i64: 128, 128>}, {pipeline_mode = #tpu.pipeline_mode<synchronous>, transform_indices = @transform_14, window_bounds = array<i64: 1, 128>}, {pipeline_mode = #tpu.pipeline_mode<synchronous>, transform_indices = @transform_15, window_bounds = array<i64: 128, 128>}, {pipeline_mode = #tpu.pipeline_mode<synchronous>, transform_indices = @transform_16, window_bounds = array<i64: 1, 128>}, {pipeline_mode = #tpu.pipeline_mode<synchronous>, transform_indices = @transform_17, window_bounds = array<i64: 1, 128>}, {pipeline_mode = #tpu.pipeline_mode<synchronous>, transform_indices = @transform_18, window_bounds = array<i64: 1, 128>}, {transform_indices = @transform_19, window_bounds = array<i64: 8, 384>}, {transform_indices = @transform_20, window_bounds = array<i64: 1, 8, 128>}]} {
    %0 = tpu.iota {dimensions = array<i32: 1>} : vector<8x6xi32>
    %cst = arith.constant 0.000000e+00 : f32
    %1 = vector.broadcast %cst : f32 to vector<6x8x384xf32>
    %c0 = arith.constant 0 : index
    %c0_0 = arith.constant 0 : index
    %c0_1 = arith.constant 0 : index
    %2 = vector.load %arg22[%c0, %c0_0, %c0_1] : memref<6x8x384xf32, #tpu.memory_space<vmem>>, vector<6x8x384xf32>
    tpu.vector_store %arg22[%c0, %c0_0, %c0_1], %1 {strides = array<i32>} : memref<6x8x384xf32, #tpu.memory_space<vmem>>, vector<6x8x384xf32>,
    %cst_2 = arith.constant 0.000000e+00 : f32
    %3 = vector.broadcast %cst_2 : f32 to vector<6x8x384xf32>
    %c0_3 = arith.constant 0 : index
    %c0_4 = arith.constant 0 : index
    %c0_5 = arith.constant 0 : index
    %4 = vector.load %arg23[%c0_3, %c0_4, %c0_5] : memref<6x8x384xf32, #tpu.memory_space<vmem>>, vector<6x8x384xf32>
    tpu.vector_store %arg23[%c0_3, %c0_4, %c0_5], %3 {strides = array<i32>} : memref<6x8x384xf32, #tpu.memory_space<vmem>>, vector<6x8x384xf32>,
    %cst_6 = arith.constant 0.000000e+00 : f32
    %5 = vector.broadcast %cst_6 : f32 to vector<6x8x6xf32>
    %c0_7 = arith.constant 0 : index
    %c0_8 = arith.constant 0 : index
    %c0_9 = arith.constant 0 : index
    %6 = vector.load %arg25[%c0_7, %c0_8, %c0_9] : memref<6x8x6xf32, #tpu.memory_space<vmem>>, vector<6x8x6xf32>
    tpu.vector_store %arg25[%c0_7, %c0_8, %c0_9], %5 {strides = array<i32>} : memref<6x8x6xf32, #tpu.memory_space<vmem>>, vector<6x8x6xf32>,
    %cst_10 = arith.constant 0.000000e+00 : f32
    %7 = vector.broadcast %cst_10 : f32 to vector<8x384xf32>
    %c0_11 = arith.constant 0 : index
    %c0_12 = arith.constant 0 : index
    %8 = vector.load %arg24[%c0_11, %c0_12] : memref<8x384xf32, #tpu.memory_space<vmem>>, vector<8x384xf32>
    tpu.vector_store %arg24[%c0_11, %c0_12], %7 {strides = array<i32>} : memref<8x384xf32, #tpu.memory_space<vmem>>, vector<8x384xf32>,
    %cst_13 = arith.constant 0.000000e+00 : f32
    %9 = vector.broadcast %cst_13 : f32 to vector<8x384xf32>
    %c0_14 = arith.constant 0 : index
    %c0_15 = arith.constant 0 : index
    %10 = vector.load %arg20[%c0_14, %c0_15] : memref<8x384xf32, #tpu.memory_space<vmem>>, vector<8x384xf32>
    tpu.vector_store %arg20[%c0_14, %c0_15], %9 {strides = array<i32>} : memref<8x384xf32, #tpu.memory_space<vmem>>, vector<8x384xf32>,
    %cst_16 = arith.constant 1.000000e+16 : f32
    %c0_17 = arith.constant 0 : index
    %11 = memref.load %arg27[%c0_17] : memref<1xf32, #tpu.memory_space<smem>>
    memref.store %cst_16, %arg27[%c0_17] : memref<1xf32, #tpu.memory_space<smem>>
    %cst_18 = arith.constant 1.000000e+16 : f32
    %c0_19 = arith.constant 0 : index
    %12 = memref.load %arg28[%c0_19] : memref<1xf32, #tpu.memory_space<smem>>
    memref.store %cst_18, %arg28[%c0_19] : memref<1xf32, #tpu.memory_space<smem>>
    %c0_i32 = arith.constant 0 : i32
    %c0_20 = arith.constant 0 : index
    %13 = memref.load %arg29[%c0_20] : memref<1xi32, #tpu.memory_space<smem>>
    memref.store %c0_i32, %arg29[%c0_20] : memref<1xi32, #tpu.memory_space<smem>>
    %c0_i32_21 = arith.constant 0 : i32
    %c0_22 = arith.constant 0 : index
    %14 = memref.load %arg30[%c0_22] : memref<1xi32, #tpu.memory_space<smem>>
    memref.store %c0_i32_21, %arg30[%c0_22] : memref<1xi32, #tpu.memory_space<smem>>
    %c0_23 = arith.constant 0 : index
    %c0_24 = arith.constant 0 : index
    %15 = vector.load %arg3[%c0_23, %c0_24] : memref<128x128xbf16, #tpu.memory_space<vmem>>, vector<128x128xbf16>
    %c0_25 = arith.constant 0 : index
    %c256 = arith.constant 256 : index
    %16 = vector.load %arg24[%c0_25, %c256] : memref<8x384xf32, #tpu.memory_space<vmem>>, vector<8x128xf32>
    %cst_26 = arith.constant 0.000000e+00 : f32
    %17 = vector.broadcast %cst_26 : f32 to vector<8x128xf32>
    %c0_27 = arith.constant 0 : index
    %c0_28 = arith.constant 0 : index
    %18 = vector.load %arg24[%c0_27, %c0_28] : memref<8x384xf32, #tpu.memory_space<vmem>>, vector<8x128xf32>
    %c0_29 = arith.constant 0 : index
    %c0_30 = arith.constant 0 : index
    %19 = vector.load %arg1[%c0_29, %c0_30] : memref<8x384xf32, #tpu.memory_space<vmem>>, vector<8x128xf32>
    %c0_31 = arith.constant 0 : index
    %c0_32 = arith.constant 0 : index
    %c0_33 = arith.constant 0 : index
    %20 = vector.load %arg4[%c0_31, %c0_32, %c0_33] : memref<2x128x128xbf16, #tpu.memory_space<vmem>>, vector<1x128x128xbf16>
    %21 = vector.shape_cast %20 : vector<1x128x128xbf16> to vector<128x128xbf16>
    %c0_34 = arith.constant 0 : index
    %c0_35 = arith.constant 0 : index
    %c0_36 = arith.constant 0 : index
    %22 = vector.load %arg5[%c0_34, %c0_35, %c0_36] : memref<2x1x128xf32, #tpu.memory_space<vmem>>, vector<1x1x128xf32>
    %23 = vector.shape_cast %22 : vector<1x1x128xf32> to vector<1x128xf32>
    %24 = arith.truncf %18 : vector<8x128xf32> to vector<8x128xbf16>
    %cst_37 = arith.constant dense<0.000000e+00> : vector<8x128xf32>
    %25 = tpu.matmul %24, %21, %cst_37 {dimension_numbers = #tpu.dot_dimension_numbers<[1], [0], [0], [1], [0, 0, 1, 1], [], []>} : vector<8x128xbf16>, vector<128x128xbf16>, vector<8x128xf32> -> vector<8x128xf32>
    %26 = vector.broadcast %23 : vector<1x128xf32> to vector<8x128xf32>
    %27 = arith.addf %25, %26 : vector<8x128xf32>
    %c0_38 = arith.constant 0 : index
    %c0_39 = arith.constant 0 : index
    %c0_40 = arith.constant 0 : index
    %28 = vector.load %arg8[%c0_38, %c0_39, %c0_40] : memref<2x1x128xf32, #tpu.memory_space<vmem>>, vector<1x1x128xf32>
    %29 = vector.shape_cast %28 : vector<1x1x128xf32> to vector<1x128xf32>
    %c0_41 = arith.constant 0 : index
    %c0_42 = arith.constant 0 : index
    %c0_43 = arith.constant 0 : index
    %30 = vector.load %arg9[%c0_41, %c0_42, %c0_43] : memref<2x1x128xf32, #tpu.memory_space<vmem>>, vector<1x1x128xf32>
    %31 = vector.shape_cast %30 : vector<1x1x128xf32> to vector<1x128xf32>
    %32 = arith.truncf %27 : vector<8x128xf32> to vector<8x128xbf16>
    %cst_44 = arith.constant dense<0.000000e+00> : vector<8x128xf32>
    %33 = tpu.matmul %32, %15, %cst_44 {dimension_numbers = #tpu.dot_dimension_numbers<[1], [0], [0], [1], [0, 0, 1, 1], [], []>} : vector<8x128xbf16>, vector<128x128xbf16>, vector<8x128xf32> -> vector<8x128xf32>
    %34 = arith.subf %27, %33 : vector<8x128xf32>
    %35 = arith.mulf %34, %34 : vector<8x128xf32>
    %36 = arith.truncf %35 : vector<8x128xf32> to vector<8x128xbf16>
    %cst_45 = arith.constant dense<0.000000e+00> : vector<8x128xf32>
    %37 = tpu.matmul %36, %15, %cst_45 {dimension_numbers = #tpu.dot_dimension_numbers<[1], [0], [0], [1], [0, 0, 1, 1], [], []>} : vector<8x128xbf16>, vector<128x128xbf16>, vector<8x128xf32> -> vector<8x128xf32>
    %cst_46 = arith.constant 9.99999974E-6 : f32
    %38 = vector.broadcast %cst_46 : f32 to vector<8x128xf32>
    %39 = arith.addf %37, %38 : vector<8x128xf32>
    %40 = math.rsqrt %39 : vector<8x128xf32>
    %41 = arith.mulf %34, %40 : vector<8x128xf32>
    %42 = vector.broadcast %29 : vector<1x128xf32> to vector<8x128xf32>
    %43 = arith.mulf %41, %42 : vector<8x128xf32>
    %44 = vector.broadcast %31 : vector<1x128xf32> to vector<8x128xf32>
    %45 = arith.addf %43, %44 : vector<8x128xf32>
    %cst_47 = arith.constant 0.000000e+00 : f32
    %46 = vector.broadcast %cst_47 : f32 to vector<8x128xf32>
    %47 = arith.maximumf %45, %46 : vector<8x128xf32>
    %c0_48 = arith.constant 0 : index
    %c0_49 = arith.constant 0 : index
    %c0_50 = arith.constant 0 : index
    %48 = vector.load %arg6[%c0_48, %c0_49, %c0_50] : memref<2x128x128xbf16, #tpu.memory_space<vmem>>, vector<1x128x128xbf16>
    %49 = vector.shape_cast %48 : vector<1x128x128xbf16> to vector<128x128xbf16>
    %c0_51 = arith.constant 0 : index
    %c0_52 = arith.constant 0 : index
    %c0_53 = arith.constant 0 : index
    %50 = vector.load %arg7[%c0_51, %c0_52, %c0_53] : memref<2x1x128xf32, #tpu.memory_space<vmem>>, vector<1x1x128xf32>
    %51 = vector.shape_cast %50 : vector<1x1x128xf32> to vector<1x128xf32>
    %52 = arith.truncf %47 : vector<8x128xf32> to vector<8x128xbf16>
    %cst_54 = arith.constant dense<0.000000e+00> : vector<8x128xf32>
    %53 = tpu.matmul %52, %49, %cst_54 {dimension_numbers = #tpu.dot_dimension_numbers<[1], [0], [0], [1], [0, 0, 1, 1], [], []>} : vector<8x128xbf16>, vector<128x128xbf16>, vector<8x128xf32> -> vector<8x128xf32>
    %54 = vector.broadcast %51 : vector<1x128xf32> to vector<8x128xf32>
    %55 = arith.addf %53, %54 : vector<8x128xf32>
    %56 = arith.addf %55, %19 : vector<8x128xf32>
    %c0_55 = arith.constant 0 : index
    %c0_56 = arith.constant 0 : index
    %c0_57 = arith.constant 0 : index
    %57 = vector.load %arg10[%c0_55, %c0_56, %c0_57] : memref<2x1x128xf32, #tpu.memory_space<vmem>>, vector<1x1x128xf32>
    %58 = vector.shape_cast %57 : vector<1x1x128xf32> to vector<1x128xf32>
    %c0_58 = arith.constant 0 : index
    %c0_59 = arith.constant 0 : index
    %c0_60 = arith.constant 0 : index
    %59 = vector.load %arg11[%c0_58, %c0_59, %c0_60] : memref<2x1x128xf32, #tpu.memory_space<vmem>>, vector<1x1x128xf32>
    %60 = vector.shape_cast %59 : vector<1x1x128xf32> to vector<1x128xf32>
    %61 = arith.truncf %56 : vector<8x128xf32> to vector<8x128xbf16>
    %cst_61 = arith.constant dense<0.000000e+00> : vector<8x128xf32>
    %62 = tpu.matmul %61, %15, %cst_61 {dimension_numbers = #tpu.dot_dimension_numbers<[1], [0], [0], [1], [0, 0, 1, 1], [], []>} : vector<8x128xbf16>, vector<128x128xbf16>, vector<8x128xf32> -> vector<8x128xf32>
    %63 = arith.subf %56, %62 : vector<8x128xf32>
    %64 = arith.mulf %63, %63 : vector<8x128xf32>
    %65 = arith.truncf %64 : vector<8x128xf32> to vector<8x128xbf16>
    %cst_62 = arith.constant dense<0.000000e+00> : vector<8x128xf32>
    %66 = tpu.matmul %65, %15, %cst_62 {dimension_numbers = #tpu.dot_dimension_numbers<[1], [0], [0], [1], [0, 0, 1, 1], [], []>} : vector<8x128xbf16>, vector<128x128xbf16>, vector<8x128xf32> -> vector<8x128xf32>
    %cst_63 = arith.constant 9.99999974E-6 : f32
    %67 = vector.broadcast %cst_63 : f32 to vector<8x128xf32>
    %68 = arith.addf %66, %67 : vector<8x128xf32>
    %69 = math.rsqrt %68 : vector<8x128xf32>
    %70 = arith.mulf %63, %69 : vector<8x128xf32>
    %71 = vector.broadcast %58 : vector<1x128xf32> to vector<8x128xf32>
    %72 = arith.mulf %70, %71 : vector<8x128xf32>
    %73 = vector.broadcast %60 : vector<1x128xf32> to vector<8x128xf32>
    %74 = arith.addf %72, %73 : vector<8x128xf32>
    %75 = arith.addf %74, %18 : vector<8x128xf32>
    %cst_64 = arith.constant 0.000000e+00 : f32
    %76 = vector.broadcast %cst_64 : f32 to vector<8x128xf32>
    %77 = arith.maximumf %75, %76 : vector<8x128xf32>
    %c0_65 = arith.constant 0 : index
    %c0_66 = arith.constant 0 : index
    %c0_67 = arith.constant 0 : index
    %78 = vector.load %arg12[%c0_65, %c0_66, %c0_67] : memref<2x1x128xf32, #tpu.memory_space<vmem>>, vector<1x1x128xf32>
    %79 = vector.shape_cast %78 : vector<1x1x128xf32> to vector<1x128xf32>
    %c0_68 = arith.constant 0 : index
    %c0_69 = arith.constant 0 : index
    %c0_70 = arith.constant 0 : index
    %80 = vector.load %arg13[%c0_68, %c0_69, %c0_70] : memref<2x1x128xf32, #tpu.memory_space<vmem>>, vector<1x1x128xf32>
    %81 = vector.shape_cast %80 : vector<1x1x128xf32> to vector<1x128xf32>
    %82 = arith.truncf %77 : vector<8x128xf32> to vector<8x128xbf16>
    %cst_71 = arith.constant dense<0.000000e+00> : vector<8x128xf32>
    %83 = tpu.matmul %82, %15, %cst_71 {dimension_numbers = #tpu.dot_dimension_numbers<[1], [0], [0], [1], [0, 0, 1, 1], [], []>} : vector<8x128xbf16>, vector<128x128xbf16>, vector<8x128xf32> -> vector<8x128xf32>
    %84 = arith.subf %77, %83 : vector<8x128xf32>
    %85 = arith.mulf %84, %84 : vector<8x128xf32>
    %86 = arith.truncf %85 : vector<8x128xf32> to vector<8x128xbf16>
    %cst_72 = arith.constant dense<0.000000e+00> : vector<8x128xf32>
    %87 = tpu.matmul %86, %15, %cst_72 {dimension_numbers = #tpu.dot_dimension_numbers<[1], [0], [0], [1], [0, 0, 1, 1], [], []>} : vector<8x128xbf16>, vector<128x128xbf16>, vector<8x128xf32> -> vector<8x128xf32>
    %cst_73 = arith.constant 9.99999974E-6 : f32
    %88 = vector.broadcast %cst_73 : f32 to vector<8x128xf32>
    %89 = arith.addf %87, %88 : vector<8x128xf32>
    %90 = math.rsqrt %89 : vector<8x128xf32>
    %91 = arith.mulf %84, %90 : vector<8x128xf32>
    %92 = vector.broadcast %79 : vector<1x128xf32> to vector<8x128xf32>
    %93 = arith.mulf %91, %92 : vector<8x128xf32>
    %94 = vector.broadcast %81 : vector<1x128xf32> to vector<8x128xf32>
    %95 = arith.addf %93, %94 : vector<8x128xf32>
    %96 = vector.shape_cast %95 : vector<8x128xf32> to vector<1x8x128xf32>
    %c0_74 = arith.constant 0 : index
    %c0_75 = arith.constant 0 : index
    %c0_76 = arith.constant 0 : index
    %97 = vector.load %arg22[%c0_74, %c0_75, %c0_76] : memref<6x8x384xf32, #tpu.memory_space<vmem>>, vector<1x8x128xf32>
    tpu.vector_store %arg22[%c0_74, %c0_75, %c0_76], %96 {strides = array<i32>} : memref<6x8x384xf32, #tpu.memory_space<vmem>>, vector<1x8x128xf32>,
    %98 = arith.addf %17, %95 : vector<8x128xf32>
    %c0_77 = arith.constant 0 : index
    %c128 = arith.constant 128 : index
    %99 = vector.load %arg24[%c0_77, %c128] : memref<8x384xf32, #tpu.memory_space<vmem>>, vector<8x128xf32>
    %c0_78 = arith.constant 0 : index
    %c128_79 = arith.constant 128 : index
    %100 = vector.load %arg1[%c0_78, %c128_79] : memref<8x384xf32, #tpu.memory_space<vmem>>, vector<8x128xf32>
    %c1 = arith.constant 1 : index
    %c0_80 = arith.constant 0 : index
    %c0_81 = arith.constant 0 : index
    %101 = vector.load %arg4[%c1, %c0_80, %c0_81] : memref<2x128x128xbf16, #tpu.memory_space<vmem>>, vector<1x128x128xbf16>
    %102 = vector.shape_cast %101 : vector<1x128x128xbf16> to vector<128x128xbf16>
    %c1_82 = arith.constant 1 : index
    %c0_83 = arith.constant 0 : index
    %c0_84 = arith.constant 0 : index
    %103 = vector.load %arg5[%c1_82, %c0_83, %c0_84] : memref<2x1x128xf32, #tpu.memory_space<vmem>>, vector<1x1x128xf32>
    %104 = vector.shape_cast %103 : vector<1x1x128xf32> to vector<1x128xf32>
    %105 = arith.truncf %99 : vector<8x128xf32> to vector<8x128xbf16>
    %cst_85 = arith.constant dense<0.000000e+00> : vector<8x128xf32>
    %106 = tpu.matmul %105, %102, %cst_85 {dimension_numbers = #tpu.dot_dimension_numbers<[1], [0], [0], [1], [0, 0, 1, 1], [], []>} : vector<8x128xbf16>, vector<128x128xbf16>, vector<8x128xf32> -> vector<8x128xf32>
    %107 = vector.broadcast %104 : vector<1x128xf32> to vector<8x128xf32>
    %108 = arith.addf %106, %107 : vector<8x128xf32>
    %c1_86 = arith.constant 1 : index
    %c0_87 = arith.constant 0 : index
    %c0_88 = arith.constant 0 : index
    %109 = vector.load %arg8[%c1_86, %c0_87, %c0_88] : memref<2x1x128xf32, #tpu.memory_space<vmem>>, vector<1x1x128xf32>
    %110 = vector.shape_cast %109 : vector<1x1x128xf32> to vector<1x128xf32>
    %c1_89 = arith.constant 1 : index
    %c0_90 = arith.constant 0 : index
    %c0_91 = arith.constant 0 : index
    %111 = vector.load %arg9[%c1_89, %c0_90, %c0_91] : memref<2x1x128xf32, #tpu.memory_space<vmem>>, vector<1x1x128xf32>
    %112 = vector.shape_cast %111 : vector<1x1x128xf32> to vector<1x128xf32>
    %113 = arith.truncf %108 : vector<8x128xf32> to vector<8x128xbf16>
    %cst_92 = arith.constant dense<0.000000e+00> : vector<8x128xf32>
    %114 = tpu.matmul %113, %15, %cst_92 {dimension_numbers = #tpu.dot_dimension_numbers<[1], [0], [0], [1], [0, 0, 1, 1], [], []>} : vector<8x128xbf16>, vector<128x128xbf16>, vector<8x128xf32> -> vector<8x128xf32>
    %115 = arith.subf %108, %114 : vector<8x128xf32>
    %116 = arith.mulf %115, %115 : vector<8x128xf32>
    %117 = arith.truncf %116 : vector<8x128xf32> to vector<8x128xbf16>
    %cst_93 = arith.constant dense<0.000000e+00> : vector<8x128xf32>
    %118 = tpu.matmul %117, %15, %cst_93 {dimension_numbers = #tpu.dot_dimension_numbers<[1], [0], [0], [1], [0, 0, 1, 1], [], []>} : vector<8x128xbf16>, vector<128x128xbf16>, vector<8x128xf32> -> vector<8x128xf32>
    %cst_94 = arith.constant 9.99999974E-6 : f32
    %119 = vector.broadcast %cst_94 : f32 to vector<8x128xf32>
    %120 = arith.addf %118, %119 : vector<8x128xf32>
    %121 = math.rsqrt %120 : vector<8x128xf32>
    %122 = arith.mulf %115, %121 : vector<8x128xf32>
    %123 = vector.broadcast %110 : vector<1x128xf32> to vector<8x128xf32>
    %124 = arith.mulf %122, %123 : vector<8x128xf32>
    %125 = vector.broadcast %112 : vector<1x128xf32> to vector<8x128xf32>
    %126 = arith.addf %124, %125 : vector<8x128xf32>
    %cst_95 = arith.constant 0.000000e+00 : f32
    %127 = vector.broadcast %cst_95 : f32 to vector<8x128xf32>
    %128 = arith.maximumf %126, %127 : vector<8x128xf32>
    %c1_96 = arith.constant 1 : index
    %c0_97 = arith.constant 0 : index
    %c0_98 = arith.constant 0 : index
    %129 = vector.load %arg6[%c1_96, %c0_97, %c0_98] : memref<2x128x128xbf16, #tpu.memory_space<vmem>>, vector<1x128x128xbf16>
    %130 = vector.shape_cast %129 : vector<1x128x128xbf16> to vector<128x128xbf16>
    %c1_99 = arith.constant 1 : index
    %c0_100 = arith.constant 0 : index
    %c0_101 = arith.constant 0 : index
    %131 = vector.load %arg7[%c1_99, %c0_100, %c0_101] : memref<2x1x128xf32, #tpu.memory_space<vmem>>, vector<1x1x128xf32>
    %132 = vector.shape_cast %131 : vector<1x1x128xf32> to vector<1x128xf32>
    %133 = arith.truncf %128 : vector<8x128xf32> to vector<8x128xbf16>
    %cst_102 = arith.constant dense<0.000000e+00> : vector<8x128xf32>
    %134 = tpu.matmul %133, %130, %cst_102 {dimension_numbers = #tpu.dot_dimension_numbers<[1], [0], [0], [1], [0, 0, 1, 1], [], []>} : vector<8x128xbf16>, vector<128x128xbf16>, vector<8x128xf32> -> vector<8x128xf32>
    %135 = vector.broadcast %132 : vector<1x128xf32> to vector<8x128xf32>
    %136 = arith.addf %134, %135 : vector<8x128xf32>
    %137 = arith.addf %136, %100 : vector<8x128xf32>
    %c1_103 = arith.constant 1 : index
    %c0_104 = arith.constant 0 : index
    %c0_105 = arith.constant 0 : index
    %138 = vector.load %arg10[%c1_103, %c0_104, %c0_105] : memref<2x1x128xf32, #tpu.memory_space<vmem>>, vector<1x1x128xf32>
    %139 = vector.shape_cast %138 : vector<1x1x128xf32> to vector<1x128xf32>
    %c1_106 = arith.constant 1 : index
    %c0_107 = arith.constant 0 : index
    %c0_108 = arith.constant 0 : index
    %140 = vector.load %arg11[%c1_106, %c0_107, %c0_108] : memref<2x1x128xf32, #tpu.memory_space<vmem>>, vector<1x1x128xf32>
    %141 = vector.shape_cast %140 : vector<1x1x128xf32> to vector<1x128xf32>
    %142 = arith.truncf %137 : vector<8x128xf32> to vector<8x128xbf16>
    %cst_109 = arith.constant dense<0.000000e+00> : vector<8x128xf32>
    %143 = tpu.matmul %142, %15, %cst_109 {dimension_numbers = #tpu.dot_dimension_numbers<[1], [0], [0], [1], [0, 0, 1, 1], [], []>} : vector<8x128xbf16>, vector<128x128xbf16>, vector<8x128xf32> -> vector<8x128xf32>
    %144 = arith.subf %137, %143 : vector<8x128xf32>
    %145 = arith.mulf %144, %144 : vector<8x128xf32>
    %146 = arith.truncf %145 : vector<8x128xf32> to vector<8x128xbf16>
    %cst_110 = arith.constant dense<0.000000e+00> : vector<8x128xf32>
    %147 = tpu.matmul %146, %15, %cst_110 {dimension_numbers = #tpu.dot_dimension_numbers<[1], [0], [0], [1], [0, 0, 1, 1], [], []>} : vector<8x128xbf16>, vector<128x128xbf16>, vector<8x128xf32> -> vector<8x128xf32>
    %cst_111 = arith.constant 9.99999974E-6 : f32
    %148 = vector.broadcast %cst_111 : f32 to vector<8x128xf32>
    %149 = arith.addf %147, %148 : vector<8x128xf32>
    %150 = math.rsqrt %149 : vector<8x128xf32>
    %151 = arith.mulf %144, %150 : vector<8x128xf32>
    %152 = vector.broadcast %139 : vector<1x128xf32> to vector<8x128xf32>
    %153 = arith.mulf %151, %152 : vector<8x128xf32>
    %154 = vector.broadcast %141 : vector<1x128xf32> to vector<8x128xf32>
    %155 = arith.addf %153, %154 : vector<8x128xf32>
    %156 = arith.addf %155, %99 : vector<8x128xf32>
    %cst_112 = arith.constant 0.000000e+00 : f32
    %157 = vector.broadcast %cst_112 : f32 to vector<8x128xf32>
    %158 = arith.maximumf %156, %157 : vector<8x128xf32>
    %c1_113 = arith.constant 1 : index
    %c0_114 = arith.constant 0 : index
    %c0_115 = arith.constant 0 : index
    %159 = vector.load %arg12[%c1_113, %c0_114, %c0_115] : memref<2x1x128xf32, #tpu.memory_space<vmem>>, vector<1x1x128xf32>
    %160 = vector.shape_cast %159 : vector<1x1x128xf32> to vector<1x128xf32>
    %c1_116 = arith.constant 1 : index
    %c0_117 = arith.constant 0 : index
    %c0_118 = arith.constant 0 : index
    %161 = vector.load %arg13[%c1_116, %c0_117, %c0_118] : memref<2x1x128xf32, #tpu.memory_space<vmem>>, vector<1x1x128xf32>
    %162 = vector.shape_cast %161 : vector<1x1x128xf32> to vector<1x128xf32>
    %163 = arith.truncf %158 : vector<8x128xf32> to vector<8x128xbf16>
    %cst_119 = arith.constant dense<0.000000e+00> : vector<8x128xf32>
    %164 = tpu.matmul %163, %15, %cst_119 {dimension_numbers = #tpu.dot_dimension_numbers<[1], [0], [0], [1], [0, 0, 1, 1], [], []>} : vector<8x128xbf16>, vector<128x128xbf16>, vector<8x128xf32> -> vector<8x128xf32>
    %165 = arith.subf %158, %164 : vector<8x128xf32>
    %166 = arith.mulf %165, %165 : vector<8x128xf32>
    %167 = arith.truncf %166 : vector<8x128xf32> to vector<8x128xbf16>
    %cst_120 = arith.constant dense<0.000000e+00> : vector<8x128xf32>
    %168 = tpu.matmul %167, %15, %cst_120 {dimension_numbers = #tpu.dot_dimension_numbers<[1], [0], [0], [1], [0, 0, 1, 1], [], []>} : vector<8x128xbf16>, vector<128x128xbf16>, vector<8x128xf32> -> vector<8x128xf32>
    %cst_121 = arith.constant 9.99999974E-6 : f32
    %169 = vector.broadcast %cst_121 : f32 to vector<8x128xf32>
    %170 = arith.addf %168, %169 : vector<8x128xf32>
    %171 = math.rsqrt %170 : vector<8x128xf32>
    %172 = arith.mulf %165, %171 : vector<8x128xf32>
    %173 = vector.broadcast %160 : vector<1x128xf32> to vector<8x128xf32>
    %174 = arith.mulf %172, %173 : vector<8x128xf32>
    %175 = vector.broadcast %162 : vector<1x128xf32> to vector<8x128xf32>
    %176 = arith.addf %174, %175 : vector<8x128xf32>
    %177 = vector.shape_cast %176 : vector<8x128xf32> to vector<1x8x128xf32>
    %c0_122 = arith.constant 0 : index
    %c0_123 = arith.constant 0 : index
    %c128_124 = arith.constant 128 : index
    %178 = vector.load %arg22[%c0_122, %c0_123, %c128_124] : memref<6x8x384xf32, #tpu.memory_space<vmem>>, vector<1x8x128xf32>
    tpu.vector_store %arg22[%c0_122, %c0_123, %c128_124], %177 {strides = array<i32>} : memref<6x8x384xf32, #tpu.memory_space<vmem>>, vector<1x8x128xf32>,
    %179 = arith.addf %98, %176 : vector<8x128xf32>
    %cst_125 = arith.constant 2.000000e+00 : f32
    %180 = vector.broadcast %cst_125 : f32 to vector<8x128xf32>
    %181 = arith.mulf %180, %16 : vector<8x128xf32>
    %182 = arith.addf %179, %181 : vector<8x128xf32>
    %183 = arith.truncf %182 : vector<8x128xf32> to vector<8x128xbf16>
    %c0_126 = arith.constant 0 : index
    %c0_127 = arith.constant 0 : index
    %184 = vector.load %arg14[%c0_126, %c0_127] : memref<128x128xbf16, #tpu.memory_space<vmem>>, vector<128x128xbf16>
    %cst_128 = arith.constant dense<0.000000e+00> : vector<8x128xf32>
    %185 = tpu.matmul %183, %184, %cst_128 {dimension_numbers = #tpu.dot_dimension_numbers<[1], [0], [0], [1], [0, 0, 1, 1], [], []>} : vector<8x128xbf16>, vector<128x128xbf16>, vector<8x128xf32> -> vector<8x128xf32>
    %c0_129 = arith.constant 0 : index
    %c0_130 = arith.constant 0 : index
    %186 = vector.load %arg15[%c0_129, %c0_130] : memref<1x128xf32, #tpu.memory_space<vmem>>, vector<1x128xf32>
    %cst_131 = arith.constant 2.000000e+00 : f32
    %187 = vector.broadcast %cst_131 : f32 to vector<1x128xf32>
    %188 = arith.mulf %187, %186 : vector<1x128xf32>
    %189 = vector.broadcast %188 : vector<1x128xf32> to vector<8x128xf32>
    %190 = arith.addf %185, %189 : vector<8x128xf32>
    %191 = arith.mulf %16, %190 : vector<8x128xf32>
    %c0_132 = arith.constant 0 : index
    %c0_133 = arith.constant 0 : index
    %192 = vector.load %arg16[%c0_132, %c0_133] : memref<128x128xbf16, #tpu.memory_space<vmem>>, vector<128x128xbf16>
    %c0_134 = arith.constant 0 : index
    %c0_135 = arith.constant 0 : index
    %193 = vector.load %arg17[%c0_134, %c0_135] : memref<1x128xf32, #tpu.memory_space<vmem>>, vector<1x128xf32>
    %194 = arith.truncf %191 : vector<8x128xf32> to vector<8x128xbf16>
    %cst_136 = arith.constant dense<0.000000e+00> : vector<8x128xf32>
    %195 = tpu.matmul %194, %192, %cst_136 {dimension_numbers = #tpu.dot_dimension_numbers<[1], [0], [0], [1], [0, 0, 1, 1], [], []>} : vector<8x128xbf16>, vector<128x128xbf16>, vector<8x128xf32> -> vector<8x128xf32>
    %196 = vector.broadcast %193 : vector<1x128xf32> to vector<8x128xf32>
    %197 = arith.addf %195, %196 : vector<8x128xf32>
    %c0_137 = arith.constant 0 : index
    %c256_138 = arith.constant 256 : index
    %198 = vector.load %arg1[%c0_137, %c256_138] : memref<8x384xf32, #tpu.memory_space<vmem>>, vector<8x128xf32>
    %199 = arith.addf %197, %198 : vector<8x128xf32>
    %cst_139 = arith.constant 0.000000e+00 : f32
    %200 = vector.broadcast %cst_139 : f32 to vector<8x128xf32>
    %201 = arith.maximumf %199, %200 : vector<8x128xf32>
    %c0_140 = arith.constant 0 : index
    %c0_141 = arith.constant 0 : index
    %202 = vector.load %arg18[%c0_140, %c0_141] : memref<1x128xf32, #tpu.memory_space<vmem>>, vector<1x128xf32>
    %c0_142 = arith.constant 0 : index
    %c0_143 = arith.constant 0 : index
    %203 = vector.load %arg19[%c0_142, %c0_143] : memref<1x128xf32, #tpu.memory_space<vmem>>, vector<1x128xf32>
    %204 = arith.truncf %201 : vector<8x128xf32> to vector<8x128xbf16>
    %cst_144 = arith.constant dense<0.000000e+00> : vector<8x128xf32>
    %205 = tpu.matmul %204, %15, %cst_144 {dimension_numbers = #tpu.dot_dimension_numbers<[1], [0], [0], [1], [0, 0, 1, 1], [], []>} : vector<8x128xbf16>, vector<128x128xbf16>, vector<8x128xf32> -> vector<8x128xf32>
    %206 = arith.subf %201, %205 : vector<8x128xf32>
    %207 = arith.mulf %206, %206 : vector<8x128xf32>
    %208 = arith.truncf %207 : vector<8x128xf32> to vector<8x128xbf16>
    %cst_145 = arith.constant dense<0.000000e+00> : vector<8x128xf32>
    %209 = tpu.matmul %208, %15, %cst_145 {dimension_numbers = #tpu.dot_dimension_numbers<[1], [0], [0], [1], [0, 0, 1, 1], [], []>} : vector<8x128xbf16>, vector<128x128xbf16>, vector<8x128xf32> -> vector<8x128xf32>
    %cst_146 = arith.constant 9.99999974E-6 : f32
    %210 = vector.broadcast %cst_146 : f32 to vector<8x128xf32>
    %211 = arith.addf %209, %210 : vector<8x128xf32>
    %212 = math.rsqrt %211 : vector<8x128xf32>
    %213 = arith.mulf %206, %212 : vector<8x128xf32>
    %214 = vector.broadcast %202 : vector<1x128xf32> to vector<8x128xf32>
    %215 = arith.mulf %213, %214 : vector<8x128xf32>
    %216 = vector.broadcast %203 : vector<1x128xf32> to vector<8x128xf32>
    %217 = arith.addf %215, %216 : vector<8x128xf32>
    %218 = vector.shape_cast %217 : vector<8x128xf32> to vector<1x8x128xf32>
    %c0_147 = arith.constant 0 : index
    %c0_148 = arith.constant 0 : index
    %c256_149 = arith.constant 256 : index
    %219 = vector.load %arg22[%c0_147, %c0_148, %c256_149] : memref<6x8x384xf32, #tpu.memory_space<vmem>>, vector<1x8x128xf32>
    tpu.vector_store %arg22[%c0_147, %c0_148, %c256_149], %218 {strides = array<i32>} : memref<6x8x384xf32, #tpu.memory_space<vmem>>, vector<1x8x128xf32>,
    %cst_150 = arith.constant 0.000000e+00 : f32
    %220 = vector.broadcast %cst_150 : f32 to vector<8x1xf32>
    %cst_151 = arith.constant 0.000000e+00 : f32
    %221 = vector.broadcast %cst_151 : f32 to vector<8x1xf32>
    %cst_152 = arith.constant 0.000000e+00 : f32
    %222 = vector.broadcast %cst_152 : f32 to vector<8x1xf32>
    %cst_153 = arith.constant 0.000000e+00 : f32
    %223 = vector.broadcast %cst_153 : f32 to vector<8x1xf32>
    %cst_154 = arith.constant 0.000000e+00 : f32
    %224 = vector.broadcast %cst_154 : f32 to vector<8x1xf32>
    %cst_155 = arith.constant 0.000000e+00 : f32
    %225 = vector.broadcast %cst_155 : f32 to vector<8x1xf32>
    %c0_156 = arith.constant 0 : index
    %c0_157 = arith.constant 0 : index
    %c0_158 = arith.constant 0 : index
    %226 = vector.load %arg22[%c0_156, %c0_157, %c0_158] : memref<6x8x384xf32, #tpu.memory_space<vmem>>, vector<1x8x128xf32>
    %227 = vector.shape_cast %226 : vector<1x8x128xf32> to vector<8x128xf32>
    %c0_159 = arith.constant 0 : index
    %c0_160 = arith.constant 0 : index
    %228 = vector.load %arg24[%c0_159, %c0_160] : memref<8x384xf32, #tpu.memory_space<vmem>>, vector<8x128xf32>
    %229 = arith.subf %227, %228 : vector<8x128xf32>
    %230 = vector.shape_cast %229 : vector<8x128xf32> to vector<1x8x128xf32>
    %c0_161 = arith.constant 0 : index
    %c0_162 = arith.constant 0 : index
    %c0_163 = arith.constant 0 : index
    %231 = vector.load %arg23[%c0_161, %c0_162, %c0_163] : memref<6x8x384xf32, #tpu.memory_space<vmem>>, vector<1x8x128xf32>
    tpu.vector_store %arg23[%c0_161, %c0_162, %c0_163], %230 {strides = array<i32>} : memref<6x8x384xf32, #tpu.memory_space<vmem>>, vector<1x8x128xf32>,
    %c0_164 = arith.constant 0 : index
    %c0_165 = arith.constant 0 : index
    %c0_166 = arith.constant 0 : index
    %232 = vector.load %arg23[%c0_164, %c0_165, %c0_166] : memref<6x8x384xf32, #tpu.memory_space<vmem>>, vector<1x8x128xf32>
    %233 = vector.shape_cast %232 : vector<1x8x128xf32> to vector<8x128xf32>
    %234 = arith.mulf %229, %233 : vector<8x128xf32>
    %cst_167 = arith.constant dense<0.000000e+00> : vector<8xf32>
    %235 = vector.multi_reduction <add>, %234, %cst_167 [1] : vector<8x128xf32> to vector<8xf32>
    %236 = vector.shape_cast %235 : vector<8xf32> to vector<8x1xf32>
    %237 = arith.addf %220, %236 : vector<8x1xf32>
    %c1_168 = arith.constant 1 : index
    %c0_169 = arith.constant 0 : index
    %c0_170 = arith.constant 0 : index
    %238 = vector.load %arg23[%c1_168, %c0_169, %c0_170] : memref<6x8x384xf32, #tpu.memory_space<vmem>>, vector<1x8x128xf32>
    %239 = vector.shape_cast %238 : vector<1x8x128xf32> to vector<8x128xf32>
    %240 = arith.mulf %229, %239 : vector<8x128xf32>
    %cst_171 = arith.constant dense<0.000000e+00> : vector<8xf32>
    %241 = vector.multi_reduction <add>, %240, %cst_171 [1] : vector<8x128xf32> to vector<8xf32>
    %242 = vector.shape_cast %241 : vector<8xf32> to vector<8x1xf32>
    %243 = arith.addf %221, %242 : vector<8x1xf32>
    %c2 = arith.constant 2 : index
    %c0_172 = arith.constant 0 : index
    %c0_173 = arith.constant 0 : index
    %244 = vector.load %arg23[%c2, %c0_172, %c0_173] : memref<6x8x384xf32, #tpu.memory_space<vmem>>, vector<1x8x128xf32>
    %245 = vector.shape_cast %244 : vector<1x8x128xf32> to vector<8x128xf32>
    %246 = arith.mulf %229, %245 : vector<8x128xf32>
    %cst_174 = arith.constant dense<0.000000e+00> : vector<8xf32>
    %247 = vector.multi_reduction <add>, %246, %cst_174 [1] : vector<8x128xf32> to vector<8xf32>
    %248 = vector.shape_cast %247 : vector<8xf32> to vector<8x1xf32>
    %249 = arith.addf %222, %248 : vector<8x1xf32>
    %c3 = arith.constant 3 : index
    %c0_175 = arith.constant 0 : index
    %c0_176 = arith.constant 0 : index
    %250 = vector.load %arg23[%c3, %c0_175, %c0_176] : memref<6x8x384xf32, #tpu.memory_space<vmem>>, vector<1x8x128xf32>
    %251 = vector.shape_cast %250 : vector<1x8x128xf32> to vector<8x128xf32>
    %252 = arith.mulf %229, %251 : vector<8x128xf32>
    %cst_177 = arith.constant dense<0.000000e+00> : vector<8xf32>
    %253 = vector.multi_reduction <add>, %252, %cst_177 [1] : vector<8x128xf32> to vector<8xf32>
    %254 = vector.shape_cast %253 : vector<8xf32> to vector<8x1xf32>
    %255 = arith.addf %223, %254 : vector<8x1xf32>
    %c4 = arith.constant 4 : index
    %c0_178 = arith.constant 0 : index
    %c0_179 = arith.constant 0 : index
    %256 = vector.load %arg23[%c4, %c0_178, %c0_179] : memref<6x8x384xf32, #tpu.memory_space<vmem>>, vector<1x8x128xf32>
    %257 = vector.shape_cast %256 : vector<1x8x128xf32> to vector<8x128xf32>
    %258 = arith.mulf %229, %257 : vector<8x128xf32>
    %cst_180 = arith.constant dense<0.000000e+00> : vector<8xf32>
    %259 = vector.multi_reduction <add>, %258, %cst_180 [1] : vector<8x128xf32> to vector<8xf32>
    %260 = vector.shape_cast %259 : vector<8xf32> to vector<8x1xf32>
    %261 = arith.addf %224, %260 : vector<8x1xf32>
    %c5 = arith.constant 5 : index
    %c0_181 = arith.constant 0 : index
    %c0_182 = arith.constant 0 : index
    %262 = vector.load %arg23[%c5, %c0_181, %c0_182] : memref<6x8x384xf32, #tpu.memory_space<vmem>>, vector<1x8x128xf32>
    %263 = vector.shape_cast %262 : vector<1x8x128xf32> to vector<8x128xf32>
    %264 = arith.mulf %229, %263 : vector<8x128xf32>
    %cst_183 = arith.constant dense<0.000000e+00> : vector<8xf32>
    %265 = vector.multi_reduction <add>, %264, %cst_183 [1] : vector<8x128xf32> to vector<8xf32>
    %266 = vector.shape_cast %265 : vector<8xf32> to vector<8x1xf32>
    %267 = arith.addf %225, %266 : vector<8x1xf32>
    %c0_184 = arith.constant 0 : index
    %c0_185 = arith.constant 0 : index
    %c128_186 = arith.constant 128 : index
    %268 = vector.load %arg22[%c0_184, %c0_185, %c128_186] : memref<6x8x384xf32, #tpu.memory_space<vmem>>, vector<1x8x128xf32>
    %269 = vector.shape_cast %268 : vector<1x8x128xf32> to vector<8x128xf32>
    %c0_187 = arith.constant 0 : index
    %c128_188 = arith.constant 128 : index
    %270 = vector.load %arg24[%c0_187, %c128_188] : memref<8x384xf32, #tpu.memory_space<vmem>>, vector<8x128xf32>
    %271 = arith.subf %269, %270 : vector<8x128xf32>
    %272 = vector.shape_cast %271 : vector<8x128xf32> to vector<1x8x128xf32>
    %c0_189 = arith.constant 0 : index
    %c0_190 = arith.constant 0 : index
    %c128_191 = arith.constant 128 : index
    %273 = vector.load %arg23[%c0_189, %c0_190, %c128_191] : memref<6x8x384xf32, #tpu.memory_space<vmem>>, vector<1x8x128xf32>
    tpu.vector_store %arg23[%c0_189, %c0_190, %c128_191], %272 {strides = array<i32>} : memref<6x8x384xf32, #tpu.memory_space<vmem>>, vector<1x8x128xf32>,
    %c0_192 = arith.constant 0 : index
    %c0_193 = arith.constant 0 : index
    %c128_194 = arith.constant 128 : index
    %274 = vector.load %arg23[%c0_192, %c0_193, %c128_194] : memref<6x8x384xf32, #tpu.memory_space<vmem>>, vector<1x8x128xf32>
    %275 = vector.shape_cast %274 : vector<1x8x128xf32> to vector<8x128xf32>
    %276 = arith.mulf %271, %275 : vector<8x128xf32>
    %cst_195 = arith.constant dense<0.000000e+00> : vector<8xf32>
    %277 = vector.multi_reduction <add>, %276, %cst_195 [1] : vector<8x128xf32> to vector<8xf32>
    %278 = vector.shape_cast %277 : vector<8xf32> to vector<8x1xf32>
    %279 = arith.addf %237, %278 : vector<8x1xf32>
    %c1_196 = arith.constant 1 : index
    %c0_197 = arith.constant 0 : index
    %c128_198 = arith.constant 128 : index
    %280 = vector.load %arg23[%c1_196, %c0_197, %c128_198] : memref<6x8x384xf32, #tpu.memory_space<vmem>>, vector<1x8x128xf32>
    %281 = vector.shape_cast %280 : vector<1x8x128xf32> to vector<8x128xf32>
    %282 = arith.mulf %271, %281 : vector<8x128xf32>
    %cst_199 = arith.constant dense<0.000000e+00> : vector<8xf32>
    %283 = vector.multi_reduction <add>, %282, %cst_199 [1] : vector<8x128xf32> to vector<8xf32>
    %284 = vector.shape_cast %283 : vector<8xf32> to vector<8x1xf32>
    %285 = arith.addf %243, %284 : vector<8x1xf32>
    %c2_200 = arith.constant 2 : index
    %c0_201 = arith.constant 0 : index
    %c128_202 = arith.constant 128 : index
    %286 = vector.load %arg23[%c2_200, %c0_201, %c128_202] : memref<6x8x384xf32, #tpu.memory_space<vmem>>, vector<1x8x128xf32>
    %287 = vector.shape_cast %286 : vector<1x8x128xf32> to vector<8x128xf32>
    %288 = arith.mulf %271, %287 : vector<8x128xf32>
    %cst_203 = arith.constant dense<0.000000e+00> : vector<8xf32>
    %289 = vector.multi_reduction <add>, %288, %cst_203 [1] : vector<8x128xf32> to vector<8xf32>
    %290 = vector.shape_cast %289 : vector<8xf32> to vector<8x1xf32>
    %291 = arith.addf %249, %290 : vector<8x1xf32>
    %c3_204 = arith.constant 3 : index
    %c0_205 = arith.constant 0 : index
    %c128_206 = arith.constant 128 : index
    %292 = vector.load %arg23[%c3_204, %c0_205, %c128_206] : memref<6x8x384xf32, #tpu.memory_space<vmem>>, vector<1x8x128xf32>
    %293 = vector.shape_cast %292 : vector<1x8x128xf32> to vector<8x128xf32>
    %294 = arith.mulf %271, %293 : vector<8x128xf32>
    %cst_207 = arith.constant dense<0.000000e+00> : vector<8xf32>
    %295 = vector.multi_reduction <add>, %294, %cst_207 [1] : vector<8x128xf32> to vector<8xf32>
    %296 = vector.shape_cast %295 : vector<8xf32> to vector<8x1xf32>
    %297 = arith.addf %255, %296 : vector<8x1xf32>
    %c4_208 = arith.constant 4 : index
    %c0_209 = arith.constant 0 : index
    %c128_210 = arith.constant 128 : index
    %298 = vector.load %arg23[%c4_208, %c0_209, %c128_210] : memref<6x8x384xf32, #tpu.memory_space<vmem>>, vector<1x8x128xf32>
    %299 = vector.shape_cast %298 : vector<1x8x128xf32> to vector<8x128xf32>
    %300 = arith.mulf %271, %299 : vector<8x128xf32>
    %cst_211 = arith.constant dense<0.000000e+00> : vector<8xf32>
    %301 = vector.multi_reduction <add>, %300, %cst_211 [1] : vector<8x128xf32> to vector<8xf32>
    %302 = vector.shape_cast %301 : vector<8xf32> to vector<8x1xf32>
    %303 = arith.addf %261, %302 : vector<8x1xf32>
    %c5_212 = arith.constant 5 : index
    %c0_213 = arith.constant 0 : index
    %c128_214 = arith.constant 128 : index
    %304 = vector.load %arg23[%c5_212, %c0_213, %c128_214] : memref<6x8x384xf32, #tpu.memory_space<vmem>>, vector<1x8x128xf32>
    %305 = vector.shape_cast %304 : vector<1x8x128xf32> to vector<8x128xf32>
    %306 = arith.mulf %271, %305 : vector<8x128xf32>
    %cst_215 = arith.constant dense<0.000000e+00> : vector<8xf32>
    %307 = vector.multi_reduction <add>, %306, %cst_215 [1] : vector<8x128xf32> to vector<8xf32>
    %308 = vector.shape_cast %307 : vector<8xf32> to vector<8x1xf32>
    %309 = arith.addf %267, %308 : vector<8x1xf32>
    %c0_216 = arith.constant 0 : index
    %c0_217 = arith.constant 0 : index
    %c256_218 = arith.constant 256 : index
    %310 = vector.load %arg22[%c0_216, %c0_217, %c256_218] : memref<6x8x384xf32, #tpu.memory_space<vmem>>, vector<1x8x128xf32>
    %311 = vector.shape_cast %310 : vector<1x8x128xf32> to vector<8x128xf32>
    %c0_219 = arith.constant 0 : index
    %c256_220 = arith.constant 256 : index
    %312 = vector.load %arg24[%c0_219, %c256_220] : memref<8x384xf32, #tpu.memory_space<vmem>>, vector<8x128xf32>
    %313 = arith.subf %311, %312 : vector<8x128xf32>
    %314 = vector.shape_cast %313 : vector<8x128xf32> to vector<1x8x128xf32>
    %c0_221 = arith.constant 0 : index
    %c0_222 = arith.constant 0 : index
    %c256_223 = arith.constant 256 : index
    %315 = vector.load %arg23[%c0_221, %c0_222, %c256_223] : memref<6x8x384xf32, #tpu.memory_space<vmem>>, vector<1x8x128xf32>
    tpu.vector_store %arg23[%c0_221, %c0_222, %c256_223], %314 {strides = array<i32>} : memref<6x8x384xf32, #tpu.memory_space<vmem>>, vector<1x8x128xf32>,
    %c0_224 = arith.constant 0 : index
    %c0_225 = arith.constant 0 : index
    %c256_226 = arith.constant 256 : index
    %316 = vector.load %arg23[%c0_224, %c0_225, %c256_226] : memref<6x8x384xf32, #tpu.memory_space<vmem>>, vector<1x8x128xf32>
    %317 = vector.shape_cast %316 : vector<1x8x128xf32> to vector<8x128xf32>
    %318 = arith.mulf %313, %317 : vector<8x128xf32>
    %cst_227 = arith.constant dense<0.000000e+00> : vector<8xf32>
    %319 = vector.multi_reduction <add>, %318, %cst_227 [1] : vector<8x128xf32> to vector<8xf32>
    %320 = vector.shape_cast %319 : vector<8xf32> to vector<8x1xf32>
    %321 = arith.addf %279, %320 : vector<8x1xf32>
    %c1_228 = arith.constant 1 : index
    %c0_229 = arith.constant 0 : index
    %c256_230 = arith.constant 256 : index
    %322 = vector.load %arg23[%c1_228, %c0_229, %c256_230] : memref<6x8x384xf32, #tpu.memory_space<vmem>>, vector<1x8x128xf32>
    %323 = vector.shape_cast %322 : vector<1x8x128xf32> to vector<8x128xf32>
    %324 = arith.mulf %313, %323 : vector<8x128xf32>
    %cst_231 = arith.constant dense<0.000000e+00> : vector<8xf32>
    %325 = vector.multi_reduction <add>, %324, %cst_231 [1] : vector<8x128xf32> to vector<8xf32>
    %326 = vector.shape_cast %325 : vector<8xf32> to vector<8x1xf32>
    %327 = arith.addf %285, %326 : vector<8x1xf32>
    %c2_232 = arith.constant 2 : index
    %c0_233 = arith.constant 0 : index
    %c256_234 = arith.constant 256 : index
    %328 = vector.load %arg23[%c2_232, %c0_233, %c256_234] : memref<6x8x384xf32, #tpu.memory_space<vmem>>, vector<1x8x128xf32>
    %329 = vector.shape_cast %328 : vector<1x8x128xf32> to vector<8x128xf32>
    %330 = arith.mulf %313, %329 : vector<8x128xf32>
    %cst_235 = arith.constant dense<0.000000e+00> : vector<8xf32>
    %331 = vector.multi_reduction <add>, %330, %cst_235 [1] : vector<8x128xf32> to vector<8xf32>
    %332 = vector.shape_cast %331 : vector<8xf32> to vector<8x1xf32>
    %333 = arith.addf %291, %332 : vector<8x1xf32>
    %c3_236 = arith.constant 3 : index
    %c0_237 = arith.constant 0 : index
    %c256_238 = arith.constant 256 : index
    %334 = vector.load %arg23[%c3_236, %c0_237, %c256_238] : memref<6x8x384xf32, #tpu.memory_space<vmem>>, vector<1x8x128xf32>
    %335 = vector.shape_cast %334 : vector<1x8x128xf32> to vector<8x128xf32>
    %336 = arith.mulf %313, %335 : vector<8x128xf32>
    %cst_239 = arith.constant dense<0.000000e+00> : vector<8xf32>
    %337 = vector.multi_reduction <add>, %336, %cst_239 [1] : vector<8x128xf32> to vector<8xf32>
    %338 = vector.shape_cast %337 : vector<8xf32> to vector<8x1xf32>
    %339 = arith.addf %297, %338 : vector<8x1xf32>
    %c4_240 = arith.constant 4 : index
    %c0_241 = arith.constant 0 : index
    %c256_242 = arith.constant 256 : index
    %340 = vector.load %arg23[%c4_240, %c0_241, %c256_242] : memref<6x8x384xf32, #tpu.memory_space<vmem>>, vector<1x8x128xf32>
    %341 = vector.shape_cast %340 : vector<1x8x128xf32> to vector<8x128xf32>
    %342 = arith.mulf %313, %341 : vector<8x128xf32>
    %cst_243 = arith.constant dense<0.000000e+00> : vector<8xf32>
    %343 = vector.multi_reduction <add>, %342, %cst_243 [1] : vector<8x128xf32> to vector<8xf32>
    %344 = vector.shape_cast %343 : vector<8xf32> to vector<8x1xf32>
    %345 = arith.addf %303, %344 : vector<8x1xf32>
    %c5_244 = arith.constant 5 : index
    %c0_245 = arith.constant 0 : index
    %c256_246 = arith.constant 256 : index
    %346 = vector.load %arg23[%c5_244, %c0_245, %c256_246] : memref<6x8x384xf32, #tpu.memory_space<vmem>>, vector<1x8x128xf32>
    %347 = vector.shape_cast %346 : vector<1x8x128xf32> to vector<8x128xf32>
    %348 = arith.mulf %313, %347 : vector<8x128xf32>
    %cst_247 = arith.constant dense<0.000000e+00> : vector<8xf32>
    %349 = vector.multi_reduction <add>, %348, %cst_247 [1] : vector<8x128xf32> to vector<8xf32>
    %350 = vector.shape_cast %349 : vector<8xf32> to vector<8x1xf32>
    %351 = arith.addf %309, %350 : vector<8x1xf32>
    %352 = tpu.concatenate %321, %327, %333, %339, %345, %351 in 1 : vector<8x1xf32>, vector<8x1xf32>, vector<8x1xf32>, vector<8x1xf32>, vector<8x1xf32>, vector<8x1xf32> -> vector<8x6xf32>
    %c0_i32_248 = arith.constant 0 : i32
    %353 = vector.broadcast %c0_i32_248 : i32 to vector<8x6xi32>
    %354 = arith.cmpi eq, %0, %353 : vector<8x6xi32>
    %c0_249 = arith.constant 0 : index
    %c0_250 = arith.constant 0 : index
    %c0_251 = arith.constant 0 : index
    %355 = vector.load %arg25[%c0_249, %c0_250, %c0_251] : memref<6x8x6xf32, #tpu.memory_space<vmem>>, vector<1x8x6xf32>
    %356 = vector.shape_cast %355 : vector<1x8x6xf32> to vector<8x6xf32>
    %357 = vector.shape_cast %321 : vector<8x1xf32> to vector<8x1xf32>
    %358 = vector.broadcast %357 : vector<8x1xf32> to vector<8x6xf32>
    %359 = arith.select %354, %358, %356 : vector<8x6xi1>, vector<8x6xf32>
    %c0_i32_252 = arith.constant 0 : i32
    %c0_i32_253 = arith.constant 0 : i32
    %360 = arith.cmpi eq, %c0_i32_252, %c0_i32_253 : i32
    %361 = arith.extui %360 : i1 to i32
    %362 = arith.sitofp %361 : i32 to f32
    %363 = vector.broadcast %362 : f32 to vector<8x6xf32>
    %364 = arith.mulf %363, %352 : vector<8x6xf32>
    %cst_254 = arith.constant 1.000000e+00 : f32
    %365 = arith.subf %cst_254, %362 : f32
    %366 = vector.broadcast %365 : f32 to vector<8x6xf32>
    %367 = arith.mulf %366, %359 : vector<8x6xf32>
    %368 = arith.addf %364, %367 : vector<8x6xf32>
    %c0_255 = arith.constant 0 : index
    %c0_256 = arith.constant 0 : index
    %c0_257 = arith.constant 0 : index
    %369 = vector.load %arg25[%c0_255, %c0_256, %c0_257] : memref<6x8x6xf32, #tpu.memory_space<vmem>>, vector<1x8x6xf32>
    %370 = vector.shape_cast %369 : vector<1x8x6xf32> to vector<8x6xf32>
    %371 = vector.shape_cast %368 : vector<8x6xf32> to vector<1x8x6xf32>
    tpu.vector_store %arg25[%c0_255, %c0_256, %c0_257], %371 {strides = array<i32>} : memref<6x8x6xf32, #tpu.memory_space<vmem>>, vector<1x8x6xf32>,
    %c1_258 = arith.constant 1 : index
    %c0_259 = arith.constant 0 : index
    %c0_260 = arith.constant 0 : index
    %372 = vector.load %arg25[%c1_258, %c0_259, %c0_260] : memref<6x8x6xf32, #tpu.memory_space<vmem>>, vector<1x8x6xf32>
    %373 = vector.shape_cast %372 : vector<1x8x6xf32> to vector<8x6xf32>
    %374 = vector.shape_cast %327 : vector<8x1xf32> to vector<8x1xf32>
    %375 = vector.broadcast %374 : vector<8x1xf32> to vector<8x6xf32>
    %376 = arith.select %354, %375, %373 : vector<8x6xi1>, vector<8x6xf32>
    %c1_i32 = arith.constant 1 : i32
    %c0_i32_261 = arith.constant 0 : i32
    %377 = arith.cmpi eq, %c1_i32, %c0_i32_261 : i32
    %378 = arith.extui %377 : i1 to i32
    %379 = arith.sitofp %378 : i32 to f32
    %380 = vector.broadcast %379 : f32 to vector<8x6xf32>
    %381 = arith.mulf %380, %352 : vector<8x6xf32>
    %cst_262 = arith.constant 1.000000e+00 : f32
    %382 = arith.subf %cst_262, %379 : f32
    %383 = vector.broadcast %382 : f32 to vector<8x6xf32>
    %384 = arith.mulf %383, %376 : vector<8x6xf32>
    %385 = arith.addf %381, %384 : vector<8x6xf32>
    %c1_263 = arith.constant 1 : index
    %c0_264 = arith.constant 0 : index
    %c0_265 = arith.constant 0 : index
    %386 = vector.load %arg25[%c1_263, %c0_264, %c0_265] : memref<6x8x6xf32, #tpu.memory_space<vmem>>, vector<1x8x6xf32>
    %387 = vector.shape_cast %386 : vector<1x8x6xf32> to vector<8x6xf32>
    %388 = vector.shape_cast %385 : vector<8x6xf32> to vector<1x8x6xf32>
    tpu.vector_store %arg25[%c1_263, %c0_264, %c0_265], %388 {strides = array<i32>} : memref<6x8x6xf32, #tpu.memory_space<vmem>>, vector<1x8x6xf32>,
    %c2_266 = arith.constant 2 : index
    %c0_267 = arith.constant 0 : index
    %c0_268 = arith.constant 0 : index
    %389 = vector.load %arg25[%c2_266, %c0_267, %c0_268] : memref<6x8x6xf32, #tpu.memory_space<vmem>>, vector<1x8x6xf32>
    %390 = vector.shape_cast %389 : vector<1x8x6xf32> to vector<8x6xf32>
    %391 = vector.shape_cast %333 : vector<8x1xf32> to vector<8x1xf32>
    %392 = vector.broadcast %391 : vector<8x1xf32> to vector<8x6xf32>
    %393 = arith.select %354, %392, %390 : vector<8x6xi1>, vector<8x6xf32>
    %c2_i32 = arith.constant 2 : i32
    %c0_i32_269 = arith.constant 0 : i32
    %394 = arith.cmpi eq, %c2_i32, %c0_i32_269 : i32
    %395 = arith.extui %394 : i1 to i32
    %396 = arith.sitofp %395 : i32 to f32
    %397 = vector.broadcast %396 : f32 to vector<8x6xf32>
    %398 = arith.mulf %397, %352 : vector<8x6xf32>
    %cst_270 = arith.constant 1.000000e+00 : f32
    %399 = arith.subf %cst_270, %396 : f32
    %400 = vector.broadcast %399 : f32 to vector<8x6xf32>
    %401 = arith.mulf %400, %393 : vector<8x6xf32>
    %402 = arith.addf %398, %401 : vector<8x6xf32>
    %c2_271 = arith.constant 2 : index
    %c0_272 = arith.constant 0 : index
    %c0_273 = arith.constant 0 : index
    %403 = vector.load %arg25[%c2_271, %c0_272, %c0_273] : memref<6x8x6xf32, #tpu.memory_space<vmem>>, vector<1x8x6xf32>
    %404 = vector.shape_cast %403 : vector<1x8x6xf32> to vector<8x6xf32>
    %405 = vector.shape_cast %402 : vector<8x6xf32> to vector<1x8x6xf32>
    tpu.vector_store %arg25[%c2_271, %c0_272, %c0_273], %405 {strides = array<i32>} : memref<6x8x6xf32, #tpu.memory_space<vmem>>, vector<1x8x6xf32>,
    %c3_274 = arith.constant 3 : index
    %c0_275 = arith.constant 0 : index
    %c0_276 = arith.constant 0 : index
    %406 = vector.load %arg25[%c3_274, %c0_275, %c0_276] : memref<6x8x6xf32, #tpu.memory_space<vmem>>, vector<1x8x6xf32>
    %407 = vector.shape_cast %406 : vector<1x8x6xf32> to vector<8x6xf32>
    %408 = vector.shape_cast %339 : vector<8x1xf32> to vector<8x1xf32>
    %409 = vector.broadcast %408 : vector<8x1xf32> to vector<8x6xf32>
    %410 = arith.select %354, %409, %407 : vector<8x6xi1>, vector<8x6xf32>
    %c3_i32 = arith.constant 3 : i32
    %c0_i32_277 = arith.constant 0 : i32
    %411 = arith.cmpi eq, %c3_i32, %c0_i32_277 : i32
    %412 = arith.extui %411 : i1 to i32
    %413 = arith.sitofp %412 : i32 to f32
    %414 = vector.broadcast %413 : f32 to vector<8x6xf32>
    %415 = arith.mulf %414, %352 : vector<8x6xf32>
    %cst_278 = arith.constant 1.000000e+00 : f32
    %416 = arith.subf %cst_278, %413 : f32
    %417 = vector.broadcast %416 : f32 to vector<8x6xf32>
    %418 = arith.mulf %417, %410 : vector<8x6xf32>
    %419 = arith.addf %415, %418 : vector<8x6xf32>
    %c3_279 = arith.constant 3 : index
    %c0_280 = arith.constant 0 : index
    %c0_281 = arith.constant 0 : index
    %420 = vector.load %arg25[%c3_279, %c0_280, %c0_281] : memref<6x8x6xf32, #tpu.memory_space<vmem>>, vector<1x8x6xf32>
    %421 = vector.shape_cast %420 : vector<1x8x6xf32> to vector<8x6xf32>
    %422 = vector.shape_cast %419 : vector<8x6xf32> to vector<1x8x6xf32>
    tpu.vector_store %arg25[%c3_279, %c0_280, %c0_281], %422 {strides = array<i32>} : memref<6x8x6xf32, #tpu.memory_space<vmem>>, vector<1x8x6xf32>,
    %c4_282 = arith.constant 4 : index
    %c0_283 = arith.constant 0 : index
    %c0_284 = arith.constant 0 : index
    %423 = vector.load %arg25[%c4_282, %c0_283, %c0_284] : memref<6x8x6xf32, #tpu.memory_space<vmem>>, vector<1x8x6xf32>
    %424 = vector.shape_cast %423 : vector<1x8x6xf32> to vector<8x6xf32>
    %425 = vector.shape_cast %345 : vector<8x1xf32> to vector<8x1xf32>
    %426 = vector.broadcast %425 : vector<8x1xf32> to vector<8x6xf32>
    %427 = arith.select %354, %426, %424 : vector<8x6xi1>, vector<8x6xf32>
    %c4_i32 = arith.constant 4 : i32
    %c0_i32_285 = arith.constant 0 : i32
    %428 = arith.cmpi eq, %c4_i32, %c0_i32_285 : i32
    %429 = arith.extui %428 : i1 to i32
    %430 = arith.sitofp %429 : i32 to f32
    %431 = vector.broadcast %430 : f32 to vector<8x6xf32>
    %432 = arith.mulf %431, %352 : vector<8x6xf32>
    %cst_286 = arith.constant 1.000000e+00 : f32
    %433 = arith.subf %cst_286, %430 : f32
    %434 = vector.broadcast %433 : f32 to vector<8x6xf32>
    %435 = arith.mulf %434, %427 : vector<8x6xf32>
    %436 = arith.addf %432, %435 : vector<8x6xf32>
    %c4_287 = arith.constant 4 : index
    %c0_288 = arith.constant 0 : index
    %c0_289 = arith.constant 0 : index
    %437 = vector.load %arg25[%c4_287, %c0_288, %c0_289] : memref<6x8x6xf32, #tpu.memory_space<vmem>>, vector<1x8x6xf32>
    %438 = vector.shape_cast %437 : vector<1x8x6xf32> to vector<8x6xf32>
    %439 = vector.shape_cast %436 : vector<8x6xf32> to vector<1x8x6xf32>
    tpu.vector_store %arg25[%c4_287, %c0_288, %c0_289], %439 {strides = array<i32>} : memref<6x8x6xf32, #tpu.memory_space<vmem>>, vector<1x8x6xf32>,
    %c5_290 = arith.constant 5 : index
    %c0_291 = arith.constant 0 : index
    %c0_292 = arith.constant 0 : index
    %440 = vector.load %arg25[%c5_290, %c0_291, %c0_292] : memref<6x8x6xf32, #tpu.memory_space<vmem>>, vector<1x8x6xf32>
    %441 = vector.shape_cast %440 : vector<1x8x6xf32> to vector<8x6xf32>
    %442 = vector.shape_cast %351 : vector<8x1xf32> to vector<8x1xf32>
    %443 = vector.broadcast %442 : vector<8x1xf32> to vector<8x6xf32>
    %444 = arith.select %354, %443, %441 : vector<8x6xi1>, vector<8x6xf32>
    %c5_i32 = arith.constant 5 : i32
    %c0_i32_293 = arith.constant 0 : i32
    %445 = arith.cmpi eq, %c5_i32, %c0_i32_293 : i32
    %446 = arith.extui %445 : i1 to i32
    %447 = arith.sitofp %446 : i32 to f32
    %448 = vector.broadcast %447 : f32 to vector<8x6xf32>
    %449 = arith.mulf %448, %352 : vector<8x6xf32>
    %cst_294 = arith.constant 1.000000e+00 : f32
    %450 = arith.subf %cst_294, %447 : f32
    %451 = vector.broadcast %450 : f32 to vector<8x6xf32>
    %452 = arith.mulf %451, %444 : vector<8x6xf32>
    %453 = arith.addf %449, %452 : vector<8x6xf32>
    %c5_295 = arith.constant 5 : index
    %c0_296 = arith.constant 0 : index
    %c0_297 = arith.constant 0 : index
    %454 = vector.load %arg25[%c5_295, %c0_296, %c0_297] : memref<6x8x6xf32, #tpu.memory_space<vmem>>, vector<1x8x6xf32>
    %455 = vector.shape_cast %454 : vector<1x8x6xf32> to vector<8x6xf32>
    %456 = vector.shape_cast %453 : vector<8x6xf32> to vector<1x8x6xf32>
    tpu.vector_store %arg25[%c5_295, %c0_296, %c0_297], %456 {strides = array<i32>} : memref<6x8x6xf32, #tpu.memory_space<vmem>>, vector<1x8x6xf32>,
    %c0_298 = arith.constant 0 : index
    %c0_299 = arith.constant 0 : index
    %c0_300 = arith.constant 0 : index
    %457 = vector.load %arg22[%c0_298, %c0_299, %c0_300] : memref<6x8x384xf32, #tpu.memory_space<vmem>>, vector<1x8x384xf32>
    %458 = vector.shape_cast %457 : vector<1x8x384xf32> to vector<8x384xf32>
    %c0_301 = arith.constant 0 : index
    %c0_302 = arith.constant 0 : index
    %459 = vector.load %arg24[%c0_301, %c0_302] : memref<8x384xf32, #tpu.memory_space<vmem>>, vector<8x384xf32>
    tpu.vector_store %arg24[%c0_301, %c0_302], %458 {strides = array<i32>} : memref<8x384xf32, #tpu.memory_space<vmem>>, vector<8x384xf32>,
    %c0_303 = arith.constant 0 : index
    %c0_304 = arith.constant 0 : index
    %460 = vector.load %arg3[%c0_303, %c0_304] : memref<128x128xbf16, #tpu.memory_space<vmem>>, vector<128x128xbf16>
    %c0_305 = arith.constant 0 : index
    %c256_306 = arith.constant 256 : index
    %461 = vector.load %arg24[%c0_305, %c256_306] : memref<8x384xf32, #tpu.memory_space<vmem>>, vector<8x128xf32>
    %cst_307 = arith.constant 0.000000e+00 : f32
    %462 = vector.broadcast %cst_307 : f32 to vector<8x128xf32>
    %c0_308 = arith.constant 0 : index
    %c0_309 = arith.constant 0 : index
    %463 = vector.load %arg24[%c0_308, %c0_309] : memref<8x384xf32, #tpu.memory_space<vmem>>, vector<8x128xf32>
    %c0_310 = arith.constant 0 : index
    %c0_311 = arith.constant 0 : index
    %464 = vector.load %arg1[%c0_310, %c0_311] : memref<8x384xf32, #tpu.memory_space<vmem>>, vector<8x128xf32>
    %c0_312 = arith.constant 0 : index
    %c0_313 = arith.constant 0 : index
    %c0_314 = arith.constant 0 : index
    %465 = vector.load %arg4[%c0_312, %c0_313, %c0_314] : memref<2x128x128xbf16, #tpu.memory_space<vmem>>, vector<1x128x128xbf16>
    %466 = vector.shape_cast %465 : vector<1x128x128xbf16> to vector<128x128xbf16>
    %c0_315 = arith.constant 0 : index
    %c0_316 = arith.constant 0 : index
    %c0_317 = arith.constant 0 : index
    %467 = vector.load %arg5[%c0_315, %c0_316, %c0_317] : memref<2x1x128xf32, #tpu.memory_space<vmem>>, vector<1x1x128xf32>
    %468 = vector.shape_cast %467 : vector<1x1x128xf32> to vector<1x128xf32>
    %469 = arith.truncf %463 : vector<8x128xf32> to vector<8x128xbf16>
    %cst_318 = arith.constant dense<0.000000e+00> : vector<8x128xf32>
    %470 = tpu.matmul %469, %466, %cst_318 {dimension_numbers = #tpu.dot_dimension_numbers<[1], [0], [0], [1], [0, 0, 1, 1], [], []>} : vector<8x128xbf16>, vector<128x128xbf16>, vector<8x128xf32> -> vector<8x128xf32>
    %471 = vector.broadcast %468 : vector<1x128xf32> to vector<8x128xf32>
    %472 = arith.addf %470, %471 : vector<8x128xf32>
    %c0_319 = arith.constant 0 : index
    %c0_320 = arith.constant 0 : index
    %c0_321 = arith.constant 0 : index
    %473 = vector.load %arg8[%c0_319, %c0_320, %c0_321] : memref<2x1x128xf32, #tpu.memory_space<vmem>>, vector<1x1x128xf32>
    %474 = vector.shape_cast %473 : vector<1x1x128xf32> to vector<1x128xf32>
    %c0_322 = arith.constant 0 : index
    %c0_323 = arith.constant 0 : index
    %c0_324 = arith.constant 0 : index
    %475 = vector.load %arg9[%c0_322, %c0_323, %c0_324] : memref<2x1x128xf32, #tpu.memory_space<vmem>>, vector<1x1x128xf32>
    %476 = vector.shape_cast %475 : vector<1x1x128xf32> to vector<1x128xf32>
    %477 = arith.truncf %472 : vector<8x128xf32> to vector<8x128xbf16>
    %cst_325 = arith.constant dense<0.000000e+00> : vector<8x128xf32>
    %478 = tpu.matmul %477, %460, %cst_325 {dimension_numbers = #tpu.dot_dimension_numbers<[1], [0], [0], [1], [0, 0, 1, 1], [], []>} : vector<8x128xbf16>, vector<128x128xbf16>, vector<8x128xf32> -> vector<8x128xf32>
    %479 = arith.subf %472, %478 : vector<8x128xf32>
    %480 = arith.mulf %479, %479 : vector<8x128xf32>
    %481 = arith.truncf %480 : vector<8x128xf32> to vector<8x128xbf16>
    %cst_326 = arith.constant dense<0.000000e+00> : vector<8x128xf32>
    %482 = tpu.matmul %481, %460, %cst_326 {dimension_numbers = #tpu.dot_dimension_numbers<[1], [0], [0], [1], [0, 0, 1, 1], [], []>} : vector<8x128xbf16>, vector<128x128xbf16>, vector<8x128xf32> -> vector<8x128xf32>
    %cst_327 = arith.constant 9.99999974E-6 : f32
    %483 = vector.broadcast %cst_327 : f32 to vector<8x128xf32>
    %484 = arith.addf %482, %483 : vector<8x128xf32>
    %485 = math.rsqrt %484 : vector<8x128xf32>
    %486 = arith.mulf %479, %485 : vector<8x128xf32>
    %487 = vector.broadcast %474 : vector<1x128xf32> to vector<8x128xf32>
    %488 = arith.mulf %486, %487 : vector<8x128xf32>
    %489 = vector.broadcast %476 : vector<1x128xf32> to vector<8x128xf32>
    %490 = arith.addf %488, %489 : vector<8x128xf32>
    %cst_328 = arith.constant 0.000000e+00 : f32
    %491 = vector.broadcast %cst_328 : f32 to vector<8x128xf32>
    %492 = arith.maximumf %490, %491 : vector<8x128xf32>
    %c0_329 = arith.constant 0 : index
    %c0_330 = arith.constant 0 : index
    %c0_331 = arith.constant 0 : index
    %493 = vector.load %arg6[%c0_329, %c0_330, %c0_331] : memref<2x128x128xbf16, #tpu.memory_space<vmem>>, vector<1x128x128xbf16>
    %494 = vector.shape_cast %493 : vector<1x128x128xbf16> to vector<128x128xbf16>
    %c0_332 = arith.constant 0 : index
    %c0_333 = arith.constant 0 : index
    %c0_334 = arith.constant 0 : index
    %495 = vector.load %arg7[%c0_332, %c0_333, %c0_334] : memref<2x1x128xf32, #tpu.memory_space<vmem>>, vector<1x1x128xf32>
    %496 = vector.shape_cast %495 : vector<1x1x128xf32> to vector<1x128xf32>
    %497 = arith.truncf %492 : vector<8x128xf32> to vector<8x128xbf16>
    %cst_335 = arith.constant dense<0.000000e+00> : vector<8x128xf32>
    %498 = tpu.matmul %497, %494, %cst_335 {dimension_numbers = #tpu.dot_dimension_numbers<[1], [0], [0], [1], [0, 0, 1, 1], [], []>} : vector<8x128xbf16>, vector<128x128xbf16>, vector<8x128xf32> -> vector<8x128xf32>
    %499 = vector.broadcast %496 : vector<1x128xf32> to vector<8x128xf32>
    %500 = arith.addf %498, %499 : vector<8x128xf32>
    %501 = arith.addf %500, %464 : vector<8x128xf32>
    %c0_336 = arith.constant 0 : index
    %c0_337 = arith.constant 0 : index
    %c0_338 = arith.constant 0 : index
    %502 = vector.load %arg10[%c0_336, %c0_337, %c0_338] : memref<2x1x128xf32, #tpu.memory_space<vmem>>, vector<1x1x128xf32>
    %503 = vector.shape_cast %502 : vector<1x1x128xf32> to vector<1x128xf32>
    %c0_339 = arith.constant 0 : index
    %c0_340 = arith.constant 0 : index
    %c0_341 = arith.constant 0 : index
    %504 = vector.load %arg11[%c0_339, %c0_340, %c0_341] : memref<2x1x128xf32, #tpu.memory_space<vmem>>, vector<1x1x128xf32>
    %505 = vector.shape_cast %504 : vector<1x1x128xf32> to vector<1x128xf32>
    %506 = arith.truncf %501 : vector<8x128xf32> to vector<8x128xbf16>
    %cst_342 = arith.constant dense<0.000000e+00> : vector<8x128xf32>
    %507 = tpu.matmul %506, %460, %cst_342 {dimension_numbers = #tpu.dot_dimension_numbers<[1], [0], [0], [1], [0, 0, 1, 1], [], []>} : vector<8x128xbf16>, vector<128x128xbf16>, vector<8x128xf32> -> vector<8x128xf32>
    %508 = arith.subf %501, %507 : vector<8x128xf32>
    %509 = arith.mulf %508, %508 : vector<8x128xf32>
    %510 = arith.truncf %509 : vector<8x128xf32> to vector<8x128xbf16>
    %cst_343 = arith.constant dense<0.000000e+00> : vector<8x128xf32>
    %511 = tpu.matmul %510, %460, %cst_343 {dimension_numbers = #tpu.dot_dimension_numbers<[1], [0], [0], [1], [0, 0, 1, 1], [], []>} : vector<8x128xbf16>, vector<128x128xbf16>, vector<8x128xf32> -> vector<8x128xf32>
    %cst_344 = arith.constant 9.99999974E-6 : f32
    %512 = vector.broadcast %cst_344 : f32 to vector<8x128xf32>
    %513 = arith.addf %511, %512 : vector<8x128xf32>
    %514 = math.rsqrt %513 : vector<8x128xf32>
    %515 = arith.mulf %508, %514 : vector<8x128xf32>
    %516 = vector.broadcast %503 : vector<1x128xf32> to vector<8x128xf32>
    %517 = arith.mulf %515, %516 : vector<8x128xf32>
    %518 = vector.broadcast %505 : vector<1x128xf32> to vector<8x128xf32>
    %519 = arith.addf %517, %518 : vector<8x128xf32>
    %520 = arith.addf %519, %463 : vector<8x128xf32>
    %cst_345 = arith.constant 0.000000e+00 : f32
    %521 = vector.broadcast %cst_345 : f32 to vector<8x128xf32>
    %522 = arith.maximumf %520, %521 : vector<8x128xf32>
    %c0_346 = arith.constant 0 : index
    %c0_347 = arith.constant 0 : index
    %c0_348 = arith.constant 0 : index
    %523 = vector.load %arg12[%c0_346, %c0_347, %c0_348] : memref<2x1x128xf32, #tpu.memory_space<vmem>>, vector<1x1x128xf32>
    %524 = vector.shape_cast %523 : vector<1x1x128xf32> to vector<1x128xf32>
    %c0_349 = arith.constant 0 : index
    %c0_350 = arith.constant 0 : index
    %c0_351 = arith.constant 0 : index
    %525 = vector.load %arg13[%c0_349, %c0_350, %c0_351] : memref<2x1x128xf32, #tpu.memory_space<vmem>>, vector<1x1x128xf32>
    %526 = vector.shape_cast %525 : vector<1x1x128xf32> to vector<1x128xf32>
    %527 = arith.truncf %522 : vector<8x128xf32> to vector<8x128xbf16>
    %cst_352 = arith.constant dense<0.000000e+00> : vector<8x128xf32>
    %528 = tpu.matmul %527, %460, %cst_352 {dimension_numbers = #tpu.dot_dimension_numbers<[1], [0], [0], [1], [0, 0, 1, 1], [], []>} : vector<8x128xbf16>, vector<128x128xbf16>, vector<8x128xf32> -> vector<8x128xf32>
    %529 = arith.subf %522, %528 : vector<8x128xf32>
    %530 = arith.mulf %529, %529 : vector<8x128xf32>
    %531 = arith.truncf %530 : vector<8x128xf32> to vector<8x128xbf16>
    %cst_353 = arith.constant dense<0.000000e+00> : vector<8x128xf32>
    %532 = tpu.matmul %531, %460, %cst_353 {dimension_numbers = #tpu.dot_dimension_numbers<[1], [0], [0], [1], [0, 0, 1, 1], [], []>} : vector<8x128xbf16>, vector<128x128xbf16>, vector<8x128xf32> -> vector<8x128xf32>
    %cst_354 = arith.constant 9.99999974E-6 : f32
    %533 = vector.broadcast %cst_354 : f32 to vector<8x128xf32>
    %534 = arith.addf %532, %533 : vector<8x128xf32>
    %535 = math.rsqrt %534 : vector<8x128xf32>
    %536 = arith.mulf %529, %535 : vector<8x128xf32>
    %537 = vector.broadcast %524 : vector<1x128xf32> to vector<8x128xf32>
    %538 = arith.mulf %536, %537 : vector<8x128xf32>
    %539 = vector.broadcast %526 : vector<1x128xf32> to vector<8x128xf32>
    %540 = arith.addf %538, %539 : vector<8x128xf32>
    %541 = vector.shape_cast %540 : vector<8x128xf32> to vector<1x8x128xf32>
    %c1_355 = arith.constant 1 : index
    %c0_356 = arith.constant 0 : index
    %c0_357 = arith.constant 0 : index
    %542 = vector.load %arg22[%c1_355, %c0_356, %c0_357] : memref<6x8x384xf32, #tpu.memory_space<vmem>>, vector<1x8x128xf32>
    tpu.vector_store %arg22[%c1_355, %c0_356, %c0_357], %541 {strides = array<i32>} : memref<6x8x384xf32, #tpu.memory_space<vmem>>, vector<1x8x128xf32>,
    %543 = arith.addf %462, %540 : vector<8x128xf32>
    %c0_358 = arith.constant 0 : index
    %c128_359 = arith.constant 128 : index
    %544 = vector.load %arg24[%c0_358, %c128_359] : memref<8x384xf32, #tpu.memory_space<vmem>>, vector<8x128xf32>
    %c0_360 = arith.constant 0 : index
    %c128_361 = arith.constant 128 : index
    %545 = vector.load %arg1[%c0_360, %c128_361] : memref<8x384xf32, #tpu.memory_space<vmem>>, vector<8x128xf32>
    %c1_362 = arith.constant 1 : index
    %c0_363 = arith.constant 0 : index
    %c0_364 = arith.constant 0 : index
    %546 = vector.load %arg4[%c1_362, %c0_363, %c0_364] : memref<2x128x128xbf16, #tpu.memory_space<vmem>>, vector<1x128x128xbf16>
    %547 = vector.shape_cast %546 : vector<1x128x128xbf16> to vector<128x128xbf16>
    %c1_365 = arith.constant 1 : index
    %c0_366 = arith.constant 0 : index
    %c0_367 = arith.constant 0 : index
    %548 = vector.load %arg5[%c1_365, %c0_366, %c0_367] : memref<2x1x128xf32, #tpu.memory_space<vmem>>, vector<1x1x128xf32>
    %549 = vector.shape_cast %548 : vector<1x1x128xf32> to vector<1x128xf32>
    %550 = arith.truncf %544 : vector<8x128xf32> to vector<8x128xbf16>
    %cst_368 = arith.constant dense<0.000000e+00> : vector<8x128xf32>
    %551 = tpu.matmul %550, %547, %cst_368 {dimension_numbers = #tpu.dot_dimension_numbers<[1], [0], [0], [1], [0, 0, 1, 1], [], []>} : vector<8x128xbf16>, vector<128x128xbf16>, vector<8x128xf32> -> vector<8x128xf32>
    %552 = vector.broadcast %549 : vector<1x128xf32> to vector<8x128xf32>
    %553 = arith.addf %551, %552 : vector<8x128xf32>
    %c1_369 = arith.constant 1 : index
    %c0_370 = arith.constant 0 : index
    %c0_371 = arith.constant 0 : index
    %554 = vector.load %arg8[%c1_369, %c0_370, %c0_371] : memref<2x1x128xf32, #tpu.memory_space<vmem>>, vector<1x1x128xf32>
    %555 = vector.shape_cast %554 : vector<1x1x128xf32> to vector<1x128xf32>
    %c1_372 = arith.constant 1 : index
    %c0_373 = arith.constant 0 : index
    %c0_374 = arith.constant 0 : index
    %556 = vector.load %arg9[%c1_372, %c0_373, %c0_374] : memref<2x1x128xf32, #tpu.memory_space<vmem>>, vector<1x1x128xf32>
    %557 = vector.shape_cast %556 : vector<1x1x128xf32> to vector<1x128xf32>
    %558 = arith.truncf %553 : vector<8x128xf32> to vector<8x128xbf16>
    %cst_375 = arith.constant dense<0.000000e+00> : vector<8x128xf32>
    %559 = tpu.matmul %558, %460, %cst_375 {dimension_numbers = #tpu.dot_dimension_numbers<[1], [0], [0], [1], [0, 0, 1, 1], [], []>} : vector<8x128xbf16>, vector<128x128xbf16>, vector<8x128xf32> -> vector<8x128xf32>
    %560 = arith.subf %553, %559 : vector<8x128xf32>
    %561 = arith.mulf %560, %560 : vector<8x128xf32>
    %562 = arith.truncf %561 : vector<8x128xf32> to vector<8x128xbf16>
    %cst_376 = arith.constant dense<0.000000e+00> : vector<8x128xf32>
    %563 = tpu.matmul %562, %460, %cst_376 {dimension_numbers = #tpu.dot_dimension_numbers<[1], [0], [0], [1], [0, 0, 1, 1], [], []>} : vector<8x128xbf16>, vector<128x128xbf16>, vector<8x128xf32> -> vector<8x128xf32>
    %cst_377 = arith.constant 9.99999974E-6 : f32
    %564 = vector.broadcast %cst_377 : f32 to vector<8x128xf32>
    %565 = arith.addf %563, %564 : vector<8x128xf32>
    %566 = math.rsqrt %565 : vector<8x128xf32>
    %567 = arith.mulf %560, %566 : vector<8x128xf32>
    %568 = vector.broadcast %555 : vector<1x128xf32> to vector<8x128xf32>
    %569 = arith.mulf %567, %568 : vector<8x128xf32>
    %570 = vector.broadcast %557 : vector<1x128xf32> to vector<8x128xf32>
    %571 = arith.addf %569, %570 : vector<8x128xf32>
    %cst_378 = arith.constant 0.000000e+00 : f32
    %572 = vector.broadcast %cst_378 : f32 to vector<8x128xf32>
    %573 = arith.maximumf %571, %572 : vector<8x128xf32>
    %c1_379 = arith.constant 1 : index
    %c0_380 = arith.constant 0 : index
    %c0_381 = arith.constant 0 : index
    %574 = vector.load %arg6[%c1_379, %c0_380, %c0_381] : memref<2x128x128xbf16, #tpu.memory_space<vmem>>, vector<1x128x128xbf16>
    %575 = vector.shape_cast %574 : vector<1x128x128xbf16> to vector<128x128xbf16>
    %c1_382 = arith.constant 1 : index
    %c0_383 = arith.constant 0 : index
    %c0_384 = arith.constant 0 : index
    %576 = vector.load %arg7[%c1_382, %c0_383, %c0_384] : memref<2x1x128xf32, #tpu.memory_space<vmem>>, vector<1x1x128xf32>
    %577 = vector.shape_cast %576 : vector<1x1x128xf32> to vector<1x128xf32>
    %578 = arith.truncf %573 : vector<8x128xf32> to vector<8x128xbf16>
    %cst_385 = arith.constant dense<0.000000e+00> : vector<8x128xf32>
    %579 = tpu.matmul %578, %575, %cst_385 {dimension_numbers = #tpu.dot_dimension_numbers<[1], [0], [0], [1], [0, 0, 1, 1], [], []>} : vector<8x128xbf16>, vector<128x128xbf16>, vector<8x128xf32> -> vector<8x128xf32>
    %580 = vector.broadcast %577 : vector<1x128xf32> to vector<8x128xf32>
    %581 = arith.addf %579, %580 : vector<8x128xf32>
    %582 = arith.addf %581, %545 : vector<8x128xf32>
    %c1_386 = arith.constant 1 : index
    %c0_387 = arith.constant 0 : index
    %c0_388 = arith.constant 0 : index
    %583 = vector.load %arg10[%c1_386, %c0_387, %c0_388] : memref<2x1x128xf32, #tpu.memory_space<vmem>>, vector<1x1x128xf32>
    %584 = vector.shape_cast %583 : vector<1x1x128xf32> to vector<1x128xf32>
    %c1_389 = arith.constant 1 : index
    %c0_390 = arith.constant 0 : index
    %c0_391 = arith.constant 0 : index
    %585 = vector.load %arg11[%c1_389, %c0_390, %c0_391] : memref<2x1x128xf32, #tpu.memory_space<vmem>>, vector<1x1x128xf32>
    %586 = vector.shape_cast %585 : vector<1x1x128xf32> to vector<1x128xf32>
    %587 = arith.truncf %582 : vector<8x128xf32> to vector<8x128xbf16>
    %cst_392 = arith.constant dense<0.000000e+00> : vector<8x128xf32>
    %588 = tpu.matmul %587, %460, %cst_392 {dimension_numbers = #tpu.dot_dimension_numbers<[1], [0], [0], [1], [0, 0, 1, 1], [], []>} : vector<8x128xbf16>, vector<128x128xbf16>, vector<8x128xf32> -> vector<8x128xf32>
    %589 = arith.subf %582, %588 : vector<8x128xf32>
    %590 = arith.mulf %589, %589 : vector<8x128xf32>
    %591 = arith.truncf %590 : vector<8x128xf32> to vector<8x128xbf16>
    %cst_393 = arith.constant dense<0.000000e+00> : vector<8x128xf32>
    %592 = tpu.matmul %591, %460, %cst_393 {dimension_numbers = #tpu.dot_dimension_numbers<[1], [0], [0], [1], [0, 0, 1, 1], [], []>} : vector<8x128xbf16>, vector<128x128xbf16>, vector<8x128xf32> -> vector<8x128xf32>
    %cst_394 = arith.constant 9.99999974E-6 : f32
    %593 = vector.broadcast %cst_394 : f32 to vector<8x128xf32>
    %594 = arith.addf %592, %593 : vector<8x128xf32>
    %595 = math.rsqrt %594 : vector<8x128xf32>
    %596 = arith.mulf %589, %595 : vector<8x128xf32>
    %597 = vector.broadcast %584 : vector<1x128xf32> to vector<8x128xf32>
    %598 = arith.mulf %596, %597 : vector<8x128xf32>
    %599 = vector.broadcast %586 : vector<1x128xf32> to vector<8x128xf32>
    %600 = arith.addf %598, %599 : vector<8x128xf32>
    %601 = arith.addf %600, %544 : vector<8x128xf32>
    %cst_395 = arith.constant 0.000000e+00 : f32
    %602 = vector.broadcast %cst_395 : f32 to vector<8x128xf32>
    %603 = arith.maximumf %601, %602 : vector<8x128xf32>
    %c1_396 = arith.constant 1 : index
    %c0_397 = arith.constant 0 : index
    %c0_398 = arith.constant 0 : index
    %604 = vector.load %arg12[%c1_396, %c0_397, %c0_398] : memref<2x1x128xf32, #tpu.memory_space<vmem>>, vector<1x1x128xf32>
    %605 = vector.shape_cast %604 : vector<1x1x128xf32> to vector<1x128xf32>
    %c1_399 = arith.constant 1 : index
    %c0_400 = arith.constant 0 : index
    %c0_401 = arith.constant 0 : index
    %606 = vector.load %arg13[%c1_399, %c0_400, %c0_401] : memref<2x1x128xf32, #tpu.memory_space<vmem>>, vector<1x1x128xf32>
    %607 = vector.shape_cast %606 : vector<1x1x128xf32> to vector<1x128xf32>
    %608 = arith.truncf %603 : vector<8x128xf32> to vector<8x128xbf16>
    %cst_402 = arith.constant dense<0.000000e+00> : vector<8x128xf32>
    %609 = tpu.matmul %608, %460, %cst_402 {dimension_numbers = #tpu.dot_dimension_numbers<[1], [0], [0], [1], [0, 0, 1, 1], [], []>} : vector<8x128xbf16>, vector<128x128xbf16>, vector<8x128xf32> -> vector<8x128xf32>
    %610 = arith.subf %603, %609 : vector<8x128xf32>
    %611 = arith.mulf %610, %610 : vector<8x128xf32>
    %612 = arith.truncf %611 : vector<8x128xf32> to vector<8x128xbf16>
    %cst_403 = arith.constant dense<0.000000e+00> : vector<8x128xf32>
    %613 = tpu.matmul %612, %460, %cst_403 {dimension_numbers = #tpu.dot_dimension_numbers<[1], [0], [0], [1], [0, 0, 1, 1], [], []>} : vector<8x128xbf16>, vector<128x128xbf16>, vector<8x128xf32> -> vector<8x128xf32>
    %cst_404 = arith.constant 9.99999974E-6 : f32
    %614 = vector.broadcast %cst_404 : f32 to vector<8x128xf32>
    %615 = arith.addf %613, %614 : vector<8x128xf32>
    %616 = math.rsqrt %615 : vector<8x128xf32>
    %617 = arith.mulf %610, %616 : vector<8x128xf32>
    %618 = vector.broadcast %605 : vector<1x128xf32> to vector<8x128xf32>
    %619 = arith.mulf %617, %618 : vector<8x128xf32>
    %620 = vector.broadcast %607 : vector<1x128xf32> to vector<8x128xf32>
    %621 = arith.addf %619, %620 : vector<8x128xf32>
    %622 = vector.shape_cast %621 : vector<8x128xf32> to vector<1x8x128xf32>
    %c1_405 = arith.constant 1 : index
    %c0_406 = arith.constant 0 : index
    %c128_407 = arith.constant 128 : index
    %623 = vector.load %arg22[%c1_405, %c0_406, %c128_407] : memref<6x8x384xf32, #tpu.memory_space<vmem>>, vector<1x8x128xf32>
    tpu.vector_store %arg22[%c1_405, %c0_406, %c128_407], %622 {strides = array<i32>} : memref<6x8x384xf32, #tpu.memory_space<vmem>>, vector<1x8x128xf32>,
    %624 = arith.addf %543, %621 : vector<8x128xf32>
    %cst_408 = arith.constant 2.000000e+00 : f32
    %625 = vector.broadcast %cst_408 : f32 to vector<8x128xf32>
    %626 = arith.mulf %625, %461 : vector<8x128xf32>
    %627 = arith.addf %624, %626 : vector<8x128xf32>
    %628 = arith.truncf %627 : vector<8x128xf32> to vector<8x128xbf16>
    %c0_409 = arith.constant 0 : index
    %c0_410 = arith.constant 0 : index
    %629 = vector.load %arg14[%c0_409, %c0_410] : memref<128x128xbf16, #tpu.memory_space<vmem>>, vector<128x128xbf16>
    %cst_411 = arith.constant dense<0.000000e+00> : vector<8x128xf32>
    %630 = tpu.matmul %628, %629, %cst_411 {dimension_numbers = #tpu.dot_dimension_numbers<[1], [0], [0], [1], [0, 0, 1, 1], [], []>} : vector<8x128xbf16>, vector<128x128xbf16>, vector<8x128xf32> -> vector<8x128xf32>
    %c0_412 = arith.constant 0 : index
    %c0_413 = arith.constant 0 : index
    %631 = vector.load %arg15[%c0_412, %c0_413] : memref<1x128xf32, #tpu.memory_space<vmem>>, vector<1x128xf32>
    %cst_414 = arith.constant 2.000000e+00 : f32
    %632 = vector.broadcast %cst_414 : f32 to vector<1x128xf32>
    %633 = arith.mulf %632, %631 : vector<1x128xf32>
    %634 = vector.broadcast %633 : vector<1x128xf32> to vector<8x128xf32>
    %635 = arith.addf %630, %634 : vector<8x128xf32>
    %636 = arith.mulf %461, %635 : vector<8x128xf32>
    %c0_415 = arith.constant 0 : index
    %c0_416 = arith.constant 0 : index
    %637 = vector.load %arg16[%c0_415, %c0_416] : memref<128x128xbf16, #tpu.memory_space<vmem>>, vector<128x128xbf16>
    %c0_417 = arith.constant 0 : index
    %c0_418 = arith.constant 0 : index
    %638 = vector.load %arg17[%c0_417, %c0_418] : memref<1x128xf32, #tpu.memory_space<vmem>>, vector<1x128xf32>
    %639 = arith.truncf %636 : vector<8x128xf32> to vector<8x128xbf16>
    %cst_419 = arith.constant dense<0.000000e+00> : vector<8x128xf32>
    %640 = tpu.matmul %639, %637, %cst_419 {dimension_numbers = #tpu.dot_dimension_numbers<[1], [0], [0], [1], [0, 0, 1, 1], [], []>} : vector<8x128xbf16>, vector<128x128xbf16>, vector<8x128xf32> -> vector<8x128xf32>
    %641 = vector.broadcast %638 : vector<1x128xf32> to vector<8x128xf32>
    %642 = arith.addf %640, %641 : vector<8x128xf32>
    %c0_420 = arith.constant 0 : index
    %c256_421 = arith.constant 256 : index
    %643 = vector.load %arg1[%c0_420, %c256_421] : memref<8x384xf32, #tpu.memory_space<vmem>>, vector<8x128xf32>
    %644 = arith.addf %642, %643 : vector<8x128xf32>
    %cst_422 = arith.constant 0.000000e+00 : f32
    %645 = vector.broadcast %cst_422 : f32 to vector<8x128xf32>
    %646 = arith.maximumf %644, %645 : vector<8x128xf32>
    %c0_423 = arith.constant 0 : index
    %c0_424 = arith.constant 0 : index
    %647 = vector.load %arg18[%c0_423, %c0_424] : memref<1x128xf32, #tpu.memory_space<vmem>>, vector<1x128xf32>
    %c0_425 = arith.constant 0 : index
    %c0_426 = arith.constant 0 : index
    %648 = vector.load %arg19[%c0_425, %c0_426] : memref<1x128xf32, #tpu.memory_space<vmem>>, vector<1x128xf32>
    %649 = arith.truncf %646 : vector<8x128xf32> to vector<8x128xbf16>
    %cst_427 = arith.constant dense<0.000000e+00> : vector<8x128xf32>
    %650 = tpu.matmul %649, %460, %cst_427 {dimension_numbers = #tpu.dot_dimension_numbers<[1], [0], [0], [1], [0, 0, 1, 1], [], []>} : vector<8x128xbf16>, vector<128x128xbf16>, vector<8x128xf32> -> vector<8x128xf32>
    %651 = arith.subf %646, %650 : vector<8x128xf32>
    %652 = arith.mulf %651, %651 : vector<8x128xf32>
    %653 = arith.truncf %652 : vector<8x128xf32> to vector<8x128xbf16>
    %cst_428 = arith.constant dense<0.000000e+00> : vector<8x128xf32>
    %654 = tpu.matmul %653, %460, %cst_428 {dimension_numbers = #tpu.dot_dimension_numbers<[1], [0], [0], [1], [0, 0, 1, 1], [], []>} : vector<8x128xbf16>, vector<128x128xbf16>, vector<8x128xf32> -> vector<8x128xf32>
    %cst_429 = arith.constant 9.99999974E-6 : f32
    %655 = vector.broadcast %cst_429 : f32 to vector<8x128xf32>
    %656 = arith.addf %654, %655 : vector<8x128xf32>
    %657 = math.rsqrt %656 : vector<8x128xf32>
    %658 = arith.mulf %651, %657 : vector<8x128xf32>
    %659 = vector.broadcast %647 : vector<1x128xf32> to vector<8x128xf32>
    %660 = arith.mulf %658, %659 : vector<8x128xf32>
    %661 = vector.broadcast %648 : vector<1x128xf32> to vector<8x128xf32>
    %662 = arith.addf %660, %661 : vector<8x128xf32>
    %663 = vector.shape_cast %662 : vector<8x128xf32> to vector<1x8x128xf32>
    %c1_430 = arith.constant 1 : index
    %c0_431 = arith.constant 0 : index
    %c256_432 = arith.constant 256 : index
    %664 = vector.load %arg22[%c1_430, %c0_431, %c256_432] : memref<6x8x384xf32, #tpu.memory_space<vmem>>, vector<1x8x128xf32>
    tpu.vector_store %arg22[%c1_430, %c0_431, %c256_432], %663 {strides = array<i32>} : memref<6x8x384xf32, #tpu.memory_space<vmem>>, vector<1x8x128xf32>,
    %cst_433 = arith.constant 0.000000e+00 : f32
    %665 = vector.broadcast %cst_433 : f32 to vector<8x1xf32>
    %cst_434 = arith.constant 0.000000e+00 : f32
    %666 = vector.broadcast %cst_434 : f32 to vector<8x1xf32>
    %cst_435 = arith.constant 0.000000e+00 : f32
    %667 = vector.broadcast %cst_435 : f32 to vector<8x1xf32>
    %cst_436 = arith.constant 0.000000e+00 : f32
    %668 = vector.broadcast %cst_436 : f32 to vector<8x1xf32>
    %cst_437 = arith.constant 0.000000e+00 : f32
    %669 = vector.broadcast %cst_437 : f32 to vector<8x1xf32>
    %cst_438 = arith.constant 0.000000e+00 : f32
    %670 = vector.broadcast %cst_438 : f32 to vector<8x1xf32>
    %c1_439 = arith.constant 1 : index
    %c0_440 = arith.constant 0 : index
    %c0_441 = arith.constant 0 : index
    %671 = vector.load %arg22[%c1_439, %c0_440, %c0_441] : memref<6x8x384xf32, #tpu.memory_space<vmem>>, vector<1x8x128xf32>
    %672 = vector.shape_cast %671 : vector<1x8x128xf32> to vector<8x128xf32>
    %c0_442 = arith.constant 0 : index
    %c0_443 = arith.constant 0 : index
    %673 = vector.load %arg24[%c0_442, %c0_443] : memref<8x384xf32, #tpu.memory_space<vmem>>, vector<8x128xf32>
    %674 = arith.subf %672, %673 : vector<8x128xf32>
    %675 = vector.shape_cast %674 : vector<8x128xf32> to vector<1x8x128xf32>
    %c1_444 = arith.constant 1 : index
    %c0_445 = arith.constant 0 : index
    %c0_446 = arith.constant 0 : index
    %676 = vector.load %arg23[%c1_444, %c0_445, %c0_446] : memref<6x8x384xf32, #tpu.memory_space<vmem>>, vector<1x8x128xf32>
    tpu.vector_store %arg23[%c1_444, %c0_445, %c0_446], %675 {strides = array<i32>} : memref<6x8x384xf32, #tpu.memory_space<vmem>>, vector<1x8x128xf32>,
    %c0_447 = arith.constant 0 : index
    %c0_448 = arith.constant 0 : index
    %c0_449 = arith.constant 0 : index
    %677 = vector.load %arg23[%c0_447, %c0_448, %c0_449] : memref<6x8x384xf32, #tpu.memory_space<vmem>>, vector<1x8x128xf32>
    %678 = vector.shape_cast %677 : vector<1x8x128xf32> to vector<8x128xf32>
    %679 = arith.mulf %674, %678 : vector<8x128xf32>
    %cst_450 = arith.constant dense<0.000000e+00> : vector<8xf32>
    %680 = vector.multi_reduction <add>, %679, %cst_450 [1] : vector<8x128xf32> to vector<8xf32>
    %681 = vector.shape_cast %680 : vector<8xf32> to vector<8x1xf32>
    %682 = arith.addf %665, %681 : vector<8x1xf32>
    %c1_451 = arith.constant 1 : index
    %c0_452 = arith.constant 0 : index
    %c0_453 = arith.constant 0 : index
    %683 = vector.load %arg23[%c1_451, %c0_452, %c0_453] : memref<6x8x384xf32, #tpu.memory_space<vmem>>, vector<1x8x128xf32>
    %684 = vector.shape_cast %683 : vector<1x8x128xf32> to vector<8x128xf32>
    %685 = arith.mulf %674, %684 : vector<8x128xf32>
    %cst_454 = arith.constant dense<0.000000e+00> : vector<8xf32>
    %686 = vector.multi_reduction <add>, %685, %cst_454 [1] : vector<8x128xf32> to vector<8xf32>
    %687 = vector.shape_cast %686 : vector<8xf32> to vector<8x1xf32>
    %688 = arith.addf %666, %687 : vector<8x1xf32>
    %c2_455 = arith.constant 2 : index
    %c0_456 = arith.constant 0 : index
    %c0_457 = arith.constant 0 : index
    %689 = vector.load %arg23[%c2_455, %c0_456, %c0_457] : memref<6x8x384xf32, #tpu.memory_space<vmem>>, vector<1x8x128xf32>
    %690 = vector.shape_cast %689 : vector<1x8x128xf32> to vector<8x128xf32>
    %691 = arith.mulf %674, %690 : vector<8x128xf32>
    %cst_458 = arith.constant dense<0.000000e+00> : vector<8xf32>
    %692 = vector.multi_reduction <add>, %691, %cst_458 [1] : vector<8x128xf32> to vector<8xf32>
    %693 = vector.shape_cast %692 : vector<8xf32> to vector<8x1xf32>
    %694 = arith.addf %667, %693 : vector<8x1xf32>
    %c3_459 = arith.constant 3 : index
    %c0_460 = arith.constant 0 : index
    %c0_461 = arith.constant 0 : index
    %695 = vector.load %arg23[%c3_459, %c0_460, %c0_461] : memref<6x8x384xf32, #tpu.memory_space<vmem>>, vector<1x8x128xf32>
    %696 = vector.shape_cast %695 : vector<1x8x128xf32> to vector<8x128xf32>
    %697 = arith.mulf %674, %696 : vector<8x128xf32>
    %cst_462 = arith.constant dense<0.000000e+00> : vector<8xf32>
    %698 = vector.multi_reduction <add>, %697, %cst_462 [1] : vector<8x128xf32> to vector<8xf32>
    %699 = vector.shape_cast %698 : vector<8xf32> to vector<8x1xf32>
    %700 = arith.addf %668, %699 : vector<8x1xf32>
    %c4_463 = arith.constant 4 : index
    %c0_464 = arith.constant 0 : index
    %c0_465 = arith.constant 0 : index
    %701 = vector.load %arg23[%c4_463, %c0_464, %c0_465] : memref<6x8x384xf32, #tpu.memory_space<vmem>>, vector<1x8x128xf32>
    %702 = vector.shape_cast %701 : vector<1x8x128xf32> to vector<8x128xf32>
    %703 = arith.mulf %674, %702 : vector<8x128xf32>
    %cst_466 = arith.constant dense<0.000000e+00> : vector<8xf32>
    %704 = vector.multi_reduction <add>, %703, %cst_466 [1] : vector<8x128xf32> to vector<8xf32>
    %705 = vector.shape_cast %704 : vector<8xf32> to vector<8x1xf32>
    %706 = arith.addf %669, %705 : vector<8x1xf32>
    %c5_467 = arith.constant 5 : index
    %c0_468 = arith.constant 0 : index
    %c0_469 = arith.constant 0 : index
    %707 = vector.load %arg23[%c5_467, %c0_468, %c0_469] : memref<6x8x384xf32, #tpu.memory_space<vmem>>, vector<1x8x128xf32>
    %708 = vector.shape_cast %707 : vector<1x8x128xf32> to vector<8x128xf32>
    %709 = arith.mulf %674, %708 : vector<8x128xf32>
    %cst_470 = arith.constant dense<0.000000e+00> : vector<8xf32>
    %710 = vector.multi_reduction <add>, %709, %cst_470 [1] : vector<8x128xf32> to vector<8xf32>
    %711 = vector.shape_cast %710 : vector<8xf32> to vector<8x1xf32>
    %712 = arith.addf %670, %711 : vector<8x1xf32>
    %c1_471 = arith.constant 1 : index
    %c0_472 = arith.constant 0 : index
    %c128_473 = arith.constant 128 : index
    %713 = vector.load %arg22[%c1_471, %c0_472, %c128_473] : memref<6x8x384xf32, #tpu.memory_space<vmem>>, vector<1x8x128xf32>
    %714 = vector.shape_cast %713 : vector<1x8x128xf32> to vector<8x128xf32>
    %c0_474 = arith.constant 0 : index
    %c128_475 = arith.constant 128 : index
    %715 = vector.load %arg24[%c0_474, %c128_475] : memref<8x384xf32, #tpu.memory_space<vmem>>, vector<8x128xf32>
    %716 = arith.subf %714, %715 : vector<8x128xf32>
    %717 = vector.shape_cast %716 : vector<8x128xf32> to vector<1x8x128xf32>
    %c1_476 = arith.constant 1 : index
    %c0_477 = arith.constant 0 : index
    %c128_478 = arith.constant 128 : index
    %718 = vector.load %arg23[%c1_476, %c0_477, %c128_478] : memref<6x8x384xf32, #tpu.memory_space<vmem>>, vector<1x8x128xf32>
    tpu.vector_store %arg23[%c1_476, %c0_477, %c128_478], %717 {strides = array<i32>} : memref<6x8x384xf32, #tpu.memory_space<vmem>>, vector<1x8x128xf32>,
    %c0_479 = arith.constant 0 : index
    %c0_480 = arith.constant 0 : index
    %c128_481 = arith.constant 128 : index
    %719 = vector.load %arg23[%c0_479, %c0_480, %c128_481] : memref<6x8x384xf32, #tpu.memory_space<vmem>>, vector<1x8x128xf32>
    %720 = vector.shape_cast %719 : vector<1x8x128xf32> to vector<8x128xf32>
    %721 = arith.mulf %716, %720 : vector<8x128xf32>
    %cst_482 = arith.constant dense<0.000000e+00> : vector<8xf32>
    %722 = vector.multi_reduction <add>, %721, %cst_482 [1] : vector<8x128xf32> to vector<8xf32>
    %723 = vector.shape_cast %722 : vector<8xf32> to vector<8x1xf32>
    %724 = arith.addf %682, %723 : vector<8x1xf32>
    %c1_483 = arith.constant 1 : index
    %c0_484 = arith.constant 0 : index
    %c128_485 = arith.constant 128 : index
    %725 = vector.load %arg23[%c1_483, %c0_484, %c128_485] : memref<6x8x384xf32, #tpu.memory_space<vmem>>, vector<1x8x128xf32>
    %726 = vector.shape_cast %725 : vector<1x8x128xf32> to vector<8x128xf32>
    %727 = arith.mulf %716, %726 : vector<8x128xf32>
    %cst_486 = arith.constant dense<0.000000e+00> : vector<8xf32>
    %728 = vector.multi_reduction <add>, %727, %cst_486 [1] : vector<8x128xf32> to vector<8xf32>
    %729 = vector.shape_cast %728 : vector<8xf32> to vector<8x1xf32>
    %730 = arith.addf %688, %729 : vector<8x1xf32>
    %c2_487 = arith.constant 2 : index
    %c0_488 = arith.constant 0 : index
    %c128_489 = arith.constant 128 : index
    %731 = vector.load %arg23[%c2_487, %c0_488, %c128_489] : memref<6x8x384xf32, #tpu.memory_space<vmem>>, vector<1x8x128xf32>
    %732 = vector.shape_cast %731 : vector<1x8x128xf32> to vector<8x128xf32>
    %733 = arith.mulf %716, %732 : vector<8x128xf32>
    %cst_490 = arith.constant dense<0.000000e+00> : vector<8xf32>
    %734 = vector.multi_reduction <add>, %733, %cst_490 [1] : vector<8x128xf32> to vector<8xf32>
    %735 = vector.shape_cast %734 : vector<8xf32> to vector<8x1xf32>
    %736 = arith.addf %694, %735 : vector<8x1xf32>
    %c3_491 = arith.constant 3 : index
    %c0_492 = arith.constant 0 : index
    %c128_493 = arith.constant 128 : index
    %737 = vector.load %arg23[%c3_491, %c0_492, %c128_493] : memref<6x8x384xf32, #tpu.memory_space<vmem>>, vector<1x8x128xf32>
    %738 = vector.shape_cast %737 : vector<1x8x128xf32> to vector<8x128xf32>
    %739 = arith.mulf %716, %738 : vector<8x128xf32>
    %cst_494 = arith.constant dense<0.000000e+00> : vector<8xf32>
    %740 = vector.multi_reduction <add>, %739, %cst_494 [1] : vector<8x128xf32> to vector<8xf32>
    %741 = vector.shape_cast %740 : vector<8xf32> to vector<8x1xf32>
    %742 = arith.addf %700, %741 : vector<8x1xf32>
    %c4_495 = arith.constant 4 : index
    %c0_496 = arith.constant 0 : index
    %c128_497 = arith.constant 128 : index
    %743 = vector.load %arg23[%c4_495, %c0_496, %c128_497] : memref<6x8x384xf32, #tpu.memory_space<vmem>>, vector<1x8x128xf32>
    %744 = vector.shape_cast %743 : vector<1x8x128xf32> to vector<8x128xf32>
    %745 = arith.mulf %716, %744 : vector<8x128xf32>
    %cst_498 = arith.constant dense<0.000000e+00> : vector<8xf32>
    %746 = vector.multi_reduction <add>, %745, %cst_498 [1] : vector<8x128xf32> to vector<8xf32>
    %747 = vector.shape_cast %746 : vector<8xf32> to vector<8x1xf32>
    %748 = arith.addf %706, %747 : vector<8x1xf32>
    %c5_499 = arith.constant 5 : index
    %c0_500 = arith.constant 0 : index
    %c128_501 = arith.constant 128 : index
    %749 = vector.load %arg23[%c5_499, %c0_500, %c128_501] : memref<6x8x384xf32, #tpu.memory_space<vmem>>, vector<1x8x128xf32>
    %750 = vector.shape_cast %749 : vector<1x8x128xf32> to vector<8x128xf32>
    %751 = arith.mulf %716, %750 : vector<8x128xf32>
    %cst_502 = arith.constant dense<0.000000e+00> : vector<8xf32>
    %752 = vector.multi_reduction <add>, %751, %cst_502 [1] : vector<8x128xf32> to vector<8xf32>
    %753 = vector.shape_cast %752 : vector<8xf32> to vector<8x1xf32>
    %754 = arith.addf %712, %753 : vector<8x1xf32>
    %c1_503 = arith.constant 1 : index
    %c0_504 = arith.constant 0 : index
    %c256_505 = arith.constant 256 : index
    %755 = vector.load %arg22[%c1_503, %c0_504, %c256_505] : memref<6x8x384xf32, #tpu.memory_space<vmem>>, vector<1x8x128xf32>
    %756 = vector.shape_cast %755 : vector<1x8x128xf32> to vector<8x128xf32>
    %c0_506 = arith.constant 0 : index
    %c256_507 = arith.constant 256 : index
    %757 = vector.load %arg24[%c0_506, %c256_507] : memref<8x384xf32, #tpu.memory_space<vmem>>, vector<8x128xf32>
    %758 = arith.subf %756, %757 : vector<8x128xf32>
    %759 = vector.shape_cast %758 : vector<8x128xf32> to vector<1x8x128xf32>
    %c1_508 = arith.constant 1 : index
    %c0_509 = arith.constant 0 : index
    %c256_510 = arith.constant 256 : index
    %760 = vector.load %arg23[%c1_508, %c0_509, %c256_510] : memref<6x8x384xf32, #tpu.memory_space<vmem>>, vector<1x8x128xf32>
    tpu.vector_store %arg23[%c1_508, %c0_509, %c256_510], %759 {strides = array<i32>} : memref<6x8x384xf32, #tpu.memory_space<vmem>>, vector<1x8x128xf32>,
    %c0_511 = arith.constant 0 : index
    %c0_512 = arith.constant 0 : index
    %c256_513 = arith.constant 256 : index
    %761 = vector.load %arg23[%c0_511, %c0_512, %c256_513] : memref<6x8x384xf32, #tpu.memory_space<vmem>>, vector<1x8x128xf32>
    %762 = vector.shape_cast %761 : vector<1x8x128xf32> to vector<8x128xf32>
    %763 = arith.mulf %758, %762 : vector<8x128xf32>
    %cst_514 = arith.constant dense<0.000000e+00> : vector<8xf32>
    %764 = vector.multi_reduction <add>, %763, %cst_514 [1] : vector<8x128xf32> to vector<8xf32>
    %765 = vector.shape_cast %764 : vector<8xf32> to vector<8x1xf32>
    %766 = arith.addf %724, %765 : vector<8x1xf32>
    %c1_515 = arith.constant 1 : index
    %c0_516 = arith.constant 0 : index
    %c256_517 = arith.constant 256 : index
    %767 = vector.load %arg23[%c1_515, %c0_516, %c256_517] : memref<6x8x384xf32, #tpu.memory_space<vmem>>, vector<1x8x128xf32>
    %768 = vector.shape_cast %767 : vector<1x8x128xf32> to vector<8x128xf32>
    %769 = arith.mulf %758, %768 : vector<8x128xf32>
    %cst_518 = arith.constant dense<0.000000e+00> : vector<8xf32>
    %770 = vector.multi_reduction <add>, %769, %cst_518 [1] : vector<8x128xf32> to vector<8xf32>
    %771 = vector.shape_cast %770 : vector<8xf32> to vector<8x1xf32>
    %772 = arith.addf %730, %771 : vector<8x1xf32>
    %c2_519 = arith.constant 2 : index
    %c0_520 = arith.constant 0 : index
    %c256_521 = arith.constant 256 : index
    %773 = vector.load %arg23[%c2_519, %c0_520, %c256_521] : memref<6x8x384xf32, #tpu.memory_space<vmem>>, vector<1x8x128xf32>
    %774 = vector.shape_cast %773 : vector<1x8x128xf32> to vector<8x128xf32>
    %775 = arith.mulf %758, %774 : vector<8x128xf32>
    %cst_522 = arith.constant dense<0.000000e+00> : vector<8xf32>
    %776 = vector.multi_reduction <add>, %775, %cst_522 [1] : vector<8x128xf32> to vector<8xf32>
    %777 = vector.shape_cast %776 : vector<8xf32> to vector<8x1xf32>
    %778 = arith.addf %736, %777 : vector<8x1xf32>
    %c3_523 = arith.constant 3 : index
    %c0_524 = arith.constant 0 : index
    %c256_525 = arith.constant 256 : index
    %779 = vector.load %arg23[%c3_523, %c0_524, %c256_525] : memref<6x8x384xf32, #tpu.memory_space<vmem>>, vector<1x8x128xf32>
    %780 = vector.shape_cast %779 : vector<1x8x128xf32> to vector<8x128xf32>
    %781 = arith.mulf %758, %780 : vector<8x128xf32>
    %cst_526 = arith.constant dense<0.000000e+00> : vector<8xf32>
    %782 = vector.multi_reduction <add>, %781, %cst_526 [1] : vector<8x128xf32> to vector<8xf32>
    %783 = vector.shape_cast %782 : vector<8xf32> to vector<8x1xf32>
    %784 = arith.addf %742, %783 : vector<8x1xf32>
    %c4_527 = arith.constant 4 : index
    %c0_528 = arith.constant 0 : index
    %c256_529 = arith.constant 256 : index
    %785 = vector.load %arg23[%c4_527, %c0_528, %c256_529] : memref<6x8x384xf32, #tpu.memory_space<vmem>>, vector<1x8x128xf32>
    %786 = vector.shape_cast %785 : vector<1x8x128xf32> to vector<8x128xf32>
    %787 = arith.mulf %758, %786 : vector<8x128xf32>
    %cst_530 = arith.constant dense<0.000000e+00> : vector<8xf32>
    %788 = vector.multi_reduction <add>, %787, %cst_530 [1] : vector<8x128xf32> to vector<8xf32>
    %789 = vector.shape_cast %788 : vector<8xf32> to vector<8x1xf32>
    %790 = arith.addf %748, %789 : vector<8x1xf32>
    %c5_531 = arith.constant 5 : index
    %c0_532 = arith.constant 0 : index
    %c256_533 = arith.constant 256 : index
    %791 = vector.load %arg23[%c5_531, %c0_532, %c256_533] : memref<6x8x384xf32, #tpu.memory_space<vmem>>, vector<1x8x128xf32>
    %792 = vector.shape_cast %791 : vector<1x8x128xf32> to vector<8x128xf32>
    %793 = arith.mulf %758, %792 : vector<8x128xf32>
    %cst_534 = arith.constant dense<0.000000e+00> : vector<8xf32>
    %794 = vector.multi_reduction <add>, %793, %cst_534 [1] : vector<8x128xf32> to vector<8xf32>
    %795 = vector.shape_cast %794 : vector<8xf32> to vector<8x1xf32>
    %796 = arith.addf %754, %795 : vector<8x1xf32>
    %797 = tpu.concatenate %766, %772, %778, %784, %790, %796 in 1 : vector<8x1xf32>, vector<8x1xf32>, vector<8x1xf32>, vector<8x1xf32>, vector<8x1xf32>, vector<8x1xf32> -> vector<8x6xf32>
    %c1_i32_535 = arith.constant 1 : i32
    %798 = vector.broadcast %c1_i32_535 : i32 to vector<8x6xi32>
    %799 = arith.cmpi eq, %0, %798 : vector<8x6xi32>
    %c0_536 = arith.constant 0 : index
    %c0_537 = arith.constant 0 : index
    %c0_538 = arith.constant 0 : index
    %800 = vector.load %arg25[%c0_536, %c0_537, %c0_538] : memref<6x8x6xf32, #tpu.memory_space<vmem>>, vector<1x8x6xf32>
    %801 = vector.shape_cast %800 : vector<1x8x6xf32> to vector<8x6xf32>
    %802 = vector.shape_cast %766 : vector<8x1xf32> to vector<8x1xf32>
    %803 = vector.broadcast %802 : vector<8x1xf32> to vector<8x6xf32>
    %804 = arith.select %799, %803, %801 : vector<8x6xi1>, vector<8x6xf32>
    %c0_i32_539 = arith.constant 0 : i32
    %c1_i32_540 = arith.constant 1 : i32
    %805 = arith.cmpi eq, %c0_i32_539, %c1_i32_540 : i32
    %806 = arith.extui %805 : i1 to i32
    %807 = arith.sitofp %806 : i32 to f32
    %808 = vector.broadcast %807 : f32 to vector<8x6xf32>
    %809 = arith.mulf %808, %797 : vector<8x6xf32>
    %cst_541 = arith.constant 1.000000e+00 : f32
    %810 = arith.subf %cst_541, %807 : f32
    %811 = vector.broadcast %810 : f32 to vector<8x6xf32>
    %812 = arith.mulf %811, %804 : vector<8x6xf32>
    %813 = arith.addf %809, %812 : vector<8x6xf32>
    %c0_542 = arith.constant 0 : index
    %c0_543 = arith.constant 0 : index
    %c0_544 = arith.constant 0 : index
    %814 = vector.load %arg25[%c0_542, %c0_543, %c0_544] : memref<6x8x6xf32, #tpu.memory_space<vmem>>, vector<1x8x6xf32>
    %815 = vector.shape_cast %814 : vector<1x8x6xf32> to vector<8x6xf32>
    %816 = vector.shape_cast %813 : vector<8x6xf32> to vector<1x8x6xf32>
    tpu.vector_store %arg25[%c0_542, %c0_543, %c0_544], %816 {strides = array<i32>} : memref<6x8x6xf32, #tpu.memory_space<vmem>>, vector<1x8x6xf32>,
    %c1_545 = arith.constant 1 : index
    %c0_546 = arith.constant 0 : index
    %c0_547 = arith.constant 0 : index
    %817 = vector.load %arg25[%c1_545, %c0_546, %c0_547] : memref<6x8x6xf32, #tpu.memory_space<vmem>>, vector<1x8x6xf32>
    %818 = vector.shape_cast %817 : vector<1x8x6xf32> to vector<8x6xf32>
    %819 = vector.shape_cast %772 : vector<8x1xf32> to vector<8x1xf32>
    %820 = vector.broadcast %819 : vector<8x1xf32> to vector<8x6xf32>
    %821 = arith.select %799, %820, %818 : vector<8x6xi1>, vector<8x6xf32>
    %c1_i32_548 = arith.constant 1 : i32
    %c1_i32_549 = arith.constant 1 : i32
    %822 = arith.cmpi eq, %c1_i32_548, %c1_i32_549 : i32
    %823 = arith.extui %822 : i1 to i32
    %824 = arith.sitofp %823 : i32 to f32
    %825 = vector.broadcast %824 : f32 to vector<8x6xf32>
    %826 = arith.mulf %825, %797 : vector<8x6xf32>
    %cst_550 = arith.constant 1.000000e+00 : f32
    %827 = arith.subf %cst_550, %824 : f32
    %828 = vector.broadcast %827 : f32 to vector<8x6xf32>
    %829 = arith.mulf %828, %821 : vector<8x6xf32>
    %830 = arith.addf %826, %829 : vector<8x6xf32>
    %c1_551 = arith.constant 1 : index
    %c0_552 = arith.constant 0 : index
    %c0_553 = arith.constant 0 : index
    %831 = vector.load %arg25[%c1_551, %c0_552, %c0_553] : memref<6x8x6xf32, #tpu.memory_space<vmem>>, vector<1x8x6xf32>
    %832 = vector.shape_cast %831 : vector<1x8x6xf32> to vector<8x6xf32>
    %833 = vector.shape_cast %830 : vector<8x6xf32> to vector<1x8x6xf32>
    tpu.vector_store %arg25[%c1_551, %c0_552, %c0_553], %833 {strides = array<i32>} : memref<6x8x6xf32, #tpu.memory_space<vmem>>, vector<1x8x6xf32>,
    %c2_554 = arith.constant 2 : index
    %c0_555 = arith.constant 0 : index
    %c0_556 = arith.constant 0 : index
    %834 = vector.load %arg25[%c2_554, %c0_555, %c0_556] : memref<6x8x6xf32, #tpu.memory_space<vmem>>, vector<1x8x6xf32>
    %835 = vector.shape_cast %834 : vector<1x8x6xf32> to vector<8x6xf32>
    %836 = vector.shape_cast %778 : vector<8x1xf32> to vector<8x1xf32>
    %837 = vector.broadcast %836 : vector<8x1xf32> to vector<8x6xf32>
    %838 = arith.select %799, %837, %835 : vector<8x6xi1>, vector<8x6xf32>
    %c2_i32_557 = arith.constant 2 : i32
    %c1_i32_558 = arith.constant 1 : i32
    %839 = arith.cmpi eq, %c2_i32_557, %c1_i32_558 : i32
    %840 = arith.extui %839 : i1 to i32
    %841 = arith.sitofp %840 : i32 to f32
    %842 = vector.broadcast %841 : f32 to vector<8x6xf32>
    %843 = arith.mulf %842, %797 : vector<8x6xf32>
    %cst_559 = arith.constant 1.000000e+00 : f32
    %844 = arith.subf %cst_559, %841 : f32
    %845 = vector.broadcast %844 : f32 to vector<8x6xf32>
    %846 = arith.mulf %845, %838 : vector<8x6xf32>
    %847 = arith.addf %843, %846 : vector<8x6xf32>
    %c2_560 = arith.constant 2 : index
    %c0_561 = arith.constant 0 : index
    %c0_562 = arith.constant 0 : index
    %848 = vector.load %arg25[%c2_560, %c0_561, %c0_562] : memref<6x8x6xf32, #tpu.memory_space<vmem>>, vector<1x8x6xf32>
    %849 = vector.shape_cast %848 : vector<1x8x6xf32> to vector<8x6xf32>
    %850 = vector.shape_cast %847 : vector<8x6xf32> to vector<1x8x6xf32>
    tpu.vector_store %arg25[%c2_560, %c0_561, %c0_562], %850 {strides = array<i32>} : memref<6x8x6xf32, #tpu.memory_space<vmem>>, vector<1x8x6xf32>,
    %c3_563 = arith.constant 3 : index
    %c0_564 = arith.constant 0 : index
    %c0_565 = arith.constant 0 : index
    %851 = vector.load %arg25[%c3_563, %c0_564, %c0_565] : memref<6x8x6xf32, #tpu.memory_space<vmem>>, vector<1x8x6xf32>
    %852 = vector.shape_cast %851 : vector<1x8x6xf32> to vector<8x6xf32>
    %853 = vector.shape_cast %784 : vector<8x1xf32> to vector<8x1xf32>
    %854 = vector.broadcast %853 : vector<8x1xf32> to vector<8x6xf32>
    %855 = arith.select %799, %854, %852 : vector<8x6xi1>, vector<8x6xf32>
    %c3_i32_566 = arith.constant 3 : i32
    %c1_i32_567 = arith.constant 1 : i32
    %856 = arith.cmpi eq, %c3_i32_566, %c1_i32_567 : i32
    %857 = arith.extui %856 : i1 to i32
    %858 = arith.sitofp %857 : i32 to f32
    %859 = vector.broadcast %858 : f32 to vector<8x6xf32>
    %860 = arith.mulf %859, %797 : vector<8x6xf32>
    %cst_568 = arith.constant 1.000000e+00 : f32
    %861 = arith.subf %cst_568, %858 : f32
    %862 = vector.broadcast %861 : f32 to vector<8x6xf32>
    %863 = arith.mulf %862, %855 : vector<8x6xf32>
    %864 = arith.addf %860, %863 : vector<8x6xf32>
    %c3_569 = arith.constant 3 : index
    %c0_570 = arith.constant 0 : index
    %c0_571 = arith.constant 0 : index
    %865 = vector.load %arg25[%c3_569, %c0_570, %c0_571] : memref<6x8x6xf32, #tpu.memory_space<vmem>>, vector<1x8x6xf32>
    %866 = vector.shape_cast %865 : vector<1x8x6xf32> to vector<8x6xf32>
    %867 = vector.shape_cast %864 : vector<8x6xf32> to vector<1x8x6xf32>
    tpu.vector_store %arg25[%c3_569, %c0_570, %c0_571], %867 {strides = array<i32>} : memref<6x8x6xf32, #tpu.memory_space<vmem>>, vector<1x8x6xf32>,
    %c4_572 = arith.constant 4 : index
    %c0_573 = arith.constant 0 : index
    %c0_574 = arith.constant 0 : index
    %868 = vector.load %arg25[%c4_572, %c0_573, %c0_574] : memref<6x8x6xf32, #tpu.memory_space<vmem>>, vector<1x8x6xf32>
    %869 = vector.shape_cast %868 : vector<1x8x6xf32> to vector<8x6xf32>
    %870 = vector.shape_cast %790 : vector<8x1xf32> to vector<8x1xf32>
    %871 = vector.broadcast %870 : vector<8x1xf32> to vector<8x6xf32>
    %872 = arith.select %799, %871, %869 : vector<8x6xi1>, vector<8x6xf32>
    %c4_i32_575 = arith.constant 4 : i32
    %c1_i32_576 = arith.constant 1 : i32
    %873 = arith.cmpi eq, %c4_i32_575, %c1_i32_576 : i32
    %874 = arith.extui %873 : i1 to i32
    %875 = arith.sitofp %874 : i32 to f32
    %876 = vector.broadcast %875 : f32 to vector<8x6xf32>
    %877 = arith.mulf %876, %797 : vector<8x6xf32>
    %cst_577 = arith.constant 1.000000e+00 : f32
    %878 = arith.subf %cst_577, %875 : f32
    %879 = vector.broadcast %878 : f32 to vector<8x6xf32>
    %880 = arith.mulf %879, %872 : vector<8x6xf32>
    %881 = arith.addf %877, %880 : vector<8x6xf32>
    %c4_578 = arith.constant 4 : index
    %c0_579 = arith.constant 0 : index
    %c0_580 = arith.constant 0 : index
    %882 = vector.load %arg25[%c4_578, %c0_579, %c0_580] : memref<6x8x6xf32, #tpu.memory_space<vmem>>, vector<1x8x6xf32>
    %883 = vector.shape_cast %882 : vector<1x8x6xf32> to vector<8x6xf32>
    %884 = vector.shape_cast %881 : vector<8x6xf32> to vector<1x8x6xf32>
    tpu.vector_store %arg25[%c4_578, %c0_579, %c0_580], %884 {strides = array<i32>} : memref<6x8x6xf32, #tpu.memory_space<vmem>>, vector<1x8x6xf32>,
    %c5_581 = arith.constant 5 : index
    %c0_582 = arith.constant 0 : index
    %c0_583 = arith.constant 0 : index
    %885 = vector.load %arg25[%c5_581, %c0_582, %c0_583] : memref<6x8x6xf32, #tpu.memory_space<vmem>>, vector<1x8x6xf32>
    %886 = vector.shape_cast %885 : vector<1x8x6xf32> to vector<8x6xf32>
    %887 = vector.shape_cast %796 : vector<8x1xf32> to vector<8x1xf32>
    %888 = vector.broadcast %887 : vector<8x1xf32> to vector<8x6xf32>
    %889 = arith.select %799, %888, %886 : vector<8x6xi1>, vector<8x6xf32>
    %c5_i32_584 = arith.constant 5 : i32
    %c1_i32_585 = arith.constant 1 : i32
    %890 = arith.cmpi eq, %c5_i32_584, %c1_i32_585 : i32
    %891 = arith.extui %890 : i1 to i32
    %892 = arith.sitofp %891 : i32 to f32
    %893 = vector.broadcast %892 : f32 to vector<8x6xf32>
    %894 = arith.mulf %893, %797 : vector<8x6xf32>
    %cst_586 = arith.constant 1.000000e+00 : f32
    %895 = arith.subf %cst_586, %892 : f32
    %896 = vector.broadcast %895 : f32 to vector<8x6xf32>
    %897 = arith.mulf %896, %889 : vector<8x6xf32>
    %898 = arith.addf %894, %897 : vector<8x6xf32>
    %c5_587 = arith.constant 5 : index
    %c0_588 = arith.constant 0 : index
    %c0_589 = arith.constant 0 : index
    %899 = vector.load %arg25[%c5_587, %c0_588, %c0_589] : memref<6x8x6xf32, #tpu.memory_space<vmem>>, vector<1x8x6xf32>
    %900 = vector.shape_cast %899 : vector<1x8x6xf32> to vector<8x6xf32>
    %901 = vector.shape_cast %898 : vector<8x6xf32> to vector<1x8x6xf32>
    tpu.vector_store %arg25[%c5_587, %c0_588, %c0_589], %901 {strides = array<i32>} : memref<6x8x6xf32, #tpu.memory_space<vmem>>, vector<1x8x6xf32>,
    %c2_i32_590 = arith.constant 2 : i32
    %c53_i32 = arith.constant 53 : i32
    %902 = arith.addi %c2_i32_590, %c53_i32 : i32
    %c1_i32_591 = arith.constant 1 : i32
    scf.for %arg31 = %c2_i32_590 to %902 step %c1_i32_591  : i32 {
      %c0_600 = arith.constant 0 : index
      %917 = memref.load %arg30[%c0_600] : memref<1xi32, #tpu.memory_space<smem>>
      %c0_i32_601 = arith.constant 0 : i32
      %918 = arith.cmpi eq, %917, %c0_i32_601 : i32
      %919 = arith.extui %918 : i1 to i32
      %c0_i32_602 = arith.constant 0 : i32
      %920 = arith.cmpi ne, %919, %c0_i32_602 : i32
      scf.if %920 {
        %c0_i32_603 = arith.constant 0 : i32
        %921 = arith.cmpi slt, %c0_i32_603, %arg31 : i32
        %922 = arith.extui %921 : i1 to i32
        %923 = arith.sitofp %922 : i32 to f32
        %c0_i32_604 = arith.constant 0 : i32
        %924 = vector.broadcast %c0_i32_604 : i32 to vector<8x6xi32>
        %925 = arith.cmpi eq, %0, %924 : vector<8x6xi32>
        %926 = arith.extui %925 : vector<8x6xi1> to vector<8x6xi32>
        %927 = arith.sitofp %926 : vector<8x6xi32> to vector<8x6xf32>
        %cst_605 = arith.constant 9.99999974E-5 : f32
        %928 = arith.mulf %923, %cst_605 : f32
        %cst_606 = arith.constant 1.000000e+00 : f32
        %929 = arith.subf %cst_606, %923 : f32
        %930 = arith.addf %928, %929 : f32
        %c0_607 = arith.constant 0 : index
        %c0_608 = arith.constant 0 : index
        %c0_609 = arith.constant 0 : index
        %931 = vector.load %arg25[%c0_607, %c0_608, %c0_609] : memref<6x8x6xf32, #tpu.memory_space<vmem>>, vector<1x8x6xf32>
        %932 = vector.shape_cast %931 : vector<1x8x6xf32> to vector<8x6xf32>
        %933 = vector.broadcast %930 : f32 to vector<8x6xf32>
        %934 = arith.mulf %927, %933 : vector<8x6xf32>
        %935 = arith.addf %932, %934 : vector<8x6xf32>
        %cst_610 = arith.constant 1.000000e+00 : f32
        %936 = vector.broadcast %cst_610 : f32 to vector<8x1xf32>
        %937 = vector.broadcast %923 : f32 to vector<8x1xf32>
        %938 = arith.mulf %937, %936 : vector<8x1xf32>
        %c1_i32_611 = arith.constant 1 : i32
        %939 = arith.cmpi slt, %c1_i32_611, %arg31 : i32
        %940 = arith.extui %939 : i1 to i32
        %941 = arith.sitofp %940 : i32 to f32
        %c1_i32_612 = arith.constant 1 : i32
        %942 = vector.broadcast %c1_i32_612 : i32 to vector<8x6xi32>
        %943 = arith.cmpi eq, %0, %942 : vector<8x6xi32>
        %944 = arith.extui %943 : vector<8x6xi1> to vector<8x6xi32>
        %945 = arith.sitofp %944 : vector<8x6xi32> to vector<8x6xf32>
        %cst_613 = arith.constant 9.99999974E-5 : f32
        %946 = arith.mulf %941, %cst_613 : f32
        %cst_614 = arith.constant 1.000000e+00 : f32
        %947 = arith.subf %cst_614, %941 : f32
        %948 = arith.addf %946, %947 : f32
        %c1_615 = arith.constant 1 : index
        %c0_616 = arith.constant 0 : index
        %c0_617 = arith.constant 0 : index
        %949 = vector.load %arg25[%c1_615, %c0_616, %c0_617] : memref<6x8x6xf32, #tpu.memory_space<vmem>>, vector<1x8x6xf32>
        %950 = vector.shape_cast %949 : vector<1x8x6xf32> to vector<8x6xf32>
        %951 = vector.broadcast %948 : f32 to vector<8x6xf32>
        %952 = arith.mulf %945, %951 : vector<8x6xf32>
        %953 = arith.addf %950, %952 : vector<8x6xf32>
        %cst_618 = arith.constant 1.000000e+00 : f32
        %954 = vector.broadcast %cst_618 : f32 to vector<8x1xf32>
        %955 = vector.broadcast %941 : f32 to vector<8x1xf32>
        %956 = arith.mulf %955, %954 : vector<8x1xf32>
        %c2_i32_619 = arith.constant 2 : i32
        %957 = arith.cmpi slt, %c2_i32_619, %arg31 : i32
        %958 = arith.extui %957 : i1 to i32
        %959 = arith.sitofp %958 : i32 to f32
        %c2_i32_620 = arith.constant 2 : i32
        %960 = vector.broadcast %c2_i32_620 : i32 to vector<8x6xi32>
        %961 = arith.cmpi eq, %0, %960 : vector<8x6xi32>
        %962 = arith.extui %961 : vector<8x6xi1> to vector<8x6xi32>
        %963 = arith.sitofp %962 : vector<8x6xi32> to vector<8x6xf32>
        %cst_621 = arith.constant 9.99999974E-5 : f32
        %964 = arith.mulf %959, %cst_621 : f32
        %cst_622 = arith.constant 1.000000e+00 : f32
        %965 = arith.subf %cst_622, %959 : f32
        %966 = arith.addf %964, %965 : f32
        %c2_623 = arith.constant 2 : index
        %c0_624 = arith.constant 0 : index
        %c0_625 = arith.constant 0 : index
        %967 = vector.load %arg25[%c2_623, %c0_624, %c0_625] : memref<6x8x6xf32, #tpu.memory_space<vmem>>, vector<1x8x6xf32>
        %968 = vector.shape_cast %967 : vector<1x8x6xf32> to vector<8x6xf32>
        %969 = vector.broadcast %966 : f32 to vector<8x6xf32>
        %970 = arith.mulf %963, %969 : vector<8x6xf32>
        %971 = arith.addf %968, %970 : vector<8x6xf32>
        %cst_626 = arith.constant 1.000000e+00 : f32
        %972 = vector.broadcast %cst_626 : f32 to vector<8x1xf32>
        %973 = vector.broadcast %959 : f32 to vector<8x1xf32>
        %974 = arith.mulf %973, %972 : vector<8x1xf32>
        %c3_i32_627 = arith.constant 3 : i32
        %975 = arith.cmpi slt, %c3_i32_627, %arg31 : i32
        %976 = arith.extui %975 : i1 to i32
        %977 = arith.sitofp %976 : i32 to f32
        %c3_i32_628 = arith.constant 3 : i32
        %978 = vector.broadcast %c3_i32_628 : i32 to vector<8x6xi32>
        %979 = arith.cmpi eq, %0, %978 : vector<8x6xi32>
        %980 = arith.extui %979 : vector<8x6xi1> to vector<8x6xi32>
        %981 = arith.sitofp %980 : vector<8x6xi32> to vector<8x6xf32>
        %cst_629 = arith.constant 9.99999974E-5 : f32
        %982 = arith.mulf %977, %cst_629 : f32
        %cst_630 = arith.constant 1.000000e+00 : f32
        %983 = arith.subf %cst_630, %977 : f32
        %984 = arith.addf %982, %983 : f32
        %c3_631 = arith.constant 3 : index
        %c0_632 = arith.constant 0 : index
        %c0_633 = arith.constant 0 : index
        %985 = vector.load %arg25[%c3_631, %c0_632, %c0_633] : memref<6x8x6xf32, #tpu.memory_space<vmem>>, vector<1x8x6xf32>
        %986 = vector.shape_cast %985 : vector<1x8x6xf32> to vector<8x6xf32>
        %987 = vector.broadcast %984 : f32 to vector<8x6xf32>
        %988 = arith.mulf %981, %987 : vector<8x6xf32>
        %989 = arith.addf %986, %988 : vector<8x6xf32>
        %cst_634 = arith.constant 1.000000e+00 : f32
        %990 = vector.broadcast %cst_634 : f32 to vector<8x1xf32>
        %991 = vector.broadcast %977 : f32 to vector<8x1xf32>
        %992 = arith.mulf %991, %990 : vector<8x1xf32>
        %c4_i32_635 = arith.constant 4 : i32
        %993 = arith.cmpi slt, %c4_i32_635, %arg31 : i32
        %994 = arith.extui %993 : i1 to i32
        %995 = arith.sitofp %994 : i32 to f32
        %c4_i32_636 = arith.constant 4 : i32
        %996 = vector.broadcast %c4_i32_636 : i32 to vector<8x6xi32>
        %997 = arith.cmpi eq, %0, %996 : vector<8x6xi32>
        %998 = arith.extui %997 : vector<8x6xi1> to vector<8x6xi32>
        %999 = arith.sitofp %998 : vector<8x6xi32> to vector<8x6xf32>
        %cst_637 = arith.constant 9.99999974E-5 : f32
        %1000 = arith.mulf %995, %cst_637 : f32
        %cst_638 = arith.constant 1.000000e+00 : f32
        %1001 = arith.subf %cst_638, %995 : f32
        %1002 = arith.addf %1000, %1001 : f32
        %c4_639 = arith.constant 4 : index
        %c0_640 = arith.constant 0 : index
        %c0_641 = arith.constant 0 : index
        %1003 = vector.load %arg25[%c4_639, %c0_640, %c0_641] : memref<6x8x6xf32, #tpu.memory_space<vmem>>, vector<1x8x6xf32>
        %1004 = vector.shape_cast %1003 : vector<1x8x6xf32> to vector<8x6xf32>
        %1005 = vector.broadcast %1002 : f32 to vector<8x6xf32>
        %1006 = arith.mulf %999, %1005 : vector<8x6xf32>
        %1007 = arith.addf %1004, %1006 : vector<8x6xf32>
        %cst_642 = arith.constant 1.000000e+00 : f32
        %1008 = vector.broadcast %cst_642 : f32 to vector<8x1xf32>
        %1009 = vector.broadcast %995 : f32 to vector<8x1xf32>
        %1010 = arith.mulf %1009, %1008 : vector<8x1xf32>
        %c5_i32_643 = arith.constant 5 : i32
        %1011 = arith.cmpi slt, %c5_i32_643, %arg31 : i32
        %1012 = arith.extui %1011 : i1 to i32
        %1013 = arith.sitofp %1012 : i32 to f32
        %c5_i32_644 = arith.constant 5 : i32
        %1014 = vector.broadcast %c5_i32_644 : i32 to vector<8x6xi32>
        %1015 = arith.cmpi eq, %0, %1014 : vector<8x6xi32>
        %1016 = arith.extui %1015 : vector<8x6xi1> to vector<8x6xi32>
        %1017 = arith.sitofp %1016 : vector<8x6xi32> to vector<8x6xf32>
        %cst_645 = arith.constant 9.99999974E-5 : f32
        %1018 = arith.mulf %1013, %cst_645 : f32
        %cst_646 = arith.constant 1.000000e+00 : f32
        %1019 = arith.subf %cst_646, %1013 : f32
        %1020 = arith.addf %1018, %1019 : f32
        %c5_647 = arith.constant 5 : index
        %c0_648 = arith.constant 0 : index
        %c0_649 = arith.constant 0 : index
        %1021 = vector.load %arg25[%c5_647, %c0_648, %c0_649] : memref<6x8x6xf32, #tpu.memory_space<vmem>>, vector<1x8x6xf32>
        %1022 = vector.shape_cast %1021 : vector<1x8x6xf32> to vector<8x6xf32>
        %1023 = vector.broadcast %1020 : f32 to vector<8x6xf32>
        %1024 = arith.mulf %1017, %1023 : vector<8x6xf32>
        %1025 = arith.addf %1022, %1024 : vector<8x6xf32>
        %cst_650 = arith.constant 1.000000e+00 : f32
        %1026 = vector.broadcast %cst_650 : f32 to vector<8x1xf32>
        %1027 = vector.broadcast %1013 : f32 to vector<8x1xf32>
        %1028 = arith.mulf %1027, %1026 : vector<8x1xf32>
        %1029 = vector.extract_strided_slice %935 {offsets = [0, 0], sizes = [8, 1], strides = [1, 1]} : vector<8x6xf32> to vector<8x1xf32>
        %cst_651 = arith.constant 9.99999993E-9 : f32
        %1030 = vector.broadcast %cst_651 : f32 to vector<8x1xf32>
        %1031 = arith.maximumf %1029, %1030 : vector<8x1xf32>
        %cst_652 = arith.constant 1.000000e+00 : f32
        %1032 = vector.broadcast %cst_652 : f32 to vector<8x1xf32>
        %1033 = arith.divf %1032, %1031 : vector<8x1xf32>
        %1034 = vector.extract_strided_slice %953 {offsets = [0, 0], sizes = [8, 1], strides = [1, 1]} : vector<8x6xf32> to vector<8x1xf32>
        %1035 = arith.mulf %1034, %1033 : vector<8x1xf32>
        %1036 = vector.broadcast %1035 : vector<8x1xf32> to vector<8x6xf32>
        %1037 = arith.mulf %1036, %935 : vector<8x6xf32>
        %1038 = arith.subf %953, %1037 : vector<8x6xf32>
        %1039 = arith.mulf %1035, %938 : vector<8x1xf32>
        %1040 = arith.subf %956, %1039 : vector<8x1xf32>
        %1041 = vector.extract_strided_slice %971 {offsets = [0, 0], sizes = [8, 1], strides = [1, 1]} : vector<8x6xf32> to vector<8x1xf32>
        %1042 = arith.mulf %1041, %1033 : vector<8x1xf32>
        %1043 = vector.broadcast %1042 : vector<8x1xf32> to vector<8x6xf32>
        %1044 = arith.mulf %1043, %935 : vector<8x6xf32>
        %1045 = arith.subf %971, %1044 : vector<8x6xf32>
        %1046 = arith.mulf %1042, %938 : vector<8x1xf32>
        %1047 = arith.subf %974, %1046 : vector<8x1xf32>
        %1048 = vector.extract_strided_slice %989 {offsets = [0, 0], sizes = [8, 1], strides = [1, 1]} : vector<8x6xf32> to vector<8x1xf32>
        %1049 = arith.mulf %1048, %1033 : vector<8x1xf32>
        %1050 = vector.broadcast %1049 : vector<8x1xf32> to vector<8x6xf32>
        %1051 = arith.mulf %1050, %935 : vector<8x6xf32>
        %1052 = arith.subf %989, %1051 : vector<8x6xf32>
        %1053 = arith.mulf %1049, %938 : vector<8x1xf32>
        %1054 = arith.subf %992, %1053 : vector<8x1xf32>
        %1055 = vector.extract_strided_slice %1007 {offsets = [0, 0], sizes = [8, 1], strides = [1, 1]} : vector<8x6xf32> to vector<8x1xf32>
        %1056 = arith.mulf %1055, %1033 : vector<8x1xf32>
        %1057 = vector.broadcast %1056 : vector<8x1xf32> to vector<8x6xf32>
        %1058 = arith.mulf %1057, %935 : vector<8x6xf32>
        %1059 = arith.subf %1007, %1058 : vector<8x6xf32>
        %1060 = arith.mulf %1056, %938 : vector<8x1xf32>
        %1061 = arith.subf %1010, %1060 : vector<8x1xf32>
        %1062 = vector.extract_strided_slice %1025 {offsets = [0, 0], sizes = [8, 1], strides = [1, 1]} : vector<8x6xf32> to vector<8x1xf32>
        %1063 = arith.mulf %1062, %1033 : vector<8x1xf32>
        %1064 = vector.broadcast %1063 : vector<8x1xf32> to vector<8x6xf32>
        %1065 = arith.mulf %1064, %935 : vector<8x6xf32>
        %1066 = arith.subf %1025, %1065 : vector<8x6xf32>
        %1067 = arith.mulf %1063, %938 : vector<8x1xf32>
        %1068 = arith.subf %1028, %1067 : vector<8x1xf32>
        %1069 = vector.extract_strided_slice %1038 {offsets = [0, 1], sizes = [8, 1], strides = [1, 1]} : vector<8x6xf32> to vector<8x1xf32>
        %cst_653 = arith.constant 9.99999993E-9 : f32
        %1070 = vector.broadcast %cst_653 : f32 to vector<8x1xf32>
        %1071 = arith.maximumf %1069, %1070 : vector<8x1xf32>
        %cst_654 = arith.constant 1.000000e+00 : f32
        %1072 = vector.broadcast %cst_654 : f32 to vector<8x1xf32>
        %1073 = arith.divf %1072, %1071 : vector<8x1xf32>
        %1074 = vector.extract_strided_slice %935 {offsets = [0, 1], sizes = [8, 1], strides = [1, 1]} : vector<8x6xf32> to vector<8x1xf32>
        %1075 = arith.mulf %1074, %1073 : vector<8x1xf32>
        %1076 = vector.broadcast %1075 : vector<8x1xf32> to vector<8x6xf32>
        %1077 = arith.mulf %1076, %1038 : vector<8x6xf32>
        %1078 = arith.subf %935, %1077 : vector<8x6xf32>
        %1079 = arith.mulf %1075, %1040 : vector<8x1xf32>
        %1080 = arith.subf %938, %1079 : vector<8x1xf32>
        %1081 = vector.extract_strided_slice %1045 {offsets = [0, 1], sizes = [8, 1], strides = [1, 1]} : vector<8x6xf32> to vector<8x1xf32>
        %1082 = arith.mulf %1081, %1073 : vector<8x1xf32>
        %1083 = vector.broadcast %1082 : vector<8x1xf32> to vector<8x6xf32>
        %1084 = arith.mulf %1083, %1038 : vector<8x6xf32>
        %1085 = arith.subf %1045, %1084 : vector<8x6xf32>
        %1086 = arith.mulf %1082, %1040 : vector<8x1xf32>
        %1087 = arith.subf %1047, %1086 : vector<8x1xf32>
        %1088 = vector.extract_strided_slice %1052 {offsets = [0, 1], sizes = [8, 1], strides = [1, 1]} : vector<8x6xf32> to vector<8x1xf32>
        %1089 = arith.mulf %1088, %1073 : vector<8x1xf32>
        %1090 = vector.broadcast %1089 : vector<8x1xf32> to vector<8x6xf32>
        %1091 = arith.mulf %1090, %1038 : vector<8x6xf32>
        %1092 = arith.subf %1052, %1091 : vector<8x6xf32>
        %1093 = arith.mulf %1089, %1040 : vector<8x1xf32>
        %1094 = arith.subf %1054, %1093 : vector<8x1xf32>
        %1095 = vector.extract_strided_slice %1059 {offsets = [0, 1], sizes = [8, 1], strides = [1, 1]} : vector<8x6xf32> to vector<8x1xf32>
        %1096 = arith.mulf %1095, %1073 : vector<8x1xf32>
        %1097 = vector.broadcast %1096 : vector<8x1xf32> to vector<8x6xf32>
        %1098 = arith.mulf %1097, %1038 : vector<8x6xf32>
        %1099 = arith.subf %1059, %1098 : vector<8x6xf32>
        %1100 = arith.mulf %1096, %1040 : vector<8x1xf32>
        %1101 = arith.subf %1061, %1100 : vector<8x1xf32>
        %1102 = vector.extract_strided_slice %1066 {offsets = [0, 1], sizes = [8, 1], strides = [1, 1]} : vector<8x6xf32> to vector<8x1xf32>
        %1103 = arith.mulf %1102, %1073 : vector<8x1xf32>
        %1104 = vector.broadcast %1103 : vector<8x1xf32> to vector<8x6xf32>
        %1105 = arith.mulf %1104, %1038 : vector<8x6xf32>
        %1106 = arith.subf %1066, %1105 : vector<8x6xf32>
        %1107 = arith.mulf %1103, %1040 : vector<8x1xf32>
        %1108 = arith.subf %1068, %1107 : vector<8x1xf32>
        %1109 = vector.extract_strided_slice %1085 {offsets = [0, 2], sizes = [8, 1], strides = [1, 1]} : vector<8x6xf32> to vector<8x1xf32>
        %cst_655 = arith.constant 9.99999993E-9 : f32
        %1110 = vector.broadcast %cst_655 : f32 to vector<8x1xf32>
        %1111 = arith.maximumf %1109, %1110 : vector<8x1xf32>
        %cst_656 = arith.constant 1.000000e+00 : f32
        %1112 = vector.broadcast %cst_656 : f32 to vector<8x1xf32>
        %1113 = arith.divf %1112, %1111 : vector<8x1xf32>
        %1114 = vector.extract_strided_slice %1078 {offsets = [0, 2], sizes = [8, 1], strides = [1, 1]} : vector<8x6xf32> to vector<8x1xf32>
        %1115 = arith.mulf %1114, %1113 : vector<8x1xf32>
        %1116 = vector.broadcast %1115 : vector<8x1xf32> to vector<8x6xf32>
        %1117 = arith.mulf %1116, %1085 : vector<8x6xf32>
        %1118 = arith.subf %1078, %1117 : vector<8x6xf32>
        %1119 = arith.mulf %1115, %1087 : vector<8x1xf32>
        %1120 = arith.subf %1080, %1119 : vector<8x1xf32>
        %1121 = vector.extract_strided_slice %1038 {offsets = [0, 2], sizes = [8, 1], strides = [1, 1]} : vector<8x6xf32> to vector<8x1xf32>
        %1122 = arith.mulf %1121, %1113 : vector<8x1xf32>
        %1123 = vector.broadcast %1122 : vector<8x1xf32> to vector<8x6xf32>
        %1124 = arith.mulf %1123, %1085 : vector<8x6xf32>
        %1125 = arith.subf %1038, %1124 : vector<8x6xf32>
        %1126 = arith.mulf %1122, %1087 : vector<8x1xf32>
        %1127 = arith.subf %1040, %1126 : vector<8x1xf32>
        %1128 = vector.extract_strided_slice %1092 {offsets = [0, 2], sizes = [8, 1], strides = [1, 1]} : vector<8x6xf32> to vector<8x1xf32>
        %1129 = arith.mulf %1128, %1113 : vector<8x1xf32>
        %1130 = vector.broadcast %1129 : vector<8x1xf32> to vector<8x6xf32>
        %1131 = arith.mulf %1130, %1085 : vector<8x6xf32>
        %1132 = arith.subf %1092, %1131 : vector<8x6xf32>
        %1133 = arith.mulf %1129, %1087 : vector<8x1xf32>
        %1134 = arith.subf %1094, %1133 : vector<8x1xf32>
        %1135 = vector.extract_strided_slice %1099 {offsets = [0, 2], sizes = [8, 1], strides = [1, 1]} : vector<8x6xf32> to vector<8x1xf32>
        %1136 = arith.mulf %1135, %1113 : vector<8x1xf32>
        %1137 = vector.broadcast %1136 : vector<8x1xf32> to vector<8x6xf32>
        %1138 = arith.mulf %1137, %1085 : vector<8x6xf32>
        %1139 = arith.subf %1099, %1138 : vector<8x6xf32>
        %1140 = arith.mulf %1136, %1087 : vector<8x1xf32>
        %1141 = arith.subf %1101, %1140 : vector<8x1xf32>
        %1142 = vector.extract_strided_slice %1106 {offsets = [0, 2], sizes = [8, 1], strides = [1, 1]} : vector<8x6xf32> to vector<8x1xf32>
        %1143 = arith.mulf %1142, %1113 : vector<8x1xf32>
        %1144 = vector.broadcast %1143 : vector<8x1xf32> to vector<8x6xf32>
        %1145 = arith.mulf %1144, %1085 : vector<8x6xf32>
        %1146 = arith.subf %1106, %1145 : vector<8x6xf32>
        %1147 = arith.mulf %1143, %1087 : vector<8x1xf32>
        %1148 = arith.subf %1108, %1147 : vector<8x1xf32>
        %1149 = vector.extract_strided_slice %1132 {offsets = [0, 3], sizes = [8, 1], strides = [1, 1]} : vector<8x6xf32> to vector<8x1xf32>
        %cst_657 = arith.constant 9.99999993E-9 : f32
        %1150 = vector.broadcast %cst_657 : f32 to vector<8x1xf32>
        %1151 = arith.maximumf %1149, %1150 : vector<8x1xf32>
        %cst_658 = arith.constant 1.000000e+00 : f32
        %1152 = vector.broadcast %cst_658 : f32 to vector<8x1xf32>
        %1153 = arith.divf %1152, %1151 : vector<8x1xf32>
        %1154 = vector.extract_strided_slice %1118 {offsets = [0, 3], sizes = [8, 1], strides = [1, 1]} : vector<8x6xf32> to vector<8x1xf32>
        %1155 = arith.mulf %1154, %1153 : vector<8x1xf32>
        %1156 = vector.broadcast %1155 : vector<8x1xf32> to vector<8x6xf32>
        %1157 = arith.mulf %1156, %1132 : vector<8x6xf32>
        %1158 = arith.subf %1118, %1157 : vector<8x6xf32>
        %1159 = arith.mulf %1155, %1134 : vector<8x1xf32>
        %1160 = arith.subf %1120, %1159 : vector<8x1xf32>
        %1161 = vector.extract_strided_slice %1125 {offsets = [0, 3], sizes = [8, 1], strides = [1, 1]} : vector<8x6xf32> to vector<8x1xf32>
        %1162 = arith.mulf %1161, %1153 : vector<8x1xf32>
        %1163 = vector.broadcast %1162 : vector<8x1xf32> to vector<8x6xf32>
        %1164 = arith.mulf %1163, %1132 : vector<8x6xf32>
        %1165 = arith.subf %1125, %1164 : vector<8x6xf32>
        %1166 = arith.mulf %1162, %1134 : vector<8x1xf32>
        %1167 = arith.subf %1127, %1166 : vector<8x1xf32>
        %1168 = vector.extract_strided_slice %1085 {offsets = [0, 3], sizes = [8, 1], strides = [1, 1]} : vector<8x6xf32> to vector<8x1xf32>
        %1169 = arith.mulf %1168, %1153 : vector<8x1xf32>
        %1170 = vector.broadcast %1169 : vector<8x1xf32> to vector<8x6xf32>
        %1171 = arith.mulf %1170, %1132 : vector<8x6xf32>
        %1172 = arith.subf %1085, %1171 : vector<8x6xf32>
        %1173 = arith.mulf %1169, %1134 : vector<8x1xf32>
        %1174 = arith.subf %1087, %1173 : vector<8x1xf32>
        %1175 = vector.extract_strided_slice %1139 {offsets = [0, 3], sizes = [8, 1], strides = [1, 1]} : vector<8x6xf32> to vector<8x1xf32>
        %1176 = arith.mulf %1175, %1153 : vector<8x1xf32>
        %1177 = vector.broadcast %1176 : vector<8x1xf32> to vector<8x6xf32>
        %1178 = arith.mulf %1177, %1132 : vector<8x6xf32>
        %1179 = arith.subf %1139, %1178 : vector<8x6xf32>
        %1180 = arith.mulf %1176, %1134 : vector<8x1xf32>
        %1181 = arith.subf %1141, %1180 : vector<8x1xf32>
        %1182 = vector.extract_strided_slice %1146 {offsets = [0, 3], sizes = [8, 1], strides = [1, 1]} : vector<8x6xf32> to vector<8x1xf32>
        %1183 = arith.mulf %1182, %1153 : vector<8x1xf32>
        %1184 = vector.broadcast %1183 : vector<8x1xf32> to vector<8x6xf32>
        %1185 = arith.mulf %1184, %1132 : vector<8x6xf32>
        %1186 = arith.subf %1146, %1185 : vector<8x6xf32>
        %1187 = arith.mulf %1183, %1134 : vector<8x1xf32>
        %1188 = arith.subf %1148, %1187 : vector<8x1xf32>
        %1189 = vector.extract_strided_slice %1179 {offsets = [0, 4], sizes = [8, 1], strides = [1, 1]} : vector<8x6xf32> to vector<8x1xf32>
        %cst_659 = arith.constant 9.99999993E-9 : f32
        %1190 = vector.broadcast %cst_659 : f32 to vector<8x1xf32>
        %1191 = arith.maximumf %1189, %1190 : vector<8x1xf32>
        %cst_660 = arith.constant 1.000000e+00 : f32
        %1192 = vector.broadcast %cst_660 : f32 to vector<8x1xf32>
        %1193 = arith.divf %1192, %1191 : vector<8x1xf32>
        %1194 = vector.extract_strided_slice %1158 {offsets = [0, 4], sizes = [8, 1], strides = [1, 1]} : vector<8x6xf32> to vector<8x1xf32>
        %1195 = arith.mulf %1194, %1193 : vector<8x1xf32>
        %1196 = vector.broadcast %1195 : vector<8x1xf32> to vector<8x6xf32>
        %1197 = arith.mulf %1196, %1179 : vector<8x6xf32>
        %1198 = arith.subf %1158, %1197 : vector<8x6xf32>
        %1199 = arith.mulf %1195, %1181 : vector<8x1xf32>
        %1200 = arith.subf %1160, %1199 : vector<8x1xf32>
        %1201 = vector.extract_strided_slice %1165 {offsets = [0, 4], sizes = [8, 1], strides = [1, 1]} : vector<8x6xf32> to vector<8x1xf32>
        %1202 = arith.mulf %1201, %1193 : vector<8x1xf32>
        %1203 = vector.broadcast %1202 : vector<8x1xf32> to vector<8x6xf32>
        %1204 = arith.mulf %1203, %1179 : vector<8x6xf32>
        %1205 = arith.subf %1165, %1204 : vector<8x6xf32>
        %1206 = arith.mulf %1202, %1181 : vector<8x1xf32>
        %1207 = arith.subf %1167, %1206 : vector<8x1xf32>
        %1208 = vector.extract_strided_slice %1172 {offsets = [0, 4], sizes = [8, 1], strides = [1, 1]} : vector<8x6xf32> to vector<8x1xf32>
        %1209 = arith.mulf %1208, %1193 : vector<8x1xf32>
        %1210 = vector.broadcast %1209 : vector<8x1xf32> to vector<8x6xf32>
        %1211 = arith.mulf %1210, %1179 : vector<8x6xf32>
        %1212 = arith.subf %1172, %1211 : vector<8x6xf32>
        %1213 = arith.mulf %1209, %1181 : vector<8x1xf32>
        %1214 = arith.subf %1174, %1213 : vector<8x1xf32>
        %1215 = vector.extract_strided_slice %1132 {offsets = [0, 4], sizes = [8, 1], strides = [1, 1]} : vector<8x6xf32> to vector<8x1xf32>
        %1216 = arith.mulf %1215, %1193 : vector<8x1xf32>
        %1217 = vector.broadcast %1216 : vector<8x1xf32> to vector<8x6xf32>
        %1218 = arith.mulf %1217, %1179 : vector<8x6xf32>
        %1219 = arith.subf %1132, %1218 : vector<8x6xf32>
        %1220 = arith.mulf %1216, %1181 : vector<8x1xf32>
        %1221 = arith.subf %1134, %1220 : vector<8x1xf32>
        %1222 = vector.extract_strided_slice %1186 {offsets = [0, 4], sizes = [8, 1], strides = [1, 1]} : vector<8x6xf32> to vector<8x1xf32>
        %1223 = arith.mulf %1222, %1193 : vector<8x1xf32>
        %1224 = vector.broadcast %1223 : vector<8x1xf32> to vector<8x6xf32>
        %1225 = arith.mulf %1224, %1179 : vector<8x6xf32>
        %1226 = arith.subf %1186, %1225 : vector<8x6xf32>
        %1227 = arith.mulf %1223, %1181 : vector<8x1xf32>
        %1228 = arith.subf %1188, %1227 : vector<8x1xf32>
        %1229 = vector.extract_strided_slice %1226 {offsets = [0, 5], sizes = [8, 1], strides = [1, 1]} : vector<8x6xf32> to vector<8x1xf32>
        %cst_661 = arith.constant 9.99999993E-9 : f32
        %1230 = vector.broadcast %cst_661 : f32 to vector<8x1xf32>
        %1231 = arith.maximumf %1229, %1230 : vector<8x1xf32>
        %cst_662 = arith.constant 1.000000e+00 : f32
        %1232 = vector.broadcast %cst_662 : f32 to vector<8x1xf32>
        %1233 = arith.divf %1232, %1231 : vector<8x1xf32>
        %1234 = vector.extract_strided_slice %1198 {offsets = [0, 5], sizes = [8, 1], strides = [1, 1]} : vector<8x6xf32> to vector<8x1xf32>
        %1235 = arith.mulf %1234, %1233 : vector<8x1xf32>
        %1236 = vector.broadcast %1235 : vector<8x1xf32> to vector<8x6xf32>
        %1237 = arith.mulf %1236, %1226 : vector<8x6xf32>
        %1238 = arith.subf %1198, %1237 : vector<8x6xf32>
        %1239 = arith.mulf %1235, %1228 : vector<8x1xf32>
        %1240 = arith.subf %1200, %1239 : vector<8x1xf32>
        %1241 = vector.extract_strided_slice %1205 {offsets = [0, 5], sizes = [8, 1], strides = [1, 1]} : vector<8x6xf32> to vector<8x1xf32>
        %1242 = arith.mulf %1241, %1233 : vector<8x1xf32>
        %1243 = vector.broadcast %1242 : vector<8x1xf32> to vector<8x6xf32>
        %1244 = arith.mulf %1243, %1226 : vector<8x6xf32>
        %1245 = arith.subf %1205, %1244 : vector<8x6xf32>
        %1246 = arith.mulf %1242, %1228 : vector<8x1xf32>
        %1247 = arith.subf %1207, %1246 : vector<8x1xf32>
        %1248 = vector.extract_strided_slice %1212 {offsets = [0, 5], sizes = [8, 1], strides = [1, 1]} : vector<8x6xf32> to vector<8x1xf32>
        %1249 = arith.mulf %1248, %1233 : vector<8x1xf32>
        %1250 = vector.broadcast %1249 : vector<8x1xf32> to vector<8x6xf32>
        %1251 = arith.mulf %1250, %1226 : vector<8x6xf32>
        %1252 = arith.subf %1212, %1251 : vector<8x6xf32>
        %1253 = arith.mulf %1249, %1228 : vector<8x1xf32>
        %1254 = arith.subf %1214, %1253 : vector<8x1xf32>
        %1255 = vector.extract_strided_slice %1219 {offsets = [0, 5], sizes = [8, 1], strides = [1, 1]} : vector<8x6xf32> to vector<8x1xf32>
        %1256 = arith.mulf %1255, %1233 : vector<8x1xf32>
        %1257 = vector.broadcast %1256 : vector<8x1xf32> to vector<8x6xf32>
        %1258 = arith.mulf %1257, %1226 : vector<8x6xf32>
        %1259 = arith.subf %1219, %1258 : vector<8x6xf32>
        %1260 = arith.mulf %1256, %1228 : vector<8x1xf32>
        %1261 = arith.subf %1221, %1260 : vector<8x1xf32>
        %1262 = vector.extract_strided_slice %1179 {offsets = [0, 5], sizes = [8, 1], strides = [1, 1]} : vector<8x6xf32> to vector<8x1xf32>
        %1263 = arith.mulf %1262, %1233 : vector<8x1xf32>
        %1264 = vector.broadcast %1263 : vector<8x1xf32> to vector<8x6xf32>
        %1265 = arith.mulf %1264, %1226 : vector<8x6xf32>
        %1266 = arith.subf %1179, %1265 : vector<8x6xf32>
        %1267 = arith.mulf %1263, %1228 : vector<8x1xf32>
        %1268 = arith.subf %1181, %1267 : vector<8x1xf32>
        %1269 = vector.extract_strided_slice %1238 {offsets = [0, 0], sizes = [8, 1], strides = [1, 1]} : vector<8x6xf32> to vector<8x1xf32>
        %cst_663 = arith.constant 9.99999993E-9 : f32
        %1270 = vector.broadcast %cst_663 : f32 to vector<8x1xf32>
        %1271 = arith.maximumf %1269, %1270 : vector<8x1xf32>
        %1272 = arith.divf %1240, %1271 : vector<8x1xf32>
        %1273 = vector.extract_strided_slice %1245 {offsets = [0, 1], sizes = [8, 1], strides = [1, 1]} : vector<8x6xf32> to vector<8x1xf32>
        %cst_664 = arith.constant 9.99999993E-9 : f32
        %1274 = vector.broadcast %cst_664 : f32 to vector<8x1xf32>
        %1275 = arith.maximumf %1273, %1274 : vector<8x1xf32>
        %1276 = arith.divf %1247, %1275 : vector<8x1xf32>
        %1277 = vector.extract_strided_slice %1252 {offsets = [0, 2], sizes = [8, 1], strides = [1, 1]} : vector<8x6xf32> to vector<8x1xf32>
        %cst_665 = arith.constant 9.99999993E-9 : f32
        %1278 = vector.broadcast %cst_665 : f32 to vector<8x1xf32>
        %1279 = arith.maximumf %1277, %1278 : vector<8x1xf32>
        %1280 = arith.divf %1254, %1279 : vector<8x1xf32>
        %1281 = vector.extract_strided_slice %1259 {offsets = [0, 3], sizes = [8, 1], strides = [1, 1]} : vector<8x6xf32> to vector<8x1xf32>
        %cst_666 = arith.constant 9.99999993E-9 : f32
        %1282 = vector.broadcast %cst_666 : f32 to vector<8x1xf32>
        %1283 = arith.maximumf %1281, %1282 : vector<8x1xf32>
        %1284 = arith.divf %1261, %1283 : vector<8x1xf32>
        %1285 = vector.extract_strided_slice %1266 {offsets = [0, 4], sizes = [8, 1], strides = [1, 1]} : vector<8x6xf32> to vector<8x1xf32>
        %cst_667 = arith.constant 9.99999993E-9 : f32
        %1286 = vector.broadcast %cst_667 : f32 to vector<8x1xf32>
        %1287 = arith.maximumf %1285, %1286 : vector<8x1xf32>
        %1288 = arith.divf %1268, %1287 : vector<8x1xf32>
        %1289 = vector.extract_strided_slice %1226 {offsets = [0, 5], sizes = [8, 1], strides = [1, 1]} : vector<8x6xf32> to vector<8x1xf32>
        %cst_668 = arith.constant 9.99999993E-9 : f32
        %1290 = vector.broadcast %cst_668 : f32 to vector<8x1xf32>
        %1291 = arith.maximumf %1289, %1290 : vector<8x1xf32>
        %1292 = arith.divf %1228, %1291 : vector<8x1xf32>
        %1293 = arith.addf %1272, %1276 : vector<8x1xf32>
        %1294 = arith.addf %1293, %1280 : vector<8x1xf32>
        %1295 = arith.addf %1294, %1284 : vector<8x1xf32>
        %1296 = arith.addf %1295, %1288 : vector<8x1xf32>
        %1297 = arith.addf %1296, %1292 : vector<8x1xf32>
        %cst_669 = arith.constant 9.99999993E-9 : f32
        %1298 = vector.broadcast %cst_669 : f32 to vector<8x1xf32>
        %1299 = arith.maximumf %1297, %1298 : vector<8x1xf32>
        %cst_670 = arith.constant 1.000000e+00 : f32
        %1300 = vector.broadcast %cst_670 : f32 to vector<8x1xf32>
        %1301 = arith.divf %1300, %1299 : vector<8x1xf32>
        %1302 = arith.mulf %1272, %1301 : vector<8x1xf32>
        %cst_671 = arith.constant -1.000000e+04 : f32
        %cst_672 = arith.constant 1.000000e+04 : f32
        %1303 = vector.broadcast %cst_671 : f32 to vector<8x1xf32>
        %1304 = arith.maximumf %1303, %1302 : vector<8x1xf32>
        %1305 = vector.broadcast %cst_672 : f32 to vector<8x1xf32>
        %1306 = arith.minimumf %1305, %1304 : vector<8x1xf32>
        %1307 = arith.mulf %1276, %1301 : vector<8x1xf32>
        %cst_673 = arith.constant -1.000000e+04 : f32
        %cst_674 = arith.constant 1.000000e+04 : f32
        %1308 = vector.broadcast %cst_673 : f32 to vector<8x1xf32>
        %1309 = arith.maximumf %1308, %1307 : vector<8x1xf32>
        %1310 = vector.broadcast %cst_674 : f32 to vector<8x1xf32>
        %1311 = arith.minimumf %1310, %1309 : vector<8x1xf32>
        %1312 = arith.mulf %1280, %1301 : vector<8x1xf32>
        %cst_675 = arith.constant -1.000000e+04 : f32
        %cst_676 = arith.constant 1.000000e+04 : f32
        %1313 = vector.broadcast %cst_675 : f32 to vector<8x1xf32>
        %1314 = arith.maximumf %1313, %1312 : vector<8x1xf32>
        %1315 = vector.broadcast %cst_676 : f32 to vector<8x1xf32>
        %1316 = arith.minimumf %1315, %1314 : vector<8x1xf32>
        %1317 = arith.mulf %1284, %1301 : vector<8x1xf32>
        %cst_677 = arith.constant -1.000000e+04 : f32
        %cst_678 = arith.constant 1.000000e+04 : f32
        %1318 = vector.broadcast %cst_677 : f32 to vector<8x1xf32>
        %1319 = arith.maximumf %1318, %1317 : vector<8x1xf32>
        %1320 = vector.broadcast %cst_678 : f32 to vector<8x1xf32>
        %1321 = arith.minimumf %1320, %1319 : vector<8x1xf32>
        %1322 = arith.mulf %1288, %1301 : vector<8x1xf32>
        %cst_679 = arith.constant -1.000000e+04 : f32
        %cst_680 = arith.constant 1.000000e+04 : f32
        %1323 = vector.broadcast %cst_679 : f32 to vector<8x1xf32>
        %1324 = arith.maximumf %1323, %1322 : vector<8x1xf32>
        %1325 = vector.broadcast %cst_680 : f32 to vector<8x1xf32>
        %1326 = arith.minimumf %1325, %1324 : vector<8x1xf32>
        %1327 = arith.mulf %1292, %1301 : vector<8x1xf32>
        %cst_681 = arith.constant -1.000000e+04 : f32
        %cst_682 = arith.constant 1.000000e+04 : f32
        %1328 = vector.broadcast %cst_681 : f32 to vector<8x1xf32>
        %1329 = arith.maximumf %1328, %1327 : vector<8x1xf32>
        %1330 = vector.broadcast %cst_682 : f32 to vector<8x1xf32>
        %1331 = arith.minimumf %1330, %1329 : vector<8x1xf32>
        %cst_683 = arith.constant 0.000000e+00 : f32
        %1332 = vector.broadcast %cst_683 : f32 to vector<8x128xf32>
        %c0_684 = arith.constant 0 : index
        %c0_685 = arith.constant 0 : index
        %c0_686 = arith.constant 0 : index
        %1333 = vector.load %arg22[%c0_684, %c0_685, %c0_686] : memref<6x8x384xf32, #tpu.memory_space<vmem>>, vector<1x8x128xf32>
        %1334 = vector.shape_cast %1333 : vector<1x8x128xf32> to vector<8x128xf32>
        %1335 = vector.broadcast %1306 : vector<8x1xf32> to vector<8x128xf32>
        %1336 = arith.mulf %1335, %1334 : vector<8x128xf32>
        %1337 = arith.addf %1332, %1336 : vector<8x128xf32>
        %c1_687 = arith.constant 1 : index
        %c0_688 = arith.constant 0 : index
        %c0_689 = arith.constant 0 : index
        %1338 = vector.load %arg22[%c1_687, %c0_688, %c0_689] : memref<6x8x384xf32, #tpu.memory_space<vmem>>, vector<1x8x128xf32>
        %1339 = vector.shape_cast %1338 : vector<1x8x128xf32> to vector<8x128xf32>
        %1340 = vector.broadcast %1311 : vector<8x1xf32> to vector<8x128xf32>
        %1341 = arith.mulf %1340, %1339 : vector<8x128xf32>
        %1342 = arith.addf %1337, %1341 : vector<8x128xf32>
        %c2_690 = arith.constant 2 : index
        %c0_691 = arith.constant 0 : index
        %c0_692 = arith.constant 0 : index
        %1343 = vector.load %arg22[%c2_690, %c0_691, %c0_692] : memref<6x8x384xf32, #tpu.memory_space<vmem>>, vector<1x8x128xf32>
        %1344 = vector.shape_cast %1343 : vector<1x8x128xf32> to vector<8x128xf32>
        %1345 = vector.broadcast %1316 : vector<8x1xf32> to vector<8x128xf32>
        %1346 = arith.mulf %1345, %1344 : vector<8x128xf32>
        %1347 = arith.addf %1342, %1346 : vector<8x128xf32>
        %c3_693 = arith.constant 3 : index
        %c0_694 = arith.constant 0 : index
        %c0_695 = arith.constant 0 : index
        %1348 = vector.load %arg22[%c3_693, %c0_694, %c0_695] : memref<6x8x384xf32, #tpu.memory_space<vmem>>, vector<1x8x128xf32>
        %1349 = vector.shape_cast %1348 : vector<1x8x128xf32> to vector<8x128xf32>
        %1350 = vector.broadcast %1321 : vector<8x1xf32> to vector<8x128xf32>
        %1351 = arith.mulf %1350, %1349 : vector<8x128xf32>
        %1352 = arith.addf %1347, %1351 : vector<8x128xf32>
        %c4_696 = arith.constant 4 : index
        %c0_697 = arith.constant 0 : index
        %c0_698 = arith.constant 0 : index
        %1353 = vector.load %arg22[%c4_696, %c0_697, %c0_698] : memref<6x8x384xf32, #tpu.memory_space<vmem>>, vector<1x8x128xf32>
        %1354 = vector.shape_cast %1353 : vector<1x8x128xf32> to vector<8x128xf32>
        %1355 = vector.broadcast %1326 : vector<8x1xf32> to vector<8x128xf32>
        %1356 = arith.mulf %1355, %1354 : vector<8x128xf32>
        %1357 = arith.addf %1352, %1356 : vector<8x128xf32>
        %c5_699 = arith.constant 5 : index
        %c0_700 = arith.constant 0 : index
        %c0_701 = arith.constant 0 : index
        %1358 = vector.load %arg22[%c5_699, %c0_700, %c0_701] : memref<6x8x384xf32, #tpu.memory_space<vmem>>, vector<1x8x128xf32>
        %1359 = vector.shape_cast %1358 : vector<1x8x128xf32> to vector<8x128xf32>
        %1360 = vector.broadcast %1331 : vector<8x1xf32> to vector<8x128xf32>
        %1361 = arith.mulf %1360, %1359 : vector<8x128xf32>
        %1362 = arith.addf %1357, %1361 : vector<8x128xf32>
        %c0_702 = arith.constant 0 : index
        %c0_703 = arith.constant 0 : index
        %1363 = vector.load %arg24[%c0_702, %c0_703] : memref<8x384xf32, #tpu.memory_space<vmem>>, vector<8x128xf32>
        tpu.vector_store %arg24[%c0_702, %c0_703], %1362 {strides = array<i32>} : memref<8x384xf32, #tpu.memory_space<vmem>>, vector<8x128xf32>,
        %cst_704 = arith.constant 0.000000e+00 : f32
        %1364 = vector.broadcast %cst_704 : f32 to vector<8x128xf32>
        %c0_705 = arith.constant 0 : index
        %c0_706 = arith.constant 0 : index
        %c128_707 = arith.constant 128 : index
        %1365 = vector.load %arg22[%c0_705, %c0_706, %c128_707] : memref<6x8x384xf32, #tpu.memory_space<vmem>>, vector<1x8x128xf32>
        %1366 = vector.shape_cast %1365 : vector<1x8x128xf32> to vector<8x128xf32>
        %1367 = vector.broadcast %1306 : vector<8x1xf32> to vector<8x128xf32>
        %1368 = arith.mulf %1367, %1366 : vector<8x128xf32>
        %1369 = arith.addf %1364, %1368 : vector<8x128xf32>
        %c1_708 = arith.constant 1 : index
        %c0_709 = arith.constant 0 : index
        %c128_710 = arith.constant 128 : index
        %1370 = vector.load %arg22[%c1_708, %c0_709, %c128_710] : memref<6x8x384xf32, #tpu.memory_space<vmem>>, vector<1x8x128xf32>
        %1371 = vector.shape_cast %1370 : vector<1x8x128xf32> to vector<8x128xf32>
        %1372 = vector.broadcast %1311 : vector<8x1xf32> to vector<8x128xf32>
        %1373 = arith.mulf %1372, %1371 : vector<8x128xf32>
        %1374 = arith.addf %1369, %1373 : vector<8x128xf32>
        %c2_711 = arith.constant 2 : index
        %c0_712 = arith.constant 0 : index
        %c128_713 = arith.constant 128 : index
        %1375 = vector.load %arg22[%c2_711, %c0_712, %c128_713] : memref<6x8x384xf32, #tpu.memory_space<vmem>>, vector<1x8x128xf32>
        %1376 = vector.shape_cast %1375 : vector<1x8x128xf32> to vector<8x128xf32>
        %1377 = vector.broadcast %1316 : vector<8x1xf32> to vector<8x128xf32>
        %1378 = arith.mulf %1377, %1376 : vector<8x128xf32>
        %1379 = arith.addf %1374, %1378 : vector<8x128xf32>
        %c3_714 = arith.constant 3 : index
        %c0_715 = arith.constant 0 : index
        %c128_716 = arith.constant 128 : index
        %1380 = vector.load %arg22[%c3_714, %c0_715, %c128_716] : memref<6x8x384xf32, #tpu.memory_space<vmem>>, vector<1x8x128xf32>
        %1381 = vector.shape_cast %1380 : vector<1x8x128xf32> to vector<8x128xf32>
        %1382 = vector.broadcast %1321 : vector<8x1xf32> to vector<8x128xf32>
        %1383 = arith.mulf %1382, %1381 : vector<8x128xf32>
        %1384 = arith.addf %1379, %1383 : vector<8x128xf32>
        %c4_717 = arith.constant 4 : index
        %c0_718 = arith.constant 0 : index
        %c128_719 = arith.constant 128 : index
        %1385 = vector.load %arg22[%c4_717, %c0_718, %c128_719] : memref<6x8x384xf32, #tpu.memory_space<vmem>>, vector<1x8x128xf32>
        %1386 = vector.shape_cast %1385 : vector<1x8x128xf32> to vector<8x128xf32>
        %1387 = vector.broadcast %1326 : vector<8x1xf32> to vector<8x128xf32>
        %1388 = arith.mulf %1387, %1386 : vector<8x128xf32>
        %1389 = arith.addf %1384, %1388 : vector<8x128xf32>
        %c5_720 = arith.constant 5 : index
        %c0_721 = arith.constant 0 : index
        %c128_722 = arith.constant 128 : index
        %1390 = vector.load %arg22[%c5_720, %c0_721, %c128_722] : memref<6x8x384xf32, #tpu.memory_space<vmem>>, vector<1x8x128xf32>
        %1391 = vector.shape_cast %1390 : vector<1x8x128xf32> to vector<8x128xf32>
        %1392 = vector.broadcast %1331 : vector<8x1xf32> to vector<8x128xf32>
        %1393 = arith.mulf %1392, %1391 : vector<8x128xf32>
        %1394 = arith.addf %1389, %1393 : vector<8x128xf32>
        %c0_723 = arith.constant 0 : index
        %c128_724 = arith.constant 128 : index
        %1395 = vector.load %arg24[%c0_723, %c128_724] : memref<8x384xf32, #tpu.memory_space<vmem>>, vector<8x128xf32>
        tpu.vector_store %arg24[%c0_723, %c128_724], %1394 {strides = array<i32>} : memref<8x384xf32, #tpu.memory_space<vmem>>, vector<8x128xf32>,
        %cst_725 = arith.constant 0.000000e+00 : f32
        %1396 = vector.broadcast %cst_725 : f32 to vector<8x128xf32>
        %c0_726 = arith.constant 0 : index
        %c0_727 = arith.constant 0 : index
        %c256_728 = arith.constant 256 : index
        %1397 = vector.load %arg22[%c0_726, %c0_727, %c256_728] : memref<6x8x384xf32, #tpu.memory_space<vmem>>, vector<1x8x128xf32>
        %1398 = vector.shape_cast %1397 : vector<1x8x128xf32> to vector<8x128xf32>
        %1399 = vector.broadcast %1306 : vector<8x1xf32> to vector<8x128xf32>
        %1400 = arith.mulf %1399, %1398 : vector<8x128xf32>
        %1401 = arith.addf %1396, %1400 : vector<8x128xf32>
        %c1_729 = arith.constant 1 : index
        %c0_730 = arith.constant 0 : index
        %c256_731 = arith.constant 256 : index
        %1402 = vector.load %arg22[%c1_729, %c0_730, %c256_731] : memref<6x8x384xf32, #tpu.memory_space<vmem>>, vector<1x8x128xf32>
        %1403 = vector.shape_cast %1402 : vector<1x8x128xf32> to vector<8x128xf32>
        %1404 = vector.broadcast %1311 : vector<8x1xf32> to vector<8x128xf32>
        %1405 = arith.mulf %1404, %1403 : vector<8x128xf32>
        %1406 = arith.addf %1401, %1405 : vector<8x128xf32>
        %c2_732 = arith.constant 2 : index
        %c0_733 = arith.constant 0 : index
        %c256_734 = arith.constant 256 : index
        %1407 = vector.load %arg22[%c2_732, %c0_733, %c256_734] : memref<6x8x384xf32, #tpu.memory_space<vmem>>, vector<1x8x128xf32>
        %1408 = vector.shape_cast %1407 : vector<1x8x128xf32> to vector<8x128xf32>
        %1409 = vector.broadcast %1316 : vector<8x1xf32> to vector<8x128xf32>
        %1410 = arith.mulf %1409, %1408 : vector<8x128xf32>
        %1411 = arith.addf %1406, %1410 : vector<8x128xf32>
        %c3_735 = arith.constant 3 : index
        %c0_736 = arith.constant 0 : index
        %c256_737 = arith.constant 256 : index
        %1412 = vector.load %arg22[%c3_735, %c0_736, %c256_737] : memref<6x8x384xf32, #tpu.memory_space<vmem>>, vector<1x8x128xf32>
        %1413 = vector.shape_cast %1412 : vector<1x8x128xf32> to vector<8x128xf32>
        %1414 = vector.broadcast %1321 : vector<8x1xf32> to vector<8x128xf32>
        %1415 = arith.mulf %1414, %1413 : vector<8x128xf32>
        %1416 = arith.addf %1411, %1415 : vector<8x128xf32>
        %c4_738 = arith.constant 4 : index
        %c0_739 = arith.constant 0 : index
        %c256_740 = arith.constant 256 : index
        %1417 = vector.load %arg22[%c4_738, %c0_739, %c256_740] : memref<6x8x384xf32, #tpu.memory_space<vmem>>, vector<1x8x128xf32>
        %1418 = vector.shape_cast %1417 : vector<1x8x128xf32> to vector<8x128xf32>
        %1419 = vector.broadcast %1326 : vector<8x1xf32> to vector<8x128xf32>
        %1420 = arith.mulf %1419, %1418 : vector<8x128xf32>
        %1421 = arith.addf %1416, %1420 : vector<8x128xf32>
        %c5_741 = arith.constant 5 : index
        %c0_742 = arith.constant 0 : index
        %c256_743 = arith.constant 256 : index
        %1422 = vector.load %arg22[%c5_741, %c0_742, %c256_743] : memref<6x8x384xf32, #tpu.memory_space<vmem>>, vector<1x8x128xf32>
        %1423 = vector.shape_cast %1422 : vector<1x8x128xf32> to vector<8x128xf32>
        %1424 = vector.broadcast %1331 : vector<8x1xf32> to vector<8x128xf32>
        %1425 = arith.mulf %1424, %1423 : vector<8x128xf32>
        %1426 = arith.addf %1421, %1425 : vector<8x128xf32>
        %c0_744 = arith.constant 0 : index
        %c256_745 = arith.constant 256 : index
        %1427 = vector.load %arg24[%c0_744, %c256_745] : memref<8x384xf32, #tpu.memory_space<vmem>>, vector<8x128xf32>
        tpu.vector_store %arg24[%c0_744, %c256_745], %1426 {strides = array<i32>} : memref<8x384xf32, #tpu.memory_space<vmem>>, vector<8x128xf32>,
        %c6_i32 = arith.constant 6 : i32
        %c0_i32_746 = arith.constant 0 : i32
        %1428 = arith.cmpi eq, %c6_i32, %c0_i32_746 : i32
        %c1_i32_747 = arith.constant 1 : i32
        %1429 = arith.select %1428, %c1_i32_747, %c6_i32 : i32
        %1430 = arith.remsi %arg31, %1429 : i32
        %c0_i32_748 = arith.constant 0 : i32
        %1431 = arith.cmpi ne, %1430, %c0_i32_748 : i32
        %c0_i32_749 = arith.constant 0 : i32
        %1432 = arith.cmpi slt, %1430, %c0_i32_749 : i32
        %c0_i32_750 = arith.constant 0 : i32
        %1433 = arith.cmpi slt, %1429, %c0_i32_750 : i32
        %1434 = arith.xori %1432, %1433 : i1
        %1435 = arith.andi %1434, %1431 : i1
        %1436 = arith.addi %1430, %1429 : i32
        %1437 = arith.select %1435, %1436, %1430 : i32
        %c0_751 = arith.constant 0 : index
        %c0_752 = arith.constant 0 : index
        %1438 = vector.load %arg3[%c0_751, %c0_752] : memref<128x128xbf16, #tpu.memory_space<vmem>>, vector<128x128xbf16>
        %c0_753 = arith.constant 0 : index
        %c256_754 = arith.constant 256 : index
        %1439 = vector.load %arg24[%c0_753, %c256_754] : memref<8x384xf32, #tpu.memory_space<vmem>>, vector<8x128xf32>
        %cst_755 = arith.constant 0.000000e+00 : f32
        %1440 = vector.broadcast %cst_755 : f32 to vector<8x128xf32>
        %c0_756 = arith.constant 0 : index
        %c0_757 = arith.constant 0 : index
        %1441 = vector.load %arg24[%c0_756, %c0_757] : memref<8x384xf32, #tpu.memory_space<vmem>>, vector<8x128xf32>
        %c0_758 = arith.constant 0 : index
        %c0_759 = arith.constant 0 : index
        %1442 = vector.load %arg1[%c0_758, %c0_759] : memref<8x384xf32, #tpu.memory_space<vmem>>, vector<8x128xf32>
        %c0_760 = arith.constant 0 : index
        %c0_761 = arith.constant 0 : index
        %c0_762 = arith.constant 0 : index
        %1443 = vector.load %arg4[%c0_760, %c0_761, %c0_762] : memref<2x128x128xbf16, #tpu.memory_space<vmem>>, vector<1x128x128xbf16>
        %1444 = vector.shape_cast %1443 : vector<1x128x128xbf16> to vector<128x128xbf16>
        %c0_763 = arith.constant 0 : index
        %c0_764 = arith.constant 0 : index
        %c0_765 = arith.constant 0 : index
        %1445 = vector.load %arg5[%c0_763, %c0_764, %c0_765] : memref<2x1x128xf32, #tpu.memory_space<vmem>>, vector<1x1x128xf32>
        %1446 = vector.shape_cast %1445 : vector<1x1x128xf32> to vector<1x128xf32>
        %1447 = arith.truncf %1441 : vector<8x128xf32> to vector<8x128xbf16>
        %cst_766 = arith.constant dense<0.000000e+00> : vector<8x128xf32>
        %1448 = tpu.matmul %1447, %1444, %cst_766 {dimension_numbers = #tpu.dot_dimension_numbers<[1], [0], [0], [1], [0, 0, 1, 1], [], []>} : vector<8x128xbf16>, vector<128x128xbf16>, vector<8x128xf32> -> vector<8x128xf32>
        %1449 = vector.broadcast %1446 : vector<1x128xf32> to vector<8x128xf32>
        %1450 = arith.addf %1448, %1449 : vector<8x128xf32>
        %c0_767 = arith.constant 0 : index
        %c0_768 = arith.constant 0 : index
        %c0_769 = arith.constant 0 : index
        %1451 = vector.load %arg8[%c0_767, %c0_768, %c0_769] : memref<2x1x128xf32, #tpu.memory_space<vmem>>, vector<1x1x128xf32>
        %1452 = vector.shape_cast %1451 : vector<1x1x128xf32> to vector<1x128xf32>
        %c0_770 = arith.constant 0 : index
        %c0_771 = arith.constant 0 : index
        %c0_772 = arith.constant 0 : index
        %1453 = vector.load %arg9[%c0_770, %c0_771, %c0_772] : memref<2x1x128xf32, #tpu.memory_space<vmem>>, vector<1x1x128xf32>
        %1454 = vector.shape_cast %1453 : vector<1x1x128xf32> to vector<1x128xf32>
        %1455 = arith.truncf %1450 : vector<8x128xf32> to vector<8x128xbf16>
        %cst_773 = arith.constant dense<0.000000e+00> : vector<8x128xf32>
        %1456 = tpu.matmul %1455, %1438, %cst_773 {dimension_numbers = #tpu.dot_dimension_numbers<[1], [0], [0], [1], [0, 0, 1, 1], [], []>} : vector<8x128xbf16>, vector<128x128xbf16>, vector<8x128xf32> -> vector<8x128xf32>
        %1457 = arith.subf %1450, %1456 : vector<8x128xf32>
        %1458 = arith.mulf %1457, %1457 : vector<8x128xf32>
        %1459 = arith.truncf %1458 : vector<8x128xf32> to vector<8x128xbf16>
        %cst_774 = arith.constant dense<0.000000e+00> : vector<8x128xf32>
        %1460 = tpu.matmul %1459, %1438, %cst_774 {dimension_numbers = #tpu.dot_dimension_numbers<[1], [0], [0], [1], [0, 0, 1, 1], [], []>} : vector<8x128xbf16>, vector<128x128xbf16>, vector<8x128xf32> -> vector<8x128xf32>
        %cst_775 = arith.constant 9.99999974E-6 : f32
        %1461 = vector.broadcast %cst_775 : f32 to vector<8x128xf32>
        %1462 = arith.addf %1460, %1461 : vector<8x128xf32>
        %1463 = math.rsqrt %1462 : vector<8x128xf32>
        %1464 = arith.mulf %1457, %1463 : vector<8x128xf32>
        %1465 = vector.broadcast %1452 : vector<1x128xf32> to vector<8x128xf32>
        %1466 = arith.mulf %1464, %1465 : vector<8x128xf32>
        %1467 = vector.broadcast %1454 : vector<1x128xf32> to vector<8x128xf32>
        %1468 = arith.addf %1466, %1467 : vector<8x128xf32>
        %cst_776 = arith.constant 0.000000e+00 : f32
        %1469 = vector.broadcast %cst_776 : f32 to vector<8x128xf32>
        %1470 = arith.maximumf %1468, %1469 : vector<8x128xf32>
        %c0_777 = arith.constant 0 : index
        %c0_778 = arith.constant 0 : index
        %c0_779 = arith.constant 0 : index
        %1471 = vector.load %arg6[%c0_777, %c0_778, %c0_779] : memref<2x128x128xbf16, #tpu.memory_space<vmem>>, vector<1x128x128xbf16>
        %1472 = vector.shape_cast %1471 : vector<1x128x128xbf16> to vector<128x128xbf16>
        %c0_780 = arith.constant 0 : index
        %c0_781 = arith.constant 0 : index
        %c0_782 = arith.constant 0 : index
        %1473 = vector.load %arg7[%c0_780, %c0_781, %c0_782] : memref<2x1x128xf32, #tpu.memory_space<vmem>>, vector<1x1x128xf32>
        %1474 = vector.shape_cast %1473 : vector<1x1x128xf32> to vector<1x128xf32>
        %1475 = arith.truncf %1470 : vector<8x128xf32> to vector<8x128xbf16>
        %cst_783 = arith.constant dense<0.000000e+00> : vector<8x128xf32>
        %1476 = tpu.matmul %1475, %1472, %cst_783 {dimension_numbers = #tpu.dot_dimension_numbers<[1], [0], [0], [1], [0, 0, 1, 1], [], []>} : vector<8x128xbf16>, vector<128x128xbf16>, vector<8x128xf32> -> vector<8x128xf32>
        %1477 = vector.broadcast %1474 : vector<1x128xf32> to vector<8x128xf32>
        %1478 = arith.addf %1476, %1477 : vector<8x128xf32>
        %1479 = arith.addf %1478, %1442 : vector<8x128xf32>
        %c0_784 = arith.constant 0 : index
        %c0_785 = arith.constant 0 : index
        %c0_786 = arith.constant 0 : index
        %1480 = vector.load %arg10[%c0_784, %c0_785, %c0_786] : memref<2x1x128xf32, #tpu.memory_space<vmem>>, vector<1x1x128xf32>
        %1481 = vector.shape_cast %1480 : vector<1x1x128xf32> to vector<1x128xf32>
        %c0_787 = arith.constant 0 : index
        %c0_788 = arith.constant 0 : index
        %c0_789 = arith.constant 0 : index
        %1482 = vector.load %arg11[%c0_787, %c0_788, %c0_789] : memref<2x1x128xf32, #tpu.memory_space<vmem>>, vector<1x1x128xf32>
        %1483 = vector.shape_cast %1482 : vector<1x1x128xf32> to vector<1x128xf32>
        %1484 = arith.truncf %1479 : vector<8x128xf32> to vector<8x128xbf16>
        %cst_790 = arith.constant dense<0.000000e+00> : vector<8x128xf32>
        %1485 = tpu.matmul %1484, %1438, %cst_790 {dimension_numbers = #tpu.dot_dimension_numbers<[1], [0], [0], [1], [0, 0, 1, 1], [], []>} : vector<8x128xbf16>, vector<128x128xbf16>, vector<8x128xf32> -> vector<8x128xf32>
        %1486 = arith.subf %1479, %1485 : vector<8x128xf32>
        %1487 = arith.mulf %1486, %1486 : vector<8x128xf32>
        %1488 = arith.truncf %1487 : vector<8x128xf32> to vector<8x128xbf16>
        %cst_791 = arith.constant dense<0.000000e+00> : vector<8x128xf32>
        %1489 = tpu.matmul %1488, %1438, %cst_791 {dimension_numbers = #tpu.dot_dimension_numbers<[1], [0], [0], [1], [0, 0, 1, 1], [], []>} : vector<8x128xbf16>, vector<128x128xbf16>, vector<8x128xf32> -> vector<8x128xf32>
        %cst_792 = arith.constant 9.99999974E-6 : f32
        %1490 = vector.broadcast %cst_792 : f32 to vector<8x128xf32>
        %1491 = arith.addf %1489, %1490 : vector<8x128xf32>
        %1492 = math.rsqrt %1491 : vector<8x128xf32>
        %1493 = arith.mulf %1486, %1492 : vector<8x128xf32>
        %1494 = vector.broadcast %1481 : vector<1x128xf32> to vector<8x128xf32>
        %1495 = arith.mulf %1493, %1494 : vector<8x128xf32>
        %1496 = vector.broadcast %1483 : vector<1x128xf32> to vector<8x128xf32>
        %1497 = arith.addf %1495, %1496 : vector<8x128xf32>
        %1498 = arith.addf %1497, %1441 : vector<8x128xf32>
        %cst_793 = arith.constant 0.000000e+00 : f32
        %1499 = vector.broadcast %cst_793 : f32 to vector<8x128xf32>
        %1500 = arith.maximumf %1498, %1499 : vector<8x128xf32>
        %c0_794 = arith.constant 0 : index
        %c0_795 = arith.constant 0 : index
        %c0_796 = arith.constant 0 : index
        %1501 = vector.load %arg12[%c0_794, %c0_795, %c0_796] : memref<2x1x128xf32, #tpu.memory_space<vmem>>, vector<1x1x128xf32>
        %1502 = vector.shape_cast %1501 : vector<1x1x128xf32> to vector<1x128xf32>
        %c0_797 = arith.constant 0 : index
        %c0_798 = arith.constant 0 : index
        %c0_799 = arith.constant 0 : index
        %1503 = vector.load %arg13[%c0_797, %c0_798, %c0_799] : memref<2x1x128xf32, #tpu.memory_space<vmem>>, vector<1x1x128xf32>
        %1504 = vector.shape_cast %1503 : vector<1x1x128xf32> to vector<1x128xf32>
        %1505 = arith.truncf %1500 : vector<8x128xf32> to vector<8x128xbf16>
        %cst_800 = arith.constant dense<0.000000e+00> : vector<8x128xf32>
        %1506 = tpu.matmul %1505, %1438, %cst_800 {dimension_numbers = #tpu.dot_dimension_numbers<[1], [0], [0], [1], [0, 0, 1, 1], [], []>} : vector<8x128xbf16>, vector<128x128xbf16>, vector<8x128xf32> -> vector<8x128xf32>
        %1507 = arith.subf %1500, %1506 : vector<8x128xf32>
        %1508 = arith.mulf %1507, %1507 : vector<8x128xf32>
        %1509 = arith.truncf %1508 : vector<8x128xf32> to vector<8x128xbf16>
        %cst_801 = arith.constant dense<0.000000e+00> : vector<8x128xf32>
        %1510 = tpu.matmul %1509, %1438, %cst_801 {dimension_numbers = #tpu.dot_dimension_numbers<[1], [0], [0], [1], [0, 0, 1, 1], [], []>} : vector<8x128xbf16>, vector<128x128xbf16>, vector<8x128xf32> -> vector<8x128xf32>
        %cst_802 = arith.constant 9.99999974E-6 : f32
        %1511 = vector.broadcast %cst_802 : f32 to vector<8x128xf32>
        %1512 = arith.addf %1510, %1511 : vector<8x128xf32>
        %1513 = math.rsqrt %1512 : vector<8x128xf32>
        %1514 = arith.mulf %1507, %1513 : vector<8x128xf32>
        %1515 = vector.broadcast %1502 : vector<1x128xf32> to vector<8x128xf32>
        %1516 = arith.mulf %1514, %1515 : vector<8x128xf32>
        %1517 = vector.broadcast %1504 : vector<1x128xf32> to vector<8x128xf32>
        %1518 = arith.addf %1516, %1517 : vector<8x128xf32>
        %1519 = vector.shape_cast %1518 : vector<8x128xf32> to vector<1x8x128xf32>
        %1520 = arith.index_cast %1437 : i32 to index
        %c0_803 = arith.constant 0 : index
        %c0_804 = arith.constant 0 : index
        %1521 = vector.load %arg22[%1520, %c0_803, %c0_804] : memref<6x8x384xf32, #tpu.memory_space<vmem>>, vector<1x8x128xf32>
        tpu.vector_store %arg22[%1520, %c0_803, %c0_804], %1519 {strides = array<i32>} : memref<6x8x384xf32, #tpu.memory_space<vmem>>, vector<1x8x128xf32>,
        %1522 = arith.addf %1440, %1518 : vector<8x128xf32>
        %c0_805 = arith.constant 0 : index
        %c128_806 = arith.constant 128 : index
        %1523 = vector.load %arg24[%c0_805, %c128_806] : memref<8x384xf32, #tpu.memory_space<vmem>>, vector<8x128xf32>
        %c0_807 = arith.constant 0 : index
        %c128_808 = arith.constant 128 : index
        %1524 = vector.load %arg1[%c0_807, %c128_808] : memref<8x384xf32, #tpu.memory_space<vmem>>, vector<8x128xf32>
        %c1_809 = arith.constant 1 : index
        %c0_810 = arith.constant 0 : index
        %c0_811 = arith.constant 0 : index
        %1525 = vector.load %arg4[%c1_809, %c0_810, %c0_811] : memref<2x128x128xbf16, #tpu.memory_space<vmem>>, vector<1x128x128xbf16>
        %1526 = vector.shape_cast %1525 : vector<1x128x128xbf16> to vector<128x128xbf16>
        %c1_812 = arith.constant 1 : index
        %c0_813 = arith.constant 0 : index
        %c0_814 = arith.constant 0 : index
        %1527 = vector.load %arg5[%c1_812, %c0_813, %c0_814] : memref<2x1x128xf32, #tpu.memory_space<vmem>>, vector<1x1x128xf32>
        %1528 = vector.shape_cast %1527 : vector<1x1x128xf32> to vector<1x128xf32>
        %1529 = arith.truncf %1523 : vector<8x128xf32> to vector<8x128xbf16>
        %cst_815 = arith.constant dense<0.000000e+00> : vector<8x128xf32>
        %1530 = tpu.matmul %1529, %1526, %cst_815 {dimension_numbers = #tpu.dot_dimension_numbers<[1], [0], [0], [1], [0, 0, 1, 1], [], []>} : vector<8x128xbf16>, vector<128x128xbf16>, vector<8x128xf32> -> vector<8x128xf32>
        %1531 = vector.broadcast %1528 : vector<1x128xf32> to vector<8x128xf32>
        %1532 = arith.addf %1530, %1531 : vector<8x128xf32>
        %c1_816 = arith.constant 1 : index
        %c0_817 = arith.constant 0 : index
        %c0_818 = arith.constant 0 : index
        %1533 = vector.load %arg8[%c1_816, %c0_817, %c0_818] : memref<2x1x128xf32, #tpu.memory_space<vmem>>, vector<1x1x128xf32>
        %1534 = vector.shape_cast %1533 : vector<1x1x128xf32> to vector<1x128xf32>
        %c1_819 = arith.constant 1 : index
        %c0_820 = arith.constant 0 : index
        %c0_821 = arith.constant 0 : index
        %1535 = vector.load %arg9[%c1_819, %c0_820, %c0_821] : memref<2x1x128xf32, #tpu.memory_space<vmem>>, vector<1x1x128xf32>
        %1536 = vector.shape_cast %1535 : vector<1x1x128xf32> to vector<1x128xf32>
        %1537 = arith.truncf %1532 : vector<8x128xf32> to vector<8x128xbf16>
        %cst_822 = arith.constant dense<0.000000e+00> : vector<8x128xf32>
        %1538 = tpu.matmul %1537, %1438, %cst_822 {dimension_numbers = #tpu.dot_dimension_numbers<[1], [0], [0], [1], [0, 0, 1, 1], [], []>} : vector<8x128xbf16>, vector<128x128xbf16>, vector<8x128xf32> -> vector<8x128xf32>
        %1539 = arith.subf %1532, %1538 : vector<8x128xf32>
        %1540 = arith.mulf %1539, %1539 : vector<8x128xf32>
        %1541 = arith.truncf %1540 : vector<8x128xf32> to vector<8x128xbf16>
        %cst_823 = arith.constant dense<0.000000e+00> : vector<8x128xf32>
        %1542 = tpu.matmul %1541, %1438, %cst_823 {dimension_numbers = #tpu.dot_dimension_numbers<[1], [0], [0], [1], [0, 0, 1, 1], [], []>} : vector<8x128xbf16>, vector<128x128xbf16>, vector<8x128xf32> -> vector<8x128xf32>
        %cst_824 = arith.constant 9.99999974E-6 : f32
        %1543 = vector.broadcast %cst_824 : f32 to vector<8x128xf32>
        %1544 = arith.addf %1542, %1543 : vector<8x128xf32>
        %1545 = math.rsqrt %1544 : vector<8x128xf32>
        %1546 = arith.mulf %1539, %1545 : vector<8x128xf32>
        %1547 = vector.broadcast %1534 : vector<1x128xf32> to vector<8x128xf32>
        %1548 = arith.mulf %1546, %1547 : vector<8x128xf32>
        %1549 = vector.broadcast %1536 : vector<1x128xf32> to vector<8x128xf32>
        %1550 = arith.addf %1548, %1549 : vector<8x128xf32>
        %cst_825 = arith.constant 0.000000e+00 : f32
        %1551 = vector.broadcast %cst_825 : f32 to vector<8x128xf32>
        %1552 = arith.maximumf %1550, %1551 : vector<8x128xf32>
        %c1_826 = arith.constant 1 : index
        %c0_827 = arith.constant 0 : index
        %c0_828 = arith.constant 0 : index
        %1553 = vector.load %arg6[%c1_826, %c0_827, %c0_828] : memref<2x128x128xbf16, #tpu.memory_space<vmem>>, vector<1x128x128xbf16>
        %1554 = vector.shape_cast %1553 : vector<1x128x128xbf16> to vector<128x128xbf16>
        %c1_829 = arith.constant 1 : index
        %c0_830 = arith.constant 0 : index
        %c0_831 = arith.constant 0 : index
        %1555 = vector.load %arg7[%c1_829, %c0_830, %c0_831] : memref<2x1x128xf32, #tpu.memory_space<vmem>>, vector<1x1x128xf32>
        %1556 = vector.shape_cast %1555 : vector<1x1x128xf32> to vector<1x128xf32>
        %1557 = arith.truncf %1552 : vector<8x128xf32> to vector<8x128xbf16>
        %cst_832 = arith.constant dense<0.000000e+00> : vector<8x128xf32>
        %1558 = tpu.matmul %1557, %1554, %cst_832 {dimension_numbers = #tpu.dot_dimension_numbers<[1], [0], [0], [1], [0, 0, 1, 1], [], []>} : vector<8x128xbf16>, vector<128x128xbf16>, vector<8x128xf32> -> vector<8x128xf32>
        %1559 = vector.broadcast %1556 : vector<1x128xf32> to vector<8x128xf32>
        %1560 = arith.addf %1558, %1559 : vector<8x128xf32>
        %1561 = arith.addf %1560, %1524 : vector<8x128xf32>
        %c1_833 = arith.constant 1 : index
        %c0_834 = arith.constant 0 : index
        %c0_835 = arith.constant 0 : index
        %1562 = vector.load %arg10[%c1_833, %c0_834, %c0_835] : memref<2x1x128xf32, #tpu.memory_space<vmem>>, vector<1x1x128xf32>
        %1563 = vector.shape_cast %1562 : vector<1x1x128xf32> to vector<1x128xf32>
        %c1_836 = arith.constant 1 : index
        %c0_837 = arith.constant 0 : index
        %c0_838 = arith.constant 0 : index
        %1564 = vector.load %arg11[%c1_836, %c0_837, %c0_838] : memref<2x1x128xf32, #tpu.memory_space<vmem>>, vector<1x1x128xf32>
        %1565 = vector.shape_cast %1564 : vector<1x1x128xf32> to vector<1x128xf32>
        %1566 = arith.truncf %1561 : vector<8x128xf32> to vector<8x128xbf16>
        %cst_839 = arith.constant dense<0.000000e+00> : vector<8x128xf32>
        %1567 = tpu.matmul %1566, %1438, %cst_839 {dimension_numbers = #tpu.dot_dimension_numbers<[1], [0], [0], [1], [0, 0, 1, 1], [], []>} : vector<8x128xbf16>, vector<128x128xbf16>, vector<8x128xf32> -> vector<8x128xf32>
        %1568 = arith.subf %1561, %1567 : vector<8x128xf32>
        %1569 = arith.mulf %1568, %1568 : vector<8x128xf32>
        %1570 = arith.truncf %1569 : vector<8x128xf32> to vector<8x128xbf16>
        %cst_840 = arith.constant dense<0.000000e+00> : vector<8x128xf32>
        %1571 = tpu.matmul %1570, %1438, %cst_840 {dimension_numbers = #tpu.dot_dimension_numbers<[1], [0], [0], [1], [0, 0, 1, 1], [], []>} : vector<8x128xbf16>, vector<128x128xbf16>, vector<8x128xf32> -> vector<8x128xf32>
        %cst_841 = arith.constant 9.99999974E-6 : f32
        %1572 = vector.broadcast %cst_841 : f32 to vector<8x128xf32>
        %1573 = arith.addf %1571, %1572 : vector<8x128xf32>
        %1574 = math.rsqrt %1573 : vector<8x128xf32>
        %1575 = arith.mulf %1568, %1574 : vector<8x128xf32>
        %1576 = vector.broadcast %1563 : vector<1x128xf32> to vector<8x128xf32>
        %1577 = arith.mulf %1575, %1576 : vector<8x128xf32>
        %1578 = vector.broadcast %1565 : vector<1x128xf32> to vector<8x128xf32>
        %1579 = arith.addf %1577, %1578 : vector<8x128xf32>
        %1580 = arith.addf %1579, %1523 : vector<8x128xf32>
        %cst_842 = arith.constant 0.000000e+00 : f32
        %1581 = vector.broadcast %cst_842 : f32 to vector<8x128xf32>
        %1582 = arith.maximumf %1580, %1581 : vector<8x128xf32>
        %c1_843 = arith.constant 1 : index
        %c0_844 = arith.constant 0 : index
        %c0_845 = arith.constant 0 : index
        %1583 = vector.load %arg12[%c1_843, %c0_844, %c0_845] : memref<2x1x128xf32, #tpu.memory_space<vmem>>, vector<1x1x128xf32>
        %1584 = vector.shape_cast %1583 : vector<1x1x128xf32> to vector<1x128xf32>
        %c1_846 = arith.constant 1 : index
        %c0_847 = arith.constant 0 : index
        %c0_848 = arith.constant 0 : index
        %1585 = vector.load %arg13[%c1_846, %c0_847, %c0_848] : memref<2x1x128xf32, #tpu.memory_space<vmem>>, vector<1x1x128xf32>
        %1586 = vector.shape_cast %1585 : vector<1x1x128xf32> to vector<1x128xf32>
        %1587 = arith.truncf %1582 : vector<8x128xf32> to vector<8x128xbf16>
        %cst_849 = arith.constant dense<0.000000e+00> : vector<8x128xf32>
        %1588 = tpu.matmul %1587, %1438, %cst_849 {dimension_numbers = #tpu.dot_dimension_numbers<[1], [0], [0], [1], [0, 0, 1, 1], [], []>} : vector<8x128xbf16>, vector<128x128xbf16>, vector<8x128xf32> -> vector<8x128xf32>
        %1589 = arith.subf %1582, %1588 : vector<8x128xf32>
        %1590 = arith.mulf %1589, %1589 : vector<8x128xf32>
        %1591 = arith.truncf %1590 : vector<8x128xf32> to vector<8x128xbf16>
        %cst_850 = arith.constant dense<0.000000e+00> : vector<8x128xf32>
        %1592 = tpu.matmul %1591, %1438, %cst_850 {dimension_numbers = #tpu.dot_dimension_numbers<[1], [0], [0], [1], [0, 0, 1, 1], [], []>} : vector<8x128xbf16>, vector<128x128xbf16>, vector<8x128xf32> -> vector<8x128xf32>
        %cst_851 = arith.constant 9.99999974E-6 : f32
        %1593 = vector.broadcast %cst_851 : f32 to vector<8x128xf32>
        %1594 = arith.addf %1592, %1593 : vector<8x128xf32>
        %1595 = math.rsqrt %1594 : vector<8x128xf32>
        %1596 = arith.mulf %1589, %1595 : vector<8x128xf32>
        %1597 = vector.broadcast %1584 : vector<1x128xf32> to vector<8x128xf32>
        %1598 = arith.mulf %1596, %1597 : vector<8x128xf32>
        %1599 = vector.broadcast %1586 : vector<1x128xf32> to vector<8x128xf32>
        %1600 = arith.addf %1598, %1599 : vector<8x128xf32>
        %1601 = vector.shape_cast %1600 : vector<8x128xf32> to vector<1x8x128xf32>
        %1602 = arith.index_cast %1437 : i32 to index
        %c0_852 = arith.constant 0 : index
        %c128_853 = arith.constant 128 : index
        %1603 = vector.load %arg22[%1602, %c0_852, %c128_853] : memref<6x8x384xf32, #tpu.memory_space<vmem>>, vector<1x8x128xf32>
        tpu.vector_store %arg22[%1602, %c0_852, %c128_853], %1601 {strides = array<i32>} : memref<6x8x384xf32, #tpu.memory_space<vmem>>, vector<1x8x128xf32>,
        %1604 = arith.addf %1522, %1600 : vector<8x128xf32>
        %cst_854 = arith.constant 2.000000e+00 : f32
        %1605 = vector.broadcast %cst_854 : f32 to vector<8x128xf32>
        %1606 = arith.mulf %1605, %1439 : vector<8x128xf32>
        %1607 = arith.addf %1604, %1606 : vector<8x128xf32>
        %1608 = arith.truncf %1607 : vector<8x128xf32> to vector<8x128xbf16>
        %c0_855 = arith.constant 0 : index
        %c0_856 = arith.constant 0 : index
        %1609 = vector.load %arg14[%c0_855, %c0_856] : memref<128x128xbf16, #tpu.memory_space<vmem>>, vector<128x128xbf16>
        %cst_857 = arith.constant dense<0.000000e+00> : vector<8x128xf32>
        %1610 = tpu.matmul %1608, %1609, %cst_857 {dimension_numbers = #tpu.dot_dimension_numbers<[1], [0], [0], [1], [0, 0, 1, 1], [], []>} : vector<8x128xbf16>, vector<128x128xbf16>, vector<8x128xf32> -> vector<8x128xf32>
        %c0_858 = arith.constant 0 : index
        %c0_859 = arith.constant 0 : index
        %1611 = vector.load %arg15[%c0_858, %c0_859] : memref<1x128xf32, #tpu.memory_space<vmem>>, vector<1x128xf32>
        %cst_860 = arith.constant 2.000000e+00 : f32
        %1612 = vector.broadcast %cst_860 : f32 to vector<1x128xf32>
        %1613 = arith.mulf %1612, %1611 : vector<1x128xf32>
        %1614 = vector.broadcast %1613 : vector<1x128xf32> to vector<8x128xf32>
        %1615 = arith.addf %1610, %1614 : vector<8x128xf32>
        %1616 = arith.mulf %1439, %1615 : vector<8x128xf32>
        %c0_861 = arith.constant 0 : index
        %c0_862 = arith.constant 0 : index
        %1617 = vector.load %arg16[%c0_861, %c0_862] : memref<128x128xbf16, #tpu.memory_space<vmem>>, vector<128x128xbf16>
        %c0_863 = arith.constant 0 : index
        %c0_864 = arith.constant 0 : index
        %1618 = vector.load %arg17[%c0_863, %c0_864] : memref<1x128xf32, #tpu.memory_space<vmem>>, vector<1x128xf32>
        %1619 = arith.truncf %1616 : vector<8x128xf32> to vector<8x128xbf16>
        %cst_865 = arith.constant dense<0.000000e+00> : vector<8x128xf32>
        %1620 = tpu.matmul %1619, %1617, %cst_865 {dimension_numbers = #tpu.dot_dimension_numbers<[1], [0], [0], [1], [0, 0, 1, 1], [], []>} : vector<8x128xbf16>, vector<128x128xbf16>, vector<8x128xf32> -> vector<8x128xf32>
        %1621 = vector.broadcast %1618 : vector<1x128xf32> to vector<8x128xf32>
        %1622 = arith.addf %1620, %1621 : vector<8x128xf32>
        %c0_866 = arith.constant 0 : index
        %c256_867 = arith.constant 256 : index
        %1623 = vector.load %arg1[%c0_866, %c256_867] : memref<8x384xf32, #tpu.memory_space<vmem>>, vector<8x128xf32>
        %1624 = arith.addf %1622, %1623 : vector<8x128xf32>
        %cst_868 = arith.constant 0.000000e+00 : f32
        %1625 = vector.broadcast %cst_868 : f32 to vector<8x128xf32>
        %1626 = arith.maximumf %1624, %1625 : vector<8x128xf32>
        %c0_869 = arith.constant 0 : index
        %c0_870 = arith.constant 0 : index
        %1627 = vector.load %arg18[%c0_869, %c0_870] : memref<1x128xf32, #tpu.memory_space<vmem>>, vector<1x128xf32>
        %c0_871 = arith.constant 0 : index
        %c0_872 = arith.constant 0 : index
        %1628 = vector.load %arg19[%c0_871, %c0_872] : memref<1x128xf32, #tpu.memory_space<vmem>>, vector<1x128xf32>
        %1629 = arith.truncf %1626 : vector<8x128xf32> to vector<8x128xbf16>
        %cst_873 = arith.constant dense<0.000000e+00> : vector<8x128xf32>
        %1630 = tpu.matmul %1629, %1438, %cst_873 {dimension_numbers = #tpu.dot_dimension_numbers<[1], [0], [0], [1], [0, 0, 1, 1], [], []>} : vector<8x128xbf16>, vector<128x128xbf16>, vector<8x128xf32> -> vector<8x128xf32>
        %1631 = arith.subf %1626, %1630 : vector<8x128xf32>
        %1632 = arith.mulf %1631, %1631 : vector<8x128xf32>
        %1633 = arith.truncf %1632 : vector<8x128xf32> to vector<8x128xbf16>
        %cst_874 = arith.constant dense<0.000000e+00> : vector<8x128xf32>
        %1634 = tpu.matmul %1633, %1438, %cst_874 {dimension_numbers = #tpu.dot_dimension_numbers<[1], [0], [0], [1], [0, 0, 1, 1], [], []>} : vector<8x128xbf16>, vector<128x128xbf16>, vector<8x128xf32> -> vector<8x128xf32>
        %cst_875 = arith.constant 9.99999974E-6 : f32
        %1635 = vector.broadcast %cst_875 : f32 to vector<8x128xf32>
        %1636 = arith.addf %1634, %1635 : vector<8x128xf32>
        %1637 = math.rsqrt %1636 : vector<8x128xf32>
        %1638 = arith.mulf %1631, %1637 : vector<8x128xf32>
        %1639 = vector.broadcast %1627 : vector<1x128xf32> to vector<8x128xf32>
        %1640 = arith.mulf %1638, %1639 : vector<8x128xf32>
        %1641 = vector.broadcast %1628 : vector<1x128xf32> to vector<8x128xf32>
        %1642 = arith.addf %1640, %1641 : vector<8x128xf32>
        %1643 = vector.shape_cast %1642 : vector<8x128xf32> to vector<1x8x128xf32>
        %1644 = arith.index_cast %1437 : i32 to index
        %c0_876 = arith.constant 0 : index
        %c256_877 = arith.constant 256 : index
        %1645 = vector.load %arg22[%1644, %c0_876, %c256_877] : memref<6x8x384xf32, #tpu.memory_space<vmem>>, vector<1x8x128xf32>
        tpu.vector_store %arg22[%1644, %c0_876, %c256_877], %1643 {strides = array<i32>} : memref<6x8x384xf32, #tpu.memory_space<vmem>>, vector<1x8x128xf32>,
        %cst_878 = arith.constant 0.000000e+00 : f32
        %1646 = vector.broadcast %cst_878 : f32 to vector<8x1xf32>
        %cst_879 = arith.constant 0.000000e+00 : f32
        %1647 = vector.broadcast %cst_879 : f32 to vector<8x1xf32>
        %cst_880 = arith.constant 0.000000e+00 : f32
        %1648 = vector.broadcast %cst_880 : f32 to vector<8x1xf32>
        %cst_881 = arith.constant 0.000000e+00 : f32
        %1649 = vector.broadcast %cst_881 : f32 to vector<8x1xf32>
        %cst_882 = arith.constant 0.000000e+00 : f32
        %1650 = vector.broadcast %cst_882 : f32 to vector<8x1xf32>
        %cst_883 = arith.constant 0.000000e+00 : f32
        %1651 = vector.broadcast %cst_883 : f32 to vector<8x1xf32>
        %cst_884 = arith.constant 0.000000e+00 : f32
        %1652 = vector.broadcast %cst_884 : f32 to vector<8x1xf32>
        %1653 = arith.index_cast %1437 : i32 to index
        %c0_885 = arith.constant 0 : index
        %c0_886 = arith.constant 0 : index
        %1654 = vector.load %arg22[%1653, %c0_885, %c0_886] : memref<6x8x384xf32, #tpu.memory_space<vmem>>, vector<1x8x128xf32>
        %1655 = vector.shape_cast %1654 : vector<1x8x128xf32> to vector<8x128xf32>
        %c0_887 = arith.constant 0 : index
        %c0_888 = arith.constant 0 : index
        %1656 = vector.load %arg24[%c0_887, %c0_888] : memref<8x384xf32, #tpu.memory_space<vmem>>, vector<8x128xf32>
        %1657 = arith.subf %1655, %1656 : vector<8x128xf32>
        %1658 = vector.shape_cast %1657 : vector<8x128xf32> to vector<1x8x128xf32>
        %1659 = arith.index_cast %1437 : i32 to index
        %c0_889 = arith.constant 0 : index
        %c0_890 = arith.constant 0 : index
        %1660 = vector.load %arg23[%1659, %c0_889, %c0_890] : memref<6x8x384xf32, #tpu.memory_space<vmem>>, vector<1x8x128xf32>
        tpu.vector_store %arg23[%1659, %c0_889, %c0_890], %1658 {strides = array<i32>} : memref<6x8x384xf32, #tpu.memory_space<vmem>>, vector<1x8x128xf32>,
        %c0_891 = arith.constant 0 : index
        %c0_892 = arith.constant 0 : index
        %c0_893 = arith.constant 0 : index
        %1661 = vector.load %arg23[%c0_891, %c0_892, %c0_893] : memref<6x8x384xf32, #tpu.memory_space<vmem>>, vector<1x8x128xf32>
        %1662 = vector.shape_cast %1661 : vector<1x8x128xf32> to vector<8x128xf32>
        %1663 = arith.mulf %1657, %1662 : vector<8x128xf32>
        %cst_894 = arith.constant dense<0.000000e+00> : vector<8xf32>
        %1664 = vector.multi_reduction <add>, %1663, %cst_894 [1] : vector<8x128xf32> to vector<8xf32>
        %1665 = vector.shape_cast %1664 : vector<8xf32> to vector<8x1xf32>
        %1666 = arith.addf %1646, %1665 : vector<8x1xf32>
        %c1_895 = arith.constant 1 : index
        %c0_896 = arith.constant 0 : index
        %c0_897 = arith.constant 0 : index
        %1667 = vector.load %arg23[%c1_895, %c0_896, %c0_897] : memref<6x8x384xf32, #tpu.memory_space<vmem>>, vector<1x8x128xf32>
        %1668 = vector.shape_cast %1667 : vector<1x8x128xf32> to vector<8x128xf32>
        %1669 = arith.mulf %1657, %1668 : vector<8x128xf32>
        %cst_898 = arith.constant dense<0.000000e+00> : vector<8xf32>
        %1670 = vector.multi_reduction <add>, %1669, %cst_898 [1] : vector<8x128xf32> to vector<8xf32>
        %1671 = vector.shape_cast %1670 : vector<8xf32> to vector<8x1xf32>
        %1672 = arith.addf %1647, %1671 : vector<8x1xf32>
        %c2_899 = arith.constant 2 : index
        %c0_900 = arith.constant 0 : index
        %c0_901 = arith.constant 0 : index
        %1673 = vector.load %arg23[%c2_899, %c0_900, %c0_901] : memref<6x8x384xf32, #tpu.memory_space<vmem>>, vector<1x8x128xf32>
        %1674 = vector.shape_cast %1673 : vector<1x8x128xf32> to vector<8x128xf32>
        %1675 = arith.mulf %1657, %1674 : vector<8x128xf32>
        %cst_902 = arith.constant dense<0.000000e+00> : vector<8xf32>
        %1676 = vector.multi_reduction <add>, %1675, %cst_902 [1] : vector<8x128xf32> to vector<8xf32>
        %1677 = vector.shape_cast %1676 : vector<8xf32> to vector<8x1xf32>
        %1678 = arith.addf %1648, %1677 : vector<8x1xf32>
        %c3_903 = arith.constant 3 : index
        %c0_904 = arith.constant 0 : index
        %c0_905 = arith.constant 0 : index
        %1679 = vector.load %arg23[%c3_903, %c0_904, %c0_905] : memref<6x8x384xf32, #tpu.memory_space<vmem>>, vector<1x8x128xf32>
        %1680 = vector.shape_cast %1679 : vector<1x8x128xf32> to vector<8x128xf32>
        %1681 = arith.mulf %1657, %1680 : vector<8x128xf32>
        %cst_906 = arith.constant dense<0.000000e+00> : vector<8xf32>
        %1682 = vector.multi_reduction <add>, %1681, %cst_906 [1] : vector<8x128xf32> to vector<8xf32>
        %1683 = vector.shape_cast %1682 : vector<8xf32> to vector<8x1xf32>
        %1684 = arith.addf %1649, %1683 : vector<8x1xf32>
        %c4_907 = arith.constant 4 : index
        %c0_908 = arith.constant 0 : index
        %c0_909 = arith.constant 0 : index
        %1685 = vector.load %arg23[%c4_907, %c0_908, %c0_909] : memref<6x8x384xf32, #tpu.memory_space<vmem>>, vector<1x8x128xf32>
        %1686 = vector.shape_cast %1685 : vector<1x8x128xf32> to vector<8x128xf32>
        %1687 = arith.mulf %1657, %1686 : vector<8x128xf32>
        %cst_910 = arith.constant dense<0.000000e+00> : vector<8xf32>
        %1688 = vector.multi_reduction <add>, %1687, %cst_910 [1] : vector<8x128xf32> to vector<8xf32>
        %1689 = vector.shape_cast %1688 : vector<8xf32> to vector<8x1xf32>
        %1690 = arith.addf %1650, %1689 : vector<8x1xf32>
        %c5_911 = arith.constant 5 : index
        %c0_912 = arith.constant 0 : index
        %c0_913 = arith.constant 0 : index
        %1691 = vector.load %arg23[%c5_911, %c0_912, %c0_913] : memref<6x8x384xf32, #tpu.memory_space<vmem>>, vector<1x8x128xf32>
        %1692 = vector.shape_cast %1691 : vector<1x8x128xf32> to vector<8x128xf32>
        %1693 = arith.mulf %1657, %1692 : vector<8x128xf32>
        %cst_914 = arith.constant dense<0.000000e+00> : vector<8xf32>
        %1694 = vector.multi_reduction <add>, %1693, %cst_914 [1] : vector<8x128xf32> to vector<8xf32>
        %1695 = vector.shape_cast %1694 : vector<8xf32> to vector<8x1xf32>
        %1696 = arith.addf %1651, %1695 : vector<8x1xf32>
        %1697 = arith.mulf %1655, %1655 : vector<8x128xf32>
        %cst_915 = arith.constant dense<0.000000e+00> : vector<8xf32>
        %1698 = vector.multi_reduction <add>, %1697, %cst_915 [1] : vector<8x128xf32> to vector<8xf32>
        %1699 = vector.shape_cast %1698 : vector<8xf32> to vector<8x1xf32>
        %1700 = arith.addf %1652, %1699 : vector<8x1xf32>
        %1701 = arith.index_cast %1437 : i32 to index
        %c0_916 = arith.constant 0 : index
        %c128_917 = arith.constant 128 : index
        %1702 = vector.load %arg22[%1701, %c0_916, %c128_917] : memref<6x8x384xf32, #tpu.memory_space<vmem>>, vector<1x8x128xf32>
        %1703 = vector.shape_cast %1702 : vector<1x8x128xf32> to vector<8x128xf32>
        %c0_918 = arith.constant 0 : index
        %c128_919 = arith.constant 128 : index
        %1704 = vector.load %arg24[%c0_918, %c128_919] : memref<8x384xf32, #tpu.memory_space<vmem>>, vector<8x128xf32>
        %1705 = arith.subf %1703, %1704 : vector<8x128xf32>
        %1706 = vector.shape_cast %1705 : vector<8x128xf32> to vector<1x8x128xf32>
        %1707 = arith.index_cast %1437 : i32 to index
        %c0_920 = arith.constant 0 : index
        %c128_921 = arith.constant 128 : index
        %1708 = vector.load %arg23[%1707, %c0_920, %c128_921] : memref<6x8x384xf32, #tpu.memory_space<vmem>>, vector<1x8x128xf32>
        tpu.vector_store %arg23[%1707, %c0_920, %c128_921], %1706 {strides = array<i32>} : memref<6x8x384xf32, #tpu.memory_space<vmem>>, vector<1x8x128xf32>,
        %c0_922 = arith.constant 0 : index
        %c0_923 = arith.constant 0 : index
        %c128_924 = arith.constant 128 : index
        %1709 = vector.load %arg23[%c0_922, %c0_923, %c128_924] : memref<6x8x384xf32, #tpu.memory_space<vmem>>, vector<1x8x128xf32>
        %1710 = vector.shape_cast %1709 : vector<1x8x128xf32> to vector<8x128xf32>
        %1711 = arith.mulf %1705, %1710 : vector<8x128xf32>
        %cst_925 = arith.constant dense<0.000000e+00> : vector<8xf32>
        %1712 = vector.multi_reduction <add>, %1711, %cst_925 [1] : vector<8x128xf32> to vector<8xf32>
        %1713 = vector.shape_cast %1712 : vector<8xf32> to vector<8x1xf32>
        %1714 = arith.addf %1666, %1713 : vector<8x1xf32>
        %c1_926 = arith.constant 1 : index
        %c0_927 = arith.constant 0 : index
        %c128_928 = arith.constant 128 : index
        %1715 = vector.load %arg23[%c1_926, %c0_927, %c128_928] : memref<6x8x384xf32, #tpu.memory_space<vmem>>, vector<1x8x128xf32>
        %1716 = vector.shape_cast %1715 : vector<1x8x128xf32> to vector<8x128xf32>
        %1717 = arith.mulf %1705, %1716 : vector<8x128xf32>
        %cst_929 = arith.constant dense<0.000000e+00> : vector<8xf32>
        %1718 = vector.multi_reduction <add>, %1717, %cst_929 [1] : vector<8x128xf32> to vector<8xf32>
        %1719 = vector.shape_cast %1718 : vector<8xf32> to vector<8x1xf32>
        %1720 = arith.addf %1672, %1719 : vector<8x1xf32>
        %c2_930 = arith.constant 2 : index
        %c0_931 = arith.constant 0 : index
        %c128_932 = arith.constant 128 : index
        %1721 = vector.load %arg23[%c2_930, %c0_931, %c128_932] : memref<6x8x384xf32, #tpu.memory_space<vmem>>, vector<1x8x128xf32>
        %1722 = vector.shape_cast %1721 : vector<1x8x128xf32> to vector<8x128xf32>
        %1723 = arith.mulf %1705, %1722 : vector<8x128xf32>
        %cst_933 = arith.constant dense<0.000000e+00> : vector<8xf32>
        %1724 = vector.multi_reduction <add>, %1723, %cst_933 [1] : vector<8x128xf32> to vector<8xf32>
        %1725 = vector.shape_cast %1724 : vector<8xf32> to vector<8x1xf32>
        %1726 = arith.addf %1678, %1725 : vector<8x1xf32>
        %c3_934 = arith.constant 3 : index
        %c0_935 = arith.constant 0 : index
        %c128_936 = arith.constant 128 : index
        %1727 = vector.load %arg23[%c3_934, %c0_935, %c128_936] : memref<6x8x384xf32, #tpu.memory_space<vmem>>, vector<1x8x128xf32>
        %1728 = vector.shape_cast %1727 : vector<1x8x128xf32> to vector<8x128xf32>
        %1729 = arith.mulf %1705, %1728 : vector<8x128xf32>
        %cst_937 = arith.constant dense<0.000000e+00> : vector<8xf32>
        %1730 = vector.multi_reduction <add>, %1729, %cst_937 [1] : vector<8x128xf32> to vector<8xf32>
        %1731 = vector.shape_cast %1730 : vector<8xf32> to vector<8x1xf32>
        %1732 = arith.addf %1684, %1731 : vector<8x1xf32>
        %c4_938 = arith.constant 4 : index
        %c0_939 = arith.constant 0 : index
        %c128_940 = arith.constant 128 : index
        %1733 = vector.load %arg23[%c4_938, %c0_939, %c128_940] : memref<6x8x384xf32, #tpu.memory_space<vmem>>, vector<1x8x128xf32>
        %1734 = vector.shape_cast %1733 : vector<1x8x128xf32> to vector<8x128xf32>
        %1735 = arith.mulf %1705, %1734 : vector<8x128xf32>
        %cst_941 = arith.constant dense<0.000000e+00> : vector<8xf32>
        %1736 = vector.multi_reduction <add>, %1735, %cst_941 [1] : vector<8x128xf32> to vector<8xf32>
        %1737 = vector.shape_cast %1736 : vector<8xf32> to vector<8x1xf32>
        %1738 = arith.addf %1690, %1737 : vector<8x1xf32>
        %c5_942 = arith.constant 5 : index
        %c0_943 = arith.constant 0 : index
        %c128_944 = arith.constant 128 : index
        %1739 = vector.load %arg23[%c5_942, %c0_943, %c128_944] : memref<6x8x384xf32, #tpu.memory_space<vmem>>, vector<1x8x128xf32>
        %1740 = vector.shape_cast %1739 : vector<1x8x128xf32> to vector<8x128xf32>
        %1741 = arith.mulf %1705, %1740 : vector<8x128xf32>
        %cst_945 = arith.constant dense<0.000000e+00> : vector<8xf32>
        %1742 = vector.multi_reduction <add>, %1741, %cst_945 [1] : vector<8x128xf32> to vector<8xf32>
        %1743 = vector.shape_cast %1742 : vector<8xf32> to vector<8x1xf32>
        %1744 = arith.addf %1696, %1743 : vector<8x1xf32>
        %1745 = arith.mulf %1703, %1703 : vector<8x128xf32>
        %cst_946 = arith.constant dense<0.000000e+00> : vector<8xf32>
        %1746 = vector.multi_reduction <add>, %1745, %cst_946 [1] : vector<8x128xf32> to vector<8xf32>
        %1747 = vector.shape_cast %1746 : vector<8xf32> to vector<8x1xf32>
        %1748 = arith.addf %1700, %1747 : vector<8x1xf32>
        %1749 = arith.index_cast %1437 : i32 to index
        %c0_947 = arith.constant 0 : index
        %c256_948 = arith.constant 256 : index
        %1750 = vector.load %arg22[%1749, %c0_947, %c256_948] : memref<6x8x384xf32, #tpu.memory_space<vmem>>, vector<1x8x128xf32>
        %1751 = vector.shape_cast %1750 : vector<1x8x128xf32> to vector<8x128xf32>
        %c0_949 = arith.constant 0 : index
        %c256_950 = arith.constant 256 : index
        %1752 = vector.load %arg24[%c0_949, %c256_950] : memref<8x384xf32, #tpu.memory_space<vmem>>, vector<8x128xf32>
        %1753 = arith.subf %1751, %1752 : vector<8x128xf32>
        %1754 = vector.shape_cast %1753 : vector<8x128xf32> to vector<1x8x128xf32>
        %1755 = arith.index_cast %1437 : i32 to index
        %c0_951 = arith.constant 0 : index
        %c256_952 = arith.constant 256 : index
        %1756 = vector.load %arg23[%1755, %c0_951, %c256_952] : memref<6x8x384xf32, #tpu.memory_space<vmem>>, vector<1x8x128xf32>
        tpu.vector_store %arg23[%1755, %c0_951, %c256_952], %1754 {strides = array<i32>} : memref<6x8x384xf32, #tpu.memory_space<vmem>>, vector<1x8x128xf32>,
        %c0_953 = arith.constant 0 : index
        %c0_954 = arith.constant 0 : index
        %c256_955 = arith.constant 256 : index
        %1757 = vector.load %arg23[%c0_953, %c0_954, %c256_955] : memref<6x8x384xf32, #tpu.memory_space<vmem>>, vector<1x8x128xf32>
        %1758 = vector.shape_cast %1757 : vector<1x8x128xf32> to vector<8x128xf32>
        %1759 = arith.mulf %1753, %1758 : vector<8x128xf32>
        %cst_956 = arith.constant dense<0.000000e+00> : vector<8xf32>
        %1760 = vector.multi_reduction <add>, %1759, %cst_956 [1] : vector<8x128xf32> to vector<8xf32>
        %1761 = vector.shape_cast %1760 : vector<8xf32> to vector<8x1xf32>
        %1762 = arith.addf %1714, %1761 : vector<8x1xf32>
        %c1_957 = arith.constant 1 : index
        %c0_958 = arith.constant 0 : index
        %c256_959 = arith.constant 256 : index
        %1763 = vector.load %arg23[%c1_957, %c0_958, %c256_959] : memref<6x8x384xf32, #tpu.memory_space<vmem>>, vector<1x8x128xf32>
        %1764 = vector.shape_cast %1763 : vector<1x8x128xf32> to vector<8x128xf32>
        %1765 = arith.mulf %1753, %1764 : vector<8x128xf32>
        %cst_960 = arith.constant dense<0.000000e+00> : vector<8xf32>
        %1766 = vector.multi_reduction <add>, %1765, %cst_960 [1] : vector<8x128xf32> to vector<8xf32>
        %1767 = vector.shape_cast %1766 : vector<8xf32> to vector<8x1xf32>
        %1768 = arith.addf %1720, %1767 : vector<8x1xf32>
        %c2_961 = arith.constant 2 : index
        %c0_962 = arith.constant 0 : index
        %c256_963 = arith.constant 256 : index
        %1769 = vector.load %arg23[%c2_961, %c0_962, %c256_963] : memref<6x8x384xf32, #tpu.memory_space<vmem>>, vector<1x8x128xf32>
        %1770 = vector.shape_cast %1769 : vector<1x8x128xf32> to vector<8x128xf32>
        %1771 = arith.mulf %1753, %1770 : vector<8x128xf32>
        %cst_964 = arith.constant dense<0.000000e+00> : vector<8xf32>
        %1772 = vector.multi_reduction <add>, %1771, %cst_964 [1] : vector<8x128xf32> to vector<8xf32>
        %1773 = vector.shape_cast %1772 : vector<8xf32> to vector<8x1xf32>
        %1774 = arith.addf %1726, %1773 : vector<8x1xf32>
        %c3_965 = arith.constant 3 : index
        %c0_966 = arith.constant 0 : index
        %c256_967 = arith.constant 256 : index
        %1775 = vector.load %arg23[%c3_965, %c0_966, %c256_967] : memref<6x8x384xf32, #tpu.memory_space<vmem>>, vector<1x8x128xf32>
        %1776 = vector.shape_cast %1775 : vector<1x8x128xf32> to vector<8x128xf32>
        %1777 = arith.mulf %1753, %1776 : vector<8x128xf32>
        %cst_968 = arith.constant dense<0.000000e+00> : vector<8xf32>
        %1778 = vector.multi_reduction <add>, %1777, %cst_968 [1] : vector<8x128xf32> to vector<8xf32>
        %1779 = vector.shape_cast %1778 : vector<8xf32> to vector<8x1xf32>
        %1780 = arith.addf %1732, %1779 : vector<8x1xf32>
        %c4_969 = arith.constant 4 : index
        %c0_970 = arith.constant 0 : index
        %c256_971 = arith.constant 256 : index
        %1781 = vector.load %arg23[%c4_969, %c0_970, %c256_971] : memref<6x8x384xf32, #tpu.memory_space<vmem>>, vector<1x8x128xf32>
        %1782 = vector.shape_cast %1781 : vector<1x8x128xf32> to vector<8x128xf32>
        %1783 = arith.mulf %1753, %1782 : vector<8x128xf32>
        %cst_972 = arith.constant dense<0.000000e+00> : vector<8xf32>
        %1784 = vector.multi_reduction <add>, %1783, %cst_972 [1] : vector<8x128xf32> to vector<8xf32>
        %1785 = vector.shape_cast %1784 : vector<8xf32> to vector<8x1xf32>
        %1786 = arith.addf %1738, %1785 : vector<8x1xf32>
        %c5_973 = arith.constant 5 : index
        %c0_974 = arith.constant 0 : index
        %c256_975 = arith.constant 256 : index
        %1787 = vector.load %arg23[%c5_973, %c0_974, %c256_975] : memref<6x8x384xf32, #tpu.memory_space<vmem>>, vector<1x8x128xf32>
        %1788 = vector.shape_cast %1787 : vector<1x8x128xf32> to vector<8x128xf32>
        %1789 = arith.mulf %1753, %1788 : vector<8x128xf32>
        %cst_976 = arith.constant dense<0.000000e+00> : vector<8xf32>
        %1790 = vector.multi_reduction <add>, %1789, %cst_976 [1] : vector<8x128xf32> to vector<8xf32>
        %1791 = vector.shape_cast %1790 : vector<8xf32> to vector<8x1xf32>
        %1792 = arith.addf %1744, %1791 : vector<8x1xf32>
        %1793 = arith.mulf %1751, %1751 : vector<8x128xf32>
        %cst_977 = arith.constant dense<0.000000e+00> : vector<8xf32>
        %1794 = vector.multi_reduction <add>, %1793, %cst_977 [1] : vector<8x128xf32> to vector<8xf32>
        %1795 = vector.shape_cast %1794 : vector<8xf32> to vector<8x1xf32>
        %1796 = arith.addf %1748, %1795 : vector<8x1xf32>
        %1797 = tpu.concatenate %1762, %1768, %1774, %1780, %1786, %1792 in 1 : vector<8x1xf32>, vector<8x1xf32>, vector<8x1xf32>, vector<8x1xf32>, vector<8x1xf32>, vector<8x1xf32> -> vector<8x6xf32>
        %1798 = vector.broadcast %1437 : i32 to vector<8x6xi32>
        %1799 = arith.cmpi eq, %0, %1798 : vector<8x6xi32>
        %c0_978 = arith.constant 0 : index
        %c0_979 = arith.constant 0 : index
        %c0_980 = arith.constant 0 : index
        %1800 = vector.load %arg25[%c0_978, %c0_979, %c0_980] : memref<6x8x6xf32, #tpu.memory_space<vmem>>, vector<1x8x6xf32>
        %1801 = vector.shape_cast %1800 : vector<1x8x6xf32> to vector<8x6xf32>
        %1802 = vector.shape_cast %1762 : vector<8x1xf32> to vector<8x1xf32>
        %1803 = vector.broadcast %1802 : vector<8x1xf32> to vector<8x6xf32>
        %1804 = arith.select %1799, %1803, %1801 : vector<8x6xi1>, vector<8x6xf32>
        %c0_i32_981 = arith.constant 0 : i32
        %1805 = arith.cmpi eq, %c0_i32_981, %1437 : i32
        %1806 = arith.extui %1805 : i1 to i32
        %1807 = arith.sitofp %1806 : i32 to f32
        %1808 = vector.broadcast %1807 : f32 to vector<8x6xf32>
        %1809 = arith.mulf %1808, %1797 : vector<8x6xf32>
        %cst_982 = arith.constant 1.000000e+00 : f32
        %1810 = arith.subf %cst_982, %1807 : f32
        %1811 = vector.broadcast %1810 : f32 to vector<8x6xf32>
        %1812 = arith.mulf %1811, %1804 : vector<8x6xf32>
        %1813 = arith.addf %1809, %1812 : vector<8x6xf32>
        %c0_983 = arith.constant 0 : index
        %c0_984 = arith.constant 0 : index
        %c0_985 = arith.constant 0 : index
        %1814 = vector.load %arg25[%c0_983, %c0_984, %c0_985] : memref<6x8x6xf32, #tpu.memory_space<vmem>>, vector<1x8x6xf32>
        %1815 = vector.shape_cast %1814 : vector<1x8x6xf32> to vector<8x6xf32>
        %1816 = vector.shape_cast %1813 : vector<8x6xf32> to vector<1x8x6xf32>
        tpu.vector_store %arg25[%c0_983, %c0_984, %c0_985], %1816 {strides = array<i32>} : memref<6x8x6xf32, #tpu.memory_space<vmem>>, vector<1x8x6xf32>,
        %c1_986 = arith.constant 1 : index
        %c0_987 = arith.constant 0 : index
        %c0_988 = arith.constant 0 : index
        %1817 = vector.load %arg25[%c1_986, %c0_987, %c0_988] : memref<6x8x6xf32, #tpu.memory_space<vmem>>, vector<1x8x6xf32>
        %1818 = vector.shape_cast %1817 : vector<1x8x6xf32> to vector<8x6xf32>
        %1819 = vector.shape_cast %1768 : vector<8x1xf32> to vector<8x1xf32>
        %1820 = vector.broadcast %1819 : vector<8x1xf32> to vector<8x6xf32>
        %1821 = arith.select %1799, %1820, %1818 : vector<8x6xi1>, vector<8x6xf32>
        %c1_i32_989 = arith.constant 1 : i32
        %1822 = arith.cmpi eq, %c1_i32_989, %1437 : i32
        %1823 = arith.extui %1822 : i1 to i32
        %1824 = arith.sitofp %1823 : i32 to f32
        %1825 = vector.broadcast %1824 : f32 to vector<8x6xf32>
        %1826 = arith.mulf %1825, %1797 : vector<8x6xf32>
        %cst_990 = arith.constant 1.000000e+00 : f32
        %1827 = arith.subf %cst_990, %1824 : f32
        %1828 = vector.broadcast %1827 : f32 to vector<8x6xf32>
        %1829 = arith.mulf %1828, %1821 : vector<8x6xf32>
        %1830 = arith.addf %1826, %1829 : vector<8x6xf32>
        %c1_991 = arith.constant 1 : index
        %c0_992 = arith.constant 0 : index
        %c0_993 = arith.constant 0 : index
        %1831 = vector.load %arg25[%c1_991, %c0_992, %c0_993] : memref<6x8x6xf32, #tpu.memory_space<vmem>>, vector<1x8x6xf32>
        %1832 = vector.shape_cast %1831 : vector<1x8x6xf32> to vector<8x6xf32>
        %1833 = vector.shape_cast %1830 : vector<8x6xf32> to vector<1x8x6xf32>
        tpu.vector_store %arg25[%c1_991, %c0_992, %c0_993], %1833 {strides = array<i32>} : memref<6x8x6xf32, #tpu.memory_space<vmem>>, vector<1x8x6xf32>,
        %c2_994 = arith.constant 2 : index
        %c0_995 = arith.constant 0 : index
        %c0_996 = arith.constant 0 : index
        %1834 = vector.load %arg25[%c2_994, %c0_995, %c0_996] : memref<6x8x6xf32, #tpu.memory_space<vmem>>, vector<1x8x6xf32>
        %1835 = vector.shape_cast %1834 : vector<1x8x6xf32> to vector<8x6xf32>
        %1836 = vector.shape_cast %1774 : vector<8x1xf32> to vector<8x1xf32>
        %1837 = vector.broadcast %1836 : vector<8x1xf32> to vector<8x6xf32>
        %1838 = arith.select %1799, %1837, %1835 : vector<8x6xi1>, vector<8x6xf32>
        %c2_i32_997 = arith.constant 2 : i32
        %1839 = arith.cmpi eq, %c2_i32_997, %1437 : i32
        %1840 = arith.extui %1839 : i1 to i32
        %1841 = arith.sitofp %1840 : i32 to f32
        %1842 = vector.broadcast %1841 : f32 to vector<8x6xf32>
        %1843 = arith.mulf %1842, %1797 : vector<8x6xf32>
        %cst_998 = arith.constant 1.000000e+00 : f32
        %1844 = arith.subf %cst_998, %1841 : f32
        %1845 = vector.broadcast %1844 : f32 to vector<8x6xf32>
        %1846 = arith.mulf %1845, %1838 : vector<8x6xf32>
        %1847 = arith.addf %1843, %1846 : vector<8x6xf32>
        %c2_999 = arith.constant 2 : index
        %c0_1000 = arith.constant 0 : index
        %c0_1001 = arith.constant 0 : index
        %1848 = vector.load %arg25[%c2_999, %c0_1000, %c0_1001] : memref<6x8x6xf32, #tpu.memory_space<vmem>>, vector<1x8x6xf32>
        %1849 = vector.shape_cast %1848 : vector<1x8x6xf32> to vector<8x6xf32>
        %1850 = vector.shape_cast %1847 : vector<8x6xf32> to vector<1x8x6xf32>
        tpu.vector_store %arg25[%c2_999, %c0_1000, %c0_1001], %1850 {strides = array<i32>} : memref<6x8x6xf32, #tpu.memory_space<vmem>>, vector<1x8x6xf32>,
        %c3_1002 = arith.constant 3 : index
        %c0_1003 = arith.constant 0 : index
        %c0_1004 = arith.constant 0 : index
        %1851 = vector.load %arg25[%c3_1002, %c0_1003, %c0_1004] : memref<6x8x6xf32, #tpu.memory_space<vmem>>, vector<1x8x6xf32>
        %1852 = vector.shape_cast %1851 : vector<1x8x6xf32> to vector<8x6xf32>
        %1853 = vector.shape_cast %1780 : vector<8x1xf32> to vector<8x1xf32>
        %1854 = vector.broadcast %1853 : vector<8x1xf32> to vector<8x6xf32>
        %1855 = arith.select %1799, %1854, %1852 : vector<8x6xi1>, vector<8x6xf32>
        %c3_i32_1005 = arith.constant 3 : i32
        %1856 = arith.cmpi eq, %c3_i32_1005, %1437 : i32
        %1857 = arith.extui %1856 : i1 to i32
        %1858 = arith.sitofp %1857 : i32 to f32
        %1859 = vector.broadcast %1858 : f32 to vector<8x6xf32>
        %1860 = arith.mulf %1859, %1797 : vector<8x6xf32>
        %cst_1006 = arith.constant 1.000000e+00 : f32
        %1861 = arith.subf %cst_1006, %1858 : f32
        %1862 = vector.broadcast %1861 : f32 to vector<8x6xf32>
        %1863 = arith.mulf %1862, %1855 : vector<8x6xf32>
        %1864 = arith.addf %1860, %1863 : vector<8x6xf32>
        %c3_1007 = arith.constant 3 : index
        %c0_1008 = arith.constant 0 : index
        %c0_1009 = arith.constant 0 : index
        %1865 = vector.load %arg25[%c3_1007, %c0_1008, %c0_1009] : memref<6x8x6xf32, #tpu.memory_space<vmem>>, vector<1x8x6xf32>
        %1866 = vector.shape_cast %1865 : vector<1x8x6xf32> to vector<8x6xf32>
        %1867 = vector.shape_cast %1864 : vector<8x6xf32> to vector<1x8x6xf32>
        tpu.vector_store %arg25[%c3_1007, %c0_1008, %c0_1009], %1867 {strides = array<i32>} : memref<6x8x6xf32, #tpu.memory_space<vmem>>, vector<1x8x6xf32>,
        %c4_1010 = arith.constant 4 : index
        %c0_1011 = arith.constant 0 : index
        %c0_1012 = arith.constant 0 : index
        %1868 = vector.load %arg25[%c4_1010, %c0_1011, %c0_1012] : memref<6x8x6xf32, #tpu.memory_space<vmem>>, vector<1x8x6xf32>
        %1869 = vector.shape_cast %1868 : vector<1x8x6xf32> to vector<8x6xf32>
        %1870 = vector.shape_cast %1786 : vector<8x1xf32> to vector<8x1xf32>
        %1871 = vector.broadcast %1870 : vector<8x1xf32> to vector<8x6xf32>
        %1872 = arith.select %1799, %1871, %1869 : vector<8x6xi1>, vector<8x6xf32>
        %c4_i32_1013 = arith.constant 4 : i32
        %1873 = arith.cmpi eq, %c4_i32_1013, %1437 : i32
        %1874 = arith.extui %1873 : i1 to i32
        %1875 = arith.sitofp %1874 : i32 to f32
        %1876 = vector.broadcast %1875 : f32 to vector<8x6xf32>
        %1877 = arith.mulf %1876, %1797 : vector<8x6xf32>
        %cst_1014 = arith.constant 1.000000e+00 : f32
        %1878 = arith.subf %cst_1014, %1875 : f32
        %1879 = vector.broadcast %1878 : f32 to vector<8x6xf32>
        %1880 = arith.mulf %1879, %1872 : vector<8x6xf32>
        %1881 = arith.addf %1877, %1880 : vector<8x6xf32>
        %c4_1015 = arith.constant 4 : index
        %c0_1016 = arith.constant 0 : index
        %c0_1017 = arith.constant 0 : index
        %1882 = vector.load %arg25[%c4_1015, %c0_1016, %c0_1017] : memref<6x8x6xf32, #tpu.memory_space<vmem>>, vector<1x8x6xf32>
        %1883 = vector.shape_cast %1882 : vector<1x8x6xf32> to vector<8x6xf32>
        %1884 = vector.shape_cast %1881 : vector<8x6xf32> to vector<1x8x6xf32>
        tpu.vector_store %arg25[%c4_1015, %c0_1016, %c0_1017], %1884 {strides = array<i32>} : memref<6x8x6xf32, #tpu.memory_space<vmem>>, vector<1x8x6xf32>,
        %c5_1018 = arith.constant 5 : index
        %c0_1019 = arith.constant 0 : index
        %c0_1020 = arith.constant 0 : index
        %1885 = vector.load %arg25[%c5_1018, %c0_1019, %c0_1020] : memref<6x8x6xf32, #tpu.memory_space<vmem>>, vector<1x8x6xf32>
        %1886 = vector.shape_cast %1885 : vector<1x8x6xf32> to vector<8x6xf32>
        %1887 = vector.shape_cast %1792 : vector<8x1xf32> to vector<8x1xf32>
        %1888 = vector.broadcast %1887 : vector<8x1xf32> to vector<8x6xf32>
        %1889 = arith.select %1799, %1888, %1886 : vector<8x6xi1>, vector<8x6xf32>
        %c5_i32_1021 = arith.constant 5 : i32
        %1890 = arith.cmpi eq, %c5_i32_1021, %1437 : i32
        %1891 = arith.extui %1890 : i1 to i32
        %1892 = arith.sitofp %1891 : i32 to f32
        %1893 = vector.broadcast %1892 : f32 to vector<8x6xf32>
        %1894 = arith.mulf %1893, %1797 : vector<8x6xf32>
        %cst_1022 = arith.constant 1.000000e+00 : f32
        %1895 = arith.subf %cst_1022, %1892 : f32
        %1896 = vector.broadcast %1895 : f32 to vector<8x6xf32>
        %1897 = arith.mulf %1896, %1889 : vector<8x6xf32>
        %1898 = arith.addf %1894, %1897 : vector<8x6xf32>
        %c5_1023 = arith.constant 5 : index
        %c0_1024 = arith.constant 0 : index
        %c0_1025 = arith.constant 0 : index
        %1899 = vector.load %arg25[%c5_1023, %c0_1024, %c0_1025] : memref<6x8x6xf32, #tpu.memory_space<vmem>>, vector<1x8x6xf32>
        %1900 = vector.shape_cast %1899 : vector<1x8x6xf32> to vector<8x6xf32>
        %1901 = vector.shape_cast %1898 : vector<8x6xf32> to vector<1x8x6xf32>
        tpu.vector_store %arg25[%c5_1023, %c0_1024, %c0_1025], %1901 {strides = array<i32>} : memref<6x8x6xf32, #tpu.memory_space<vmem>>, vector<1x8x6xf32>,
        %cst_1026 = arith.constant 0.000000e+00 : f32
        %1902 = vector.broadcast %cst_1026 : f32 to vector<8x1xf32>
        %c0_i32_1027 = arith.constant 0 : i32
        %1903 = arith.cmpi eq, %c0_i32_1027, %1437 : i32
        %1904 = arith.extui %1903 : i1 to i32
        %1905 = arith.sitofp %1904 : i32 to f32
        %1906 = vector.broadcast %1905 : f32 to vector<8x1xf32>
        %1907 = arith.mulf %1906, %1762 : vector<8x1xf32>
        %1908 = arith.addf %1902, %1907 : vector<8x1xf32>
        %c1_i32_1028 = arith.constant 1 : i32
        %1909 = arith.cmpi eq, %c1_i32_1028, %1437 : i32
        %1910 = arith.extui %1909 : i1 to i32
        %1911 = arith.sitofp %1910 : i32 to f32
        %1912 = vector.broadcast %1911 : f32 to vector<8x1xf32>
        %1913 = arith.mulf %1912, %1768 : vector<8x1xf32>
        %1914 = arith.addf %1908, %1913 : vector<8x1xf32>
        %c2_i32_1029 = arith.constant 2 : i32
        %1915 = arith.cmpi eq, %c2_i32_1029, %1437 : i32
        %1916 = arith.extui %1915 : i1 to i32
        %1917 = arith.sitofp %1916 : i32 to f32
        %1918 = vector.broadcast %1917 : f32 to vector<8x1xf32>
        %1919 = arith.mulf %1918, %1774 : vector<8x1xf32>
        %1920 = arith.addf %1914, %1919 : vector<8x1xf32>
        %c3_i32_1030 = arith.constant 3 : i32
        %1921 = arith.cmpi eq, %c3_i32_1030, %1437 : i32
        %1922 = arith.extui %1921 : i1 to i32
        %1923 = arith.sitofp %1922 : i32 to f32
        %1924 = vector.broadcast %1923 : f32 to vector<8x1xf32>
        %1925 = arith.mulf %1924, %1780 : vector<8x1xf32>
        %1926 = arith.addf %1920, %1925 : vector<8x1xf32>
        %c4_i32_1031 = arith.constant 4 : i32
        %1927 = arith.cmpi eq, %c4_i32_1031, %1437 : i32
        %1928 = arith.extui %1927 : i1 to i32
        %1929 = arith.sitofp %1928 : i32 to f32
        %1930 = vector.broadcast %1929 : f32 to vector<8x1xf32>
        %1931 = arith.mulf %1930, %1786 : vector<8x1xf32>
        %1932 = arith.addf %1926, %1931 : vector<8x1xf32>
        %c5_i32_1032 = arith.constant 5 : i32
        %1933 = arith.cmpi eq, %c5_i32_1032, %1437 : i32
        %1934 = arith.extui %1933 : i1 to i32
        %1935 = arith.sitofp %1934 : i32 to f32
        %1936 = vector.broadcast %1935 : f32 to vector<8x1xf32>
        %1937 = arith.mulf %1936, %1792 : vector<8x1xf32>
        %1938 = arith.addf %1932, %1937 : vector<8x1xf32>
        %c0_1033 = arith.constant 0 : index
        %c0_1034 = arith.constant 0 : index
        %1939 = vector.load %arg2[%c0_1033, %c0_1034] : memref<8x1xf32, #tpu.memory_space<vmem>>, vector<8x1xf32>
        %1940 = arith.mulf %1938, %1939 : vector<8x1xf32>
        %cst_1035 = arith.constant dense<0.000000e+00> : vector<1xf32>
        %1941 = vector.multi_reduction <add>, %1940, %cst_1035 [0] : vector<8x1xf32> to vector<1xf32>
        %1942 = vector.shape_cast %1941 : vector<1xf32> to vector<1x1xf32>
        %1943 = arith.mulf %1796, %1939 : vector<8x1xf32>
        %cst_1036 = arith.constant dense<0.000000e+00> : vector<1xf32>
        %1944 = vector.multi_reduction <add>, %1943, %cst_1036 [0] : vector<8x1xf32> to vector<1xf32>
        %1945 = vector.shape_cast %1944 : vector<1xf32> to vector<1x1xf32>
        %1946 = math.sqrt %1945 : vector<1x1xf32>
        %cst_1037 = arith.constant 9.99999974E-6 : f32
        %1947 = vector.broadcast %cst_1037 : f32 to vector<1x1xf32>
        %1948 = arith.addf %1947, %1946 : vector<1x1xf32>
        %1949 = arith.mulf %1948, %1948 : vector<1x1xf32>
        %1950 = arith.divf %1942, %1949 : vector<1x1xf32>
        %c0_1038 = arith.constant 0 : index
        %c0_1039 = arith.constant 0 : index
        %1951 = vector.load %arg26[%c0_1038, %c0_1039] : memref<2x1xf32, #tpu.memory_space<vmem>>, vector<1x1xf32>
        tpu.vector_store %arg26[%c0_1038, %c0_1039], %1942 {strides = array<i32>} : memref<2x1xf32, #tpu.memory_space<vmem>>, vector<1x1xf32>,
        %c1_1040 = arith.constant 1 : index
        %c0_1041 = arith.constant 0 : index
        %1952 = vector.load %arg26[%c1_1040, %c0_1041] : memref<2x1xf32, #tpu.memory_space<vmem>>, vector<1x1xf32>
        tpu.vector_store %arg26[%c1_1040, %c0_1041], %1950 {strides = array<i32>} : memref<2x1xf32, #tpu.memory_space<vmem>>, vector<1x1xf32>,
        %c0_1042 = arith.constant 0 : index
        %c0_1043 = arith.constant 0 : index
        %1953 = vector.load %arg26[%c0_1042, %c0_1043] : memref<2x1xf32, #tpu.memory_space<vmem>>, vector<1x1xf32>
        %1954 = vector.extract %1953[0, 0] : f32 from vector<1x1xf32>
        %c1_1044 = arith.constant 1 : index
        %c0_1045 = arith.constant 0 : index
        %1955 = vector.load %arg26[%c1_1044, %c0_1045] : memref<2x1xf32, #tpu.memory_space<vmem>>, vector<1x1xf32>
        %1956 = vector.extract %1955[0, 0] : f32 from vector<1x1xf32>
        %c0_1046 = arith.constant 0 : index
        %1957 = memref.load %arg27[%c0_1046] : memref<1xf32, #tpu.memory_space<smem>>
        %1958 = arith.cmpf olt, %1954, %1957 : f32
        %c0_1047 = arith.constant 0 : index
        %1959 = memref.load %arg28[%c0_1047] : memref<1xf32, #tpu.memory_space<smem>>
        %1960 = arith.cmpf olt, %1956, %1959 : f32
        %c0_1048 = arith.constant 0 : index
        %1961 = memref.load %arg27[%c0_1048] : memref<1xf32, #tpu.memory_space<smem>>
        %1962 = arith.select %1958, %1954, %1961 : f32
        %c0_1049 = arith.constant 0 : index
        %1963 = memref.load %arg27[%c0_1049] : memref<1xf32, #tpu.memory_space<smem>>
        memref.store %1962, %arg27[%c0_1049] : memref<1xf32, #tpu.memory_space<smem>>
        %c0_1050 = arith.constant 0 : index
        %1964 = memref.load %arg28[%c0_1050] : memref<1xf32, #tpu.memory_space<smem>>
        %1965 = arith.select %1960, %1956, %1964 : f32
        %c0_1051 = arith.constant 0 : index
        %1966 = memref.load %arg28[%c0_1051] : memref<1xf32, #tpu.memory_space<smem>>
        memref.store %1965, %arg28[%c0_1051] : memref<1xf32, #tpu.memory_space<smem>>
        %1967 = arith.extui %1958 : i1 to i32
        %c0_i32_1052 = arith.constant 0 : i32
        %1968 = arith.cmpi ne, %1967, %c0_i32_1052 : i32
        scf.if %1968 {
          %c0_1055 = arith.constant 0 : index
          %c0_1056 = arith.constant 0 : index
          %1972 = vector.load %arg24[%c0_1055, %c0_1056] : memref<8x384xf32, #tpu.memory_space<vmem>>, vector<8x384xf32>
          %c0_1057 = arith.constant 0 : index
          %c0_1058 = arith.constant 0 : index
          %1973 = vector.load %arg20[%c0_1057, %c0_1058] : memref<8x384xf32, #tpu.memory_space<vmem>>, vector<8x384xf32>
          tpu.vector_store %arg20[%c0_1057, %c0_1058], %1972 {strides = array<i32>} : memref<8x384xf32, #tpu.memory_space<vmem>>, vector<8x384xf32>,
          %c0_1059 = arith.constant 0 : index
          %1974 = memref.load %arg29[%c0_1059] : memref<1xi32, #tpu.memory_space<smem>>
          memref.store %arg31, %arg29[%c0_1059] : memref<1xi32, #tpu.memory_space<smem>>
        } else {
        }
        %cst_1053 = arith.constant 9.99999997E-7 : f32
        %1969 = arith.cmpf olt, %1954, %cst_1053 : f32
        %1970 = arith.extui %1969 : i1 to i32
        %c0_1054 = arith.constant 0 : index
        %1971 = memref.load %arg30[%c0_1054] : memref<1xi32, #tpu.memory_space<smem>>
        memref.store %1970, %arg30[%c0_1054] : memref<1xi32, #tpu.memory_space<smem>>
      } else {
      }
    }
    %c53_i32_592 = arith.constant 53 : i32
    %c0_593 = arith.constant 0 : index
    %903 = memref.load %arg27[%c0_593] : memref<1xf32, #tpu.memory_space<smem>>
    %904 = vector.broadcast %903 : f32 to vector<1x128xf32>
    %905 = math.sqrt %904 : vector<1x128xf32>
    %c0_594 = arith.constant 0 : index
    %906 = memref.load %arg28[%c0_594] : memref<1xf32, #tpu.memory_space<smem>>
    %907 = vector.broadcast %906 : f32 to vector<1x128xf32>
    %908 = math.sqrt %907 : vector<1x128xf32>
    %c0_595 = arith.constant 0 : index
    %909 = memref.load %arg29[%c0_595] : memref<1xi32, #tpu.memory_space<smem>>
    %910 = arith.sitofp %909 : i32 to f32
    %911 = vector.broadcast %910 : f32 to vector<1x128xf32>
    %cst_596 = arith.constant 0.000000e+00 : f32
    %912 = vector.broadcast %cst_596 : f32 to vector<5x128xf32>
    %913 = tpu.concatenate %905, %908, %911, %912 in 0 : vector<1x128xf32>, vector<1x128xf32>, vector<1x128xf32>, vector<5x128xf32> -> vector<8x128xf32>
    %c0_597 = arith.constant 0 : index
    %c0_598 = arith.constant 0 : index
    %c0_599 = arith.constant 0 : index
    %914 = vector.load %arg21[%c0_597, %c0_598, %c0_599] : memref<1x8x128xf32, #tpu.memory_space<vmem>>, vector<1x8x128xf32>
    %915 = vector.shape_cast %914 : vector<1x8x128xf32> to vector<8x128xf32>
    %916 = vector.shape_cast %913 : vector<8x128xf32> to vector<1x8x128xf32>
    tpu.vector_store %arg21[%c0_597, %c0_598, %c0_599], %916 {strides = array<i32>} : memref<1x8x128xf32, #tpu.memory_space<vmem>>, vector<1x8x128xf32>,
    return
  }
  func.func @transform_0(%arg0: i32) -> (i32, i32) {
    %c0_i32 = arith.constant 0 : i32
    %c0_i32_0 = arith.constant 0 : i32
    return %arg0, %c0_i32 : i32, i32
  }
  func.func @transform_1(%arg0: i32) -> (i32, i32) {
    %c0_i32 = arith.constant 0 : i32
    %c0_i32_0 = arith.constant 0 : i32
    return %arg0, %c0_i32 : i32, i32
  }
  func.func @transform_2(%arg0: i32) -> (i32, i32) {
    %c0_i32 = arith.constant 0 : i32
    %c0_i32_0 = arith.constant 0 : i32
    %c0_i32_1 = arith.constant 0 : i32
    return %c0_i32, %c0_i32_0 : i32, i32
  }
  func.func @transform_3(%arg0: i32) -> (i32, i32, i32) {
    %c0_i32 = arith.constant 0 : i32
    %c0_i32_0 = arith.constant 0 : i32
    %c0_i32_1 = arith.constant 0 : i32
    %c0_i32_2 = arith.constant 0 : i32
    return %c0_i32, %c0_i32_0, %c0_i32_1 : i32, i32, i32
  }
  func.func @transform_4(%arg0: i32) -> (i32, i32, i32) {
    %c0_i32 = arith.constant 0 : i32
    %c0_i32_0 = arith.constant 0 : i32
    %c0_i32_1 = arith.constant 0 : i32
    %c0_i32_2 = arith.constant 0 : i32
    return %c0_i32, %c0_i32_0, %c0_i32_1 : i32, i32, i32
  }
  func.func @transform_5(%arg0: i32) -> (i32, i32, i32) {
    %c0_i32 = arith.constant 0 : i32
    %c0_i32_0 = arith.constant 0 : i32
    %c0_i32_1 = arith.constant 0 : i32
    %c0_i32_2 = arith.constant 0 : i32
    return %c0_i32, %c0_i32_0, %c0_i32_1 : i32, i32, i32
  }
  func.func @transform_6(%arg0: i32) -> (i32, i32, i32) {
    %c0_i32 = arith.constant 0 : i32
    %c0_i32_0 = arith.constant 0 : i32
    %c0_i32_1 = arith.constant 0 : i32
    %c0_i32_2 = arith.constant 0 : i32
    return %c0_i32, %c0_i32_0, %c0_i32_1 : i32, i32, i32
  }
  func.func @transform_7(%arg0: i32) -> (i32, i32, i32) {
    %c0_i32 = arith.constant 0 : i32
    %c0_i32_0 = arith.constant 0 : i32
    %c0_i32_1 = arith.constant 0 : i32
    %c0_i32_2 = arith.constant 0 : i32
    return %c0_i32, %c0_i32_0, %c0_i32_1 : i32, i32, i32
  }
  func.func @transform_8(%arg0: i32) -> (i32, i32, i32) {
    %c0_i32 = arith.constant 0 : i32
    %c0_i32_0 = arith.constant 0 : i32
    %c0_i32_1 = arith.constant 0 : i32
    %c0_i32_2 = arith.constant 0 : i32
    return %c0_i32, %c0_i32_0, %c0_i32_1 : i32, i32, i32
  }
  func.func @transform_9(%arg0: i32) -> (i32, i32, i32) {
    %c0_i32 = arith.constant 0 : i32
    %c0_i32_0 = arith.constant 0 : i32
    %c0_i32_1 = arith.constant 0 : i32
    %c0_i32_2 = arith.constant 0 : i32
    return %c0_i32, %c0_i32_0, %c0_i32_1 : i32, i32, i32
  }
  func.func @transform_10(%arg0: i32) -> (i32, i32, i32) {
    %c0_i32 = arith.constant 0 : i32
    %c0_i32_0 = arith.constant 0 : i32
    %c0_i32_1 = arith.constant 0 : i32
    %c0_i32_2 = arith.constant 0 : i32
    return %c0_i32, %c0_i32_0, %c0_i32_1 : i32, i32, i32
  }
  func.func @transform_11(%arg0: i32) -> (i32, i32, i32) {
    %c0_i32 = arith.constant 0 : i32
    %c0_i32_0 = arith.constant 0 : i32
    %c0_i32_1 = arith.constant 0 : i32
    %c0_i32_2 = arith.constant 0 : i32
    return %c0_i32, %c0_i32_0, %c0_i32_1 : i32, i32, i32
  }
  func.func @transform_12(%arg0: i32) -> (i32, i32, i32) {
    %c0_i32 = arith.constant 0 : i32
    %c0_i32_0 = arith.constant 0 : i32
    %c0_i32_1 = arith.constant 0 : i32
    %c0_i32_2 = arith.constant 0 : i32
    return %c0_i32, %c0_i32_0, %c0_i32_1 : i32, i32, i32
  }
  func.func @transform_13(%arg0: i32) -> (i32, i32) {
    %c0_i32 = arith.constant 0 : i32
    %c0_i32_0 = arith.constant 0 : i32
    %c0_i32_1 = arith.constant 0 : i32
    return %c0_i32, %c0_i32_0 : i32, i32
  }
  func.func @transform_14(%arg0: i32) -> (i32, i32) {
    %c0_i32 = arith.constant 0 : i32
    %c0_i32_0 = arith.constant 0 : i32
    %c0_i32_1 = arith.constant 0 : i32
    return %c0_i32, %c0_i32_0 : i32, i32
  }
  func.func @transform_15(%arg0: i32) -> (i32, i32) {
    %c0_i32 = arith.constant 0 : i32
    %c0_i32_0 = arith.constant 0 : i32
    %c0_i32_1 = arith.constant 0 : i32
    return %c0_i32, %c0_i32_0 : i32, i32
  }
  func.func @transform_16(%arg0: i32) -> (i32, i32) {
    %c0_i32 = arith.constant 0 : i32
    %c0_i32_0 = arith.constant 0 : i32
    %c0_i32_1 = arith.constant 0 : i32
    return %c0_i32, %c0_i32_0 : i32, i32
  }
  func.func @transform_17(%arg0: i32) -> (i32, i32) {
    %c0_i32 = arith.constant 0 : i32
    %c0_i32_0 = arith.constant 0 : i32
    %c0_i32_1 = arith.constant 0 : i32
    return %c0_i32, %c0_i32_0 : i32, i32
  }
  func.func @transform_18(%arg0: i32) -> (i32, i32) {
    %c0_i32 = arith.constant 0 : i32
    %c0_i32_0 = arith.constant 0 : i32
    %c0_i32_1 = arith.constant 0 : i32
    return %c0_i32, %c0_i32_0 : i32, i32
  }
  func.func @transform_19(%arg0: i32) -> (i32, i32) {
    %c0_i32 = arith.constant 0 : i32
    %c0_i32_0 = arith.constant 0 : i32
    return %arg0, %c0_i32 : i32, i32
  }
  func.func @transform_20(%arg0: i32) -> (i32, i32, i32) {
    %c0_i32 = arith.constant 0 : i32
    %c0_i32_0 = arith.constant 0 : i32
    %c0_i32_1 = arith.constant 0 : i32
    return %arg0, %c0_i32, %c0_i32_0 : i32, i32, i32
  }
}

</mosaic_0001>

<bundles_post_ra>
// kernel: _forward_impl.1
= control target key start
LH: loop header
LB: loop body
LE: loop exit
PB: predicated region body
PF: predicated region fallthrough
CT: control target
= control target key end

     0   :  { %s10580_s0 = inlined_call_operand.vmem [shape: f32[8,384], index: 0, kind: input, shape index: {}]   ;;  %s10581_s1 = inlined_call_operand.vmem [shape: f32[8,1], index: 1, kind: input, shape index: {}]   ;;  %s10582_s2 = inlined_call_operand.vmem [shape: bf16[128,128], index: 2, kind: input, shape index: {}]   ;;  %s10583_s3 = inlined_call_operand.hbm [shape: bf16[2,128,128], index: 3, kind: input, shape index: {}]   ;;  %s10584_s4 = inlined_call_operand.vmem [shape: f32[2,1,128], index: 4, kind: input, shape index: {}]   ;;  %s10585_s5 = inlined_call_operand.hbm [shape: bf16[2,128,128], index: 5, kind: input, shape index: {}]   ;;  %s10586_s6 = inlined_call_operand.vmem [shape: f32[2,1,128], index: 6, kind: input, shape index: {}]   ;;  %s10587_s7 = inlined_call_operand.vmem [shape: f32[2,1,128], index: 7, kind: input, shape index: {}, may-alias: {7,9,11}]   ;;  %s10588_s8 = inlined_call_operand.vmem [shape: f32[2,1,128], index: 8, kind: input, shape index: {}, may-alias: {8,10,12}]   ;;  %s10589_s9 = inlined_call_operand.vmem [shape: f32[2,1,128], index: 9, kind: input, shape index: {}, may-alias: {7,9,11}]   ;;  %s10590_s10 = inlined_call_operand.vmem [shape: f32[2,1,128], index: 10, kind: input, shape index: {}, may-alias: {8,10,12}]   ;;  %s10591_s11 = inlined_call_operand.vmem [shape: f32[2,1,128], index: 11, kind: input, shape index: {}, may-alias: {7,9,11}]   ;;  %s10592_s12 = inlined_call_operand.vmem [shape: f32[2,1,128], index: 12, kind: input, shape index: {}, may-alias: {8,10,12}]   ;;  %s10593_s13 = inlined_call_operand.hbm [shape: bf16[128,128], index: 13, kind: input, shape index: {}]   ;;  %s10594_s14 = inlined_call_operand.vmem [shape: f32[1,128], index: 14, kind: input, shape index: {}]   ;;  %s10595_s15 = inlined_call_operand.hbm [shape: bf16[128,128], index: 15, kind: input, shape index: {}]   ;;  %s10596_s16 = inlined_call_operand.vmem [shape: f32[1,128], index: 16, kind: input, shape index: {}]   ;;  %s10597_s17 = inlined_call_operand.vmem [shape: f32[1,128], index: 17, kind: input, shape index: {}]   ;;  %s10598_s18 = inlined_call_operand.vmem [shape: f32[1,128], index: 18, kind: input, shape index: {}]   ;;  %s10599_s19 = inlined_call_operand.vmem [shape: f32[8,384], index: 19, kind: output, shape index: {0}]   ;;  %s10600_s20 = inlined_call_operand.vmem [shape: f32[1,8,128], index: 20, kind: output, shape index: {1}]  }
   0x1   :  { %10608 = sst [smem:[#allocation21_spill]] %s10580_s0 }
   0x2   :  { %10609 = sst [smem:[#allocation22_spill]] %s10581_s1 }
   0x3   :  { %10610 = sst [smem:[#allocation23_spill]] %s10582_s2 }
   0x4   :  { %10611 = sst [smem:[#allocation24_spill]] %s10583_s3 }
   0x5   :  { %10612 = sst [smem:[#allocation25_spill]] %s10584_s4 }
   0x6   :  { %10613 = sst [smem:[#allocation26_spill]] %s10600_s20 }
   0x7   :  { %26 = vsyncpa [#allocation12], 0 }
   0x8   :  { %27 = vsyncpa [#allocation14], 0 }
   0x9   :  { %28 = vsyncpa [#allocation17], 0  ;;  %s8384_s1 = smov [#allocation13]   ;;  %s8385_s23 = smov [#allocation11]  }
   0xa   :  { %s54_s22 = sshll.u32 %s8384_s1, 4  ;;  %s40_s24 = sshll.u32 %s8385_s23, 4  ;;  %s55_s22 = int_to_ptr.vmem [resolvable:$true] %s54_s22  ;;  %s8518_s24 = int_to_ptr.vmem [resolvable:$true] %s40_s24 }
   0xb   :  { %s8282_s3 = scalar_lea.hbm %s10585_s5, 2048 }
   0xc   :  { %p8283_p0 = scmp.ne.s32.totalorder %s10585_s5, %s8282_s3  ;;  %p8286_p1 = scmp.lt.u32.totalorder %s8282_s3, %s10585_s5 }
   0xe   :  { %p8288_p2 = pnand %p8286_p1, %p8283_p0 }
  0x10   :  { %8291 = shalt.err (!%p8288_p2)
}
  0x11   :  { %s8292_s29 = scalar_lea.vmem %s55_s22, 2048  ;;  %p8297_p4 = scmp.lt.s32.totalorder %s55_s22, %s55_s22 }
  0x12   :  { %p8293_p3 = scmp.ne.s32.totalorder %s55_s22, %s8292_s29  ;;  %p8298_p5 = scmp.lt.s32.totalorder %s8292_s29, %s8292_s29 }
  0x14   :  { %p8299_p6 = por %p8298_p5, %p8297_p4 }
  0x16   :  { %p8300_p7 = pnand %p8299_p6, %p8293_p3 }
  0x18   :  { %8303 = shalt.err (!%p8300_p7)
}
  0x19   :  { %s8386_s30 = smov 64   ;;  %s8387_s0 = smov 4  }
  0x1a   :  { %60 = dma.hbm_to_vmem [thread:$0]  %s10585_s5, 2048, %s55_s22, [#allocation14], %s8386_s30, %s8386_s30, %s8387_s0  }
  0x1b   :  { %s10614_s25 = sld [smem:[#allocation24_spill]] }
  0x21   :  { %s8304_s3 = scalar_lea.hbm %s10614_s25, 2048 }
  0x22   :  { %p8305_p8 = scmp.ne.s32.totalorder %s10614_s25, %s8304_s3  ;;  %p8308_p9 = scmp.lt.u32.totalorder %s8304_s3, %s10614_s25 }
  0x24   :  { %p8310_p10 = pnand %p8308_p9, %p8305_p8 }
  0x26   :  { %8313 = shalt.err (!%p8310_p10)
}
  0x27   :  { %s8314_s29 = scalar_lea.vmem %s8518_s24, 2048  ;;  %p8319_p12 = scmp.lt.s32.totalorder %s8518_s24, %s8518_s24 }
  0x28   :  { %p8315_p11 = scmp.ne.s32.totalorder %s8518_s24, %s8314_s29  ;;  %p8320_p13 = scmp.lt.s32.totalorder %s8314_s29, %s8314_s29 }
  0x2a   :  { %p8321_p0 = por %p8320_p13, %p8319_p12 }
  0x2c   :  { %p8322_p1 = pnand %p8321_p0, %p8315_p11 }
  0x2e   :  { %8325 = shalt.err (!%p8322_p1)
}
  0x2f   :  { %46 = dma.hbm_to_vmem [thread:$0]  %s10614_s25, 2048, %s8518_s24, [#allocation12], %s8386_s30, %s8386_s30, %s8387_s0  }
  0x30   :  { %s8388_s21 = smov [#allocation15]   ;;  %s8389_s23 = smov [#allocation16]  }
  0x31   :  { %s80_s1 = sshll.u32 %s8388_s21, 4  ;;  %s94_s2 = sshll.u32 %s8389_s23, 4  ;;  %s81_s1 = int_to_ptr.vmem [resolvable:$true] %s80_s1  ;;  %s8555_s2 = int_to_ptr.vmem [resolvable:$true] %s94_s2 }
  0x32   :  { %s8326_s27 = scalar_lea.hbm %s10593_s13, 1024 }
  0x33   :  { %p8327_p2 = scmp.ne.s32.totalorder %s10593_s13, %s8326_s27  ;;  %p8330_p3 = scmp.lt.u32.totalorder %s8326_s27, %s10593_s13 }
  0x35   :  { %p8332_p4 = pnand %p8330_p3, %p8327_p2 }
  0x37   :  { %8335 = shalt.err (!%p8332_p4)
}
  0x38   :  { %s8336_s24 = scalar_lea.vmem %s81_s1, 1024  ;;  %p8341_p6 = scmp.lt.s32.totalorder %s81_s1, %s81_s1 }
  0x39   :  { %p8337_p5 = scmp.ne.s32.totalorder %s81_s1, %s8336_s24  ;;  %p8342_p7 = scmp.lt.s32.totalorder %s8336_s24, %s8336_s24 }
  0x3b   :  { %p8343_p8 = por %p8342_p7, %p8341_p6 }
  0x3d   :  { %p8344_p9 = pnand %p8343_p8, %p8337_p5 }
  0x3f   :  { %8347 = shalt.err (!%p8344_p9)
}
  0x40   :  { %86 = dma.hbm_to_vmem [thread:$0]  %s10593_s13, 1024, %s81_s1, [#allocation14], %s8386_s30, %s8386_s30, %s8387_s0  }
  0x41   :  { %s8348_s20 = scalar_lea.hbm %s10595_s15, 1024 }
  0x42   :  { %p8349_p10 = scmp.ne.s32.totalorder %s10595_s15, %s8348_s20  ;;  %p8352_p11 = scmp.lt.u32.totalorder %s8348_s20, %s10595_s15 }
  0x44   :  { %p8354_p12 = pnand %p8352_p11, %p8349_p10 }
  0x46   :  { %8357 = shalt.err (!%p8354_p12)
}
  0x47   :  { %s8358_s28 = scalar_lea.vmem %s8555_s2, 1024  ;;  %p8363_p0 = scmp.lt.s32.totalorder %s8555_s2, %s8555_s2 }
  0x48   :  { %p8359_p13 = scmp.ne.s32.totalorder %s8555_s2, %s8358_s28  ;;  %p8364_p1 = scmp.lt.s32.totalorder %s8358_s28, %s8358_s28 }
  0x4a   :  { %p8365_p2 = por %p8364_p1, %p8363_p0 }
  0x4c   :  { %p8366_p3 = pnand %p8365_p2, %p8359_p13 }
  0x4e   :  { %8369 = shalt.err (!%p8366_p3)
}
  0x4f   :  { %100 = dma.hbm_to_vmem [thread:$0]  %s10595_s15, 1024, %s8555_s2, [#allocation17], %s8386_s30, %s8386_s30, %s8387_s0  }
  0x50   :  { %8374 = dma.done.wait [#allocation12], 2048  }
  0x51   :  { %8375 = vsyncadd [#allocation12], 4294965248 }
  0x52   :  { %8376 = dma.done.wait [#allocation14], 3072  }
  0x53   :  { %8377 = vsyncadd [#allocation14], 4294964224 }
  0x54   :  { %8378 = dma.done.wait [#allocation17], 1024  }
  0x55   :  { %8379 = vsyncadd [#allocation17], 4294966272  ;;  %v8390_v0 = vmov 0.0   ;;  %s8391_s24 = smov 1e+16   ;;  %vm8392_vm0 = vmmov 0  }
  0x56   :  { %128 = vst [vmem:[#allocation2 + $0x30] sm:$0xff] %v8390_v0  ;;  %129 = vst [vmem:[#allocation2 + $0x38] sm:$0xff] %v8390_v0  ;;  %172 = sst [smem:[#allocation7]] %s8391_s24  ;;  %6750 = vmatprep.subr.bf16.mxu0 %v8390_v0  ;;  %6770 = vmatprep.subr.bf16.mxu1 %v8390_v0  ;;  %s8393_s25 = smov 0   ;;  %v7991_v1 = vld [vmem:[#allocation11] sm:$0xff]   ;;  %v7992_v2 = vld [vmem:[#allocation11 + $0x8] sm:$0xff]  }
  0x57   :  { %130 = vst [vmem:[#allocation2 + $0x40] sm:$0xff] %v8390_v0  ;;  %131 = vst [vmem:[#allocation2 + $0x48] sm:$0xff] %v8390_v0  ;;  %174 = sst [smem:[#allocation8]] %s8391_s24  ;;  %6766 = vmatprep.mubr.msk.bf16.mxu0 %vm8392_vm0, %v8390_v0  ;;  %6786 = vmatprep.mubr.msk.bf16.mxu1 %vm8392_vm0, %v8390_v0  ;;  %v7993_v3 = vld [vmem:[#allocation11 + $0x10] sm:$0xff]   ;;  %s10615_s21 = sld [smem:[#allocation23_spill]]  ;;  %v7994_v5 = vld [vmem:[#allocation11 + $0x18] sm:$0xff]  }
  0x58   :  { %132 = vst [vmem:[#allocation2 + $0x50] sm:$0xff] %v8390_v0  ;;  %133 = vst [vmem:[#allocation2 + $0x58] sm:$0xff] %v8390_v0  ;;  %176 = sst [smem:[#allocation9]] %s8393_s25  ;;  %6751 = vmatpush3.bf16.msra.mxu0 %v7991_v1  ;;  %v7995_v7 = vld [vmem:[#allocation11 + $0x20] sm:$0xff]   ;;  %v7996_v9 = vld [vmem:[#allocation11 + $0x28] sm:$0xff]   ;;  %v8394_v16 = vmov 0.0|0.0  }
  0x59   :  { %134 = vst [vmem:[#allocation2 + $0x60] sm:$0xff] %v8390_v0  ;;  %135 = vst [vmem:[#allocation2 + $0x68] sm:$0xff] %v8390_v0  ;;  %178 = sst [smem:[#allocation10]] %s8393_s25  ;;  %6752 = vmatprep.subr.bf16.mxu0 %v8390_v0  ;;  %v7997_v11 = vld [vmem:[#allocation11 + $0x30] sm:$0xff]   ;;  %v7998_v13 = vld [vmem:[#allocation11 + $0x38] sm:$0xff]   ;;  %s10616_s5 = sld [smem:[#allocation25_spill]] }
  0x5a   :  { %136 = vst [vmem:[#allocation2 + $0x70] sm:$0xff] %v8390_v0  ;;  %137 = vst [vmem:[#allocation2 + $0x78] sm:$0xff] %v8390_v0  ;;  %v8007_v25 = vld [vmem:[#allocation13] sm:$0xff]   ;;  %v8008_v26 = vld [vmem:[#allocation13 + $0x8] sm:$0xff]   ;;  %s10617_s1 = sld [smem:[#allocation21_spill]]  ;;  %vm158_vm1 = vcmask 48128  }
  0x5b   :  { %138 = vst [vmem:[#allocation2 + $0x80] sm:$0xff] %v8390_v0  ;;  %139 = vst [vmem:[#allocation2 + $0x88] sm:$0xff] %v8390_v0  ;;  %v8009_v34 = vld [vmem:[#allocation13 + $0x10] sm:$0xff]   ;;  %v8010_v35 = vld [vmem:[#allocation13 + $0x18] sm:$0xff]   ;;  %vm1771_vm3 = vcmask 7168   ;;  %vm1773_vm4 = vcmask 15360  }
  0x5c   :  { %168 = vst [vmem:[%s10599_s19] sm:$0xff] %v8390_v0  ;;  %169 = vst [vmem:[%s10599_s19 + $0x8] sm:$0xff] %v8390_v0  ;;  %6753 = vmatpush3.bf16.msra.mxu0 %v7992_v2  ;;  %v8011_v36 = vld [vmem:[#allocation13 + $0x20] sm:$0xff]   ;;  %v8012_v37 = vld [vmem:[#allocation13 + $0x28] sm:$0xff]   ;;  %vm1775_vm5 = vcmask 23552   ;;  %vm1777_vm6 = vcmask 31744   ;;  %vm1779_vm7 = vcmask 39936  }
  0x5d   :  { %170 = vst [vmem:[%s10599_s19 + $0x10] sm:$0xff] %v8390_v0  ;;  %146 = vst [vmem:[#allocation3 + $0x30] sm:$0xff] %v8390_v0  ;;  %6754 = vmatprep.subr.bf16.mxu0 %v8390_v0  ;;  %v8639_v4 = vld [vmem:[%s10615_s21] sm:$0xff]   ;;  %v8645_v6 = vld [vmem:[%s10615_s21 + $0x8] sm:$0xff]   ;;  %s9669_s27 = smov 2  }
  0x5e   :  { %147 = vst [vmem:[#allocation3 + $0x38] sm:$0xff] %v8390_v0  ;;  %148 = vst [vmem:[#allocation3 + $0x40] sm:$0xff] %v8390_v0  ;;  %6771 = vmatpush3.bf16.msra.mxu1 %v8639_v4  ;;  %v8653_v8 = vld [vmem:[%s10615_s21 + $0x10] sm:$0xff]   ;;  %v8660_v10 = vld [vmem:[%s10615_s21 + $0x18] sm:$0xff]  }
  0x5f   :  { %149 = vst [vmem:[#allocation3 + $0x48] sm:$0xff] %v8390_v0  ;;  %150 = vst [vmem:[#allocation3 + $0x50] sm:$0xff] %v8390_v0  ;;  %6772 = vmatprep.subr.bf16.mxu1 %v8390_v0  ;;  %v8668_v12 = vld [vmem:[%s10615_s21 + $0x20] sm:$0xff]   ;;  %v8676_v14 = vld [vmem:[%s10615_s21 + $0x28] sm:$0xff]  }
  0x60   :  { %151 = vst [vmem:[#allocation3 + $0x58] sm:$0xff] %v8390_v0  ;;  %152 = vst [vmem:[#allocation3 + $0x60] sm:$0xff] %v8390_v0  ;;  %6755 = vmatpush3.bf16.msra.mxu0 %v7993_v3  ;;  %v8684_v15 = vld [vmem:[%s10615_s21 + $0x30] sm:$0xff]   ;;  %v8711_v17 = vld [vmem:[%s10615_s21 + $0x38] sm:$0xff]  }
  0x61   :  { %153 = vst [vmem:[#allocation3 + $0x68] sm:$0xff] %v8390_v0  ;;  %154 = vst [vmem:[#allocation3 + $0x70] sm:$0xff] %v8390_v0  ;;  %6756 = vmatprep.subr.bf16.mxu0 %v8390_v0  ;;  %v5941_v18 = vld [vmem:[%s10616_s5] ss:$0 sm:$0xff]  ;;  %v8014_v39 = vld [vmem:[#allocation13 + $0x38] sm:$0xff]  }
  0x62   :  { %155 = vst [vmem:[#allocation3 + $0x78] sm:$0xff] %v8390_v0  ;;  %156 = vst [vmem:[#allocation3 + $0x80] sm:$0xff] %v8390_v0  ;;  %6773 = vmatpush3.bf16.msra.mxu1 %v8645_v6  ;;  %v8013_v38 = vld [vmem:[#allocation13 + $0x30] sm:$0xff]  }
  0x63   :  { %157 = vst [vmem:[#allocation3 + $0x88] sm:$0xff] %v8390_v0  ;;  %6774 = vmatprep.subr.bf16.mxu1 %v8390_v0  ;;  %v5958_v46 = vld [vmem:[%s10587_s7] ss:$0 sm:$0xff] }
  0x64   :  { %6757 = vmatpush3.bf16.msra.mxu0 %v7994_v5  ;;  %v5959_v48 = vld [vmem:[%s10588_s8] ss:$0 sm:$0xff] }
  0x65   :  { %6758 = vmatprep.subr.bf16.mxu0 %v8390_v0  ;;  %v5960_v53 = vld [vmem:[%s10586_s6] ss:$0 sm:$0xff] }
  0x66   :  { %6775 = vmatpush3.bf16.msra.mxu1 %v8653_v8  ;;  %v197_v54 = vld [vmem:[%s10617_s1] sm:$0xff] }
  0x67   :  { %6776 = vmatprep.subr.bf16.mxu1 %v8390_v0 }
  0x68   :  { %6759 = vmatpush3.bf16.msra.mxu0 %v7995_v7 }
  0x69   :  { %6760 = vmatprep.subr.bf16.mxu0 %v8390_v0 }
  0x6a   :  { %6777 = vmatpush3.bf16.msra.mxu1 %v8660_v10 }
  0x6b   :  { %6778 = vmatprep.subr.bf16.mxu1 %v8390_v0 }
  0x6c   :  { %6761 = vmatpush3.bf16.msra.mxu0 %v7996_v9 }
  0x6d   :  { %6762 = vmatprep.subr.bf16.mxu0 %v8390_v0 }
  0x6e   :  { %6779 = vmatpush3.bf16.msra.mxu1 %v8668_v12 }
  0x6f   :  { %6780 = vmatprep.subr.bf16.mxu1 %v8390_v0 }
  0x70   :  { %6763 = vmatpush3.bf16.msra.mxu0 %v7997_v11 }
  0x71   :  { %6764 = vmatprep.subr.bf16.mxu0 %v8390_v0 }
  0x72   :  { %6781 = vmatpush3.bf16.msra.mxu1 %v8676_v14 }
  0x73   :  { %6782 = vmatprep.subr.bf16.mxu1 %v8390_v0 }
  0x74   :  { %6765 = vmatpush3.bf16.msra.mxu0 %v7998_v13 }
  0x75   :  { %6790 = vmatprep.subr.bf16.mxu0 %v8390_v0 }
  0x76   :  { %6783 = vmatpush3.bf16.msra.mxu1 %v8684_v15 }
  0x77   :  { %6767 = vmatmul.mubr.bf16.vlgmr.msra.gmra.mrb[0].mxu0 %v8394_v16  ;;  %6784 = vmatprep.subr.bf16.mxu1 %v8390_v0 }
  0x78   :  { %6791 = vmatpush3.bf16.msra.mxu0 %v8639_v4  ;;  %6806 = vmatprep.mubr.msk.bf16.mxu0 %vm8392_vm0, %v8390_v0 }
  0x79   :  { %6792 = vmatprep.subr.bf16.mxu0 %v8390_v0 }
  0x7a   :  { %6785 = vmatpush3.bf16.msra.mxu1 %v8711_v17 }
  0x7b   :  { %6810 = vmatprep.subr.bf16.mxu1 %v8390_v0 }
  0x7c   :  { %6793 = vmatpush3.bf16.msra.mxu0 %v8645_v6 }
  0x7d   :  { %6794 = vmatprep.subr.bf16.mxu0 %v8390_v0 }
  0x80   :  { %6795 = vmatpush3.bf16.msra.mxu0 %v8653_v8 }
  0x81   :  { %6796 = vmatprep.subr.bf16.mxu0 %v8390_v0 }
  0x84   :  { %6797 = vmatpush3.bf16.msra.mxu0 %v8660_v10 }
  0x85   :  { %6798 = vmatprep.subr.bf16.mxu0 %v8390_v0 }
  0x88   :  { %6799 = vmatpush3.bf16.msra.mxu0 %v8668_v12 }
  0x89   :  { %6800 = vmatprep.subr.bf16.mxu0 %v8390_v0 }
  0x8c   :  { %6801 = vmatpush3.bf16.msra.mxu0 %v8676_v14 }
  0x8d   :  { %6802 = vmatprep.subr.bf16.mxu0 %v8390_v0 }
  0x90   :  { %6803 = vmatpush3.bf16.msra.mxu0 %v8684_v15 }
  0x91   :  { %6804 = vmatprep.subr.bf16.mxu0 %v8390_v0 }
  0x94   :  { %6805 = vmatpush3.bf16.msra.mxu0 %v8711_v17 }
  0x95   :  { %6830 = vmatprep.subr.bf16.mxu0 %v8390_v0 }
 0x14a   :  { %v304_v19 = vpop.f32.mrb[0].mxu0 }
 0x14b   :  { %v305_v20 = vadd.f32 %v5941_v18, %v304_v19  ;;  %v6768_v21 = vpop.f32.mrb[1].mxu0 }
 0x14c   :  { %v307_v22 = vpop.f32.mrb[2].mxu0  ;;  %v5969_v21 = vld [vmem:[%s10589_s9] ss:$0 sm:$0xff] }
 0x14d   :  { %v312_v23 = vpack.c.bf16 %v305_v20, %v305_v20  ;;  %v6769_v24 = vpop.f32.mrb[3].mxu0 }
 0x14f   :  { %6787 = vmatmul.mubr.bf16.vlgmr.msra.gmra.mrb[0].mxu1 %v312_v23  ;;  %v5970_v23 = vld [vmem:[%s10590_s10] ss:$0 sm:$0xff] }
 0x150   :  { %6826 = vmatprep.mubr.msk.bf16.mxu1 %vm8392_vm0, %v8390_v0  ;;  %6811 = vmatpush3.bf16.msra.mxu1 %v8007_v25 }
 0x151   :  { %6812 = vmatprep.subr.bf16.mxu1 %v8390_v0 }
 0x154   :  { %6813 = vmatpush3.bf16.msra.mxu1 %v8008_v26 }
 0x155   :  { %6814 = vmatprep.subr.bf16.mxu1 %v8390_v0 }
 0x158   :  { %6815 = vmatpush3.bf16.msra.mxu1 %v8009_v34  ;;  %v8021_v34 = vld [vmem:[#allocation11 + $0x70] sm:$0xff]  }
 0x159   :  { %6816 = vmatprep.subr.bf16.mxu1 %v8390_v0 }
 0x15c   :  { %6817 = vmatpush3.bf16.msra.mxu1 %v8010_v35  ;;  %v8022_v35 = vld [vmem:[#allocation11 + $0x78] sm:$0xff]  }
 0x15d   :  { %6818 = vmatprep.subr.bf16.mxu1 %v8390_v0 }
 0x160   :  { %6819 = vmatpush3.bf16.msra.mxu1 %v8011_v36  ;;  %v8832_v36 = vld [vmem:[#allocation2 + $0x30] sm:$0xff] }
 0x161   :  { %6820 = vmatprep.subr.bf16.mxu1 %v8390_v0  ;;  %160 = vst.msk [vmem:[#allocation5 + $0x8] sm:$0xff] %vm158_vm1, %v8832_v36  ;;  %159 = vst.msk [vmem:[#allocation5] sm:$0xff] %vm158_vm1, %v8832_v36 }
 0x162   :  { %161 = vst.msk [vmem:[#allocation5 + $0x10] sm:$0xff] %vm158_vm1, %v8832_v36  ;;  %162 = vst.msk [vmem:[#allocation5 + $0x18] sm:$0xff] %vm158_vm1, %v8832_v36 }
 0x163   :  { %163 = vst.msk [vmem:[#allocation5 + $0x20] sm:$0xff] %vm158_vm1, %v8832_v36  ;;  %164 = vst.msk [vmem:[#allocation5 + $0x28] sm:$0xff] %vm158_vm1, %v8832_v36 }
 0x164   :  { %6821 = vmatpush3.bf16.msra.mxu1 %v8012_v37 }
 0x165   :  { %6822 = vmatprep.subr.bf16.mxu1 %v8390_v0 }
 0x168   :  { %6823 = vmatpush3.bf16.msra.mxu1 %v8013_v38 }
 0x169   :  { %6824 = vmatprep.subr.bf16.mxu1 %v8390_v0 }
 0x16c   :  { %6825 = vmatpush3.bf16.msra.mxu1 %v8014_v39 }
 0x16d   :  { %6850 = vmatprep.subr.bf16.mxu1 %v8390_v0 }
 0x222   :  { %v395_v27 = vpop.f32.mrb[0].mxu1 }
 0x223   :  { %v401_v28 = vsub.f32 %v305_v20, %v395_v27  ;;  %v6788_v29 = vpop.f32.mrb[1].mxu1  ;;  %v8015_v27 = vld [vmem:[#allocation11 + $0x40] sm:$0xff]  }
 0x224   :  { %v398_v30 = vpop.f32.mrb[2].mxu1  ;;  %v8016_v29 = vld [vmem:[#allocation11 + $0x48] sm:$0xff]  }
 0x225   :  { %v402_v31 = vmul.f32 %v401_v28, %v401_v28  ;;  %v6789_v32 = vpop.f32.mrb[3].mxu1  ;;  %v8017_v30 = vld [vmem:[#allocation11 + $0x50] sm:$0xff]  }
 0x226   :  { %v8019_v32 = vld [vmem:[#allocation11 + $0x60] sm:$0xff]  }
 0x227   :  { %v403_v33 = vpack.c.bf16 %v402_v31, %v402_v31  ;;  %v8018_v31 = vld [vmem:[#allocation11 + $0x58] sm:$0xff]  }
 0x229   :  { %6807 = vmatmul.mubr.bf16.vlgmr.msra.gmra.mrb[4].mxu0 %v403_v33  ;;  %v8020_v33 = vld [vmem:[#allocation11 + $0x68] sm:$0xff]  }
 0x22a   :  { %6831 = vmatpush3.bf16.msra.mxu0 %v8639_v4  ;;  %6846 = vmatprep.mubr.msk.bf16.mxu0 %vm8392_vm0, %v8390_v0 }
 0x22b   :  { %6832 = vmatprep.subr.bf16.mxu0 %v8390_v0 }
 0x22e   :  { %6833 = vmatpush3.bf16.msra.mxu0 %v8645_v6 }
 0x22f   :  { %6834 = vmatprep.subr.bf16.mxu0 %v8390_v0 }
 0x232   :  { %6835 = vmatpush3.bf16.msra.mxu0 %v8653_v8 }
 0x233   :  { %6836 = vmatprep.subr.bf16.mxu0 %v8390_v0 }
 0x236   :  { %6837 = vmatpush3.bf16.msra.mxu0 %v8660_v10 }
 0x237   :  { %6838 = vmatprep.subr.bf16.mxu0 %v8390_v0 }
 0x23a   :  { %6839 = vmatpush3.bf16.msra.mxu0 %v8668_v12 }
 0x23b   :  { %6840 = vmatprep.subr.bf16.mxu0 %v8390_v0 }
 0x23e   :  { %6841 = vmatpush3.bf16.msra.mxu0 %v8676_v14 }
 0x23f   :  { %6842 = vmatprep.subr.bf16.mxu0 %v8390_v0 }
 0x242   :  { %6843 = vmatpush3.bf16.msra.mxu0 %v8684_v15 }
 0x243   :  { %6844 = vmatprep.subr.bf16.mxu0 %v8390_v0 }
 0x246   :  { %6845 = vmatpush3.bf16.msra.mxu0 %v8711_v17 }
 0x247   :  { %6870 = vmatprep.subr.bf16.mxu0 %v8390_v0 }
 0x2fc   :  { %v438_v40 = vpop.f32.mrb[4].mxu0 }
 0x2fd   :  { %v439_v41 = vadd.f32 1e-05, %v438_v40  ;;  %v6808_v42 = vpop.f32.mrb[5].mxu0 }
 0x2fe   :  { %v441_v43 = vpop.f32.mrb[6].mxu0 }
 0x2ff   :  { %8103 = vrsqrt.f32 %v439_v41  ;;  %v6809_v44 = vpop.f32.mrb[7].mxu0 }
 0x309   :  { %v8104_v45 = vpop.eup %8103 }
 0x30a   :  { %v445_v47 = vmul.f32 %v8104_v45, %v401_v28 }
 0x30c   :  { %v452_v49 = vmul.f32 %v5958_v46, %v445_v47 }
 0x30e   :  { %v459_v50 = vadd.f32 %v5959_v48, %v452_v49 }
 0x310   :  { %v460_v51 = vmax.f32 %v459_v50, 0.0 }
 0x312   :  { %v478_v52 = vpack.c.bf16 %v460_v51, %v460_v51  ;;  %v5971_v51 = vld [vmem:[%s10591_s11] ss:$0 sm:$0xff] }
 0x314   :  { %6827 = vmatmul.mubr.bf16.vlgmr.msra.gmra.mrb[4].mxu1 %v478_v52 }
 0x315   :  { %6851 = vmatpush3.bf16.msra.mxu1 %v8639_v4  ;;  %6866 = vmatprep.mubr.msk.bf16.mxu1 %vm8392_vm0, %v8390_v0 }
 0x316   :  { %6852 = vmatprep.subr.bf16.mxu1 %v8390_v0 }
 0x319   :  { %6853 = vmatpush3.bf16.msra.mxu1 %v8645_v6 }
 0x31a   :  { %6854 = vmatprep.subr.bf16.mxu1 %v8390_v0 }
 0x31d   :  { %6855 = vmatpush3.bf16.msra.mxu1 %v8653_v8 }
 0x31e   :  { %6856 = vmatprep.subr.bf16.mxu1 %v8390_v0 }
 0x321   :  { %6857 = vmatpush3.bf16.msra.mxu1 %v8660_v10 }
 0x322   :  { %6858 = vmatprep.subr.bf16.mxu1 %v8390_v0 }
 0x325   :  { %6859 = vmatpush3.bf16.msra.mxu1 %v8668_v12 }
 0x326   :  { %6860 = vmatprep.subr.bf16.mxu1 %v8390_v0 }
 0x329   :  { %6861 = vmatpush3.bf16.msra.mxu1 %v8676_v14 }
 0x32a   :  { %6862 = vmatprep.subr.bf16.mxu1 %v8390_v0 }
 0x32d   :  { %6863 = vmatpush3.bf16.msra.mxu1 %v8684_v15 }
 0x32e   :  { %6864 = vmatprep.subr.bf16.mxu1 %v8390_v0 }
 0x331   :  { %6865 = vmatpush3.bf16.msra.mxu1 %v8711_v17 }
 0x332   :  { %6890 = vmatprep.subr.bf16.mxu1 %v8390_v0 }
 0x3e7   :  { %v567_v55 = vpop.f32.mrb[4].mxu1 }
 0x3e8   :  { %v568_v56 = vadd.f32 %v5960_v53, %v567_v55  ;;  %v6828_v57 = vpop.f32.mrb[5].mxu1  ;;  %v5972_v53 = vld [vmem:[%s10592_s12] ss:$0 sm:$0xff] }
 0x3e9   :  { %v570_v58 = vpop.f32.mrb[6].mxu1 }
 0x3ea   :  { %v573_v59 = vadd.f32 %v568_v56, %v197_v54  ;;  %v6829_v60 = vpop.f32.mrb[7].mxu1 }
 0x3ec   :  { %v576_v61 = vpack.c.bf16 %v573_v59, %v573_v59 }
 0x3ee   :  { %6847 = vmatmul.mubr.bf16.vlgmr.msra.gmra.mrb[8].mxu0 %v576_v61 }
 0x3ef   :  { %6871 = vmatpush3.bf16.msra.mxu0 %v8639_v4  ;;  %6886 = vmatprep.mubr.msk.bf16.mxu0 %vm8392_vm0, %v8390_v0 }
 0x3f0   :  { %6872 = vmatprep.subr.bf16.mxu0 %v8390_v0 }
 0x3f3   :  { %6873 = vmatpush3.bf16.msra.mxu0 %v8645_v6 }
 0x3f4   :  { %6874 = vmatprep.subr.bf16.mxu0 %v8390_v0 }
 0x3f7   :  { %6875 = vmatpush3.bf16.msra.mxu0 %v8653_v8 }
 0x3f8   :  { %6876 = vmatprep.subr.bf16.mxu0 %v8390_v0 }
 0x3fb   :  { %6877 = vmatpush3.bf16.msra.mxu0 %v8660_v10 }
 0x3fc   :  { %6878 = vmatprep.subr.bf16.mxu0 %v8390_v0 }
 0x3ff   :  { %6879 = vmatpush3.bf16.msra.mxu0 %v8668_v12 }
 0x400   :  { %6880 = vmatprep.subr.bf16.mxu0 %v8390_v0 }
 0x403   :  { %6881 = vmatpush3.bf16.msra.mxu0 %v8676_v14 }
 0x404   :  { %6882 = vmatprep.subr.bf16.mxu0 %v8390_v0 }
 0x407   :  { %6883 = vmatpush3.bf16.msra.mxu0 %v8684_v15 }
 0x408   :  { %6884 = vmatprep.subr.bf16.mxu0 %v8390_v0 }
 0x40b   :  { %6885 = vmatpush3.bf16.msra.mxu0 %v8711_v17 }
 0x40c   :  { %6910 = vmatprep.subr.bf16.mxu0 %v8390_v0 }
 0x4c1   :  { %v611_v62 = vpop.f32.mrb[8].mxu0 }
 0x4c2   :  { %v617_v63 = vsub.f32 %v573_v59, %v611_v62  ;;  %v6848_v1 = vpop.f32.mrb[9].mxu0 }
 0x4c3   :  { %v614_v2 = vpop.f32.mrb[10].mxu0 }
 0x4c4   :  { %v618_v3 = vmul.f32 %v617_v63, %v617_v63  ;;  %v6849_v5 = vpop.f32.mrb[11].mxu0 }
 0x4c5   :  { %v8903_v5 = vld [vmem:[%s10615_s21 + $0x8] sm:$0xff]  }
 0x4c6   :  { %v619_v7 = vpack.c.bf16 %v618_v3, %v618_v3  ;;  %v8894_v3 = vld [vmem:[%s10615_s21] sm:$0xff]  }
 0x4c8   :  { %6867 = vmatmul.mubr.bf16.vlgmr.msra.gmra.mrb[8].mxu1 %v619_v7  ;;  %v8910_v7 = vld [vmem:[%s10615_s21 + $0x10] sm:$0xff]  }
 0x4c9   :  { %6891 = vmatpush3.bf16.msra.mxu1 %v8639_v4  ;;  %6906 = vmatprep.mubr.msk.bf16.mxu1 %vm8392_vm0, %v8390_v0 }
 0x4ca   :  { %6892 = vmatprep.subr.bf16.mxu1 %v8390_v0 }
 0x4cd   :  { %6893 = vmatpush3.bf16.msra.mxu1 %v8645_v6 }
 0x4ce   :  { %6894 = vmatprep.subr.bf16.mxu1 %v8390_v0 }
 0x4d1   :  { %6895 = vmatpush3.bf16.msra.mxu1 %v8653_v8 }
 0x4d2   :  { %6896 = vmatprep.subr.bf16.mxu1 %v8390_v0 }
 0x4d5   :  { %6897 = vmatpush3.bf16.msra.mxu1 %v8660_v10 }
 0x4d6   :  { %6898 = vmatprep.subr.bf16.mxu1 %v8390_v0 }
 0x4d9   :  { %6899 = vmatpush3.bf16.msra.mxu1 %v8668_v12 }
 0x4da   :  { %6900 = vmatprep.subr.bf16.mxu1 %v8390_v0 }
 0x4dd   :  { %6901 = vmatpush3.bf16.msra.mxu1 %v8676_v14 }
 0x4de   :  { %6902 = vmatprep.subr.bf16.mxu1 %v8390_v0 }
 0x4e1   :  { %6903 = vmatpush3.bf16.msra.mxu1 %v8684_v15 }
 0x4e2   :  { %6904 = vmatprep.subr.bf16.mxu1 %v8390_v0 }
 0x4e5   :  { %6905 = vmatpush3.bf16.msra.mxu1 %v8711_v17 }
 0x4e6   :  { %6930 = vmatprep.subr.bf16.mxu1 %v8390_v0 }
 0x59b   :  { %v654_v9 = vpop.f32.mrb[8].mxu1 }
 0x59c   :  { %v655_v11 = vadd.f32 1e-05, %v654_v9  ;;  %v6868_v13 = vpop.f32.mrb[9].mxu1  ;;  %v8917_v9 = vld [vmem:[%s10615_s21 + $0x18] sm:$0xff]  }
 0x59d   :  { %v657_v18 = vpop.f32.mrb[10].mxu1  ;;  %v8024_v13 = vld [vmem:[#allocation13 + $0x48] sm:$0xff]  }
 0x59e   :  { %8105 = vrsqrt.f32 %v655_v11  ;;  %v6869_v19 = vpop.f32.mrb[11].mxu1  ;;  %v8023_v11 = vld [vmem:[#allocation13 + $0x40] sm:$0xff]   ;;  %v8025_v18 = vld [vmem:[#allocation13 + $0x50] sm:$0xff]  }
 0x59f   :  { %v8027_v19 = vld [vmem:[#allocation13 + $0x60] sm:$0xff]  }
 0x5a8   :  { %v8106_v20 = vpop.eup %8105 }
 0x5a9   :  { %v661_v22 = vmul.f32 %v8106_v20, %v617_v63  ;;  %v8030_v20 = vld [vmem:[#allocation13 + $0x78] sm:$0xff]  }
 0x5ab   :  { %v668_v24 = vmul.f32 %v5969_v21, %v661_v22 }
 0x5ad   :  { %v675_v25 = vadd.f32 %v5970_v23, %v668_v24 }
 0x5af   :  { %v677_v26 = vmax.f32 %v675_v25, 0.0 }
 0x5b1   :  { %v680_v28 = vpack.c.bf16 %v677_v26, %v677_v26 }
 0x5b3   :  { %6887 = vmatmul.mubr.bf16.vlgmr.msra.gmra.mrb[12].mxu0 %v680_v28 }
 0x5b4   :  { %6911 = vmatpush3.bf16.msra.mxu0 %v8015_v27  ;;  %6926 = vmatprep.mubr.msk.bf16.mxu0 %vm8392_vm0, %v8390_v0  ;;  %v5985_v27 = vld [vmem:[%s10587_s7 + $0x1] ss:$0 sm:$0xff] }
 0x5b5   :  { %6912 = vmatprep.subr.bf16.mxu0 %v8390_v0 }
 0x5b8   :  { %6913 = vmatpush3.bf16.msra.mxu0 %v8016_v29  ;;  %v5986_v29 = vld [vmem:[%s10588_s8 + $0x1] ss:$0 sm:$0xff] }
 0x5b9   :  { %6914 = vmatprep.subr.bf16.mxu0 %v8390_v0 }
 0x5bc   :  { %6915 = vmatpush3.bf16.msra.mxu0 %v8017_v30 }
 0x5bd   :  { %6916 = vmatprep.subr.bf16.mxu0 %v8390_v0 }
 0x5c0   :  { %6917 = vmatpush3.bf16.msra.mxu0 %v8018_v31 }
 0x5c1   :  { %6918 = vmatprep.subr.bf16.mxu0 %v8390_v0 }
 0x5c4   :  { %6919 = vmatpush3.bf16.msra.mxu0 %v8019_v32 }
 0x5c5   :  { %6920 = vmatprep.subr.bf16.mxu0 %v8390_v0 }
 0x5c8   :  { %6921 = vmatpush3.bf16.msra.mxu0 %v8020_v33 }
 0x5c9   :  { %6922 = vmatprep.subr.bf16.mxu0 %v8390_v0 }
 0x5cc   :  { %6923 = vmatpush3.bf16.msra.mxu0 %v8021_v34  ;;  %v8957_v34 = vld [vmem:[%s10615_s21 + $0x20] sm:$0xff]  }
 0x5cd   :  { %6924 = vmatprep.subr.bf16.mxu0 %v8390_v0 }
 0x5d0   :  { %6925 = vmatpush3.bf16.msra.mxu0 %v8022_v35  ;;  %v8964_v35 = vld [vmem:[%s10615_s21 + $0x28] sm:$0xff]  }
 0x5d1   :  { %6950 = vmatprep.subr.bf16.mxu0 %v8390_v0 }
 0x5d3   :  { %6927 = vmatmul.mubr.bf16.vlgmr.msra.gmra.mrb[16].mxu0 %v8394_v16 }
 0x5d4   :  { %6951 = vmatpush3.bf16.msra.mxu0 %v8639_v4  ;;  %6966 = vmatprep.mubr.msk.bf16.mxu0 %vm8392_vm0, %v8832_v36 }
 0x5d5   :  { %6952 = vmatprep.subr.bf16.mxu0 %v8832_v36 }
 0x5d8   :  { %6953 = vmatpush3.bf16.msra.mxu0 %v8645_v6 }
 0x5d9   :  { %6954 = vmatprep.subr.bf16.mxu0 %v8832_v36 }
 0x5dc   :  { %6955 = vmatpush3.bf16.msra.mxu0 %v8653_v8 }
 0x5dd   :  { %6956 = vmatprep.subr.bf16.mxu0 %v8832_v36 }
 0x5e0   :  { %6957 = vmatpush3.bf16.msra.mxu0 %v8660_v10 }
 0x5e1   :  { %6958 = vmatprep.subr.bf16.mxu0 %v8832_v36 }
 0x5e4   :  { %6959 = vmatpush3.bf16.msra.mxu0 %v8668_v12 }
 0x5e5   :  { %6960 = vmatprep.subr.bf16.mxu0 %v8832_v36 }
 0x5e8   :  { %6961 = vmatpush3.bf16.msra.mxu0 %v8676_v14 }
 0x5e9   :  { %6962 = vmatprep.subr.bf16.mxu0 %v8832_v36 }
 0x5ec   :  { %6963 = vmatpush3.bf16.msra.mxu0 %v8684_v15 }
 0x5ed   :  { %6964 = vmatprep.subr.bf16.mxu0 %v8832_v36 }
 0x5f0   :  { %6965 = vmatpush3.bf16.msra.mxu0 %v8711_v17 }
 0x5f1   :  { %6990 = vmatprep.subr.bf16.mxu0 %v8832_v36 }
 0x686   :  { %v715_v0 = vpop.f32.mrb[12].mxu0 }
 0x687   :  { %v721_v16 = vsub.f32 %v677_v26, %v715_v0  ;;  %v6888_v37 = vpop.f32.mrb[13].mxu0  ;;  %v8971_v0 = vld [vmem:[%s10615_s21 + $0x30] sm:$0xff]  }
 0x688   :  { %v718_v38 = vpop.f32.mrb[14].mxu0  ;;  %v783_v37 = vld [vmem:[%s10617_s1 + $0x8] sm:$0xff] }
 0x689   :  { %v722_v39 = vmul.f32 %v721_v16, %v721_v16  ;;  %v6889_v40 = vpop.f32.mrb[15].mxu0 }
 0x68b   :  { %v723_v41 = vpack.c.bf16 %v722_v39, %v722_v39 }
 0x68d   :  { %6907 = vmatmul.mubr.bf16.vlgmr.msra.gmra.mrb[12].mxu1 %v723_v41 }
 0x68e   :  { %6931 = vmatpush3.bf16.msra.mxu1 %v8639_v4  ;;  %6946 = vmatprep.mubr.msk.bf16.mxu1 %vm8392_vm0, %v8832_v36  ;;  %v5974_v4 = vld [vmem:[%s10616_s5 + $0x1] ss:$0 sm:$0xff] }
 0x68f   :  { %6932 = vmatprep.subr.bf16.mxu1 %v8832_v36 }
 0x692   :  { %6933 = vmatpush3.bf16.msra.mxu1 %v8645_v6 }
 0x693   :  { %6934 = vmatprep.subr.bf16.mxu1 %v8832_v36 }
 0x696   :  { %6935 = vmatpush3.bf16.msra.mxu1 %v8653_v8 }
 0x697   :  { %6936 = vmatprep.subr.bf16.mxu1 %v8832_v36 }
 0x69a   :  { %6937 = vmatpush3.bf16.msra.mxu1 %v8660_v10 }
 0x69b   :  { %6938 = vmatprep.subr.bf16.mxu1 %v8832_v36 }
 0x69e   :  { %6939 = vmatpush3.bf16.msra.mxu1 %v8668_v12 }
 0x69f   :  { %6940 = vmatprep.subr.bf16.mxu1 %v8832_v36 }
 0x6a2   :  { %6941 = vmatpush3.bf16.msra.mxu1 %v8676_v14 }
 0x6a3   :  { %6942 = vmatprep.subr.bf16.mxu1 %v8832_v36 }
 0x6a6   :  { %v892_v6 = vpop.f32.mrb[16].mxu0  ;;  %6943 = vmatpush3.bf16.msra.mxu1 %v8684_v15 }
 0x6a7   :  { %v893_v8 = vadd.f32 %v5974_v4, %v892_v6  ;;  %v6928_v42 = vpop.f32.mrb[17].mxu0  ;;  %6944 = vmatprep.subr.bf16.mxu1 %v8832_v36 }
 0x6a8   :  { %v895_v10 = vpop.f32.mrb[18].mxu0 }
 0x6a9   :  { %v902_v43 = vpack.c.bf16 %v893_v8, %v893_v8  ;;  %v6929_v44 = vpop.f32.mrb[19].mxu0 }
 0x6aa   :  { %6945 = vmatpush3.bf16.msra.mxu1 %v8711_v17 }
 0x6ab   :  { %6970 = vmatprep.subr.bf16.mxu1 %v8832_v36 }
 0x6ad   :  { %6947 = vmatmul.mubr.bf16.vlgmr.msra.gmra.mrb[16].mxu1 %v902_v43 }
 0x6ae   :  { %6986 = vmatprep.mubr.msk.bf16.mxu1 %vm8392_vm0, %v8832_v36  ;;  %6971 = vmatpush3.bf16.msra.mxu1 %v8023_v11 }
 0x6af   :  { %6972 = vmatprep.subr.bf16.mxu1 %v8832_v36 }
 0x6b2   :  { %6973 = vmatpush3.bf16.msra.mxu1 %v8024_v13 }
 0x6b3   :  { %6974 = vmatprep.subr.bf16.mxu1 %v8832_v36 }
 0x6b6   :  { %6975 = vmatpush3.bf16.msra.mxu1 %v8025_v18 }
 0x6b7   :  { %6976 = vmatprep.subr.bf16.mxu1 %v8832_v36 }
 0x760   :  { %v758_v45 = vpop.f32.mrb[12].mxu1 }
 0x761   :  { %v759_v46 = vadd.f32 1e-05, %v758_v45  ;;  %v6908_v47 = vpop.f32.mrb[13].mxu1 }
 0x762   :  { %v761_v48 = vpop.f32.mrb[14].mxu1 }
 0x763   :  { %8107 = vrsqrt.f32 %v759_v46  ;;  %v6909_v49 = vpop.f32.mrb[15].mxu1 }
 0x76d   :  { %v8108_v50 = vpop.eup %8107 }
 0x76e   :  { %v765_v52 = vmul.f32 %v8108_v50, %v721_v16  ;;  %v5988_v16 = vld [vmem:[%s10586_s6 + $0x1] ss:$0 sm:$0xff] }
 0x770   :  { %v772_v54 = vmul.f32 %v5971_v51, %v765_v52 }
 0x772   :  { %v8880_v55 = vadd.f32 %v5972_v53, %v772_v54  ;;  %v5999_v54 = vld [vmem:[%s10589_s9 + $0x1] ss:$0 sm:$0xff] }
 0x774   :  { %780 = vst [vmem:[#allocation2] sm:$0xff] %v8880_v55  ;;  %v1666_v56 = vsub.f32 %v8880_v55, %v8832_v36  ;;  %1816 = vst [vmem:[#allocation4] sm:$0xff] %v8880_v55 }
 0x776   :  { %v1699_v57 = vmul.f32 %v8832_v36, %v1666_v56  ;;  %1667 = vst [vmem:[#allocation3] sm:$0xff] %v1666_v56  ;;  %v1669_v2 = vmul.f32 %v1666_v56, %v1666_v56 }
 0x778   :  { %1700 = vadd.xlane.f32.xlu1 %v1699_v57  ;;  %1676 = vadd.xlane.f32.xlu0 %v1699_v57 }
 0x77c   :  { %1682 = vadd.xlane.f32.xlu0 %v1699_v57 }
 0x780   :  { %v937_v58 = vpop.f32.mrb[16].mxu1  ;;  %1688 = vadd.xlane.f32.xlu0 %v1699_v57 }
 0x781   :  { %v8887_v59 = vsub.f32 %v893_v8, %v937_v58  ;;  %v6948_v60 = vpop.f32.mrb[17].mxu1 }
 0x782   :  { %v940_v61 = vpop.f32.mrb[18].mxu1 }
 0x783   :  { %v944_v62 = vmul.f32 %v8887_v59, %v8887_v59  ;;  %v6949_v63 = vpop.f32.mrb[19].mxu1 }
 0x784   :  { %1694 = vadd.xlane.f32.xlu0 %v1699_v57  ;;  %v6000_v57 = vld [vmem:[%s10590_s10 + $0x1] ss:$0 sm:$0xff]  ;;  %v8031_v63 = vld [vmem:[#allocation15] sm:$0xff]  }
 0x785   :  { %v945_v1 = vpack.c.bf16 %v944_v62, %v944_v62 }
 0x787   :  { %6967 = vmatmul.mubr.bf16.vlgmr.msra.gmra.mrb[20].mxu0 %v945_v1  ;;  %v8032_v1 = vld [vmem:[#allocation15 + $0x8] sm:$0xff]  }
 0x788   :  { %1670 = vadd.xlane.f32.xlu0 %v1669_v2  ;;  %6991 = vmatpush3.bf16.msra.mxu0 %v8894_v3 }
 0x789   :  { %6992 = vmatprep.subr.bf16.mxu0 %v8832_v36  ;;  %7006 = vmatprep.mubr.msk.bf16.mxu0 %vm8392_vm0, %v8832_v36 }
 0x78c   :  { %6993 = vmatpush3.bf16.msra.mxu0 %v8903_v5 }
 0x78d   :  { %6994 = vmatprep.subr.bf16.mxu0 %v8832_v36 }
 0x790   :  { %6995 = vmatpush3.bf16.msra.mxu0 %v8910_v7 }
 0x791   :  { %6996 = vmatprep.subr.bf16.mxu0 %v8832_v36 }
 0x794   :  { %6997 = vmatpush3.bf16.msra.mxu0 %v8917_v9 }
 0x795   :  { %6998 = vmatprep.subr.bf16.mxu0 %v8832_v36 }
 0x798   :  { %6999 = vmatpush3.bf16.msra.mxu0 %v8668_v12  ;;  %v8026_v12 = vld [vmem:[#allocation13 + $0x58] sm:$0xff]  }
 0x799   :  { %7000 = vmatprep.subr.bf16.mxu0 %v8832_v36  ;;  %6977 = vmatpush3.bf16.msra.mxu1 %v8026_v12 }
 0x79a   :  { %6978 = vmatprep.subr.bf16.mxu1 %v8832_v36 }
 0x79c   :  { %7001 = vmatpush3.bf16.msra.mxu0 %v8676_v14  ;;  %v8028_v14 = vld [vmem:[#allocation13 + $0x68] sm:$0xff]  }
 0x79d   :  { %7002 = vmatprep.subr.bf16.mxu0 %v8832_v36  ;;  %6979 = vmatpush3.bf16.msra.mxu1 %v8027_v19 }
 0x79e   :  { %6980 = vmatprep.subr.bf16.mxu1 %v8832_v36 }
 0x7a0   :  { %7003 = vmatpush3.bf16.msra.mxu0 %v8684_v15  ;;  %v8029_v15 = vld [vmem:[#allocation13 + $0x70] sm:$0xff]  }
 0x7a1   :  { %7004 = vmatprep.subr.bf16.mxu0 %v8832_v36  ;;  %6981 = vmatpush3.bf16.msra.mxu1 %v8028_v14 }
 0x7a2   :  { %6982 = vmatprep.subr.bf16.mxu1 %v8832_v36 }
 0x7a4   :  { %7005 = vmatpush3.bf16.msra.mxu0 %v8711_v17 }
 0x7a5   :  { %7030 = vmatprep.subr.bf16.mxu0 %v8832_v36  ;;  %6983 = vmatpush3.bf16.msra.mxu1 %v8029_v15  ;;  %v8033_v15 = vld [vmem:[#allocation15 + $0x10] sm:$0xff]  }
 0x7a6   :  { %6984 = vmatprep.subr.bf16.mxu1 %v8832_v36 }
 0x7a9   :  { %6985 = vmatpush3.bf16.msra.mxu1 %v8030_v20  ;;  %v8034_v20 = vld [vmem:[#allocation15 + $0x18] sm:$0xff]  }
 0x7aa   :  { %7010 = vmatprep.subr.bf16.mxu1 %v8832_v36 }
 0x85a   :  { %v980_v21 = vpop.f32.mrb[20].mxu0 }
 0x85b   :  { %v981_v22 = vadd.f32 1e-05, %v980_v21  ;;  %v6968_v23 = vpop.f32.mrb[21].mxu0  ;;  %v8035_v21 = vld [vmem:[#allocation15 + $0x20] sm:$0xff]  }
 0x85c   :  { %v983_v24 = vpop.f32.mrb[22].mxu0  ;;  %v8037_v23 = vld [vmem:[#allocation15 + $0x30] sm:$0xff]  }
 0x85d   :  { %8109 = vrsqrt.f32 %v981_v22  ;;  %v6969_v25 = vpop.f32.mrb[23].mxu0  ;;  %v8036_v22 = vld [vmem:[#allocation15 + $0x28] sm:$0xff]   ;;  %v8038_v24 = vld [vmem:[#allocation15 + $0x38] sm:$0xff]  }
 0x867   :  { %v8110_v26 = vpop.eup %8109 }
 0x868   :  { %v987_v28 = vmul.f32 %v8110_v26, %v8887_v59 }
 0x86a   :  { %v994_v30 = vmul.f32 %v5985_v27, %v987_v28 }
 0x86c   :  { %v1001_v31 = vadd.f32 %v5986_v29, %v994_v30 }
 0x86e   :  { %v1002_v32 = vmax.f32 %v1001_v31, 0.0  ;;  %v6003_v31 = vld [vmem:[%s10591_s11 + $0x1] ss:$0 sm:$0xff] }
 0x870   :  { %v1022_v33 = vpack.c.bf16 %v1002_v32, %v1002_v32 }
 0x872   :  { %6987 = vmatmul.mubr.bf16.vlgmr.msra.gmra.mrb[20].mxu1 %v1022_v33  ;;  %v6004_v33 = vld [vmem:[%s10592_s12 + $0x1] ss:$0 sm:$0xff] }
 0x873   :  { %7011 = vmatpush3.bf16.msra.mxu1 %v8894_v3  ;;  %7026 = vmatprep.mubr.msk.bf16.mxu1 %vm8392_vm0, %v8832_v36 }
 0x874   :  { %7012 = vmatprep.subr.bf16.mxu1 %v8832_v36 }
 0x877   :  { %7013 = vmatpush3.bf16.msra.mxu1 %v8903_v5 }
 0x878   :  { %7014 = vmatprep.subr.bf16.mxu1 %v8832_v36 }
 0x87b   :  { %7015 = vmatpush3.bf16.msra.mxu1 %v8910_v7 }
 0x87c   :  { %7016 = vmatprep.subr.bf16.mxu1 %v8832_v36 }
 0x87f   :  { %7017 = vmatpush3.bf16.msra.mxu1 %v8917_v9 }
 0x880   :  { %7018 = vmatprep.subr.bf16.mxu1 %v8832_v36 }
 0x883   :  { %7019 = vmatpush3.bf16.msra.mxu1 %v8957_v34 }
 0x884   :  { %7020 = vmatprep.subr.bf16.mxu1 %v8832_v36 }
 0x887   :  { %7021 = vmatpush3.bf16.msra.mxu1 %v8964_v35 }
 0x888   :  { %7022 = vmatprep.subr.bf16.mxu1 %v8832_v36 }
 0x88b   :  { %7023 = vmatpush3.bf16.msra.mxu1 %v8971_v0 }
 0x88c   :  { %7024 = vmatprep.subr.bf16.mxu1 %v8832_v36 }
 0x88f   :  { %7025 = vmatpush3.bf16.msra.mxu1 %v8711_v17 }
 0x890   :  { %7050 = vmatprep.subr.bf16.mxu1 %v8832_v36 }
 0x945   :  { %v1111_v38 = vpop.f32.mrb[20].mxu1 }
 0x946   :  { %v1112_v39 = vadd.f32 %v5988_v16, %v1111_v38  ;;  %v6988_v40 = vpop.f32.mrb[21].mxu1  ;;  %v1330_v38 = vmul.f32 2.0, %v8832_v36 }
 0x947   :  { %v1114_v41 = vpop.f32.mrb[22].mxu1 }
 0x948   :  { %v1117_v4 = vadd.f32 %v1112_v39, %v783_v37  ;;  %v6989_v6 = vpop.f32.mrb[23].mxu1 }
 0x94a   :  { %v1122_v8 = vpack.c.bf16 %v1117_v4, %v1117_v4 }
 0x94c   :  { %7007 = vmatmul.mubr.bf16.vlgmr.msra.gmra.mrb[24].mxu0 %v1122_v8 }
 0x94d   :  { %7031 = vmatpush3.bf16.msra.mxu0 %v8894_v3  ;;  %7046 = vmatprep.mubr.msk.bf16.mxu0 %vm8392_vm0, %v8832_v36 }
 0x94e   :  { %7032 = vmatprep.subr.bf16.mxu0 %v8832_v36 }
 0x951   :  { %7033 = vmatpush3.bf16.msra.mxu0 %v8903_v5 }
 0x952   :  { %7034 = vmatprep.subr.bf16.mxu0 %v8832_v36 }
 0x955   :  { %7035 = vmatpush3.bf16.msra.mxu0 %v8910_v7 }
 0x956   :  { %7036 = vmatprep.subr.bf16.mxu0 %v8832_v36 }
 0x959   :  { %7037 = vmatpush3.bf16.msra.mxu0 %v8917_v9 }
 0x95a   :  { %7038 = vmatprep.subr.bf16.mxu0 %v8832_v36 }
 0x95d   :  { %7039 = vmatpush3.bf16.msra.mxu0 %v8957_v34 }
 0x95e   :  { %7040 = vmatprep.subr.bf16.mxu0 %v8832_v36 }
 0x961   :  { %7041 = vmatpush3.bf16.msra.mxu0 %v8964_v35 }
 0x962   :  { %7042 = vmatprep.subr.bf16.mxu0 %v8832_v36 }
 0x965   :  { %7043 = vmatpush3.bf16.msra.mxu0 %v8971_v0 }
 0x966   :  { %7044 = vmatprep.subr.bf16.mxu0 %v8832_v36 }
 0x969   :  { %7045 = vmatpush3.bf16.msra.mxu0 %v8711_v17 }
 0x96a   :  { %7070 = vmatprep.subr.bf16.mxu0 %v8832_v36 }
 0xa1f   :  { %v1157_v42 = vpop.f32.mrb[24].mxu0 }
 0xa20   :  { %v1163_v10 = vsub.f32 %v1117_v4, %v1157_v42  ;;  %v7008_v43 = vpop.f32.mrb[25].mxu0  ;;  %v8039_v42 = vld [vmem:[#allocation16] sm:$0xff]  }
 0xa21   :  { %v1160_v44 = vpop.f32.mrb[26].mxu0  ;;  %v8041_v43 = vld [vmem:[#allocation16 + $0x10] sm:$0xff]  }
 0xa22   :  { %v1164_v45 = vmul.f32 %v1163_v10, %v1163_v10  ;;  %v7009_v46 = vpop.f32.mrb[27].mxu0  ;;  %v8042_v44 = vld [vmem:[#allocation16 + $0x18] sm:$0xff]  }
 0xa23   :  { %v8045_v46 = vld [vmem:[#allocation16 + $0x30] sm:$0xff]  }
 0xa24   :  { %v1165_v47 = vpack.c.bf16 %v1164_v45, %v1164_v45  ;;  %v8043_v45 = vld [vmem:[#allocation16 + $0x20] sm:$0xff]  }
 0xa26   :  { %7027 = vmatmul.mubr.bf16.vlgmr.msra.gmra.mrb[24].mxu1 %v1165_v47  ;;  %v8046_v47 = vld [vmem:[#allocation16 + $0x38] sm:$0xff]  }
 0xa27   :  { %7051 = vmatpush3.bf16.msra.mxu1 %v8894_v3  ;;  %7066 = vmatprep.mubr.msk.bf16.mxu1 %vm8392_vm0, %v8832_v36 }
 0xa28   :  { %7052 = vmatprep.subr.bf16.mxu1 %v8832_v36 }
 0xa2b   :  { %7053 = vmatpush3.bf16.msra.mxu1 %v8903_v5 }
 0xa2c   :  { %7054 = vmatprep.subr.bf16.mxu1 %v8832_v36 }
 0xa2f   :  { %7055 = vmatpush3.bf16.msra.mxu1 %v8910_v7 }
 0xa30   :  { %7056 = vmatprep.subr.bf16.mxu1 %v8832_v36 }
 0xa33   :  { %7057 = vmatpush3.bf16.msra.mxu1 %v8917_v9 }
 0xa34   :  { %7058 = vmatprep.subr.bf16.mxu1 %v8832_v36 }
 0xa37   :  { %7059 = vmatpush3.bf16.msra.mxu1 %v8957_v34 }
 0xa38   :  { %7060 = vmatprep.subr.bf16.mxu1 %v8832_v36 }
 0xa3b   :  { %7061 = vmatpush3.bf16.msra.mxu1 %v8964_v35 }
 0xa3c   :  { %7062 = vmatprep.subr.bf16.mxu1 %v8832_v36 }
 0xa3f   :  { %7063 = vmatpush3.bf16.msra.mxu1 %v8971_v0 }
 0xa40   :  { %7064 = vmatprep.subr.bf16.mxu1 %v8832_v36 }
 0xa43   :  { %7065 = vmatpush3.bf16.msra.mxu1 %v8711_v17 }
 0xa44   :  { %7090 = vmatprep.subr.bf16.mxu1 %v8832_v36 }
 0xaf9   :  { %v1200_v48 = vpop.f32.mrb[24].mxu1 }
 0xafa   :  { %v1201_v49 = vadd.f32 1e-05, %v1200_v48  ;;  %v7028_v50 = vpop.f32.mrb[25].mxu1  ;;  %v120_v48 = vlaneseq }
 0xafb   :  { %v1203_v51 = vpop.f32.mrb[26].mxu1  ;;  %v1349_v50 = vld [vmem:[%s10594_s14] sm:$0x1] }
 0xafc   :  { %8111 = vrsqrt.f32 %v1201_v49  ;;  %v7029_v52 = vpop.f32.mrb[27].mxu1  ;;  %v1353_v49 = vshrl.u32 %v120_v48, 7  ;;  %v1350_v51 = vmul.f32 2.0, %v1349_v50 }
 0xafe   :  { %v9078_v52 = vsub.s32 0, %v1353_v49  ;;  %v6023_v49 = vld [vmem:[%s10598_s18] ss:$0 sm:$0xff] }
 0xb06   :  { %v8112_v53 = vpop.eup %8111 }
 0xb07   :  { %v1207_v56 = vmul.f32 %v8112_v53, %v1163_v10  ;;  %v8040_v10 = vld [vmem:[#allocation16 + $0x8] sm:$0xff]   ;;  %v1355_v53 = vrot.slane %v1350_v51, %v9078_v52 }
 0xb09   :  { %v1214_v58 = vmul.f32 %v5999_v54, %v1207_v56 }
 0xb0b   :  { %v1221_v59 = vadd.f32 %v6000_v57, %v1214_v58 }
 0xb0d   :  { %v1222_v60 = vadd.f32 %v8832_v36, %v1221_v59 }
 0xb0f   :  { %v1223_v61 = vmax.f32 %v1222_v60, 0.0 }
 0xb11   :  { %v1228_v62 = vpack.c.bf16 %v1223_v61, %v1223_v61 }
 0xb13   :  { %7047 = vmatmul.mubr.bf16.vlgmr.msra.gmra.mrb[28].mxu0 %v1228_v62 }
 0xb14   :  { %7086 = vmatprep.mubr.msk.bf16.mxu0 %vm8392_vm0, %v8832_v36  ;;  %7071 = vmatpush3.bf16.msra.mxu0 %v8031_v63 }
 0xb15   :  { %7072 = vmatprep.subr.bf16.mxu0 %v8832_v36 }
 0xb18   :  { %7073 = vmatpush3.bf16.msra.mxu0 %v8032_v1 }
 0xb19   :  { %7074 = vmatprep.subr.bf16.mxu0 %v8832_v36 }
 0xb1c   :  { %7075 = vmatpush3.bf16.msra.mxu0 %v8033_v15  ;;  %v8053_v15 = vld [vmem:[#allocation11 + $0x30] sm:$0xff]  }
 0xb1d   :  { %7076 = vmatprep.subr.bf16.mxu0 %v8832_v36 }
 0xb20   :  { %7077 = vmatpush3.bf16.msra.mxu0 %v8034_v20  ;;  %v8054_v20 = vld [vmem:[#allocation11 + $0x38] sm:$0xff]  }
 0xb21   :  { %7078 = vmatprep.subr.bf16.mxu0 %v8832_v36 }
 0xb24   :  { %7079 = vmatpush3.bf16.msra.mxu0 %v8035_v21  ;;  %v1855_v21 = vpack.c.bf16 %v8880_v55, %v8880_v55 }
 0xb25   :  { %7080 = vmatprep.subr.bf16.mxu0 %v8832_v36 }
 0xb28   :  { %7081 = vmatpush3.bf16.msra.mxu0 %v8036_v22  ;;  %v9125_v22 = vld [vmem:[%s10615_s21] sm:$0xff]  }
 0xb29   :  { %7082 = vmatprep.subr.bf16.mxu0 %v8832_v36 }
 0xb2c   :  { %7083 = vmatpush3.bf16.msra.mxu0 %v8037_v23  ;;  %v9132_v23 = vld [vmem:[%s10615_s21 + $0x8] sm:$0xff]  }
 0xb2d   :  { %7084 = vmatprep.subr.bf16.mxu0 %v8832_v36 }
 0xb30   :  { %7085 = vmatpush3.bf16.msra.mxu0 %v8038_v24  ;;  %v9146_v24 = vld [vmem:[%s10615_s21 + $0x18] sm:$0xff]  }
 0xb31   :  { %7110 = vmatprep.subr.bf16.mxu0 %v8832_v36 }
 0xbe6   :  { %v1263_v2 = vpop.f32.mrb[28].mxu0 }
 0xbe7   :  { %v1269_v11 = vsub.f32 %v1223_v61, %v1263_v2  ;;  %v7048_v13 = vpop.f32.mrb[29].mxu0  ;;  %v8047_v2 = vld [vmem:[#allocation11] sm:$0xff]  }
 0xbe8   :  { %v1266_v18 = vpop.f32.mrb[30].mxu0  ;;  %v8048_v13 = vld [vmem:[#allocation11 + $0x8] sm:$0xff]  }
 0xbe9   :  { %v1270_v12 = vmul.f32 %v1269_v11, %v1269_v11  ;;  %v7049_v19 = vpop.f32.mrb[31].mxu0  ;;  %v8049_v18 = vld [vmem:[#allocation11 + $0x10] sm:$0xff]  }
 0xbea   :  { %v8051_v19 = vld [vmem:[#allocation11 + $0x20] sm:$0xff]  }
 0xbeb   :  { %v1271_v14 = vpack.c.bf16 %v1270_v12, %v1270_v12  ;;  %v8050_v12 = vld [vmem:[#allocation11 + $0x18] sm:$0xff]  }
 0xbed   :  { %7067 = vmatmul.mubr.bf16.vlgmr.msra.gmra.mrb[28].mxu1 %v1271_v14  ;;  %v8052_v14 = vld [vmem:[#allocation11 + $0x28] sm:$0xff]  }
 0xbee   :  { %7106 = vmatprep.mubr.msk.bf16.mxu1 %vm8392_vm0, %v8832_v36  ;;  %7091 = vmatpush3.bf16.msra.mxu1 %v8039_v42 }
 0xbef   :  { %7092 = vmatprep.subr.bf16.mxu1 %v8832_v36 }
 0xbf2   :  { %7093 = vmatpush3.bf16.msra.mxu1 %v8040_v10 }
 0xbf3   :  { %7094 = vmatprep.subr.bf16.mxu1 %v8832_v36 }
 0xbf6   :  { %7095 = vmatpush3.bf16.msra.mxu1 %v8041_v43 }
 0xbf7   :  { %7096 = vmatprep.subr.bf16.mxu1 %v8832_v36 }
 0xbfa   :  { %7097 = vmatpush3.bf16.msra.mxu1 %v8042_v44 }
 0xbfb   :  { %7098 = vmatprep.subr.bf16.mxu1 %v8832_v36 }
 0xbfe   :  { %7099 = vmatpush3.bf16.msra.mxu1 %v8043_v45 }
 0xbff   :  { %7100 = vmatprep.subr.bf16.mxu1 %v8832_v36 }
 0xcc0   :  { %v1306_v25 = vpop.f32.mrb[28].mxu1 }
 0xcc1   :  { %v1307_v26 = vadd.f32 1e-05, %v1306_v25  ;;  %v7068_v27 = vpop.f32.mrb[29].mxu1  ;;  %v9153_v25 = vld [vmem:[%s10615_s21 + $0x20] sm:$0xff]  }
 0xcc2   :  { %v1309_v28 = vpop.f32.mrb[30].mxu1  ;;  %v9167_v27 = vld [vmem:[%s10615_s21 + $0x30] sm:$0xff]  }
 0xcc3   :  { %8113 = vrsqrt.f32 %v1307_v26  ;;  %v7069_v29 = vpop.f32.mrb[31].mxu1  ;;  %v9160_v26 = vld [vmem:[%s10615_s21 + $0x28] sm:$0xff]   ;;  %v9174_v28 = vld [vmem:[%s10615_s21 + $0x38] sm:$0xff]  }
 0xccd   :  { %v8114_v30 = vpop.eup %8113 }
 0xcce   :  { %v1313_v32 = vmul.f32 %v8114_v30, %v1269_v11 }
 0xcd0   :  { %v1320_v16 = vmul.f32 %v6003_v31, %v1313_v32 }
 0xcd2   :  { %v1327_v37 = vadd.f32 %v6004_v33, %v1320_v16 }
 0xcd4   :  { %1328 = vst [vmem:[#allocation2 + $0x8] sm:$0xff] %v1327_v37  ;;  %v1329_v39 = vadd.f32 %v1327_v37, %v8880_v55  ;;  %v1705_v40 = vsub.f32 %v1327_v37, %v8832_v36  ;;  %1817 = vst [vmem:[#allocation4 + $0x8] sm:$0xff] %v1327_v37  ;;  %v9139_v55 = vld [vmem:[%s10615_s21 + $0x10] sm:$0xff]  }
 0xcd6   :  { %v1331_v41 = vadd.f32 %v1330_v38, %v1329_v39  ;;  %v1713_v4 = vmul.f32 %v8832_v36, %v1705_v40  ;;  %1706 = vst [vmem:[#allocation3 + $0x8] sm:$0xff] %v1705_v40  ;;  %v1708_v8 = vmul.f32 %v1705_v40, %v1705_v40  ;;  %v6024_v38 = vld [vmem:[%s10616_s5] ss:$0 sm:$0xff] }
 0xcd8   :  { %v1332_v6 = vpack.c.bf16 %v1331_v41, %v1331_v41  ;;  %1714 = vadd.xlane.f32.xlu1 %v1713_v4  ;;  %1734 = vadd.xlane.f32.xlu0 %v1713_v4 }
 0xcda   :  { %7087 = vmatmul.mubr.bf16.vlgmr.msra.gmra.mrb[32].mxu0 %v1332_v6 }
 0xcdb   :  { %7111 = vmatpush3.bf16.msra.mxu0 %v8894_v3  ;;  %7126 = vmatprep.mubr.msk.bf16.mxu0 %vm8392_vm0, %v8832_v36 }
 0xcdc   :  { %1719 = vadd.xlane.f32.xlu1 %v1713_v4  ;;  %7112 = vmatprep.subr.bf16.mxu0 %v8832_v36 }
 0xcdf   :  { %7113 = vmatpush3.bf16.msra.mxu0 %v8903_v5 }
 0xce0   :  { %1724 = vadd.xlane.f32.xlu1 %v1713_v4  ;;  %7114 = vmatprep.subr.bf16.mxu0 %v8832_v36 }
 0xce3   :  { %7115 = vmatpush3.bf16.msra.mxu0 %v8910_v7 }
 0xce4   :  { %1729 = vadd.xlane.f32.xlu1 %v1713_v4  ;;  %7116 = vmatprep.subr.bf16.mxu0 %v8832_v36 }
 0xce7   :  { %7117 = vmatpush3.bf16.msra.mxu0 %v8917_v9 }
 0xce8   :  { %1709 = vadd.xlane.f32.xlu1 %v1708_v8  ;;  %7118 = vmatprep.subr.bf16.mxu0 %v8832_v36 }
 0xceb   :  { %7119 = vmatpush3.bf16.msra.mxu0 %v8957_v34 }
 0xcec   :  { %7120 = vmatprep.subr.bf16.mxu0 %v8832_v36 }
 0xcef   :  { %7121 = vmatpush3.bf16.msra.mxu0 %v8964_v35 }
 0xcf0   :  { %7122 = vmatprep.subr.bf16.mxu0 %v8832_v36 }
 0xcf3   :  { %7123 = vmatpush3.bf16.msra.mxu0 %v8971_v0 }
 0xcf4   :  { %7124 = vmatprep.subr.bf16.mxu0 %v8832_v36 }
 0xcf7   :  { %7125 = vmatpush3.bf16.msra.mxu0 %v8711_v17  ;;  %v8044_v17 = vld [vmem:[#allocation16 + $0x28] sm:$0xff]  }
 0xcf8   :  { %7150 = vmatprep.subr.bf16.mxu0 %v8832_v36  ;;  %7101 = vmatpush3.bf16.msra.mxu1 %v8044_v17 }
 0xcf9   :  { %7102 = vmatprep.subr.bf16.mxu1 %v8832_v36 }
 0xcfc   :  { %7103 = vmatpush3.bf16.msra.mxu1 %v8045_v46  ;;  %v6022_v46 = vld [vmem:[%s10597_s17] ss:$0 sm:$0xff] }
 0xcfd   :  { %7104 = vmatprep.subr.bf16.mxu1 %v8832_v36 }
 0xd00   :  { %7105 = vmatpush3.bf16.msra.mxu1 %v8046_v47 }
 0xd01   :  { %7130 = vmatprep.subr.bf16.mxu1 %v8832_v36 }
 0xdad   :  { %v1439_v54 = vpop.f32.mrb[32].mxu0 }
 0xdae   :  { %v1440_v56 = vadd.f32 %v1439_v54, %v1355_v53  ;;  %v7088_v57 = vpop.f32.mrb[33].mxu0 }
 0xdaf   :  { %v1442_v58 = vpop.f32.mrb[34].mxu0 }
 0xdb0   :  { %v1445_v59 = vmul.f32 %v8832_v36, %v1440_v56  ;;  %v7089_v60 = vpop.f32.mrb[35].mxu0 }
 0xdb2   :  { %v1463_v61 = vpack.c.bf16 %v1445_v59, %v1445_v59 }
 0xdb4   :  { %7107 = vmatmul.mubr.bf16.vlgmr.msra.gmra.mrb[32].mxu1 %v1463_v61 }
 0xdb5   :  { %7131 = vmatpush3.bf16.msra.mxu1 %v8894_v3  ;;  %7146 = vmatprep.mubr.msk.bf16.mxu1 %vm8392_vm0, %v8832_v36  ;;  %v8139_v3 = vld [vmem:[%s10615_s21 + $0x38] sm:$0xff]  }
 0xdb6   :  { %7132 = vmatprep.subr.bf16.mxu1 %v8832_v36 }
 0xdb9   :  { %7133 = vmatpush3.bf16.msra.mxu1 %v8903_v5  ;;  %v6013_v5 = vld [vmem:[%s10596_s16] ss:$0 sm:$0xff] }
 0xdba   :  { %7134 = vmatprep.subr.bf16.mxu1 %v8832_v36 }
 0xdbd   :  { %7135 = vmatpush3.bf16.msra.mxu1 %v8910_v7 }
 0xdbe   :  { %7136 = vmatprep.subr.bf16.mxu1 %v8832_v36 }
 0xdc1   :  { %7137 = vmatpush3.bf16.msra.mxu1 %v8917_v9  ;;  %v1558_v9 = vld [vmem:[%s10617_s1 + $0x10] sm:$0xff] }
 0xdc2   :  { %7138 = vmatprep.subr.bf16.mxu1 %v8832_v36 }
 0xdc5   :  { %7139 = vmatpush3.bf16.msra.mxu1 %v8957_v34 }
 0xdc6   :  { %7140 = vmatprep.subr.bf16.mxu1 %v8832_v36 }
 0xdc9   :  { %7141 = vmatpush3.bf16.msra.mxu1 %v8964_v35 }
 0xdca   :  { %7142 = vmatprep.subr.bf16.mxu1 %v8832_v36 }
 0xdcd   :  { %7143 = vmatpush3.bf16.msra.mxu1 %v8971_v0 }
 0xdce   :  { %7144 = vmatprep.subr.bf16.mxu1 %v8832_v36 }
 0xdd1   :  { %7145 = vmatpush3.bf16.msra.mxu1 %v8139_v3 }
 0xdd2   :  { %7170 = vmatprep.subr.bf16.mxu1 %v8832_v36 }
 0xe87   :  { %v1552_v7 = vpop.f32.mrb[32].mxu1 }
 0xe88   :  { %v1553_v34 = vadd.f32 %v6013_v5, %v1552_v7  ;;  %v7108_v35 = vpop.f32.mrb[33].mxu1  ;;  %v8063_v7 = vld [vmem:[#allocation13] sm:$0xff]  }
 0xe89   :  { %v1555_v0 = vpop.f32.mrb[34].mxu1  ;;  %v8065_v35 = vld [vmem:[#allocation13 + $0x10] sm:$0xff]  }
 0xe8a   :  { %v1559_v62 = vadd.f32 %v1558_v9, %v1553_v34  ;;  %v7109_v63 = vpop.f32.mrb[35].mxu1  ;;  %v8064_v9 = vld [vmem:[#allocation13 + $0x8] sm:$0xff]   ;;  %v8066_v0 = vld [vmem:[#allocation13 + $0x18] sm:$0xff]  }
 0xe8b   :  { %v9241_v34 = vld [vmem:[#allocation2 + $0x30] sm:$0xff]  ;;  %v1677_v63 = vpop.xlane.xlu0 %1676 }
 0xe8c   :  { %v1560_v1 = vmax.f32 %v1559_v62, 0.0  ;;  %v1701_v62 = vpop.xlane.xlu1 %1700 }
 0xe8e   :  { %v1563_v11 = vpack.c.bf16 %v1560_v1, %v1560_v1 }
 0xe90   :  { %7127 = vmatmul.mubr.bf16.vlgmr.msra.gmra.mrb[36].mxu0 %v1563_v11  ;;  %v1715_v11 = vpop.xlane.xlu1 %1714 }
 0xe91   :  { %7151 = vmatpush3.bf16.msra.mxu0 %v8047_v2  ;;  %7166 = vmatprep.mubr.msk.bf16.mxu0 %vm8392_vm0, %v8832_v36  ;;  %v8069_v2 = vld [vmem:[#allocation13 + $0x30] sm:$0xff]  }
 0xe92   :  { %7152 = vmatprep.subr.bf16.mxu0 %v8832_v36 }
 0xe95   :  { %7153 = vmatpush3.bf16.msra.mxu0 %v8048_v13  ;;  %v1683_v13 = vpop.xlane.xlu0 %1682 }
 0xe96   :  { %7154 = vmatprep.subr.bf16.mxu0 %v8832_v36 }
 0xe99   :  { %7155 = vmatpush3.bf16.msra.mxu0 %v8049_v18  ;;  %v8070_v18 = vld [vmem:[#allocation13 + $0x38] sm:$0xff]  }
 0xe9a   :  { %7156 = vmatprep.subr.bf16.mxu0 %v8832_v36 }
 0xe9d   :  { %7157 = vmatpush3.bf16.msra.mxu0 %v8050_v12  ;;  %v1720_v12 = vpop.xlane.xlu1 %1719 }
 0xe9e   :  { %7158 = vmatprep.subr.bf16.mxu0 %v8832_v36 }
 0xea1   :  { %7159 = vmatpush3.bf16.msra.mxu0 %v8051_v19  ;;  %v1689_v19 = vpop.xlane.xlu0 %1688 }
 0xea2   :  { %7160 = vmatprep.subr.bf16.mxu0 %v8832_v36 }
 0xea5   :  { %7161 = vmatpush3.bf16.msra.mxu0 %v8052_v14  ;;  %v1725_v14 = vpop.xlane.xlu1 %1724 }
 0xea6   :  { %7162 = vmatprep.subr.bf16.mxu0 %v8832_v36 }
 0xea9   :  { %7163 = vmatpush3.bf16.msra.mxu0 %v8053_v15  ;;  %v1695_v15 = vpop.xlane.xlu0 %1694 }
 0xeaa   :  { %7164 = vmatprep.subr.bf16.mxu0 %v8832_v36 }
 0xead   :  { %7165 = vmatpush3.bf16.msra.mxu0 %v8054_v20  ;;  %v1730_v20 = vpop.xlane.xlu1 %1729 }
 0xeae   :  { %7190 = vmatprep.subr.bf16.mxu0 %v8832_v36 }
 0xeb0   :  { %7167 = vmatmul.mubr.bf16.vlgmr.msra.gmra.mrb[40].mxu0 %v1855_v21  ;;  %v1671_v21 = vpop.xlane.xlu0 %1670 }
 0xeb1   :  { %7206 = vmatprep.mubr.msk.bf16.mxu0 %vm8392_vm0, %v8832_v36  ;;  %7191 = vmatpush3.bf16.msra.mxu0 %v9125_v22 }
 0xeb2   :  { %7192 = vmatprep.subr.bf16.mxu0 %v8832_v36 }
 0xeb5   :  { %7193 = vmatpush3.bf16.msra.mxu0 %v9132_v23 }
 0xeb6   :  { %7194 = vmatprep.subr.bf16.mxu0 %v8832_v36 }
 0xeb9   :  { %7195 = vmatpush3.bf16.msra.mxu0 %v9139_v55 }
 0xeba   :  { %7196 = vmatprep.subr.bf16.mxu0 %v8832_v36 }
 0xebd   :  { %7197 = vmatpush3.bf16.msra.mxu0 %v9146_v24 }
 0xebe   :  { %7198 = vmatprep.subr.bf16.mxu0 %v8832_v36 }
 0xec1   :  { %7199 = vmatpush3.bf16.msra.mxu0 %v9153_v25 }
 0xec2   :  { %7200 = vmatprep.subr.bf16.mxu0 %v8832_v36 }
 0xec5   :  { %7201 = vmatpush3.bf16.msra.mxu0 %v9160_v26 }
 0xec6   :  { %7202 = vmatprep.subr.bf16.mxu0 %v8832_v36 }
 0xec9   :  { %7203 = vmatpush3.bf16.msra.mxu0 %v9167_v27 }
 0xeca   :  { %7204 = vmatprep.subr.bf16.mxu0 %v8832_v36 }
 0xecd   :  { %7205 = vmatpush3.bf16.msra.mxu0 %v9174_v28 }
 0xece   :  { %7230 = vmatprep.subr.bf16.mxu0 %v8832_v36 }
 0xf63   :  { %v1598_v29 = vpop.f32.mrb[36].mxu0 }
 0xf64   :  { %v1604_v30 = vsub.f32 %v1560_v1, %v1598_v29  ;;  %v7128_v31 = vpop.f32.mrb[37].mxu0  ;;  %v8068_v1 = vld [vmem:[#allocation13 + $0x28] sm:$0xff]   ;;  %v1735_v29 = vpop.xlane.xlu0 %1734 }
 0xf65   :  { %v1601_v32 = vpop.f32.mrb[38].mxu0 }
 0xf66   :  { %v1605_v33 = vmul.f32 %v1604_v30, %v1604_v30  ;;  %v7129_v16 = vpop.f32.mrb[39].mxu0 }
 0xf68   :  { %v1606_v37 = vpack.c.bf16 %v1605_v33, %v1605_v33  ;;  %v9254_v33 = vand.u32 127, %v120_v48 }
 0xf6a   :  { %7147 = vmatmul.mubr.bf16.vlgmr.msra.gmra.mrb[36].mxu1 %v1606_v37  ;;  %vm1781_vm2 = vcmp.eq.s32.totalorder %v9254_v33, 0  ;;  %vm3402_vm8 = vcmp.eq.s32.totalorder %v9254_v33, 1 }
 0xf6b   :  { %7171 = vmatpush3.bf16.msra.mxu1 %v9125_v22  ;;  %7186 = vmatprep.mubr.msk.bf16.mxu1 %vm8392_vm0, %v8832_v36 }
 0xf6c   :  { %7172 = vmatprep.subr.bf16.mxu1 %v8832_v36 }
 0xf6f   :  { %7173 = vmatpush3.bf16.msra.mxu1 %v9132_v23 }
 0xf70   :  { %7174 = vmatprep.subr.bf16.mxu1 %v8832_v36 }
 0xf73   :  { %7175 = vmatpush3.bf16.msra.mxu1 %v9139_v55 }
 0xf74   :  { %7176 = vmatprep.subr.bf16.mxu1 %v8832_v36 }
 0xf77   :  { %7177 = vmatpush3.bf16.msra.mxu1 %v9146_v24 }
 0xf78   :  { %7178 = vmatprep.subr.bf16.mxu1 %v8832_v36 }
 0xf7b   :  { %7179 = vmatpush3.bf16.msra.mxu1 %v9153_v25 }
 0xf7c   :  { %7180 = vmatprep.subr.bf16.mxu1 %v8832_v36 }
 0xf7f   :  { %7181 = vmatpush3.bf16.msra.mxu1 %v9160_v26 }
 0xf80   :  { %7182 = vmatprep.subr.bf16.mxu1 %v8832_v36 }
 0xf83   :  { %v1944_v39 = vpop.f32.mrb[40].mxu0  ;;  %7183 = vmatpush3.bf16.msra.mxu1 %v9167_v27 }
 0xf84   :  { %v1945_v40 = vadd.f32 %v6024_v38, %v1944_v39  ;;  %v7168_v41 = vpop.f32.mrb[41].mxu0  ;;  %7184 = vmatprep.subr.bf16.mxu1 %v8832_v36  ;;  %v1716_v38 = vadd.f32 %v1715_v11, %v1677_v63 }
 0xf85   :  { %v1947_v4 = vpop.f32.mrb[42].mxu0  ;;  %v1782_v41 = vld [vmem:[#allocation5] sm:$0xff] }
 0xf86   :  { %v7169_v6 = vpop.f32.mrb[43].mxu0  ;;  %v1952_v8 = vpack.c.bf16 %v1945_v40, %v1945_v40 }
 0xf87   :  { %7185 = vmatpush3.bf16.msra.mxu1 %v9174_v28  ;;  %v1726_v6 = vadd.f32 %v1725_v14, %v1689_v19 }
 0xf88   :  { %7210 = vmatprep.subr.bf16.mxu1 %v8832_v36 }
 0xf8a   :  { %7187 = vmatmul.mubr.bf16.vlgmr.msra.gmra.mrb[40].mxu1 %v1952_v8 }
 0xf8b   :  { %7226 = vmatprep.mubr.msk.bf16.mxu1 %vm8392_vm0, %v8832_v36  ;;  %7211 = vmatpush3.bf16.msra.mxu1 %v8063_v7 }
 0xf8c   :  { %7212 = vmatprep.subr.bf16.mxu1 %v8832_v36 }
 0xf8f   :  { %7213 = vmatpush3.bf16.msra.mxu1 %v8064_v9 }
 0xf90   :  { %7214 = vmatprep.subr.bf16.mxu1 %v9241_v34 }
 0xf93   :  { %7215 = vmatpush3.bf16.msra.mxu1 %v8065_v35 }
 0xf94   :  { %7216 = vmatprep.subr.bf16.mxu1 %v9241_v34 }
 0xf97   :  { %7217 = vmatpush3.bf16.msra.mxu1 %v8066_v0 }
 0xf98   :  { %7218 = vmatprep.subr.bf16.mxu1 %v9241_v34 }
0x103d   :  { %v1641_v42 = vpop.f32.mrb[36].mxu1 }
0x103e   :  { %v1642_v10 = vadd.f32 1e-05, %v1641_v42  ;;  %v7148_v43 = vpop.f32.mrb[37].mxu1 }
0x103f   :  { %v1644_v44 = vpop.f32.mrb[38].mxu1  ;;  %v1731_v43 = vadd.f32 %v1730_v20, %v1695_v15 }
0x1040   :  { %8115 = vrsqrt.f32 %v1642_v10  ;;  %v7149_v45 = vpop.f32.mrb[39].mxu1  ;;  %v1736_v10 = vadd.f32 %v1735_v29, %v1701_v62 }
0x104a   :  { %v8116_v17 = vpop.eup %8115 }
0x104b   :  { %v1648_v47 = vmul.f32 %v8116_v17, %v1604_v30  ;;  %v1710_v30 = vpop.xlane.xlu1 %1709 }
0x104c   :  { %v1711_v39 = vadd.f32 %v1710_v30, %v1671_v21  ;;  %v6041_v21 = vld [vmem:[%s10587_s7] ss:$0 sm:$0xff] }
0x104d   :  { %v1655_v50 = vmul.f32 %v6022_v46, %v1648_v47  ;;  %v6042_v30 = vld [vmem:[%s10588_s8] ss:$0 sm:$0xff] }
0x104f   :  { %v1662_v51 = vadd.f32 %v6023_v49, %v1655_v50  ;;  %v1788_v50 = vld [vmem:[#allocation5 + $0x8] sm:$0xff] }
0x1051   :  { %1663 = vst [vmem:[#allocation2 + $0x10] sm:$0xff] %v1662_v51  ;;  %v1739_v53 = vsub.f32 %v1662_v51, %v8832_v36  ;;  %1818 = vst [vmem:[#allocation4 + $0x10] sm:$0xff] %v1662_v51  ;;  %v1794_v51 = vld [vmem:[#allocation5 + $0x10] sm:$0xff] }
0x1053   :  { %v1747_v54 = vmul.f32 %v8832_v36, %v1739_v53  ;;  %1740 = vst [vmem:[#allocation3 + $0x10] sm:$0xff] %v1739_v53  ;;  %v1742_v56 = vmul.f32 %v1739_v53, %v1739_v53 }
0x1055   :  { %1748 = vadd.xlane.f32.xlu1 %v1747_v54  ;;  %1753 = vadd.xlane.f32.xlu0 %v1747_v54 }
0x1059   :  { %1758 = vadd.xlane.f32.xlu1 %v1747_v54  ;;  %1763 = vadd.xlane.f32.xlu0 %v1747_v54 }
0x105d   :  { %v2035_v57 = vpop.f32.mrb[40].mxu1  ;;  %1768 = vadd.xlane.f32.xlu1 %v1747_v54  ;;  %1743 = vadd.xlane.f32.xlu0 %v1742_v56  ;;  %v1799_v56 = vld [vmem:[#allocation5 + $0x18] sm:$0xff] }
0x105e   :  { %v9221_v58 = vsub.f32 %v1945_v40, %v2035_v57  ;;  %v7188_v59 = vpop.f32.mrb[41].mxu1  ;;  %v1721_v40 = vadd.f32 %v1720_v12, %v1683_v13  ;;  %v1804_v57 = vld [vmem:[#allocation5 + $0x20] sm:$0xff] }
0x105f   :  { %v2038_v60 = vpop.f32.mrb[42].mxu1  ;;  %v1809_v59 = vld [vmem:[#allocation5 + $0x28] sm:$0xff] }
0x1060   :  { %v2042_v61 = vmul.f32 %v9221_v58, %v9221_v58  ;;  %v7189_v3 = vpop.f32.mrb[43].mxu1 }
0x1062   :  { %v2043_v5 = vpack.c.bf16 %v2042_v61, %v2042_v61 }
0x1064   :  { %7207 = vmatmul.mubr.bf16.vlgmr.msra.gmra.mrb[44].mxu0 %v2043_v5 }
0x1065   :  { %7231 = vmatpush3.bf16.msra.mxu0 %v9125_v22  ;;  %7246 = vmatprep.mubr.msk.bf16.mxu0 %vm8392_vm0, %v8832_v36 }
0x1066   :  { %7232 = vmatprep.subr.bf16.mxu0 %v8832_v36 }
0x1069   :  { %7233 = vmatpush3.bf16.msra.mxu0 %v9132_v23 }
0x106a   :  { %7234 = vmatprep.subr.bf16.mxu0 %v8832_v36 }
0x106d   :  { %7235 = vmatpush3.bf16.msra.mxu0 %v9139_v55 }
0x106e   :  { %7236 = vmatprep.subr.bf16.mxu0 %v8832_v36 }
0x1071   :  { %7237 = vmatpush3.bf16.msra.mxu0 %v9146_v24 }
0x1072   :  { %7238 = vmatprep.subr.bf16.mxu0 %v8832_v36 }
0x1075   :  { %7239 = vmatpush3.bf16.msra.mxu0 %v9153_v25 }
0x1076   :  { %7240 = vmatprep.subr.bf16.mxu0 %v8832_v36 }
0x1079   :  { %7241 = vmatpush3.bf16.msra.mxu0 %v9160_v26 }
0x107a   :  { %7242 = vmatprep.subr.bf16.mxu0 %v8832_v36  ;;  %v8067_v36 = vld [vmem:[#allocation13 + $0x20] sm:$0xff]  }
0x107b   :  { %7219 = vmatpush3.bf16.msra.mxu1 %v8067_v36 }
0x107c   :  { %7220 = vmatprep.subr.bf16.mxu1 %v9241_v34 }
0x107d   :  { %7243 = vmatpush3.bf16.msra.mxu0 %v9167_v27 }
0x107e   :  { %7244 = vmatprep.subr.bf16.mxu0 %v9241_v34 }
0x107f   :  { %7221 = vmatpush3.bf16.msra.mxu1 %v8068_v1 }
0x1080   :  { %7222 = vmatprep.subr.bf16.mxu1 %v9241_v34 }
0x1081   :  { %7245 = vmatpush3.bf16.msra.mxu0 %v9174_v28 }
0x1082   :  { %7270 = vmatprep.subr.bf16.mxu0 %v9241_v34 }
0x1083   :  { %7223 = vmatpush3.bf16.msra.mxu1 %v8069_v2 }
0x1084   :  { %7224 = vmatprep.subr.bf16.mxu1 %v9241_v34 }
0x1087   :  { %7225 = vmatpush3.bf16.msra.mxu1 %v8070_v18 }
0x1088   :  { %7250 = vmatprep.subr.bf16.mxu1 %v9241_v34 }
0x10e2   :  { %v1749_v31 = vpop.xlane.xlu1 %1748  ;;  %v1754_v32 = vpop.xlane.xlu0 %1753 }
0x10e3   :  { %v1750_v8 = vadd.f32 %v1749_v31, %v1716_v38  ;;  %v1755_v44 = vadd.f32 %v1754_v32, %v1721_v40  ;;  %v1837_v38 = vld [vmem:[%s10617_s1] sm:$0xff] }
0x10e5   :  { %v1789_v5 = vsel %vm1781_vm2, %v1750_v8, %v1788_v50  ;;  %v1795_v35 = vsel %vm1781_vm2, %v1755_v44, %v1794_v51 }
0x10e6   :  { %v1759_v16 = vpop.xlane.xlu1 %1758  ;;  %v1764_v37 = vpop.xlane.xlu0 %1763 }
0x10e7   :  { %v1760_v48 = vadd.f32 %v1759_v16, %v1726_v6  ;;  %v1765_v47 = vadd.f32 %v1764_v37, %v1731_v43 }
0x10e9   :  { %v1800_v0 = vsel %vm1781_vm2, %v1760_v48, %v1799_v56  ;;  %v1805_v36 = vsel %vm1781_vm2, %v1765_v47, %v1804_v57  ;;  %v6052_v56 = vld [vmem:[%s10589_s9] ss:$0 sm:$0xff] }
0x10ea   :  { %v1744_v4 = vpop.xlane.xlu0 %1743  ;;  %v1769_v45 = vpop.xlane.xlu1 %1768 }
0x10eb   :  { %v1745_v42 = vadd.f32 %v1744_v4, %v1711_v39  ;;  %v1770_v53 = vadd.f32 %v1769_v45, %v1736_v10 }
0x10ed   :  { %v1772_v17 = vsel %vm1771_vm3, %v1745_v42, %v1750_v8  ;;  %v1783_v46 = vsel %vm1781_vm2, %v1745_v42, %v1782_v41  ;;  %v1810_v62 = vsel %vm1781_vm2, %v1770_v53, %v1809_v59  ;;  %v6053_v59 = vld [vmem:[%s10590_s10] ss:$0 sm:$0xff] }
0x10ee   :  { %v1774_v49 = vsel %vm1773_vm4, %v1772_v17, %v1755_v44  ;;  %v1784_v61 = vmul.f32 0.0, %v1783_v46 }
0x10ef   :  { %v1776_v54 = vsel %vm1775_vm5, %v1774_v49, %v1760_v48 }
0x10f0   :  { %v1778_v60 = vsel %vm1777_vm6, %v1776_v54, %v1765_v47 }
0x10f1   :  { %v1780_v3 = vsel %vm1779_vm7, %v1778_v60, %v1770_v53 }
0x10f2   :  { %v1785_v7 = vadd.f32 %v1784_v61, %v1780_v3  ;;  %v1790_v9 = vmul.f32 0.0, %v1780_v3  ;;  %v8141_v3 = vld [vmem:[#allocation2] sm:$0xff] }
0x10f4   :  { %1786 = vst.msk [vmem:[#allocation5] sm:$0xff] %vm158_vm1, %v1785_v7  ;;  %v1791_v63 = vadd.f32 %v1790_v9, %v1789_v5  ;;  %v1796_v1 = vadd.f32 %v1795_v35, %v1790_v9  ;;  %v1801_v2 = vadd.f32 %v1800_v0, %v1790_v9  ;;  %v1806_v11 = vadd.f32 %v1805_v36, %v1790_v9  ;;  %v8072_v0 = vld [vmem:[#allocation11 + $0x48] sm:$0xff]   ;;  %v8073_v36 = vld [vmem:[#allocation11 + $0x50] sm:$0xff]  }
0x10f5   :  { %v1811_v13 = vadd.f32 %v1810_v62, %v1790_v9  ;;  %v8071_v9 = vld [vmem:[#allocation11 + $0x40] sm:$0xff]   ;;  %v8074_v62 = vld [vmem:[#allocation11 + $0x58] sm:$0xff]  }
0x10f6   :  { %1792 = vst.msk [vmem:[#allocation5 + $0x8] sm:$0xff] %vm158_vm1, %v1791_v63  ;;  %1797 = vst.msk [vmem:[#allocation5 + $0x10] sm:$0xff] %vm158_vm1, %v1796_v1  ;;  %v8075_v63 = vld [vmem:[#allocation11 + $0x60] sm:$0xff]   ;;  %v8076_v1 = vld [vmem:[#allocation11 + $0x68] sm:$0xff]  }
0x10f7   :  { %1802 = vst.msk [vmem:[#allocation5 + $0x18] sm:$0xff] %vm158_vm1, %v1801_v2  ;;  %1807 = vst.msk [vmem:[#allocation5 + $0x20] sm:$0xff] %vm158_vm1, %v1806_v11  ;;  %v8077_v2 = vld [vmem:[#allocation11 + $0x70] sm:$0xff]   ;;  %v8078_v11 = vld [vmem:[#allocation11 + $0x78] sm:$0xff]  }
0x10f8   :  { %1812 = vst.msk [vmem:[#allocation5 + $0x28] sm:$0xff] %vm158_vm1, %v1811_v13  ;;  %v9362_v13 = vld [vmem:[#allocation4 + $0x8] sm:$0xff] }
0x1137   :  { %v2078_v18 = vpop.f32.mrb[44].mxu0 }
0x1138   :  { %v2079_v12 = vadd.f32 1e-05, %v2078_v18  ;;  %v7208_v19 = vpop.f32.mrb[45].mxu0  ;;  %v2442_v18 = vpack.c.bf16 %v9362_v13, %v9362_v13 }
0x1139   :  { %v2081_v14 = vpop.f32.mrb[46].mxu0 }
0x113a   :  { %8117 = vrsqrt.f32 %v2079_v12  ;;  %v7209_v15 = vpop.f32.mrb[47].mxu0 }
0x1144   :  { %v8118_v20 = vpop.eup %8117 }
0x1145   :  { %v2085_v29 = vmul.f32 %v8118_v20, %v9221_v58  ;;  %v6043_v58 = vld [vmem:[%s10586_s6] ss:$0 sm:$0xff] }
0x1147   :  { %v2092_v31 = vmul.f32 %v6041_v21, %v2085_v29 }
0x1149   :  { %v2099_v32 = vadd.f32 %v6042_v30, %v2092_v31  ;;  %v6057_v30 = vld [vmem:[%s10616_s5 + $0x1] ss:$0 sm:$0xff] }
0x114b   :  { %v2100_v16 = vmax.f32 %v2099_v32, 0.0 }
0x114d   :  { %v2118_v37 = vpack.c.bf16 %v2100_v16, %v2100_v16 }
0x114f   :  { %7227 = vmatmul.mubr.bf16.vlgmr.msra.gmra.mrb[44].mxu1 %v2118_v37 }
0x1150   :  { %7251 = vmatpush3.bf16.msra.mxu1 %v9125_v22  ;;  %7266 = vmatprep.mubr.msk.bf16.mxu1 %vm8392_vm0, %v9241_v34 }
0x1151   :  { %7252 = vmatprep.subr.bf16.mxu1 %v9241_v34 }
0x1154   :  { %7253 = vmatpush3.bf16.msra.mxu1 %v9132_v23 }
0x1155   :  { %7254 = vmatprep.subr.bf16.mxu1 %v9241_v34 }
0x1158   :  { %7255 = vmatpush3.bf16.msra.mxu1 %v9139_v55 }
0x1159   :  { %7256 = vmatprep.subr.bf16.mxu1 %v9241_v34 }
0x115c   :  { %7257 = vmatpush3.bf16.msra.mxu1 %v9146_v24 }
0x115d   :  { %7258 = vmatprep.subr.bf16.mxu1 %v9241_v34 }
0x1160   :  { %7259 = vmatpush3.bf16.msra.mxu1 %v9153_v25 }
0x1161   :  { %7260 = vmatprep.subr.bf16.mxu1 %v9241_v34 }
0x1164   :  { %7261 = vmatpush3.bf16.msra.mxu1 %v9160_v26 }
0x1165   :  { %7262 = vmatprep.subr.bf16.mxu1 %v9241_v34 }
0x1168   :  { %7263 = vmatpush3.bf16.msra.mxu1 %v9167_v27 }
0x1169   :  { %7264 = vmatprep.subr.bf16.mxu1 %v9241_v34 }
0x116c   :  { %7265 = vmatpush3.bf16.msra.mxu1 %v9174_v28 }
0x116d   :  { %7290 = vmatprep.subr.bf16.mxu1 %v9241_v34 }
0x1222   :  { %v2207_v39 = vpop.f32.mrb[44].mxu1 }
0x1223   :  { %v2208_v40 = vadd.f32 %v6043_v58, %v2207_v39  ;;  %v7228_v41 = vpop.f32.mrb[45].mxu1 }
0x1224   :  { %v2210_v4 = vpop.f32.mrb[46].mxu1 }
0x1225   :  { %v2213_v6 = vadd.f32 %v2208_v40, %v1837_v38  ;;  %v7229_v8 = vpop.f32.mrb[47].mxu1 }
0x1227   :  { %v2216_v42 = vpack.c.bf16 %v2213_v6, %v2213_v6 }
0x1229   :  { %7247 = vmatmul.mubr.bf16.vlgmr.msra.gmra.mrb[48].mxu0 %v2216_v42  ;;  %v6054_v42 = vld [vmem:[%s10591_s11] ss:$0 sm:$0xff] }
0x122a   :  { %7271 = vmatpush3.bf16.msra.mxu0 %v9125_v22  ;;  %7286 = vmatprep.mubr.msk.bf16.mxu0 %vm8392_vm0, %v9241_v34 }
0x122b   :  { %7272 = vmatprep.subr.bf16.mxu0 %v9241_v34 }
0x122e   :  { %7273 = vmatpush3.bf16.msra.mxu0 %v9132_v23 }
0x122f   :  { %7274 = vmatprep.subr.bf16.mxu0 %v9241_v34 }
0x1232   :  { %7275 = vmatpush3.bf16.msra.mxu0 %v9139_v55 }
0x1233   :  { %7276 = vmatprep.subr.bf16.mxu0 %v9241_v34 }
0x1236   :  { %7277 = vmatpush3.bf16.msra.mxu0 %v9146_v24 }
0x1237   :  { %7278 = vmatprep.subr.bf16.mxu0 %v9241_v34 }
0x123a   :  { %7279 = vmatpush3.bf16.msra.mxu0 %v9153_v25 }
0x123b   :  { %7280 = vmatprep.subr.bf16.mxu0 %v9241_v34 }
0x123e   :  { %7281 = vmatpush3.bf16.msra.mxu0 %v9160_v26 }
0x123f   :  { %7282 = vmatprep.subr.bf16.mxu0 %v9241_v34 }
0x1242   :  { %7283 = vmatpush3.bf16.msra.mxu0 %v9167_v27 }
0x1243   :  { %7284 = vmatprep.subr.bf16.mxu0 %v9241_v34 }
0x1246   :  { %7285 = vmatpush3.bf16.msra.mxu0 %v9174_v28 }
0x1247   :  { %7310 = vmatprep.subr.bf16.mxu0 %v9241_v34 }
0x12fc   :  { %v2251_v10 = vpop.f32.mrb[48].mxu0 }
0x12fd   :  { %v2257_v43 = vsub.f32 %v2213_v6, %v2251_v10  ;;  %v7248_v44 = vpop.f32.mrb[49].mxu0 }
0x12fe   :  { %v2254_v45 = vpop.f32.mrb[50].mxu0 }
0x12ff   :  { %v2258_v48 = vmul.f32 %v2257_v43, %v2257_v43  ;;  %v7249_v17 = vpop.f32.mrb[51].mxu0 }
0x1301   :  { %v2259_v46 = vpack.c.bf16 %v2258_v48, %v2258_v48  ;;  %v3296_v48 = vld [vmem:[#allocation4] sm:$0xff] }
0x1303   :  { %7267 = vmatmul.mubr.bf16.vlgmr.msra.gmra.mrb[48].mxu1 %v2259_v46  ;;  %v3299_v46 = vld [vmem:[#allocation3] sm:$0xff] }
0x1304   :  { %7291 = vmatpush3.bf16.msra.mxu1 %v9125_v22  ;;  %7306 = vmatprep.mubr.msk.bf16.mxu1 %vm8392_vm0, %v9241_v34 }
0x1305   :  { %7292 = vmatprep.subr.bf16.mxu1 %v9241_v34 }
0x1308   :  { %7293 = vmatpush3.bf16.msra.mxu1 %v9132_v23 }
0x1309   :  { %7294 = vmatprep.subr.bf16.mxu1 %v9241_v34 }
0x130c   :  { %7295 = vmatpush3.bf16.msra.mxu1 %v9139_v55 }
0x130d   :  { %7296 = vmatprep.subr.bf16.mxu1 %v9241_v34 }
0x1310   :  { %7297 = vmatpush3.bf16.msra.mxu1 %v9146_v24 }
0x1311   :  { %7298 = vmatprep.subr.bf16.mxu1 %v9241_v34 }
0x1314   :  { %7299 = vmatpush3.bf16.msra.mxu1 %v9153_v25 }
0x1315   :  { %7300 = vmatprep.subr.bf16.mxu1 %v9241_v34 }
0x1318   :  { %7301 = vmatpush3.bf16.msra.mxu1 %v9160_v26 }
0x1319   :  { %7302 = vmatprep.subr.bf16.mxu1 %v9241_v34 }
0x131c   :  { %7303 = vmatpush3.bf16.msra.mxu1 %v9167_v27 }
0x131d   :  { %7304 = vmatprep.subr.bf16.mxu1 %v9241_v34 }
0x1320   :  { %7305 = vmatpush3.bf16.msra.mxu1 %v9174_v28 }
0x1321   :  { %7330 = vmatprep.subr.bf16.mxu1 %v9241_v34 }
0x13d6   :  { %v2294_v47 = vpop.f32.mrb[48].mxu1 }
0x13d7   :  { %v2295_v49 = vadd.f32 1e-05, %v2294_v47  ;;  %v7268_v50 = vpop.f32.mrb[49].mxu1 }
0x13d8   :  { %v2297_v51 = vpop.f32.mrb[50].mxu1 }
0x13d9   :  { %8119 = vrsqrt.f32 %v2295_v49  ;;  %v7269_v53 = vpop.f32.mrb[51].mxu1 }
0x13e3   :  { %v8120_v54 = vpop.eup %8119 }
0x13e4   :  { %v2301_v57 = vmul.f32 %v8120_v54, %v2257_v43  ;;  %v6055_v43 = vld [vmem:[%s10592_s12] ss:$0 sm:$0xff] }
0x13e6   :  { %v2308_v60 = vmul.f32 %v6052_v56, %v2301_v57 }
0x13e8   :  { %v2315_v61 = vadd.f32 %v6053_v59, %v2308_v60 }
0x13ea   :  { %v2316_v5 = vadd.f32 %v8141_v3, %v2315_v61  ;;  %v8079_v61 = vld [vmem:[#allocation13 + $0x40] sm:$0xff]   ;;  %v8080_v3 = vld [vmem:[#allocation13 + $0x48] sm:$0xff]  }
0x13ec   :  { %v2317_v7 = vmax.f32 %v2316_v5, 0.0  ;;  %v8081_v5 = vld [vmem:[#allocation13 + $0x50] sm:$0xff]  }
0x13ee   :  { %v2320_v35 = vpack.c.bf16 %v2317_v7, %v2317_v7 }
0x13f0   :  { %7287 = vmatmul.mubr.bf16.vlgmr.msra.gmra.mrb[52].mxu0 %v2320_v35  ;;  %v8084_v35 = vld [vmem:[#allocation13 + $0x68] sm:$0xff]  }
0x13f1   :  { %7311 = vmatpush3.bf16.msra.mxu0 %v8071_v9  ;;  %7326 = vmatprep.mubr.msk.bf16.mxu0 %vm8392_vm0, %v9241_v34  ;;  %v8083_v9 = vld [vmem:[#allocation13 + $0x60] sm:$0xff]  }
0x13f2   :  { %7312 = vmatprep.subr.bf16.mxu0 %v9241_v34 }
0x13f5   :  { %7313 = vmatpush3.bf16.msra.mxu0 %v8072_v0  ;;  %v8085_v0 = vld [vmem:[#allocation13 + $0x70] sm:$0xff]  }
0x13f6   :  { %7314 = vmatprep.subr.bf16.mxu0 %v9241_v34 }
0x13f9   :  { %7315 = vmatpush3.bf16.msra.mxu0 %v8073_v36  ;;  %v8086_v36 = vld [vmem:[#allocation13 + $0x78] sm:$0xff]  }
0x13fa   :  { %7316 = vmatprep.subr.bf16.mxu0 %v9241_v34 }
0x13fd   :  { %7317 = vmatpush3.bf16.msra.mxu0 %v8074_v62 }
0x13fe   :  { %7318 = vmatprep.subr.bf16.mxu0 %v9241_v34 }
0x1401   :  { %7319 = vmatpush3.bf16.msra.mxu0 %v8075_v63 }
0x1402   :  { %7320 = vmatprep.subr.bf16.mxu0 %v9241_v34 }
0x1405   :  { %7321 = vmatpush3.bf16.msra.mxu0 %v8076_v1 }
0x1406   :  { %7322 = vmatprep.subr.bf16.mxu0 %v9241_v34 }
0x1409   :  { %7323 = vmatpush3.bf16.msra.mxu0 %v8077_v2 }
0x140a   :  { %7324 = vmatprep.subr.bf16.mxu0 %v9241_v34 }
0x140d   :  { %7325 = vmatpush3.bf16.msra.mxu0 %v8078_v11 }
0x140e   :  { %7350 = vmatprep.subr.bf16.mxu0 %v9241_v34 }
0x1410   :  { %7327 = vmatmul.mubr.bf16.vlgmr.msra.gmra.mrb[56].mxu0 %v2442_v18 }
0x1411   :  { %7351 = vmatpush3.bf16.msra.mxu0 %v9125_v22  ;;  %7366 = vmatprep.mubr.msk.bf16.mxu0 %vm8392_vm0, %v9241_v34 }
0x1412   :  { %7352 = vmatprep.subr.bf16.mxu0 %v9241_v34 }
0x1415   :  { %7353 = vmatpush3.bf16.msra.mxu0 %v9132_v23 }
0x1416   :  { %7354 = vmatprep.subr.bf16.mxu0 %v9241_v34 }
0x1419   :  { %7355 = vmatpush3.bf16.msra.mxu0 %v9139_v55 }
0x141a   :  { %7356 = vmatprep.subr.bf16.mxu0 %v9241_v34 }
0x141d   :  { %7357 = vmatpush3.bf16.msra.mxu0 %v9146_v24 }
0x141e   :  { %7358 = vmatprep.subr.bf16.mxu0 %v9241_v34 }
0x1421   :  { %7359 = vmatpush3.bf16.msra.mxu0 %v9153_v25 }
0x1422   :  { %7360 = vmatprep.subr.bf16.mxu0 %v9241_v34 }
0x1425   :  { %7361 = vmatpush3.bf16.msra.mxu0 %v9160_v26 }
0x1426   :  { %7362 = vmatprep.subr.bf16.mxu0 %v9241_v34 }
0x1429   :  { %7363 = vmatpush3.bf16.msra.mxu0 %v9167_v27 }
0x142a   :  { %7364 = vmatprep.subr.bf16.mxu0 %v9241_v34 }
0x142d   :  { %7365 = vmatpush3.bf16.msra.mxu0 %v9174_v28 }
0x142e   :  { %7390 = vmatprep.subr.bf16.mxu0 %v9241_v34 }
0x14c3   :  { %v2355_v12 = vpop.f32.mrb[52].mxu0 }
0x14c4   :  { %v2361_v19 = vsub.f32 %v2317_v7, %v2355_v12  ;;  %v7288_v14 = vpop.f32.mrb[53].mxu0  ;;  %v8082_v7 = vld [vmem:[#allocation13 + $0x58] sm:$0xff]   ;;  %v6068_v12 = vld [vmem:[%s10587_s7 + $0x1] ss:$0 sm:$0xff] }
0x14c5   :  { %v2358_v15 = vpop.f32.mrb[54].mxu0  ;;  %v6069_v14 = vld [vmem:[%s10588_s8 + $0x1] ss:$0 sm:$0xff] }
0x14c6   :  { %v2362_v20 = vmul.f32 %v2361_v19, %v2361_v19  ;;  %v7289_v21 = vpop.f32.mrb[55].mxu0 }
0x14c8   :  { %v2363_v29 = vpack.c.bf16 %v2362_v20, %v2362_v20 }
0x14ca   :  { %7307 = vmatmul.mubr.bf16.vlgmr.msra.gmra.mrb[52].mxu1 %v2363_v29 }
0x14cb   :  { %7331 = vmatpush3.bf16.msra.mxu1 %v9125_v22  ;;  %7346 = vmatprep.mubr.msk.bf16.mxu1 %vm8392_vm0, %v9241_v34 }
0x14cc   :  { %7332 = vmatprep.subr.bf16.mxu1 %v9241_v34 }
0x14cf   :  { %7333 = vmatpush3.bf16.msra.mxu1 %v9132_v23 }
0x14d0   :  { %7334 = vmatprep.subr.bf16.mxu1 %v9241_v34 }
0x14d3   :  { %7335 = vmatpush3.bf16.msra.mxu1 %v9139_v55 }
0x14d4   :  { %7336 = vmatprep.subr.bf16.mxu1 %v9241_v34 }
0x14d7   :  { %7337 = vmatpush3.bf16.msra.mxu1 %v9146_v24 }
0x14d8   :  { %7338 = vmatprep.subr.bf16.mxu1 %v9241_v34 }
0x14db   :  { %7339 = vmatpush3.bf16.msra.mxu1 %v9153_v25 }
0x14dc   :  { %7340 = vmatprep.subr.bf16.mxu1 %v9241_v34 }
0x14df   :  { %7341 = vmatpush3.bf16.msra.mxu1 %v9160_v26 }
0x14e0   :  { %7342 = vmatprep.subr.bf16.mxu1 %v9241_v34 }
0x14e3   :  { %v2531_v31 = vpop.f32.mrb[56].mxu0  ;;  %7343 = vmatpush3.bf16.msra.mxu1 %v9167_v27 }
0x14e4   :  { %v2532_v32 = vadd.f32 %v6057_v30, %v2531_v31  ;;  %v7328_v16 = vpop.f32.mrb[57].mxu0  ;;  %7344 = vmatprep.subr.bf16.mxu1 %v9241_v34  ;;  %v6071_v30 = vld [vmem:[%s10586_s6 + $0x1] ss:$0 sm:$0xff]  ;;  %v2424_v31 = vld [vmem:[%s10617_s1 + $0x8] sm:$0xff] }
0x14e5   :  { %v2534_v37 = vpop.f32.mrb[58].mxu0 }
0x14e6   :  { %v7329_v58 = vpop.f32.mrb[59].mxu0  ;;  %v2539_v38 = vpack.c.bf16 %v2532_v32, %v2532_v32 }
0x14e7   :  { %7345 = vmatpush3.bf16.msra.mxu1 %v9174_v28 }
0x14e8   :  { %7370 = vmatprep.subr.bf16.mxu1 %v9241_v34 }
0x14ea   :  { %7347 = vmatmul.mubr.bf16.vlgmr.msra.gmra.mrb[56].mxu1 %v2539_v38 }
0x14eb   :  { %7386 = vmatprep.mubr.msk.bf16.mxu1 %vm8392_vm0, %v9241_v34  ;;  %7371 = vmatpush3.bf16.msra.mxu1 %v8079_v61  ;;  %v8087_v61 = vld [vmem:[#allocation15] sm:$0xff]  }
0x14ec   :  { %7372 = vmatprep.subr.bf16.mxu1 %v9241_v34 }
0x14ef   :  { %7373 = vmatpush3.bf16.msra.mxu1 %v8080_v3  ;;  %v8088_v3 = vld [vmem:[#allocation15 + $0x8] sm:$0xff]  }
0x14f0   :  { %7374 = vmatprep.subr.bf16.mxu1 %v9241_v34 }
0x14f3   :  { %7375 = vmatpush3.bf16.msra.mxu1 %v8081_v5 }
0x14f4   :  { %7376 = vmatprep.subr.bf16.mxu1 %v9241_v34 }
0x14f7   :  { %7377 = vmatpush3.bf16.msra.mxu1 %v8082_v7 }
0x14f8   :  { %7378 = vmatprep.subr.bf16.mxu1 %v9241_v34 }
0x14fb   :  { %7379 = vmatpush3.bf16.msra.mxu1 %v8083_v9 }
0x14fc   :  { %7380 = vmatprep.subr.bf16.mxu1 %v9241_v34 }
0x14ff   :  { %7381 = vmatpush3.bf16.msra.mxu1 %v8084_v35 }
0x1500   :  { %7382 = vmatprep.subr.bf16.mxu1 %v9241_v34 }
0x1503   :  { %7383 = vmatpush3.bf16.msra.mxu1 %v8085_v0 }
0x1504   :  { %7384 = vmatprep.subr.bf16.mxu1 %v9241_v34 }
0x1507   :  { %7385 = vmatpush3.bf16.msra.mxu1 %v8086_v36 }
0x1508   :  { %7410 = vmatprep.subr.bf16.mxu1 %v9241_v34 }
0x159d   :  { %v2398_v39 = vpop.f32.mrb[52].mxu1 }
0x159e   :  { %v2399_v40 = vadd.f32 1e-05, %v2398_v39  ;;  %v7308_v41 = vpop.f32.mrb[53].mxu1 }
0x159f   :  { %v2401_v4 = vpop.f32.mrb[54].mxu1 }
0x15a0   :  { %8121 = vrsqrt.f32 %v2399_v40  ;;  %v7309_v6 = vpop.f32.mrb[55].mxu1 }
0x15a1   :  { %v9519_v6 = vld [vmem:[%s10615_s21 + $0x18] sm:$0xff]  }
0x15aa   :  { %v8122_v8 = vpop.eup %8121 }
0x15ab   :  { %v2405_v10 = vmul.f32 %v8122_v8, %v2361_v19  ;;  %v9526_v8 = vld [vmem:[%s10615_s21 + $0x20] sm:$0xff]  }
0x15ad   :  { %v2412_v44 = vmul.f32 %v6054_v42, %v2405_v10  ;;  %v9533_v42 = vld [vmem:[%s10615_s21 + $0x28] sm:$0xff]   ;;  %v9540_v10 = vld [vmem:[%s10615_s21 + $0x30] sm:$0xff]  }
0x15af   :  { %v9414_v45 = vadd.f32 %v6055_v43, %v2412_v44  ;;  %v9547_v43 = vld [vmem:[%s10615_s21 + $0x38] sm:$0xff]  }
0x15b1   :  { %2421 = vst [vmem:[#allocation2 + $0x18] sm:$0xff] %v9414_v45  ;;  %v3297_v17 = vsub.f32 %v9414_v45, %v3296_v48 }
0x15b3   :  { %v3325_v47 = vmul.f32 %v9241_v34, %v3297_v17  ;;  %3298 = vst [vmem:[#allocation3 + $0x18] sm:$0xff] %v3297_v17  ;;  %v3300_v49 = vmul.f32 %v3299_v46, %v3297_v17  ;;  %v3305_v50 = vmul.f32 %v3297_v17, %v3297_v17 }
0x15b5   :  { %3326 = vadd.xlane.f32.xlu1 %v3325_v47  ;;  %3301 = vadd.xlane.f32.xlu0 %v3300_v49 }
0x15b9   :  { %3311 = vadd.xlane.f32.xlu0 %v3325_v47  ;;  %3306 = vadd.xlane.f32.xlu1 %v3305_v50  ;;  %v6082_v50 = vld [vmem:[%s10589_s9 + $0x1] ss:$0 sm:$0xff] }
0x15bd   :  { %v2574_v51 = vpop.f32.mrb[56].mxu1  ;;  %3316 = vadd.xlane.f32.xlu0 %v3325_v47 }
0x15be   :  { %v2580_v53 = vsub.f32 %v2532_v32, %v2574_v51  ;;  %v7348_v54 = vpop.f32.mrb[57].mxu1 }
0x15bf   :  { %v2577_v56 = vpop.f32.mrb[58].mxu1 }
0x15c0   :  { %v2581_v57 = vmul.f32 %v2580_v53, %v2580_v53  ;;  %v7349_v59 = vpop.f32.mrb[59].mxu1 }
0x15c1   :  { %3321 = vadd.xlane.f32.xlu0 %v3325_v47 }
0x15c2   :  { %v2582_v60 = vpack.c.bf16 %v2581_v57, %v2581_v57 }
0x15c4   :  { %7367 = vmatmul.mubr.bf16.vlgmr.msra.gmra.mrb[60].mxu0 %v2582_v60 }
0x15c5   :  { %7391 = vmatpush3.bf16.msra.mxu0 %v9125_v22  ;;  %7406 = vmatprep.mubr.msk.bf16.mxu0 %vm8392_vm0, %v9241_v34 }
0x15c6   :  { %7392 = vmatprep.subr.bf16.mxu0 %v9241_v34 }
0x15c9   :  { %7393 = vmatpush3.bf16.msra.mxu0 %v9132_v23 }
0x15ca   :  { %7394 = vmatprep.subr.bf16.mxu0 %v9241_v34 }
0x15cd   :  { %7395 = vmatpush3.bf16.msra.mxu0 %v9139_v55 }
0x15ce   :  { %7396 = vmatprep.subr.bf16.mxu0 %v9241_v34 }
0x15d1   :  { %7397 = vmatpush3.bf16.msra.mxu0 %v9146_v24 }
0x15d2   :  { %7398 = vmatprep.subr.bf16.mxu0 %v9241_v34 }
0x15d5   :  { %7399 = vmatpush3.bf16.msra.mxu0 %v9153_v25 }
0x15d6   :  { %7400 = vmatprep.subr.bf16.mxu0 %v9241_v34 }
0x15d9   :  { %7401 = vmatpush3.bf16.msra.mxu0 %v9160_v26 }
0x15da   :  { %7402 = vmatprep.subr.bf16.mxu0 %v9241_v34 }
0x15dd   :  { %7403 = vmatpush3.bf16.msra.mxu0 %v9167_v27 }
0x15de   :  { %7404 = vmatprep.subr.bf16.mxu0 %v9241_v34 }
0x15e1   :  { %7405 = vmatpush3.bf16.msra.mxu0 %v9174_v28 }
0x15e2   :  { %7430 = vmatprep.subr.bf16.mxu0 %v9241_v34 }
0x1697   :  { %v2617_v62 = vpop.f32.mrb[60].mxu0 }
0x1698   :  { %v2618_v63 = vadd.f32 1e-05, %v2617_v62  ;;  %v7368_v1 = vpop.f32.mrb[61].mxu0 }
0x1699   :  { %v2620_v2 = vpop.f32.mrb[62].mxu0  ;;  %v8090_v1 = vld [vmem:[#allocation15 + $0x18] sm:$0xff]  }
0x169a   :  { %8123 = vrsqrt.f32 %v2618_v63  ;;  %v7369_v11 = vpop.f32.mrb[63].mxu0  ;;  %v8089_v63 = vld [vmem:[#allocation15 + $0x10] sm:$0xff]   ;;  %v8091_v2 = vld [vmem:[#allocation15 + $0x20] sm:$0xff]  }
0x169b   :  { %v8092_v11 = vld [vmem:[#allocation15 + $0x28] sm:$0xff]  }
0x16a4   :  { %v8124_v18 = vpop.eup %8123 }
0x16a5   :  { %v2624_v19 = vmul.f32 %v8124_v18, %v2580_v53  ;;  %v6083_v53 = vld [vmem:[%s10590_s10 + $0x1] ss:$0 sm:$0xff] }
0x16a6   :  { %v8093_v18 = vld [vmem:[#allocation15 + $0x30] sm:$0xff]  }
0x16a7   :  { %v2631_v15 = vmul.f32 %v6068_v12, %v2624_v19  ;;  %v8094_v12 = vld [vmem:[#allocation15 + $0x38] sm:$0xff]  }
0x16a9   :  { %v2638_v20 = vadd.f32 %v6069_v14, %v2631_v15 }
0x16ab   :  { %v2639_v21 = vmax.f32 %v2638_v20, 0.0 }
0x16ad   :  { %v2657_v29 = vpack.c.bf16 %v2639_v21, %v2639_v21 }
0x16af   :  { %7387 = vmatmul.mubr.bf16.vlgmr.msra.gmra.mrb[60].mxu1 %v2657_v29 }
0x16b0   :  { %7411 = vmatpush3.bf16.msra.mxu1 %v9125_v22  ;;  %7426 = vmatprep.mubr.msk.bf16.mxu1 %vm8392_vm0, %v9241_v34 }
0x16b1   :  { %7412 = vmatprep.subr.bf16.mxu1 %v9241_v34 }
0x16b4   :  { %7413 = vmatpush3.bf16.msra.mxu1 %v9132_v23 }
0x16b5   :  { %7414 = vmatprep.subr.bf16.mxu1 %v9241_v34 }
0x16b8   :  { %7415 = vmatpush3.bf16.msra.mxu1 %v9139_v55 }
0x16b9   :  { %7416 = vmatprep.subr.bf16.mxu1 %v9241_v34 }
0x16bc   :  { %7417 = vmatpush3.bf16.msra.mxu1 %v9146_v24 }
0x16bd   :  { %7418 = vmatprep.subr.bf16.mxu1 %v9241_v34 }
0x16c0   :  { %7419 = vmatpush3.bf16.msra.mxu1 %v9153_v25 }
0x16c1   :  { %7420 = vmatprep.subr.bf16.mxu1 %v9241_v34 }
0x16c4   :  { %7421 = vmatpush3.bf16.msra.mxu1 %v9160_v26 }
0x16c5   :  { %7422 = vmatprep.subr.bf16.mxu1 %v9241_v34 }
0x16c8   :  { %7423 = vmatpush3.bf16.msra.mxu1 %v9167_v27 }
0x16c9   :  { %7424 = vmatprep.subr.bf16.mxu1 %v9241_v34 }
0x16cc   :  { %7425 = vmatpush3.bf16.msra.mxu1 %v9174_v28 }
0x16cd   :  { %7450 = vmatprep.subr.bf16.mxu1 %v9241_v34 }
0x1782   :  { %v2746_v32 = vpop.f32.mrb[60].mxu1 }
0x1783   :  { %v2747_v16 = vadd.f32 %v6071_v30, %v2746_v32  ;;  %v7388_v37 = vpop.f32.mrb[61].mxu1  ;;  %v6086_v30 = vld [vmem:[%s10591_s11 + $0x1] ss:$0 sm:$0xff] }
0x1784   :  { %v2749_v58 = vpop.f32.mrb[62].mxu1  ;;  %v6087_v32 = vld [vmem:[%s10592_s12 + $0x1] ss:$0 sm:$0xff]  ;;  %v9576_v37 = vld [vmem:[#allocation4 + $0x10] sm:$0xff] }
0x1785   :  { %v2752_v38 = vadd.f32 %v2747_v16, %v2424_v31  ;;  %v7389_v39 = vpop.f32.mrb[63].mxu1 }
0x1786   :  { %v2961_v39 = vmul.f32 2.0, %v9576_v37 }
0x1787   :  { %v2755_v40 = vpack.c.bf16 %v2752_v38, %v2752_v38 }
0x1789   :  { %7407 = vmatmul.mubr.bf16.vlgmr.msra.gmra.mrb[64].mxu0 %v2755_v40 }
0x178a   :  { %7431 = vmatpush3.bf16.msra.mxu0 %v9125_v22  ;;  %7446 = vmatprep.mubr.msk.bf16.mxu0 %vm8392_vm0, %v9241_v34 }
0x178b   :  { %7432 = vmatprep.subr.bf16.mxu0 %v9241_v34 }
0x178e   :  { %7433 = vmatpush3.bf16.msra.mxu0 %v9132_v23 }
0x178f   :  { %7434 = vmatprep.subr.bf16.mxu0 %v9241_v34 }
0x1792   :  { %7435 = vmatpush3.bf16.msra.mxu0 %v9139_v55 }
0x1793   :  { %7436 = vmatprep.subr.bf16.mxu0 %v9241_v34 }
0x1796   :  { %7437 = vmatpush3.bf16.msra.mxu0 %v9146_v24 }
0x1797   :  { %7438 = vmatprep.subr.bf16.mxu0 %v9241_v34 }
0x179a   :  { %7439 = vmatpush3.bf16.msra.mxu0 %v9153_v25 }
0x179b   :  { %7440 = vmatprep.subr.bf16.mxu0 %v9241_v34 }
0x179e   :  { %7441 = vmatpush3.bf16.msra.mxu0 %v9160_v26  ;;  %v9496_v26 = vld [vmem:[%s10615_s21] sm:$0xff]  }
0x179f   :  { %7442 = vmatprep.subr.bf16.mxu0 %v9241_v34 }
0x17a2   :  { %7443 = vmatpush3.bf16.msra.mxu0 %v9167_v27  ;;  %v9505_v27 = vld [vmem:[%s10615_s21 + $0x8] sm:$0xff]  }
0x17a3   :  { %7444 = vmatprep.subr.bf16.mxu0 %v9241_v34 }
0x17a6   :  { %7445 = vmatpush3.bf16.msra.mxu0 %v9174_v28  ;;  %v9512_v28 = vld [vmem:[%s10615_s21 + $0x10] sm:$0xff]  }
0x17a7   :  { %7470 = vmatprep.subr.bf16.mxu0 %v9241_v34 }
0x185c   :  { %v2790_v22 = vpop.f32.mrb[64].mxu0 }
0x185d   :  { %v2796_v23 = vsub.f32 %v2752_v38, %v2790_v22  ;;  %v7408_v55 = vpop.f32.mrb[65].mxu0  ;;  %v3333_v22 = vld [vmem:[#allocation3 + $0x8] sm:$0xff] }
0x185e   :  { %v2793_v24 = vpop.f32.mrb[66].mxu0 }
0x185f   :  { %v2797_v41 = vmul.f32 %v2796_v23, %v2796_v23  ;;  %v7409_v25 = vpop.f32.mrb[67].mxu0 }
0x1860   :  { %v8096_v25 = vld [vmem:[#allocation16 + $0x8] sm:$0xff]  }
0x1861   :  { %v2798_v4 = vpack.c.bf16 %v2797_v41, %v2797_v41 }
0x1863   :  { %7427 = vmatmul.mubr.bf16.vlgmr.msra.gmra.mrb[64].mxu1 %v2798_v4  ;;  %v8097_v4 = vld [vmem:[#allocation16 + $0x10] sm:$0xff]  }
0x1864   :  { %7451 = vmatpush3.bf16.msra.mxu1 %v9496_v26  ;;  %7466 = vmatprep.mubr.msk.bf16.mxu1 %vm8392_vm0, %v9241_v34 }
0x1865   :  { %7452 = vmatprep.subr.bf16.mxu1 %v9241_v34 }
0x1868   :  { %7453 = vmatpush3.bf16.msra.mxu1 %v9505_v27 }
0x1869   :  { %7454 = vmatprep.subr.bf16.mxu1 %v9241_v34 }
0x186c   :  { %7455 = vmatpush3.bf16.msra.mxu1 %v9512_v28 }
0x186d   :  { %7456 = vmatprep.subr.bf16.mxu1 %v9241_v34 }
0x1870   :  { %7457 = vmatpush3.bf16.msra.mxu1 %v9519_v6 }
0x1871   :  { %7458 = vmatprep.subr.bf16.mxu1 %v9241_v34 }
0x1874   :  { %7459 = vmatpush3.bf16.msra.mxu1 %v9526_v8 }
0x1875   :  { %7460 = vmatprep.subr.bf16.mxu1 %v9241_v34 }
0x1878   :  { %7461 = vmatpush3.bf16.msra.mxu1 %v9533_v42 }
0x1879   :  { %7462 = vmatprep.subr.bf16.mxu1 %v9241_v34 }
0x187c   :  { %7463 = vmatpush3.bf16.msra.mxu1 %v9540_v10 }
0x187d   :  { %7464 = vmatprep.subr.bf16.mxu1 %v9241_v34 }
0x1880   :  { %7465 = vmatpush3.bf16.msra.mxu1 %v9547_v43 }
0x1881   :  { %7490 = vmatprep.subr.bf16.mxu1 %v9241_v34 }
0x1936   :  { %v2833_v44 = vpop.f32.mrb[64].mxu1 }
0x1937   :  { %v2834_v48 = vadd.f32 1e-05, %v2833_v44  ;;  %v7428_v17 = vpop.f32.mrb[65].mxu1  ;;  %v8098_v44 = vld [vmem:[#allocation16 + $0x18] sm:$0xff]  }
0x1938   :  { %v2836_v46 = vpop.f32.mrb[66].mxu1  ;;  %v8100_v17 = vld [vmem:[#allocation16 + $0x28] sm:$0xff]  }
0x1939   :  { %8125 = vrsqrt.f32 %v2834_v48  ;;  %v7429_v47 = vpop.f32.mrb[67].mxu1  ;;  %v8099_v48 = vld [vmem:[#allocation16 + $0x20] sm:$0xff]   ;;  %v8101_v46 = vld [vmem:[#allocation16 + $0x30] sm:$0xff]  }
0x193a   :  { %v8102_v47 = vld [vmem:[#allocation16 + $0x38] sm:$0xff]  }
0x1943   :  { %v8126_v49 = vpop.eup %8125 }
0x1944   :  { %v2840_v51 = vmul.f32 %v8126_v49, %v2796_v23  ;;  %v2980_v49 = vld [vmem:[%s10594_s14] sm:$0x1] }
0x1946   :  { %v2847_v54 = vmul.f32 %v6082_v50, %v2840_v51  ;;  %v2981_v50 = vmul.f32 2.0, %v2980_v49 }
0x1948   :  { %v2854_v56 = vadd.f32 %v6083_v53, %v2847_v54  ;;  %v2986_v51 = vrot.slane %v2981_v50, %v9078_v52 }
0x194a   :  { %v2855_v57 = vadd.f32 %v2854_v56, %v9362_v13 }
0x194c   :  { %v2856_v59 = vmax.f32 %v2855_v57, 0.0 }
0x194e   :  { %v2859_v60 = vpack.c.bf16 %v2856_v59, %v2856_v59 }
0x1950   :  { %7447 = vmatmul.mubr.bf16.vlgmr.msra.gmra.mrb[68].mxu0 %v2859_v60 }
0x1951   :  { %7486 = vmatprep.mubr.msk.bf16.mxu0 %vm8392_vm0, %v9241_v34  ;;  %7471 = vmatpush3.bf16.msra.mxu0 %v8087_v61 }
0x1952   :  { %7472 = vmatprep.subr.bf16.mxu0 %v9241_v34 }
0x1955   :  { %7473 = vmatpush3.bf16.msra.mxu0 %v8088_v3 }
0x1956   :  { %7474 = vmatprep.subr.bf16.mxu0 %v9241_v34 }
0x1959   :  { %7475 = vmatpush3.bf16.msra.mxu0 %v8089_v63 }
0x195a   :  { %7476 = vmatprep.subr.bf16.mxu0 %v9241_v34 }
0x195d   :  { %7477 = vmatpush3.bf16.msra.mxu0 %v8090_v1 }
0x195e   :  { %7478 = vmatprep.subr.bf16.mxu0 %v9241_v34 }
0x1961   :  { %7479 = vmatpush3.bf16.msra.mxu0 %v8091_v2 }
0x1962   :  { %7480 = vmatprep.subr.bf16.mxu0 %v9241_v34 }
0x1965   :  { %7481 = vmatpush3.bf16.msra.mxu0 %v8092_v11 }
0x1966   :  { %7482 = vmatprep.subr.bf16.mxu0 %v9241_v34 }
0x1969   :  { %7483 = vmatpush3.bf16.msra.mxu0 %v8093_v18 }
0x196a   :  { %7484 = vmatprep.subr.bf16.mxu0 %v9241_v34 }
0x196d   :  { %7485 = vmatpush3.bf16.msra.mxu0 %v8094_v12 }
0x196e   :  { %7510 = vmatprep.subr.bf16.mxu0 %v9241_v34 }
0x1a23   :  { %v2894_v5 = vpop.f32.mrb[68].mxu0 }
0x1a24   :  { %v2900_v7 = vsub.f32 %v2856_v59, %v2894_v5  ;;  %v7448_v9 = vpop.f32.mrb[69].mxu0 }
0x1a25   :  { %v2897_v35 = vpop.f32.mrb[70].mxu0 }
0x1a26   :  { %v2901_v0 = vmul.f32 %v2900_v7, %v2900_v7  ;;  %v7449_v36 = vpop.f32.mrb[71].mxu0 }
0x1a28   :  { %v2902_v62 = vpack.c.bf16 %v2901_v0, %v2901_v0 }
0x1a2a   :  { %7467 = vmatmul.mubr.bf16.vlgmr.msra.gmra.mrb[68].mxu1 %v2902_v62 }
0x1a2b   :  { %7506 = vmatprep.mubr.msk.bf16.mxu1 %vm8392_vm0, %v9241_v34 }
0x1afd   :  { %v2937_v19 = vpop.f32.mrb[68].mxu1 }
0x1afe   :  { %v2938_v14 = vadd.f32 1e-05, %v2937_v19  ;;  %v7468_v15 = vpop.f32.mrb[69].mxu1 }
0x1aff   :  { %v2940_v20 = vpop.f32.mrb[70].mxu1 }
0x1b00   :  { %8127 = vrsqrt.f32 %v2938_v14  ;;  %v7469_v21 = vpop.f32.mrb[71].mxu1  ;;  %v6105_v14 = vld [vmem:[%s10597_s17] ss:$0 sm:$0xff] }
0x1b01   :  { %v6106_v20 = vld [vmem:[%s10598_s18] ss:$0 sm:$0xff] }
0x1b0a   :  { %v8128_v29 = vpop.eup %8127 }
0x1b0b   :  { %v2944_v31 = vmul.f32 %v8128_v29, %v2900_v7 }
0x1b0d   :  { %v2951_v16 = vmul.f32 %v6086_v30, %v2944_v31  ;;  %v3367_v31 = vld [vmem:[#allocation3 + $0x10] sm:$0xff] }
0x1b0f   :  { %v2958_v58 = vadd.f32 %v6087_v32, %v2951_v16 }
0x1b11   :  { %2959 = vst [vmem:[#allocation2 + $0x20] sm:$0xff] %v2958_v58  ;;  %v2960_v38 = vadd.f32 %v2958_v58, %v9414_v45  ;;  %v3331_v40 = vsub.f32 %v2958_v58, %v9362_v13  ;;  %v9589_v45 = vld [vmem:[#allocation2 + $0x30] sm:$0xff] }
0x1b13   :  { %v2962_v23 = vadd.f32 %v2961_v39, %v2960_v38  ;;  %v3344_v55 = vmul.f32 %v9241_v34, %v3331_v40  ;;  %3332 = vst [vmem:[#allocation3 + $0x20] sm:$0xff] %v3331_v40  ;;  %v3334_v24 = vmul.f32 %v3333_v22, %v3331_v40  ;;  %v3339_v13 = vmul.f32 %v3331_v40, %v3331_v40  ;;  %v3327_v38 = vpop.xlane.xlu1 %3326  ;;  %v3302_v39 = vpop.xlane.xlu0 %3301 }
0x1b15   :  { %v2963_v41 = vpack.c.bf16 %v2962_v23, %v2962_v23  ;;  %3345 = vadd.xlane.f32.xlu1 %v3344_v55  ;;  %3335 = vadd.xlane.f32.xlu0 %v3334_v24 }
0x1b17   :  { %7487 = vmatmul.mubr.bf16.vlgmr.msra.gmra.mrb[72].mxu0 %v2963_v41  ;;  %v3312_v40 = vpop.xlane.xlu0 %3311  ;;  %v3307_v22 = vpop.xlane.xlu1 %3306 }
0x1b18   :  { %7511 = vmatpush3.bf16.msra.mxu0 %v9496_v26  ;;  %7526 = vmatprep.mubr.msk.bf16.mxu0 %vm8392_vm0, %v9241_v34 }
0x1b19   :  { %3350 = vadd.xlane.f32.xlu1 %v3344_v55  ;;  %3360 = vadd.xlane.f32.xlu0 %v3344_v55 }
0x1b1a   :  { %7512 = vmatprep.subr.bf16.mxu0 %v9241_v34 }
0x1b1c   :  { %7513 = vmatpush3.bf16.msra.mxu0 %v9505_v27 }
0x1b1d   :  { %3355 = vadd.xlane.f32.xlu1 %v3344_v55  ;;  %7514 = vmatprep.subr.bf16.mxu0 %v9241_v34  ;;  %v8095_v34 = vld [vmem:[#allocation16] sm:$0xff]   ;;  %v3317_v55 = vpop.xlane.xlu0 %3316 }
0x1b1e   :  { %7491 = vmatpush3.bf16.msra.mxu1 %v8095_v34 }
0x1b1f   :  { %7492 = vmatprep.subr.bf16.mxu1 %v9589_v45 }
0x1b20   :  { %7515 = vmatpush3.bf16.msra.mxu0 %v9512_v28 }
0x1b21   :  { %3340 = vadd.xlane.f32.xlu1 %v3339_v13  ;;  %7516 = vmatprep.subr.bf16.mxu0 %v9589_v45 }
0x1b22   :  { %7493 = vmatpush3.bf16.msra.mxu1 %v8096_v25 }
0x1b23   :  { %7494 = vmatprep.subr.bf16.mxu1 %v9589_v45 }
0x1b24   :  { %7517 = vmatpush3.bf16.msra.mxu0 %v9519_v6 }
0x1b25   :  { %7518 = vmatprep.subr.bf16.mxu0 %v9589_v45 }
0x1b26   :  { %7495 = vmatpush3.bf16.msra.mxu1 %v8097_v4 }
0x1b27   :  { %7496 = vmatprep.subr.bf16.mxu1 %v9589_v45 }
0x1b28   :  { %7519 = vmatpush3.bf16.msra.mxu0 %v9526_v8 }
0x1b29   :  { %7520 = vmatprep.subr.bf16.mxu0 %v9589_v45 }
0x1b2a   :  { %7497 = vmatpush3.bf16.msra.mxu1 %v8098_v44 }
0x1b2b   :  { %7498 = vmatprep.subr.bf16.mxu1 %v9589_v45 }
0x1b2c   :  { %7521 = vmatpush3.bf16.msra.mxu0 %v9533_v42 }
0x1b2d   :  { %7522 = vmatprep.subr.bf16.mxu0 %v9589_v45 }
0x1b2e   :  { %7499 = vmatpush3.bf16.msra.mxu1 %v8099_v48 }
0x1b2f   :  { %7500 = vmatprep.subr.bf16.mxu1 %v9589_v45 }
0x1b30   :  { %7523 = vmatpush3.bf16.msra.mxu0 %v9540_v10 }
0x1b31   :  { %7524 = vmatprep.subr.bf16.mxu0 %v9589_v45 }
0x1b32   :  { %7501 = vmatpush3.bf16.msra.mxu1 %v8100_v17 }
0x1b33   :  { %7502 = vmatprep.subr.bf16.mxu1 %v9589_v45 }
0x1b34   :  { %7525 = vmatpush3.bf16.msra.mxu0 %v9547_v43 }
0x1b36   :  { %7503 = vmatpush3.bf16.msra.mxu1 %v8101_v46 }
0x1b37   :  { %7504 = vmatprep.subr.bf16.mxu1 %v9589_v45 }
0x1b3a   :  { %7505 = vmatpush3.bf16.msra.mxu1 %v8102_v47 }
0x1b3b   :  { %7530 = vmatprep.subr.bf16.mxu1 %v9589_v45 }
0x1ba2   :  { %v3346_v23 = vpop.xlane.xlu1 %3345 }
0x1ba3   :  { %v3347_v44 = vadd.f32 %v3346_v23, %v3312_v40 }
0x1ba6   :  { %v3351_v24 = vpop.xlane.xlu1 %3350 }
0x1ba7   :  { %v3352_v49 = vadd.f32 %v3351_v24, %v3317_v55 }
0x1baa   :  { %v3356_v13 = vpop.xlane.xlu1 %3355 }
0x1bae   :  { %v3341_v34 = vpop.xlane.xlu1 %3340 }
0x1baf   :  { %v3342_v17 = vadd.f32 %v3341_v34, %v3307_v22 }
0x1bea   :  { %v3070_v53 = vpop.f32.mrb[72].mxu0 }
0x1beb   :  { %v3071_v54 = vadd.f32 %v3070_v53, %v2986_v51  ;;  %v7488_v56 = vpop.f32.mrb[73].mxu0 }
0x1bec   :  { %v3073_v57 = vpop.f32.mrb[74].mxu0 }
0x1bed   :  { %v3076_v59 = vmul.f32 %v3071_v54, %v9576_v37  ;;  %v7489_v60 = vpop.f32.mrb[75].mxu0 }
0x1bee   :  { %v3408_v60 = vld [vmem:[#allocation5 + $0x8] sm:$0xff] }
0x1bef   :  { %v3094_v61 = vpack.c.bf16 %v3076_v59, %v3076_v59 }
0x1bf1   :  { %7507 = vmatmul.mubr.bf16.vlgmr.msra.gmra.mrb[72].mxu1 %v3094_v61 }
0x1bf2   :  { %7531 = vmatpush3.bf16.msra.mxu1 %v9496_v26  ;;  %7546 = vmatprep.mubr.msk.bf16.mxu1 %vm8392_vm0, %v9589_v45  ;;  %v6096_v26 = vld [vmem:[%s10596_s16] ss:$0 sm:$0xff] }
0x1bf3   :  { %7532 = vmatprep.subr.bf16.mxu1 %v9589_v45 }
0x1bf6   :  { %7533 = vmatpush3.bf16.msra.mxu1 %v9505_v27 }
0x1bf7   :  { %7534 = vmatprep.subr.bf16.mxu1 %v9589_v45 }
0x1bfa   :  { %7535 = vmatpush3.bf16.msra.mxu1 %v9512_v28  ;;  %v3189_v28 = vld [vmem:[%s10617_s1 + $0x10] sm:$0xff] }
0x1bfb   :  { %7536 = vmatprep.subr.bf16.mxu1 %v9589_v45 }
0x1bfe   :  { %7537 = vmatpush3.bf16.msra.mxu1 %v9519_v6 }
0x1bff   :  { %7538 = vmatprep.subr.bf16.mxu1 %v9589_v45 }
0x1c02   :  { %7539 = vmatpush3.bf16.msra.mxu1 %v9526_v8 }
0x1c03   :  { %7540 = vmatprep.subr.bf16.mxu1 %v9589_v45 }
0x1c06   :  { %7541 = vmatpush3.bf16.msra.mxu1 %v9533_v42 }
0x1c07   :  { %7542 = vmatprep.subr.bf16.mxu1 %v9589_v45 }
0x1c0a   :  { %7543 = vmatpush3.bf16.msra.mxu1 %v9540_v10 }
0x1c0b   :  { %7544 = vmatprep.subr.bf16.mxu1 %v9589_v45 }
0x1c0e   :  { %7545 = vmatpush3.bf16.msra.mxu1 %v9547_v43 }
0x1cc4   :  { %v3183_v27 = vpop.f32.mrb[72].mxu1 }
0x1cc5   :  { %v3184_v6 = vadd.f32 %v6096_v26, %v3183_v27  ;;  %v7508_v8 = vpop.f32.mrb[73].mxu1 }
0x1cc6   :  { %v3186_v42 = vpop.f32.mrb[74].mxu1 }
0x1cc7   :  { %v3190_v3 = vadd.f32 %v3189_v28, %v3184_v6  ;;  %v7509_v5 = vpop.f32.mrb[75].mxu1 }
0x1cc9   :  { %v3191_v7 = vmax.f32 %v3190_v3, 0.0 }
0x1ccb   :  { %v3194_v10 = vpack.c.bf16 %v3191_v7, %v3191_v7 }
0x1ccd   :  { %7527 = vmatmul.mubr.bf16.vlgmr.msra.gmra.mrb[76].mxu0 %v3194_v10  ;;  %v3403_v10 = vld [vmem:[#allocation5] sm:$0xff] }
0x1da0   :  { %v3229_v9 = vpop.f32.mrb[76].mxu0 }
0x1da1   :  { %v3235_v35 = vsub.f32 %v3191_v7, %v3229_v9  ;;  %v7528_v43 = vpop.f32.mrb[77].mxu0  ;;  %v3417_v7 = vld [vmem:[#allocation5 + $0x18] sm:$0xff] }
0x1da2   :  { %v3232_v0 = vpop.f32.mrb[78].mxu0  ;;  %v3413_v43 = vld [vmem:[#allocation5 + $0x10] sm:$0xff] }
0x1da3   :  { %v3236_v36 = vmul.f32 %v3235_v35, %v3235_v35  ;;  %v7529_v62 = vpop.f32.mrb[79].mxu0  ;;  %v3421_v0 = vld [vmem:[#allocation5 + $0x20] sm:$0xff] }
0x1da5   :  { %v3237_v63 = vpack.c.bf16 %v3236_v36, %v3236_v36 }
0x1da7   :  { %7547 = vmatmul.mubr.bf16.vlgmr.msra.gmra.mrb[76].mxu1 %v3237_v63  ;;  %v3425_v63 = vld [vmem:[#allocation5 + $0x28] sm:$0xff] }
0x1e7a   :  { %v3272_v1 = vpop.f32.mrb[76].mxu1 }
0x1e7b   :  { %v3273_v2 = vadd.f32 1e-05, %v3272_v1  ;;  %v7548_v11 = vpop.f32.mrb[77].mxu1 }
0x1e7c   :  { %v3275_v18 = vpop.f32.mrb[78].mxu1 }
0x1e7d   :  { %8129 = vrsqrt.f32 %v3273_v2  ;;  %v7549_v12 = vpop.f32.mrb[79].mxu1 }
0x1e87   :  { %v8130_v19 = vpop.eup %8129 }
0x1e88   :  { %v3279_v15 = vmul.f32 %v8130_v19, %v3235_v35 }
0x1e8a   :  { %v3286_v21 = vmul.f32 %v6105_v14, %v3279_v15 }
0x1e8c   :  { %v3293_v29 = vadd.f32 %v6106_v20, %v3286_v21 }
0x1e8e   :  { %3294 = vst [vmem:[#allocation2 + $0x28] sm:$0xff] %v3293_v29  ;;  %v3365_v30 = vsub.f32 %v3293_v29, %v9576_v37  ;;  %v3322_v37 = vpop.xlane.xlu0 %3321 }
0x1e8f   :  { %v3357_v56 = vadd.f32 %v3356_v13, %v3322_v37 }
0x1e90   :  { %v3383_v32 = vmul.f32 %v9589_v45, %v3365_v30  ;;  %3366 = vst [vmem:[#allocation3 + $0x28] sm:$0xff] %v3365_v30  ;;  %v3368_v16 = vmul.f32 %v3367_v31, %v3365_v30  ;;  %v3373_v58 = vmul.f32 %v3365_v30, %v3365_v30 }
0x1e92   :  { %3384 = vadd.xlane.f32.xlu1 %v3383_v32  ;;  %3369 = vadd.xlane.f32.xlu0 %v3368_v16  ;;  %v3336_v41 = vpop.xlane.xlu0 %3335 }
0x1e93   :  { %v3337_v48 = vadd.f32 %v3336_v41, %v3302_v39 }
0x1e96   :  { %3379 = vadd.xlane.f32.xlu0 %v3383_v32  ;;  %3374 = vadd.xlane.f32.xlu1 %v3373_v58  ;;  %v3361_v45 = vpop.xlane.xlu0 %3360 }
0x1e97   :  { %v3362_v54 = vadd.f32 %v3361_v45, %v3327_v38 }
0x1e9a   :  { %3389 = vadd.xlane.f32.xlu0 %v3383_v32  ;;  %3394 = vadd.xlane.f32.xlu1 %v3383_v32 }
0x1f1f   :  { %v3385_v25 = vpop.xlane.xlu1 %3384  ;;  %v3370_v4 = vpop.xlane.xlu0 %3369 }
0x1f20   :  { %v3371_v50 = vadd.f32 %v3370_v4, %v3337_v48  ;;  %v3386_v57 = vadd.f32 %v3385_v25, %v3352_v49 }
0x1f22   :  { %v3418_v35 = vsel %vm3402_vm8, %v3386_v57, %v3417_v7  ;;  %v3404_v1 = vsel %vm3402_vm8, %v3371_v50, %v3403_v10 }
0x1f23   :  { %v3380_v46 = vpop.xlane.xlu0 %3379  ;;  %v3375_v47 = vpop.xlane.xlu1 %3374 }
0x1f24   :  { %v3381_v51 = vadd.f32 %v3380_v46, %v3347_v44  ;;  %v3376_v53 = vadd.f32 %v3375_v47, %v3342_v17 }
0x1f26   :  { %v3397_v59 = vsel %vm1771_vm3, %v3371_v50, %v3376_v53  ;;  %v3409_v26 = vsel %vm3402_vm8, %v3376_v53, %v3408_v60  ;;  %v3414_v2 = vsel %vm3402_vm8, %v3381_v51, %v3413_v43 }
0x1f27   :  { %v3398_v61 = vsel %vm1773_vm4, %v3397_v59, %v3381_v51  ;;  %v3390_v27 = vpop.xlane.xlu0 %3389  ;;  %v3395_v28 = vpop.xlane.xlu1 %3394  ;;  %v3410_v3 = vmul.f32 0.0, %v3409_v26 }
0x1f28   :  { %v3399_v6 = vsel %vm1775_vm5, %v3398_v61, %v3386_v57  ;;  %v3391_v8 = vadd.f32 %v3390_v27, %v3357_v56  ;;  %v3396_v42 = vadd.f32 %v3395_v28, %v3362_v54 }
0x1f2a   :  { %v3400_v5 = vsel %vm1777_vm6, %v3399_v6, %v3391_v8  ;;  %v3422_v11 = vsel %vm3402_vm8, %v3391_v8, %v3421_v0  ;;  %v3426_v18 = vsel %vm3402_vm8, %v3396_v42, %v3425_v63 }
0x1f2b   :  { %v3401_v9 = vsel %vm1779_vm7, %v3400_v5, %v3396_v42 }
0x1f2c   :  { %v3405_v36 = vmul.f32 0.0, %v3401_v9  ;;  %v3411_v62 = vadd.f32 %v3410_v3, %v3401_v9 }
0x1f2e   :  { %v3406_v12 = vadd.f32 %v3405_v36, %v3404_v1  ;;  %3412 = vst.msk [vmem:[#allocation5 + $0x8] sm:$0xff] %vm158_vm1, %v3411_v62  ;;  %v3415_v19 = vadd.f32 %v3414_v2, %v3405_v36  ;;  %v3419_v14 = vadd.f32 %v3418_v35, %v3405_v36  ;;  %v3423_v15 = vadd.f32 %v3422_v11, %v3405_v36 }
0x1f2f   :  { %v3427_v20 = vadd.f32 %v3426_v18, %v3405_v36 }
0x1f30   :  { %3407 = vst.msk [vmem:[#allocation5] sm:$0xff] %vm158_vm1, %v3406_v12  ;;  %3416 = vst.msk [vmem:[#allocation5 + $0x10] sm:$0xff] %vm158_vm1, %v3415_v19 }
0x1f31   :  { %3420 = vst.msk [vmem:[#allocation5 + $0x18] sm:$0xff] %vm158_vm1, %v3419_v14  ;;  %3424 = vst.msk [vmem:[#allocation5 + $0x20] sm:$0xff] %vm158_vm1, %v3423_v15 }
0x1f32   :  { %3428 = vst.msk [vmem:[#allocation5 + $0x28] sm:$0xff] %vm158_vm1, %v3427_v20 }
0x1f33 LB: > { %s3435_s28 = sld [smem:[#allocation10]]  ;;  %s8382_s27 = sphi %s9669_s27, %s3434_s27  }
0x1f39   : > { %p6107_p4 = scmp.ne.s32.totalorder %s3435_s28, 0 }
0x1f3a   : > { %p3440_p5 = scmp.gt.s32.totalorder (!%p6107_p4), %s8382_s27, 0  ;;  %p3453_p6 = scmp.gt.s32.totalorder (!%p6107_p4), %s8382_s27, 1  ;;  %v8395_v21 = vmov (!%p6107_p4), 0   ;;  %v8396_v29 = vmov (!%p6107_p4), 0.0   ;;  %vm3469_vm9 = vcmp.eq.s32.totalorder (!%p6107_p4), %v9254_v33, 2  ;;  %vm3483_vm10 = vcmp.eq.s32.totalorder (!%p6107_p4), %v9254_v33, 3 }
0x1f3b   : > { %3439 = sbr.rel (%p6107_p4) target bundleno = 13965 (0x368d), region = 104  ;;  %8151 = vset.pattern.permute.xlu0 (!%p6107_p4), %v8395_v21  ;;  %p3466_p7 = scmp.gt.s32.totalorder (!%p6107_p4), %s8382_s27, 2  ;;  %8152 = vset.pattern.permute.xlu1 (!%p6107_p4), %v8395_v21  ;;  %v6108_v30 = vsel (!%p6107_p4), %vm1781_vm2, 1.0, %v8396_v29  ;;  %v6109_v31 = vsel (!%p6107_p4), %vm3402_vm8, 1.0, %v8396_v29  ;;  %v6110_v32 = vsel (!%p6107_p4), %vm3469_vm9, 1.0, %v8396_v29  ;;  %v3448_v16 = vld [vmem:[#allocation5] sm:$0xff] (!%p6107_p4) }
0x1f3c   : > { %7550 = vmatprep.subr.bf16.mxu0 (!%p6107_p4), %v8396_v29  ;;  %7570 = vmatprep.subr.bf16.mxu1 (!%p6107_p4), %v8396_v29  ;;  %p3480_p8 = scmp.gt.s32.totalorder (!%p6107_p4), %s8382_s27, 3  ;;  %p3494_p9 = scmp.gt.s32.totalorder (!%p6107_p4), %s8382_s27, 4  ;;  %vm3497_vm11 = vcmp.eq.s32.totalorder (!%p6107_p4), %v9254_v33, 4  ;;  %v6111_v22 = vsel (!%p6107_p4), %vm3483_vm10, 1.0, %v8396_v29  ;;  %v3461_v55 = vld [vmem:[#allocation5 + $0x8] sm:$0xff] (!%p6107_p4)  ;;  %v3475_v41 = vld [vmem:[#allocation5 + $0x10] sm:$0xff] (!%p6107_p4) }
0x1f3d   : > { %v6112_v45 = vsel (!%p6107_p4), %vm3497_vm11, 1.0, %v8396_v29  ;;  %v3489_v4 = vld [vmem:[#allocation5 + $0x18] sm:$0xff] (!%p6107_p4)  ;;  %v3503_v51 = vld [vmem:[#allocation5 + $0x20] sm:$0xff] (!%p6107_p4)  ;;  %v8398_v27 = vmov (!%p6107_p4), 1   ;;  %p3508_p10 = scmp.gt.s32.totalorder (!%p6107_p4), %s8382_s27, 5  ;;  %vm3511_vm12 = vcmp.eq.s32.totalorder (!%p6107_p4), %v9254_v33, 5 }
0x1f3e   : > { %v6113_v9 = vsel (!%p6107_p4), %vm3511_vm12, 1.0, %v8396_v29  ;;  %v3517_v62 = vld [vmem:[#allocation5 + $0x28] sm:$0xff] (!%p6107_p4)  ;;  %vm8412_vm13 = vmmov (!%p6107_p4), 0   ;;  %p4138_p11 = scmp.lt.s32.totalorder (!%p6107_p4), %s8382_s27, 0  ;;  %vm5864_vm9 = vcmask (!%p6107_p4), 0  }
0x1f3f   : > { %7566 = vmatprep.mubr.msk.bf16.mxu0 (!%p6107_p4), %vm8412_vm13, %v8396_v29  ;;  %7586 = vmatprep.mubr.msk.bf16.mxu1 (!%p6107_p4), %vm8412_vm13, %v8396_v29 }
0x1f42   : > { %s3441_s13 = scalar_select %p3440_p5, 1, 0 }
0x1f43   : > { %s3454_s15 = scalar_select %p3453_p6, 1, 0 }
0x1f44   : > { %s9682_s30 = scvt.s32.f32 %s3441_s13 }
0x1f45   : > { %s9688_s21 = scvt.s32.f32 %s3454_s15 }
0x1f46   : > { %s3445_s0 = smul.f32 0.0001, %s9682_s30  ;;  %s3446_s2 = ssub.f32 1.0, %s9682_s30  ;;  %v9727_v46 = vstv %s9682_s30 }
0x1f47   : > { %s3458_s5 = smul.f32 0.0001, %s9688_s21  ;;  %s3459_s4 = ssub.f32 1.0, %s9688_s21  ;;  %v3465_v50 = vstv %s9688_s21 }
0x1f48   : > { %s3447_s29 = sadd.f32 %s3446_s2, %s3445_s0 }
0x1f49   : > { %s3467_s24 = scalar_select %p3466_p7, 1, 0 }
0x1f4a   : > { %v3449_v58 = vstv %s3447_s29  ;;  %s3481_s25 = scalar_select %p3480_p8, 1, 0 }
0x1f4b   : > { %v3450_v38 = vmul.f32 %v6108_v30, %v3449_v58  ;;  %s9704_s22 = scvt.s32.f32 %s3467_s24  ;;  %s3460_s20 = sadd.f32 %s3459_s4, %s3458_s5 }
0x1f4c   : > { %s9708_s1 = scvt.s32.f32 %s3481_s25  ;;  %s8397_s24 = smov 1  }
0x1f4d   : > { %v9706_v39 = vadd.f32 %v3450_v38, %v3448_v16  ;;  %s3472_s23 = smul.f32 0.0001, %s9704_s22  ;;  %s3473_s3 = ssub.f32 1.0, %s9704_s22  ;;  %v3462_v23 = vstv %s3460_s20  ;;  %v3479_v28 = vstv %s9704_s22 }
0x1f4e   : > { %s3486_s26 = smul.f32 0.0001, %s9708_s1  ;;  %s3487_s28 = ssub.f32 1.0, %s9708_s1  ;;  %v3463_v37 = vmul.f32 %v6109_v31, %v3462_v23 }
0x1f4f   : > { %v3522_v40 = vmax.f32 %v9706_v39, 1e-08  ;;  %s3474_s13 = sadd.f32 %s3473_s3, %s3472_s23  ;;  %s8399_s23 = smov 127  }
0x1f50   : > { %s3495_s15 = scalar_select %p3494_p9, 1, 0  ;;  %v3464_v25 = vadd.f32 %v3463_v37, %v3461_v55  ;;  %v8401_v55 = vmov 2  }
0x1f51   : > { %8226 = vrcp.f32 %v3522_v40  ;;  %v3476_v24 = vstv %s3474_s13  ;;  %s3488_s0 = sadd.f32 %s3487_s28, %s3486_s26  ;;  %s8400_s3 = smov 2  }
0x1f52   : > { %s9719_s2 = scvt.s32.f32 %s3495_s15  ;;  %v3477_v13 = vmul.f32 %v6110_v32, %v3476_v24  ;;  %s8402_s26 = smov 126  }
0x1f53   : > { %v3490_v34 = vstv %s3488_s0  ;;  %s3509_s30 = scalar_select %p3508_p10, 1, 0 }
0x1f54   : > { %s3500_s5 = smul.f32 0.0001, %s9719_s2  ;;  %s3501_s4 = ssub.f32 1.0, %s9719_s2  ;;  %v3478_v44 = vadd.f32 %v3477_v13, %v3475_v41  ;;  %v3491_v48 = vmul.f32 %v6111_v22, %v3490_v34 }
0x1f55   : > { %s9745_s21 = scvt.s32.f32 %s3509_s30  ;;  %s8404_s28 = smov 3  }
0x1f56   : > { %s3502_s29 = sadd.f32 %s3501_s4, %s3500_s5  ;;  %v3492_v56 = vadd.f32 %v3491_v48, %v3489_v4  ;;  %s8407_s13 = smov 4  }
0x1f57   : > { %s3514_s25 = smul.f32 0.0001, %s9745_s21  ;;  %s3515_s20 = ssub.f32 1.0, %s9745_s21 }
0x1f58   : > { %v3504_v47 = vstv %s3502_s29  ;;  %s8409_s15 = smov 124   ;;  %s8410_s0 = smov 5  }
0x1f59   : > { %v3505_v57 = vmul.f32 %v6112_v45, %v3504_v47  ;;  %s3516_s22 = sadd.f32 %s3515_s20, %s3514_s25  ;;  %s10618_s29 = sld [smem:[#allocation23_spill]] }
0x1f5a   : > { %s10619_s4 = sld [smem:[#allocation25_spill]]  ;;  %s4139_s5 = ssub.s32 0, %s8382_s27 }
0x1f5b   : > { %v8227_v17 = vpop.eup %8226  ;;  %v3506_v61 = vadd.f32 %v3505_v57, %v3503_v51  ;;  %v3518_v35 = vstv %s3516_s22 }
0x1f5c   : > { %v3525_v49 = vmul.f32 %v8227_v17, %v3464_v25  ;;  %v3535_v53 = vmul.f32 %v8227_v17, %v3478_v44  ;;  %v9735_v60 = vmul.f32 %v8227_v17, %v3492_v56  ;;  %v3519_v36 = vmul.f32 %v6113_v9, %v3518_v35 }
0x1f5d   : > { %v9738_v26 = vmul.f32 %v8227_v17, %v3506_v61 }
0x1f5e   : > { %3528 = vperm.xlu0 %8151, %v3525_v49   ;;  %v3533_v54 = vmul.f32 %v3525_v49, %v9727_v46  ;;  %v3543_v6 = vmul.f32 %v3535_v53, %v9727_v46  ;;  %v3520_v11 = vadd.f32 %v3519_v36, %v3517_v62 }
0x1f60   : > { %v9731_v59 = vsub.f32 %v3465_v50, %v3533_v54  ;;  %v3544_v8 = vsub.f32 %v3479_v28, %v3543_v6  ;;  %v9761_v14 = vmul.f32 %v8227_v17, %v3520_v11  ;;  %v8403_v28 = vmov 3  }
0x1f62   : > { %3538 = vperm.xlu0 %8151, %v3535_v53   ;;  %3587 = vrot.lane.b32.xlu1 %v9731_v59, %s8397_s24 }
0x1f66   : > { %3548 = vperm.xlu1 %8152, %v9735_v60  }
0x1f6a   : > { %3558 = vperm.xlu1 %8152, %v9738_v26  }
0x1f6e   : > { %8153 = vset.pattern.permute.xlu1 %v8398_v27 }
0x1fd4   : > { %v9756_v0 = vpop.permute.xlu1 %3587 }
0x1fdd   : > { %v3529_v42 = vpop.permute.xlu0 %3528 }
0x1fde   : > { %v3531_v3 = vmul.f32 %v3529_v42, %v9706_v39 }
0x1fe0   : > { %v9748_v5 = vsub.f32 %v3464_v25, %v3531_v3 }
0x1fe1   : > { %v3539_v10 = vpop.permute.xlu0 %3538 }
0x1fe2   : > { %v3575_v7 = vmax.f32 %v9748_v5, 1e-08  ;;  %v3541_v43 = vmul.f32 %v3539_v10, %v9706_v39 }
0x1fe4   : > { %8228 = vrcp.f32 %v3575_v7  ;;  %v3542_v63 = vsub.f32 %v3478_v44, %v3541_v43 }
0x1fe5   : > { %v3549_v18 = vpop.permute.xlu1 %3548 }
0x1fe6   : > { %v3551_v19 = vmul.f32 %v3549_v18, %v9706_v39  ;;  %v3493_v18 = vstv %s9708_s1  ;;  %s8406_s1 = smov 125  }
0x1fe8   : > { %v3552_v15 = vsub.f32 %v3492_v56, %v3551_v19 }
0x1fe9   : > { %v3559_v30 = vpop.permute.xlu1 %3558 }
0x1fea   : > { %v3561_v31 = vmul.f32 %v3559_v30, %v9706_v39 }
0x1fec   : > { %v3562_v16 = vsub.f32 %v3506_v61, %v3561_v31 }
0x1fee   : > { %v8229_v1 = vpop.eup %8228 }
0x1fef   : > { %v3592_v2 = vmul.f32 %v8229_v1, %v3542_v63  ;;  %v3606_v20 = vmul.f32 %v8229_v1, %v3552_v15  ;;  %v3620_v38 = vmul.f32 %v8229_v1, %v3562_v16  ;;  %v9781_v47 = vmul.f32 %v8229_v1, %v9706_v39 }
0x1ff1   : > { %3595 = vperm.xlu1 %8153, %v3592_v2   ;;  %v3600_v12 = vmul.f32 %v3592_v2, %v9756_v0  ;;  %v3614_v40 = vmul.f32 %v3606_v20, %v9756_v0  ;;  %v3628_v36 = vmul.f32 %v3620_v38, %v9756_v0 }
0x1ff3   : > { %3602 = vrot.lane.b32.xlu0 %v3600_v12, %s8399_s23 }
0x1ff7   : > { %3568 = vperm.xlu0 %8151, %v9761_v14  }
0x1ffb   : > { %8154 = vset.pattern.permute.xlu0 %v8398_v27 }
0x1ffc   : > { %3609 = vperm.xlu0 %8154, %v3606_v20  }
0x2065   : > { %v3603_v32 = vpop.permute.xlu0 %3602 }
0x2066   : > { %v9766_v58 = vsub.f32 %v3544_v8, %v3603_v32 }
0x2068   : > { %3660 = vrot.lane.b32.xlu1 %v9766_v58, %s8400_s3 }
0x206c   : > { %3623 = vperm.xlu1 %8153, %v3620_v38  }
0x2070   : > { %3616 = vrot.lane.b32.xlu1 %v3614_v40, %s8399_s23  ;;  %v3596_v22 = vpop.permute.xlu1 %3595 }
0x2071   : > { %v3598_v23 = vmul.f32 %v3596_v22, %v9748_v5  ;;  %8155 = vset.pattern.permute.xlu1 %v8401_v55 }
0x2073   : > { %v9772_v24 = vsub.f32 %v3542_v63, %v3598_v23  ;;  %v3563_v23 = vmul.f32 %v9738_v26, %v9727_v46 }
0x2075   : > { %v3648_v37 = vmax.f32 %v9772_v24, 1e-08 }
0x2076   : > { %v3569_v41 = vpop.permute.xlu0 %3568 }
0x2077   : > { %8230 = vrcp.f32 %v3648_v37  ;;  %v3571_v13 = vmul.f32 %v3569_v41, %v9706_v39  ;;  %v3507_v37 = vstv %s9719_s2  ;;  %s8411_s2 = smov 123  }
0x2079   : > { %v3572_v45 = vsub.f32 %v3520_v11, %v3571_v13  ;;  %v3553_v11 = vmul.f32 %v9735_v60, %v9727_v46 }
0x207b   : > { %v3610_v34 = vpop.permute.xlu0 %3609  ;;  %v9776_v25 = vmul.f32 %v8229_v1, %v3572_v45  ;;  %v3554_v12 = vsub.f32 %v3493_v18, %v3553_v11 }
0x207c   : > { %v3612_v4 = vmul.f32 %v3610_v34, %v9748_v5 }
0x207d   : > { %3637 = vperm.xlu0 %8154, %v9776_v25  }
0x207e   : > { %v3613_v44 = vsub.f32 %v3552_v15, %v3612_v4 }
0x2081   : > { %v8231_v48 = vpop.eup %8230  ;;  %8156 = vset.pattern.permute.xlu0 %v8401_v55 }
0x2082   : > { %v3683_v17 = vmul.f32 %v8231_v48, %v3613_v44  ;;  %v3669_v49 = vmul.f32 %v8231_v48, %v9748_v5 }
0x2084   : > { %3686 = vperm.xlu1 %8155, %v3683_v17  }
0x2088   : > { %8157 = vset.pattern.permute.xlu1 %v8398_v27 }
0x2089   : > { %3581 = vperm.xlu1 %8157, %v9781_v47  }
0x208d   : > { %8158 = vset.pattern.permute.xlu1 %v8401_v55 }
0x20da   : > { %v3661_v50 = vpop.permute.xlu1 %3660 }
0x20db   : > { %v3691_v51 = vmul.f32 %v3683_v17, %v3661_v50  ;;  %v9786_v53 = vmul.f32 %v3669_v49, %v3661_v50 }
0x20dd   : > { %3693 = vrot.lane.b32.xlu0 %v3691_v51, %s8402_s26 }
0x20eb   : > { %v3624_v54 = vpop.permute.xlu1 %3623 }
0x20ec   : > { %v3626_v56 = vmul.f32 %v3624_v54, %v9748_v5 }
0x20ee   : > { %v3627_v57 = vsub.f32 %v3562_v16, %v3626_v56 }
0x20ef   : > { %v3617_v42 = vpop.permute.xlu1 %3616 }
0x20f0   : > { %v3697_v61 = vmul.f32 %v8231_v48, %v3627_v57  ;;  %v3619_v19 = vsub.f32 %v3554_v12, %v3617_v42  ;;  %v3642_v12 = vmul.f32 %v9776_v25, %v9756_v0 }
0x20f2   : > { %3700 = vperm.xlu0 %8156, %v3697_v61   ;;  %v3705_v63 = vmul.f32 %v3697_v61, %v3661_v50 }
0x20f6   : > { %8159 = vset.pattern.permute.xlu0 %v8403_v28 }
0x20fc   : > { %v3638_v6 = vpop.permute.xlu0 %3637 }
0x20fd   : > { %v3640_v8 = vmul.f32 %v3638_v6, %v9748_v5 }
0x20ff   : > { %v3641_v3 = vsub.f32 %v3572_v45, %v3640_v8  ;;  %v3564_v45 = vsub.f32 %v3507_v37, %v3563_v23 }
0x2101   : > { %v3711_v7 = vmul.f32 %v8231_v48, %v3641_v3 }
0x2103   : > { %3714 = vperm.xlu1 %8158, %v3711_v7   ;;  %v3687_v10 = vpop.permute.xlu1 %3686  ;;  %v9791_v9 = vmul.f32 %v3711_v7, %v3661_v50 }
0x2107   : > { %3672 = vperm.xlu1 %8158, %v3669_v49   ;;  %v8405_v49 = vmov 4  }
0x2108   : > { %v3582_v35 = vpop.permute.xlu1 %3581 }
0x2109   : > { %v3584_v43 = vmul.f32 %v3582_v35, %v9748_v5 }
0x210b   : > { %v3585_v62 = vsub.f32 %v9706_v39, %v3584_v43  ;;  %3630 = vrot.lane.b32.xlu1 %v3628_v36, %s8399_s23  ;;  %v3689_v39 = vmul.f32 %v3687_v10, %v9772_v24 }
0x210d   : > { %v3651_v1 = vmul.f32 %v8231_v48, %v3585_v62  ;;  %v9807_v30 = vsub.f32 %v3613_v44, %v3689_v39 }
0x210f   : > { %3707 = vrot.lane.b32.xlu1 %v3705_v63, %s8402_s26  ;;  %v9798_v2 = vmul.f32 %v3661_v50, %v3651_v1  ;;  %v3725_v31 = vmax.f32 %v9807_v30, 1e-08 }
0x2111   : > { %8232 = vrcp.f32 %v3725_v31 }
0x2113   : > { %3654 = vperm.xlu1 %8158, %v3651_v1  }
0x2117   : > { %8160 = vset.pattern.permute.xlu1 %v8403_v28 }
0x211b   : > { %v8233_v38 = vpop.eup %8232 }
0x211c   : > { %v3760_v61 = vmul.f32 %v8233_v38, %v9772_v24 }
0x214f   : > { %v3694_v15 = vpop.permute.xlu0 %3693 }
0x2150   : > { %v9803_v20 = vsub.f32 %v3619_v19, %v3694_v15 }
0x2152   : > { %3737 = vrot.lane.b32.xlu0 %v9803_v20, %s8404_s28 }
0x2171   : > { %v3701_v32 = vpop.permute.xlu0 %3700 }
0x2172   : > { %v3703_v60 = vmul.f32 %v3701_v32, %v9772_v24 }
0x2174   : > { %v3704_v16 = vsub.f32 %v3627_v57, %v3703_v60 }
0x2176   : > { %v3774_v40 = vmul.f32 %v8233_v38, %v3704_v16 }
0x2178   : > { %3777 = vperm.xlu0 %8159, %v3774_v40  }
0x2182   : > { %v3715_v22 = vpop.permute.xlu1 %3714 }
0x2183   : > { %v3717_v51 = vmul.f32 %v3715_v22, %v9772_v24 }
0x2185   : > { %v3718_v54 = vsub.f32 %v3641_v3, %v3717_v51 }
0x2186   : > { %v3673_v55 = vpop.permute.xlu1 %3672 }
0x2187   : > { %v3675_v41 = vmul.f32 %v3673_v55, %v9772_v24  ;;  %v3788_v57 = vmul.f32 %v8233_v38, %v3718_v54 }
0x2189   : > { %v3676_v13 = vsub.f32 %v9748_v5, %v3675_v41 }
0x218a   : > { %v3631_v34 = vpop.permute.xlu1 %3630 }
0x218b   : > { %v3746_v4 = vmul.f32 %v8233_v38, %v3676_v13  ;;  %v3633_v44 = vsub.f32 %v3564_v45, %v3631_v34 }
0x218d   : > { %3749 = vperm.xlu1 %8160, %v3746_v4  }
0x218e   : > { %v3708_v48 = vpop.permute.xlu1 %3707 }
0x218f   : > { %v3710_v17 = vsub.f32 %v3633_v44, %v3708_v48 }
0x2191   : > { %8161 = vset.pattern.permute.xlu1 %v8405_v49 }
0x2192   : > { %v3655_v50 = vpop.permute.xlu1 %3654 }
0x2193   : > { %v3657_v26 = vmul.f32 %v3655_v50, %v9772_v24 }
0x2195   : > { %v3658_v56 = vsub.f32 %v3585_v62, %v3657_v26 }
0x2197   : > { %v3728_v28 = vmul.f32 %v8233_v38, %v3658_v56 }
0x21c4   : > { %v3738_v5 = vpop.permute.xlu0 %3737 }
0x21c5   : > { %v3782_v6 = vmul.f32 %v3774_v40, %v3738_v5  ;;  %v3796_v8 = vmul.f32 %v3788_v57, %v3738_v5  ;;  %v9819_v42 = vmul.f32 %v3746_v4, %v3738_v5  ;;  %v9821_v7 = vmul.f32 %v3760_v61, %v3738_v5 }
0x21c6   : > { %v9823_v10 = vmul.f32 %v3738_v5, %v3728_v28 }
0x21c7   : > { %3784 = vrot.lane.b32.xlu0 %v3782_v6, %s8406_s1 }
0x21cb   : > { %3791 = vperm.xlu0 %8159, %v3788_v57  }
0x21cf   : > { %3763 = vperm.xlu0 %8159, %v3760_v61  }
0x21d3   : > { %3731 = vperm.xlu0 %8159, %v3728_v28  }
0x21d7   : > { %8162 = vset.pattern.permute.xlu0 %v8405_v49 }
0x21f7   : > { %v3778_v3 = vpop.permute.xlu0 %3777 }
0x21f8   : > { %v3780_v35 = vmul.f32 %v3778_v3, %v9807_v30 }
0x21fa   : > { %v9827_v43 = vsub.f32 %v3704_v16, %v3780_v35 }
0x21fc   : > { %v3802_v36 = vmax.f32 %v9827_v43, 1e-08 }
0x21fe   : > { %8234 = vrcp.f32 %v3802_v36 }
0x2208   : > { %v8235_v11 = vpop.eup %8234 }
0x2209   : > { %v9849_v37 = vmul.f32 %v8235_v11, %v9807_v30 }
0x220c   : > { %v3750_v62 = vpop.permute.xlu1 %3749 }
0x220d   : > { %v3752_v63 = vmul.f32 %v3750_v62, %v9807_v30 }
0x220f   : > { %v3753_v1 = vsub.f32 %v3676_v13, %v3752_v63 }
0x2211   : > { %v9831_v18 = vmul.f32 %v8235_v11, %v3753_v1 }
0x2213   : > { %3826 = vperm.xlu0 %8162, %v9831_v18  }
0x2217   : > { %3644 = vrot.lane.b32.xlu0 %v3642_v12, %s8399_s23 }
0x221b   : > { %3798 = vrot.lane.b32.xlu0 %v3796_v8, %s8406_s1 }
0x2239   : > { %v3785_v19 = vpop.permute.xlu0 %3784 }
0x223a   : > { %v9838_v15 = vsub.f32 %v3710_v17, %v3785_v19 }
0x223c   : > { %3814 = vrot.lane.b32.xlu1 %v9838_v15, %s8407_s13 }
0x224a   : > { %v3792_v39 = vpop.permute.xlu0 %3791 }
0x224b   : > { %v3794_v31 = vmul.f32 %v3792_v39, %v9807_v30 }
0x224d   : > { %v3795_v32 = vsub.f32 %v3718_v54, %v3794_v31 }
0x224e   : > { %v3764_v60 = vpop.permute.xlu0 %3763 }
0x224f   : > { %v3766_v16 = vmul.f32 %v3764_v60, %v9807_v30  ;;  %v3865_v38 = vmul.f32 %v8235_v11, %v3795_v32 }
0x2251   : > { %v3767_v25 = vsub.f32 %v9772_v24, %v3766_v16  ;;  %3868 = vperm.xlu1 %8161, %v3865_v38   ;;  %v8408_v24 = vmov 5  }
0x2252   : > { %v3732_v40 = vpop.permute.xlu0 %3731 }
0x2253   : > { %v3734_v22 = vmul.f32 %v3732_v40, %v9807_v30  ;;  %v9845_v23 = vmul.f32 %v8235_v11, %v3767_v25 }
0x2255   : > { %v3735_v55 = vsub.f32 %v3658_v56, %v3734_v22  ;;  %3840 = vperm.xlu1 %8161, %v9845_v23  }
0x2257   : > { %v9851_v41 = vmul.f32 %v8235_v11, %v3735_v55  ;;  %v3521_v11 = vstv %s9745_s21 }
0x2259   : > { %3854 = vperm.xlu1 %8161, %v9849_v37   ;;  %3808 = vperm.xlu0 %8162, %v9851_v41  }
0x225d   : > { %3721 = vrot.lane.b32.xlu1 %v9791_v9, %s8402_s26  ;;  %8164 = vset.pattern.permute.xlu0 %v8408_v24 }
0x225e   : > { %8163 = vset.pattern.permute.xlu1 %v8408_v24 }
0x2292   : > { %v3827_v48 = vpop.permute.xlu0 %3826 }
0x2293   : > { %v3829_v50 = vmul.f32 %v3827_v48, %v9827_v43 }
0x2295   : > { %v3830_v54 = vsub.f32 %v3753_v1, %v3829_v50 }
0x2296   : > { %v3645_v49 = vpop.permute.xlu0 %3644 }
0x229a   : > { %v3799_v5 = vpop.permute.xlu0 %3798 }
0x22ae   : > { %v9857_v13 = vpop.permute.xlu1 %3814 }
0x22af   : > { %v3873_v45 = vmul.f32 %v3865_v38, %v9857_v13 }
0x22b1   : > { %3875 = vrot.lane.b32.xlu1 %v3873_v45, %s8409_s15 }
0x22d0   : > { %v3869_v34 = vpop.permute.xlu1 %3868 }
0x22d1   : > { %v3871_v4 = vmul.f32 %v3869_v34, %v9827_v43 }
0x22d3   : > { %v9862_v44 = vsub.f32 %v3795_v32, %v3871_v4 }
0x22d4   : > { %v3841_v9 = vpop.permute.xlu1 %3840 }
0x22d5   : > { %v3879_v17 = vmax.f32 %v9862_v44, 1e-08  ;;  %v3843_v51 = vmul.f32 %v3841_v9, %v9827_v43 }
0x22d7   : > { %8236 = vrcp.f32 %v3879_v17  ;;  %v3844_v56 = vsub.f32 %v3767_v25, %v3843_v51 }
0x22d8   : > { %v3855_v26 = vpop.permute.xlu1 %3854  ;;  %v3809_v3 = vpop.permute.xlu0 %3808 }
0x22d9   : > { %v3857_v57 = vmul.f32 %v3855_v26, %v9827_v43  ;;  %v3811_v36 = vmul.f32 %v3809_v3, %v9827_v43  ;;  %v3831_v26 = vmul.f32 %v9831_v18, %v9857_v13 }
0x22db   : > { %v3858_v8 = vsub.f32 %v9807_v30, %v3857_v57  ;;  %v3812_v63 = vsub.f32 %v3735_v55, %v3811_v36  ;;  %v3573_v30 = vmul.f32 %v9761_v14, %v9727_v46 }
0x22dc   : > { %v3722_v19 = vpop.permute.xlu1 %3721 }
0x22dd   : > { %v3574_v12 = vsub.f32 %v3521_v11, %v3573_v30 }
0x22df   : > { %v3647_v39 = vsub.f32 %v3574_v12, %v3645_v49 }
0x22e1   : > { %v8237_v61 = vpop.eup %8236  ;;  %v3724_v31 = vsub.f32 %v3647_v39, %v3722_v19 }
0x22e2   : > { %v3900_v28 = vmul.f32 %v8237_v61, %v3830_v54  ;;  %v9870_v6 = vmul.f32 %v8237_v61, %v3844_v56  ;;  %v3928_v35 = vmul.f32 %v8237_v61, %v3858_v8  ;;  %v3942_v62 = vmul.f32 %v8237_v61, %v9827_v43 }
0x22e3   : > { %v3882_v1 = vmul.f32 %v8237_v61, %v3812_v63  ;;  %v3801_v32 = vsub.f32 %v3724_v31, %v3799_v5 }
0x22e4   : > { %3903 = vperm.xlu1 %8163, %v3900_v28   ;;  %3917 = vperm.xlu0 %8164, %v9870_v6  }
0x22e8   : > { %3931 = vperm.xlu1 %8163, %v3928_v35   ;;  %8165 = vset.pattern.permute.xlu0 %v8398_v27 }
0x22ec   : > { %3945 = vperm.xlu1 %8163, %v3942_v62  }
0x22f0   : > { %3885 = vperm.xlu1 %8163, %v3882_v1  }
0x22f4   : > { %8166 = vset.pattern.permute.xlu1 %v8395_v21 }
0x2323   : > { %v3876_v60 = vpop.permute.xlu1 %3875 }
0x2324   : > { %v9881_v16 = vsub.f32 %v3801_v32, %v3876_v60 }
0x2326   : > { %3891 = vrot.lane.b32.xlu0 %v9881_v16, %s8410_s0 }
0x2363   : > { %v3918_v27 = vpop.permute.xlu0 %3917  ;;  %v3904_v38 = vpop.permute.xlu1 %3903 }
0x2364   : > { %v3920_v25 = vmul.f32 %v3918_v27, %v9862_v44  ;;  %v3906_v40 = vmul.f32 %v3904_v38, %v9862_v44 }
0x2366   : > { %v3921_v22 = vsub.f32 %v3844_v56, %v3920_v25  ;;  %v3907_v14 = vsub.f32 %v3830_v54, %v3906_v40 }
0x2367   : > { %v3932_v55 = vpop.permute.xlu1 %3931 }
0x2368   : > { %v3970_v24 = vmax.f32 %v3921_v22, 1e-08  ;;  %v3963_v45 = vmax.f32 %v3907_v14, 1e-08  ;;  %v3934_v34 = vmul.f32 %v3932_v55, %v9862_v44 }
0x236a   : > { %v3935_v4 = vsub.f32 %v3858_v8, %v3934_v34  ;;  %3972 = vrot.lane.b32.xlu1 %v3970_v24, %s8402_s26  ;;  %3965 = vrot.lane.b32.xlu0 %v3963_v45, %s8399_s23 }
0x236b   : > { %v3946_v48 = vpop.permute.xlu1 %3945 }
0x236c   : > { %v3977_v9 = vmax.f32 %v3935_v4, 1e-08  ;;  %v3948_v49 = vmul.f32 %v3946_v48, %v9862_v44  ;;  %v3590_v4 = vmul.f32 %v9756_v0, %v9781_v47 }
0x236e   : > { %v3949_v50 = vsub.f32 %v9827_v43, %v3948_v49  ;;  %3679 = vrot.lane.b32.xlu0 %v9786_v53, %s8402_s26  ;;  %3979 = vrot.lane.b32.xlu1 %v3977_v9, %s8406_s1  ;;  %v3845_v43 = vmul.f32 %v9845_v23, %v9857_v13  ;;  %v3859_v53 = vmul.f32 %v9849_v37, %v9857_v13 }
0x236f   : > { %v3591_v49 = vsub.f32 %v9727_v46, %v3590_v4 }
0x2370   : > { %v3984_v51 = vmax.f32 %v3949_v50, 1e-08 }
0x2372   : > { %3756 = vrot.lane.b32.xlu0 %v9819_v42, %s8406_s1  ;;  %3986 = vrot.lane.b32.xlu1 %v3984_v51, %s8409_s15  ;;  %v3886_v42 = vpop.permute.xlu1 %3885 }
0x2373   : > { %v3888_v18 = vmul.f32 %v3886_v42, %v9862_v44  ;;  %v3817_v44 = vmul.f32 %v9857_v13, %v9851_v41 }
0x2375   : > { %v3889_v54 = vsub.f32 %v3812_v63, %v3888_v18 }
0x2376   : > { %3770 = vrot.lane.b32.xlu0 %v9821_v7, %s8406_s1  ;;  %3833 = vrot.lane.b32.xlu1 %v3831_v26, %s8409_s15 }
0x2377   : > { %v3956_v23 = vmax.f32 %v3889_v54, 1e-08 }
0x237a   : > { %3992 = vrot.lane.b32.xlu0 %v3879_v17, %s8411_s2  ;;  %3847 = vrot.lane.b32.xlu1 %v3845_v43, %s8409_s15 }
0x237e   : > { %3861 = vrot.lane.b32.xlu1 %v3859_v53, %s8409_s15 }
0x2398   : > { %v3892_v7 = vpop.permute.xlu0 %3891 }
0x2399   : > { %v3908_v56 = vmul.f32 %v3900_v28, %v3892_v7  ;;  %v3936_v57 = vmul.f32 %v3928_v35, %v3892_v7  ;;  %v3922_v61 = vmul.f32 %v9870_v6, %v3892_v7  ;;  %v3950_v17 = vmul.f32 %v3942_v62, %v3892_v7 }
0x239a   : > { %v3894_v37 = vmul.f32 %v3892_v7, %v3882_v1 }
0x239b   : > { %3910 = vrot.lane.b32.xlu0 %v3908_v56, %s8411_s2  ;;  %3938 = vrot.lane.b32.xlu1 %v3936_v57, %s8411_s2 }
0x239f   : > { %3924 = vrot.lane.b32.xlu0 %v3922_v61, %s8411_s2  ;;  %3958 = vrot.lane.b32.xlu1 %v3956_v23, %s8397_s24 }
0x23a3   : > { %3952 = vrot.lane.b32.xlu0 %v3950_v17, %s8411_s2  ;;  %3742 = vrot.lane.b32.xlu1 %v9823_v10, %s8402_s26  ;;  %s10620_s26 = sld [smem:[#allocation21_spill]] }
0x23a7   : > { %3665 = vrot.lane.b32.xlu0 %v9798_v2, %s8399_s23  ;;  %3896 = vrot.lane.b32.xlu1 %v3894_v37, %s8409_s15  ;;  %s10621_s15 = sld [smem:[#allocation22_spill]] }
0x23ab   : > { %3819 = vrot.lane.b32.xlu0 %v3817_v44, %s8406_s1 }
0x23dc   : > { %v3973_v5 = vpop.permute.xlu1 %3972  ;;  %v3966_v28 = vpop.permute.xlu0 %3965 }
0x23dd   : > { %8238 = vrcp.f32 %v3966_v28 }
0x23de   : > { %8240 = vrcp.f32 %v3973_v5 }
0x23e0   : > { %v3980_v6 = vpop.permute.xlu1 %3979  ;;  %v3680_v8 = vpop.permute.xlu0 %3679 }
0x23e1   : > { %v3682_v2 = vsub.f32 %v9731_v59, %v3680_v8  ;;  %8242 = vrcp.f32 %v3980_v6  ;;  %v8168_v6 = vld [vmem:[#allocation11] sm:$0xff]   ;;  %v8169_v8 = vld [vmem:[#allocation11 + $0x8] sm:$0xff]  }
0x23e2   : > { %7551 = vmatpush3.bf16.msra.mxu0 %v8168_v6  ;;  %v4131_v6 = vld [vmem:[#allocation2 + $0x70] sm:$0xff] }
0x23e3   : > { %7552 = vmatprep.subr.bf16.mxu0 %v8396_v29 }
0x23e4   : > { %v3987_v3 = vpop.permute.xlu1 %3986  ;;  %v3757_v35 = vpop.permute.xlu0 %3756 }
0x23e5   : > { %v3759_v30 = vsub.f32 %v3682_v2, %v3757_v35 }
0x23e6   : > { %7553 = vmatpush3.bf16.msra.mxu0 %v8169_v8 }
0x23e7   : > { %v8239_v31 = vpop.eup %8238  ;;  %7554 = vmatprep.subr.bf16.mxu0 %v8396_v29 }
0x23e8   : > { %v3834_v36 = vpop.permute.xlu1 %3833  ;;  %v3771_v62 = vpop.permute.xlu0 %3770 }
0x23e9   : > { %v3836_v41 = vsub.f32 %v3759_v30, %v3834_v36  ;;  %v3773_v12 = vsub.f32 %v9766_v58, %v3771_v62  ;;  %v8241_v59 = vpop.eup %8240 }
0x23eb   : > { %v8243_v40 = vpop.eup %8242 }
0x23ec   : > { %v3848_v10 = vpop.permute.xlu1 %3847  ;;  %v3993_v63 = vpop.permute.xlu0 %3992 }
0x23ed   : > { %8244 = vrcp.f32 %v3993_v63  ;;  %v3850_v32 = vsub.f32 %v3773_v12, %v3848_v10  ;;  %v8173_v12 = vld [vmem:[#allocation11 + $0x28] sm:$0xff]  }
0x23ee   : > { %8246 = vrcp.f32 %v3987_v3  ;;  %v8170_v3 = vld [vmem:[#allocation11 + $0x10] sm:$0xff]  }
0x23ef   : > { %7555 = vmatpush3.bf16.msra.mxu0 %v8170_v3 }
0x23f0   : > { %v3862_v1 = vpop.permute.xlu1 %3861  ;;  %7556 = vmatprep.subr.bf16.mxu0 %v8396_v29 }
0x23f1   : > { %v3864_v19 = vsub.f32 %v9803_v20, %v3862_v1  ;;  %v8171_v1 = vld [vmem:[#allocation11 + $0x18] sm:$0xff]  }
0x23f3   : > { %7557 = vmatpush3.bf16.msra.mxu0 %v8171_v1  ;;  %v4091_v1 = vld [vmem:[#allocation2 + $0x78] sm:$0xff] }
0x23f4   : > { %7558 = vmatprep.subr.bf16.mxu0 %v8396_v29 }
0x23f7   : > { %v8245_v55 = vpop.eup %8244 }
0x23f8   : > { %v8247_v58 = vpop.eup %8246  ;;  %v3996_v34 = vmul.f32 %v8245_v55, %v9881_v16  ;;  %v4122_v55 = vld [vmem:[#allocation2 + $0x28] sm:$0xff] }
0x240d   : > { %v3911_v13 = vpop.permute.xlu0 %3910  ;;  %v3939_v11 = vpop.permute.xlu1 %3938 }
0x240e   : > { %v3913_v39 = vsub.f32 %v3836_v41, %v3911_v13  ;;  %v3941_v27 = vsub.f32 %v3864_v19, %v3939_v11 }
0x2410   : > { %v3969_v60 = vmul.f32 %v8239_v31, %v3913_v39  ;;  %v3983_v22 = vmul.f32 %v8243_v40, %v3941_v27  ;;  %v8174_v39 = vld [vmem:[#allocation11 + $0x30] sm:$0xff]   ;;  %v8175_v31 = vld [vmem:[#allocation11 + $0x38] sm:$0xff]   ;;  %v9964_v27 = vld [vmem:[%s10618_s29 + $0x10] sm:$0xff]  }
0x2411   : > { %v3925_v38 = vpop.permute.xlu0 %3924  ;;  %v3959_v48 = vpop.permute.xlu1 %3958  ;;  %v9992_v40 = vld [vmem:[%s10618_s29 + $0x30] sm:$0xff]  }
0x2412   : > { %v3927_v25 = vsub.f32 %v3850_v32, %v3925_v38  ;;  %3998 = vrot.lane.b32.xlu0 %v3969_v60, %s8397_s24  ;;  %8248 = vrcp.f32 %v3959_v48  ;;  %v9948_v32 = vld [vmem:[%s10618_s29] sm:$0xff]   ;;  %v9971_v38 = vld [vmem:[%s10618_s29 + $0x18] sm:$0xff]  }
0x2413   : > { %7571 = vmatpush3.bf16.msra.mxu1 %v9948_v32 }
0x2414   : > { %v3976_v14 = vmul.f32 %v8241_v59, %v3927_v25  ;;  %7572 = vmatprep.subr.bf16.mxu1 %v8396_v29  ;;  %v9978_v59 = vld [vmem:[%s10618_s29 + $0x20] sm:$0xff]   ;;  %v9985_v25 = vld [vmem:[%s10618_s29 + $0x28] sm:$0xff]  }
0x2415   : > { %v3953_v24 = vpop.permute.xlu0 %3952  ;;  %v3743_v50 = vpop.permute.xlu1 %3742 }
0x2416   : > { %v3955_v45 = vsub.f32 %v9838_v15, %v3953_v24  ;;  %4003 = vrot.lane.b32.xlu1 %v3976_v14, %s8397_s24  ;;  %4008 = vrot.lane.b32.xlu0 %v3983_v22, %s8397_s24  ;;  %v4047_v24 = vld [vmem:[#allocation2] sm:$0xff] }
0x2418   : > { %v3990_v20 = vmul.f32 %v8247_v58, %v3955_v45  ;;  %v4100_v45 = vld [vmem:[#allocation2 + $0x8] sm:$0xff] }
0x2419   : > { %v3666_v9 = vpop.permute.xlu0 %3665  ;;  %v3897_v53 = vpop.permute.xlu1 %3896 }
0x241a   : > { %4013 = vrot.lane.b32.xlu1 %v3990_v20, %s8397_s24  ;;  %4018 = vrot.lane.b32.xlu0 %v3996_v34, %s8397_s24  ;;  %v3668_v15 = vsub.f32 %v3591_v49, %v3666_v9 }
0x241c   : > { %v3745_v51 = vsub.f32 %v3668_v15, %v3743_v50  ;;  %v8249_v16 = vpop.eup %8248  ;;  %v4064_v50 = vld [vmem:[#allocation2 + $0x30] sm:$0xff] }
0x241d   : > { %v3820_v26 = vpop.permute.xlu0 %3819 }
0x241e   : > { %v3822_v43 = vsub.f32 %v3745_v51, %v3820_v26  ;;  %v4106_v51 = vld [vmem:[#allocation2 + $0x38] sm:$0xff]  ;;  %v4125_v26 = vld [vmem:[#allocation2 + $0x40] sm:$0xff] }
0x2420   : > { %v3899_v42 = vsub.f32 %v3822_v43, %v3897_v53  ;;  %v4073_v53 = vld [vmem:[#allocation2 + $0x48] sm:$0xff] }
0x2422   : > { %v3962_v7 = vmul.f32 %v8249_v16, %v3899_v42 }
0x2484   : > { %v3999_v18 = vpop.permute.xlu0 %3998 }
0x2485   : > { %v4001_v54 = vadd.f32 %v3999_v18, %v3962_v7 }
0x2488   : > { %v4009_v56 = vpop.permute.xlu0 %4008  ;;  %v4004_v57 = vpop.permute.xlu1 %4003 }
0x2489   : > { %v4006_v23 = vadd.f32 %v4004_v57, %v4001_v54  ;;  %v4128_v57 = vld [vmem:[#allocation2 + $0x58] sm:$0xff] }
0x248b   : > { %v4011_v0 = vadd.f32 %v4009_v56, %v4006_v23 }
0x248c   : > { %v4014_v47 = vpop.permute.xlu1 %4013  ;;  %v4019_v17 = vpop.permute.xlu0 %4018 }
0x248d   : > { %v4016_v61 = vadd.f32 %v4014_v47, %v4011_v0 }
0x248f   : > { %v4021_v46 = vadd.f32 %v4019_v17, %v4016_v61  ;;  %v4082_v17 = vld [vmem:[#allocation2 + $0x60] sm:$0xff] }
0x2491   : > { %v4022_v37 = vmax.f32 %v4021_v46, 1e-08  ;;  %v4112_v46 = vld [vmem:[#allocation2 + $0x68] sm:$0xff] }
0x2493   : > { %8250 = vrcp.f32 %v4022_v37 }
0x249d   : > { %v8251_v44 = vpop.eup %8250 }
0x249e   : > { %4029 = vrot.lane.b32.xlu1 %v8251_v44, %s8399_s23  ;;  %v4025_v5 = vmul.f32 %v8251_v44, %v3962_v7  ;;  %v4109_v7 = vld [vmem:[#allocation2 + $0x50] sm:$0xff] }
0x24a0   : > { %v6114_v28 = vclamps-f32 %v4025_v5, 10000.0 }
0x24a2   : > { %4050 = vperm.xlu0 %8165, %v6114_v28  }
0x24a6   : > { %8167 = vset.pattern.permute.xlu0 %v8395_v21  ;;  %v8172_v21 = vld [vmem:[#allocation11 + $0x20] sm:$0xff]  }
0x24a7   : > { %7559 = vmatpush3.bf16.msra.mxu0 %v8172_v21 }
0x24a8   : > { %7560 = vmatprep.subr.bf16.mxu0 %v8396_v29 }
0x24ab   : > { %7561 = vmatpush3.bf16.msra.mxu0 %v8173_v12 }
0x24ac   : > { %7562 = vmatprep.subr.bf16.mxu0 %v8396_v29 }
0x24af   : > { %7563 = vmatpush3.bf16.msra.mxu0 %v8174_v39 }
0x24b0   : > { %7564 = vmatprep.subr.bf16.mxu0 %v8396_v29 }
0x24b3   : > { %7565 = vmatpush3.bf16.msra.mxu0 %v8175_v31 }
0x24b4   : > { %7590 = vmatprep.subr.bf16.mxu0 %v8396_v29 }
0x2510   : > { %v4030_v35 = vpop.permute.xlu1 %4029 }
0x2511   : > { %v4032_v36 = vmul.f32 %v4030_v35, %v3969_v60  ;;  %v4038_v62 = vmul.f32 %v4030_v35, %v3983_v22  ;;  %v4035_v63 = vmul.f32 %v4030_v35, %v3976_v14  ;;  %v4041_v41 = vmul.f32 %v4030_v35, %v3990_v20  ;;  %v9957_v60 = vld [vmem:[%s10618_s29 + $0x8] sm:$0xff]   ;;  %v4055_v22 = vld [vmem:[#allocation2 + $0x18] sm:$0xff]  ;;  %v4103_v14 = vld [vmem:[#allocation2 + $0x20] sm:$0xff] }
0x2512   : > { %v4044_v11 = vmul.f32 %v4030_v35, %v3996_v34  ;;  %7573 = vmatpush3.bf16.msra.mxu1 %v9957_v60  ;;  %v4119_v20 = vld [vmem:[#allocation2 + $0x10] sm:$0xff] }
0x2513   : > { %v6115_v10 = vclamps-f32 %v4032_v36, 10000.0  ;;  %v6117_v2 = vclamps-f32 %v4038_v62, 10000.0  ;;  %v6116_v30 = vclamps-f32 %v4035_v63, 10000.0  ;;  %v6118_v13 = vclamps-f32 %v4041_v41, 10000.0  ;;  %7574 = vmatprep.subr.bf16.mxu1 %v8396_v29  ;;  %v4134_v41 = vld [vmem:[#allocation2 + $0x88] sm:$0xff] }
0x2514   : > { %v6119_v19 = vclamps-f32 %v4044_v11, 10000.0 }
0x2515   : > { %4058 = vperm.xlu1 %8166, %v6115_v10   ;;  %4076 = vperm.xlu0 %8167, %v6117_v2  }
0x2516   : > { %7575 = vmatpush3.bf16.msra.mxu1 %v9964_v27 }
0x2517   : > { %7576 = vmatprep.subr.bf16.mxu1 %v8396_v29 }
0x2519   : > { %4067 = vperm.xlu1 %8166, %v6116_v30   ;;  %v4115_v30 = vld [vmem:[#allocation2 + $0x80] sm:$0xff] }
0x251a   : > { %7577 = vmatpush3.bf16.msra.mxu1 %v9971_v38 }
0x251b   : > { %7578 = vmatprep.subr.bf16.mxu1 %v8396_v29 }
0x251d   : > { %4085 = vperm.xlu1 %8166, %v6118_v13  }
0x251e   : > { %7579 = vmatpush3.bf16.msra.mxu1 %v9978_v59 }
0x251f   : > { %7580 = vmatprep.subr.bf16.mxu1 %v8396_v29 }
0x2521   : > { %4094 = vperm.xlu1 %8166, %v6119_v19   ;;  %v4051_v58 = vpop.permute.xlu0 %4050 }
0x2522   : > { %7581 = vmatpush3.bf16.msra.mxu1 %v9985_v25  ;;  %v4053_v49 = vmul.f32 %v4051_v58, %v4047_v24  ;;  %v4101_v15 = vmul.f32 %v4100_v45, %v4051_v58  ;;  %v4120_v43 = vmul.f32 %v4119_v20, %v4051_v58  ;;  %v10024_v45 = vld [vmem:[%s10618_s29 + $0x38] sm:$0xff]   ;;  %v6123_v58 = vld [vmem:[%s10619_s4] ss:$0 sm:$0xff] }
0x2523   : > { %7582 = vmatprep.subr.bf16.mxu1 %v8396_v29 }
0x2526   : > { %7583 = vmatpush3.bf16.msra.mxu1 %v9992_v40 }
0x2527   : > { %7584 = vmatprep.subr.bf16.mxu1 %v8396_v29 }
0x252a   : > { %7585 = vmatpush3.bf16.msra.mxu1 %v10024_v45 }
0x252b   : > { %7610 = vmatprep.subr.bf16.mxu1 %v8396_v29 }
0x2594   : > { %v4059_v34 = vpop.permute.xlu1 %4058  ;;  %v4077_v42 = vpop.permute.xlu0 %4076 }
0x2595   : > { %v4061_v4 = vmul.f32 %v4059_v34, %v4055_v22  ;;  %v4104_v48 = vmul.f32 %v4103_v14, %v4059_v34  ;;  %v4123_v9 = vmul.f32 %v4122_v55, %v4059_v34  ;;  %v4079_v61 = vmul.f32 %v4077_v42, %v4073_v53 }
0x2596   : > { %v4110_v37 = vmul.f32 %v4109_v7, %v4077_v42  ;;  %v4129_v8 = vmul.f32 %v4128_v57, %v4077_v42  ;;  %v8186_v7 = vld [vmem:[#allocation13 + $0x10] sm:$0xff]   ;;  %v8189_v57 = vld [vmem:[#allocation13 + $0x28] sm:$0xff]  }
0x2597   : > { %v4062_v16 = vadd.f32 %v4061_v4, %v4053_v49  ;;  %v4105_v18 = vadd.f32 %v4104_v48, %v4101_v15  ;;  %v4124_v56 = vadd.f32 %v4123_v9, %v4120_v43  ;;  %v8184_v15 = vld [vmem:[#allocation13] sm:$0xff]  }
0x2598   : > { %v4068_v54 = vpop.permute.xlu1 %4067 }
0x2599   : > { %v4070_v23 = vmul.f32 %v4068_v54, %v4064_v50  ;;  %v4107_v0 = vmul.f32 %v4106_v51, %v4068_v54  ;;  %v4126_v47 = vmul.f32 %v4125_v26, %v4068_v54  ;;  %v8185_v50 = vld [vmem:[#allocation13 + $0x8] sm:$0xff]   ;;  %v8187_v54 = vld [vmem:[#allocation13 + $0x18] sm:$0xff]  }
0x259b   : > { %v4071_v44 = vadd.f32 %v4070_v23, %v4062_v16  ;;  %v4108_v5 = vadd.f32 %v4107_v0, %v4105_v18  ;;  %v4127_v28 = vadd.f32 %v4126_v47, %v4124_v56  ;;  %v8188_v56 = vld [vmem:[#allocation13 + $0x20] sm:$0xff]   ;;  %v8190_v23 = vld [vmem:[#allocation13 + $0x30] sm:$0xff]   ;;  %v8191_v0 = vld [vmem:[#allocation13 + $0x38] sm:$0xff]  }
0x259c   : > { %v4086_v3 = vpop.permute.xlu1 %4085 }
0x259d   : > { %v4080_v35 = vadd.f32 %v4079_v61, %v4071_v44  ;;  %v4088_v36 = vmul.f32 %v4086_v3, %v4082_v17  ;;  %v4111_v62 = vadd.f32 %v4110_v37, %v4108_v5  ;;  %v4113_v10 = vmul.f32 %v4112_v46, %v4086_v3  ;;  %v6140_v5 = vld [vmem:[%s10587_s7] ss:$0 sm:$0xff] }
0x259e   : > { %v4130_v2 = vadd.f32 %v4129_v8, %v4127_v28  ;;  %v4132_v63 = vmul.f32 %v4131_v6, %v4086_v3  ;;  %v6141_v6 = vld [vmem:[%s10588_s8] ss:$0 sm:$0xff] }
0x259f   : > { %v4089_v21 = vadd.f32 %v4088_v36, %v4080_v35  ;;  %v4114_v13 = vadd.f32 %v4113_v10, %v4111_v62  ;;  %v6142_v62 = vld [vmem:[%s10586_s6] ss:$0 sm:$0xff] }
0x25a0   : > { %v4095_v11 = vpop.permute.xlu1 %4094  ;;  %v4133_v12 = vadd.f32 %v4132_v63, %v4130_v2  ;;  %v4169_v10 = vld [vmem:[%s10620_s26] sm:$0xff] }
0x25a1   : > { %v4097_v19 = vmul.f32 %v4095_v11, %v4091_v1  ;;  %v4116_v39 = vmul.f32 %v4115_v30, %v4095_v11  ;;  %v4135_v31 = vmul.f32 %v4134_v41, %v4095_v11 }
0x25a3   : > { %v9997_v22 = vadd.f32 %v4097_v19, %v4089_v21  ;;  %v9999_v14 = vadd.f32 %v4116_v39, %v4114_v13  ;;  %v4136_v55 = vadd.f32 %v4135_v31, %v4133_v12 }
0x25a5   : > { %4099 = vst [vmem:[#allocation4] sm:$0xff] %v9997_v22  ;;  %4118 = vst [vmem:[#allocation4 + $0x8] sm:$0xff] %v9999_v14  ;;  %v4187_v24 = vpack.c.bf16 %v9997_v22, %v9997_v22 }
0x25a6   : > { %4137 = vst [vmem:[#allocation4 + $0x10] sm:$0xff] %v4136_v55 }
0x25a7   : > { %7567 = vmatmul.mubr.bf16.vlgmr.msra.gmra.mrb[0].mxu0 %v4187_v24 }
0x25a8   : > { %7591 = vmatpush3.bf16.msra.mxu0 %v9948_v32  ;;  %7606 = vmatprep.mubr.msk.bf16.mxu0 %vm8412_vm13, %v8396_v29 }
0x25a9   : > { %7592 = vmatprep.subr.bf16.mxu0 %v8396_v29 }
0x25ac   : > { %7593 = vmatpush3.bf16.msra.mxu0 %v9957_v60 }
0x25ad   : > { %7594 = vmatprep.subr.bf16.mxu0 %v8396_v29 }
0x25b0   : > { %7595 = vmatpush3.bf16.msra.mxu0 %v9964_v27 }
0x25b1   : > { %7596 = vmatprep.subr.bf16.mxu0 %v8396_v29 }
0x25b4   : > { %7597 = vmatpush3.bf16.msra.mxu0 %v9971_v38 }
0x25b5   : > { %7598 = vmatprep.subr.bf16.mxu0 %v8396_v29 }
0x25b8   : > { %7599 = vmatpush3.bf16.msra.mxu0 %v9978_v59 }
0x25b9   : > { %7600 = vmatprep.subr.bf16.mxu0 %v8396_v29 }
0x25bc   : > { %7601 = vmatpush3.bf16.msra.mxu0 %v9985_v25 }
0x25bd   : > { %7602 = vmatprep.subr.bf16.mxu0 %v8396_v29 }
0x25c0   : > { %7603 = vmatpush3.bf16.msra.mxu0 %v9992_v40 }
0x25c1   : > { %7604 = vmatprep.subr.bf16.mxu0 %v8396_v29 }
0x25c4   : > { %7605 = vmatpush3.bf16.msra.mxu0 %v10024_v45 }
0x25c5   : > { %7630 = vmatprep.subr.bf16.mxu0 %v8396_v29 }
0x267a   : > { %v4276_v20 = vpop.f32.mrb[0].mxu0 }
0x267b   : > { %v4277_v34 = vadd.f32 %v6123_v58, %v4276_v20  ;;  %v7568_v4 = vpop.f32.mrb[1].mxu0 }
0x267c   : > { %v4279_v48 = vpop.f32.mrb[2].mxu0 }
0x267d   : > { %v4284_v9 = vpack.c.bf16 %v4277_v34, %v4277_v34  ;;  %v7569_v49 = vpop.f32.mrb[3].mxu0 }
0x267e   : > { %v6151_v49 = vld [vmem:[%s10589_s9] ss:$0 sm:$0xff] }
0x267f   : > { %7587 = vmatmul.mubr.bf16.vlgmr.msra.gmra.mrb[0].mxu1 %v4284_v9 }
0x2680   : > { %7626 = vmatprep.mubr.msk.bf16.mxu1 %vm8412_vm13, %v8396_v29  ;;  %7611 = vmatpush3.bf16.msra.mxu1 %v8184_v15 }
0x2681   : > { %7612 = vmatprep.subr.bf16.mxu1 %v8396_v29 }
0x2684   : > { %7613 = vmatpush3.bf16.msra.mxu1 %v8185_v50  ;;  %v6152_v50 = vld [vmem:[%s10590_s10] ss:$0 sm:$0xff] }
0x2685   : > { %7614 = vmatprep.subr.bf16.mxu1 %v8396_v29 }
0x2688   : > { %7615 = vmatpush3.bf16.msra.mxu1 %v8186_v7  ;;  %v8194_v7 = vld [vmem:[#allocation11 + $0x50] sm:$0xff]  }
0x2689   : > { %7616 = vmatprep.subr.bf16.mxu1 %v8396_v29 }
0x268c   : > { %7617 = vmatpush3.bf16.msra.mxu1 %v8187_v54  ;;  %v8195_v54 = vld [vmem:[#allocation11 + $0x58] sm:$0xff]  }
0x268d   : > { %7618 = vmatprep.subr.bf16.mxu1 %v8396_v29 }
0x2690   : > { %7619 = vmatpush3.bf16.msra.mxu1 %v8188_v56  ;;  %v8196_v56 = vld [vmem:[#allocation11 + $0x60] sm:$0xff]  }
0x2691   : > { %7620 = vmatprep.subr.bf16.mxu1 %v8396_v29 }
0x2694   : > { %7621 = vmatpush3.bf16.msra.mxu1 %v8189_v57  ;;  %v8197_v57 = vld [vmem:[#allocation11 + $0x68] sm:$0xff]  }
0x2695   : > { %7622 = vmatprep.subr.bf16.mxu1 %v8396_v29 }
0x2698   : > { %7623 = vmatpush3.bf16.msra.mxu1 %v8190_v23  ;;  %v8198_v23 = vld [vmem:[#allocation11 + $0x70] sm:$0xff]  }
0x2699   : > { %7624 = vmatprep.subr.bf16.mxu1 %v8396_v29 }
0x269c   : > { %7625 = vmatpush3.bf16.msra.mxu1 %v8191_v0  ;;  %v8199_v0 = vld [vmem:[#allocation11 + $0x78] sm:$0xff]  }
0x269d   : > { %7650 = vmatprep.subr.bf16.mxu1 %v8396_v29 }
0x2752   : > { %v4367_v51 = vpop.f32.mrb[0].mxu1 }
0x2753   : > { %v4373_v26 = vsub.f32 %v4277_v34, %v4367_v51  ;;  %v7588_v43 = vpop.f32.mrb[1].mxu1 }
0x2754   : > { %v4370_v53 = vpop.f32.mrb[2].mxu1 }
0x2755   : > { %v4374_v42 = vmul.f32 %v4373_v26, %v4373_v26  ;;  %v7589_v16 = vpop.f32.mrb[3].mxu1 }
0x2757   : > { %v4375_v18 = vpack.c.bf16 %v4374_v42, %v4374_v42  ;;  %v8192_v42 = vld [vmem:[#allocation11 + $0x40] sm:$0xff]  }
0x2759   : > { %7607 = vmatmul.mubr.bf16.vlgmr.msra.gmra.mrb[4].mxu0 %v4375_v18  ;;  %v8193_v18 = vld [vmem:[#allocation11 + $0x48] sm:$0xff]  }
0x275a   : > { %7631 = vmatpush3.bf16.msra.mxu0 %v9948_v32  ;;  %7646 = vmatprep.mubr.msk.bf16.mxu0 %vm8412_vm13, %v8396_v29 }
0x275b   : > { %7632 = vmatprep.subr.bf16.mxu0 %v8396_v29 }
0x275e   : > { %7633 = vmatpush3.bf16.msra.mxu0 %v9957_v60 }
0x275f   : > { %7634 = vmatprep.subr.bf16.mxu0 %v8396_v29 }
0x2762   : > { %7635 = vmatpush3.bf16.msra.mxu0 %v9964_v27 }
0x2763   : > { %7636 = vmatprep.subr.bf16.mxu0 %v8396_v29 }
0x2766   : > { %7637 = vmatpush3.bf16.msra.mxu0 %v9971_v38 }
0x2767   : > { %7638 = vmatprep.subr.bf16.mxu0 %v8396_v29 }
0x276a   : > { %7639 = vmatpush3.bf16.msra.mxu0 %v9978_v59 }
0x276b   : > { %7640 = vmatprep.subr.bf16.mxu0 %v8396_v29 }
0x276e   : > { %7641 = vmatpush3.bf16.msra.mxu0 %v9985_v25 }
0x276f   : > { %7642 = vmatprep.subr.bf16.mxu0 %v8396_v29 }
0x2772   : > { %7643 = vmatpush3.bf16.msra.mxu0 %v9992_v40 }
0x2773   : > { %7644 = vmatprep.subr.bf16.mxu0 %v8396_v29 }
0x2776   : > { %7645 = vmatpush3.bf16.msra.mxu0 %v10024_v45 }
0x2777   : > { %7670 = vmatprep.subr.bf16.mxu0 %v8396_v29 }
0x282c   : > { %v4410_v47 = vpop.f32.mrb[4].mxu0 }
0x282d   : > { %v4411_v61 = vadd.f32 1e-05, %v4410_v47  ;;  %v7608_v17 = vpop.f32.mrb[5].mxu0  ;;  %v4776_v47 = vpack.c.bf16 %v9999_v14, %v9999_v14 }
0x282e   : > { %v4413_v46 = vpop.f32.mrb[6].mxu0 }
0x282f   : > { %8252 = vrsqrt.f32 %v4411_v61  ;;  %v7609_v37 = vpop.f32.mrb[7].mxu0 }
0x2839   : > { %v8253_v44 = vpop.eup %8252 }
0x283a   : > { %v4417_v28 = vmul.f32 %v8253_v44, %v4373_v26 }
0x283c   : > { %v4424_v8 = vmul.f32 %v6140_v5, %v4417_v28 }
0x283e   : > { %v4431_v3 = vadd.f32 %v6141_v6, %v4424_v8  ;;  %v6157_v6 = vld [vmem:[%s10619_s4 + $0x1] ss:$0 sm:$0xff]  ;;  %s6120_s4 = smin.u32 %s8382_s27, %s4139_s5 }
0x283f   : > { %8224 = sdivrem.u32 %s6120_s4, 6 }
0x2840   : > { %v4432_v35 = vmax.f32 %v4431_v3, 0.0 }
0x2842   : > { %v4450_v36 = vpack.c.bf16 %v4432_v35, %v4432_v35 }
0x2844   : > { %7627 = vmatmul.mubr.bf16.vlgmr.msra.gmra.mrb[4].mxu1 %v4450_v36 }
0x2845   : > { %7651 = vmatpush3.bf16.msra.mxu1 %v9948_v32  ;;  %7666 = vmatprep.mubr.msk.bf16.mxu1 %vm8412_vm13, %v8396_v29 }
0x2846   : > { %7652 = vmatprep.subr.bf16.mxu1 %v8396_v29 }
0x2848   : > { %s8225_s24 = spop.drf %8224 }
0x2849   : > { %7653 = vmatpush3.bf16.msra.mxu1 %v9957_v60  ;;  %s4143_s30 = ssub.s32 0, %s8225_s24 }
0x284a   : > { %7654 = vmatprep.subr.bf16.mxu1 %v8396_v29  ;;  %s10626_s30 = smov (!%p4138_p11, %s4143_s30), %s8225_s24 }
0x284b   : > { %p6122_p12 = scmp.lt.s32.totalorder %s10626_s30, 0  ;;  %s4149_s21 = sadd.s32 6, %s10626_s30 }
0x284d   : > { %7655 = vmatpush3.bf16.msra.mxu1 %v9964_v27  ;;  %s10628_s21 = smov (!%p6122_p12, %s4149_s21), %s10626_s30 }
0x284e   : > { %7656 = vmatprep.subr.bf16.mxu1 %v8396_v29  ;;  %s6208_s22 = smul.u32 24, %s10628_s21  ;;  %p5766_p13 = scmp.eq.s32.totalorder %s10628_s21, 1 }
0x284f   : > { %p5790_p0 = scmp.eq.s32.totalorder %s10628_s21, 3  ;;  %p5754_p1 = scmp.eq.s32.totalorder %s10628_s21, 0 }
0x2850   : > { %s10201_s28 = scalar_lea.vmem [#allocation2], %s6208_s22  ;;  %s10211_s1 = scalar_lea.vmem [#allocation3], %s6208_s22 }
0x2851   : > { %7657 = vmatpush3.bf16.msra.mxu1 %v9971_v38  ;;  %s10450_s0 = scalar_select %p5766_p13, 1, 0 }
0x2852   : > { %7658 = vmatprep.subr.bf16.mxu1 %v8396_v29  ;;  %s10452_s2 = scalar_select %p5790_p0, 1, 0 }
0x2853   : > { %p5814_p2 = scmp.eq.s32.totalorder %s10628_s21, 5  ;;  %s5768_s5 = scvt.s32.f32 %s10450_s0 }
0x2854   : > { %p5778_p3 = scmp.eq.s32.totalorder %s10628_s21, 2  ;;  %s5792_s4 = scvt.s32.f32 %s10452_s2 }
0x2855   : > { %7659 = vmatpush3.bf16.msra.mxu1 %v9978_v59  ;;  %p5802_p4 = scmp.eq.s32.totalorder %s10628_s21, 4  ;;  %s5871_s0 = sld [smem:[#allocation7]] }
0x2856   : > { %7660 = vmatprep.subr.bf16.mxu1 %v8396_v29  ;;  %s10464_s24 = scalar_select %p5814_p2, 1, 0 }
0x2857   : > { %s10466_s30 = scalar_select %p5778_p3, 1, 0 }
0x2858   : > { %s10468_s25 = scalar_select %p5802_p4, 1, 0 }
0x2859   : > { %7661 = vmatpush3.bf16.msra.mxu1 %v9985_v25  ;;  %s5816_s22 = scvt.s32.f32 %s10464_s24  ;;  %s5780_s23 = scvt.s32.f32 %s10466_s30 }
0x285a   : > { %7662 = vmatprep.subr.bf16.mxu1 %v8396_v29  ;;  %s10480_s3 = ssub.f32 1.0, %s5792_s4  ;;  %s5804_s13 = scvt.s32.f32 %s10468_s25 }
0x285b   : > { %s5873_s2 = sld [smem:[#allocation8]] }
0x285d   : > { %7663 = vmatpush3.bf16.msra.mxu1 %v9992_v40 }
0x285e   : > { %7664 = vmatprep.subr.bf16.mxu1 %v8396_v29 }
0x2861   : > { %7665 = vmatpush3.bf16.msra.mxu1 %v10024_v45 }
0x2862   : > { %7690 = vmatprep.subr.bf16.mxu1 %v8396_v29 }
0x2917   : > { %v4539_v2 = vpop.f32.mrb[4].mxu1 }
0x2918   : > { %v4540_v63 = vadd.f32 %v6142_v62, %v4539_v2  ;;  %v7628_v1 = vpop.f32.mrb[5].mxu1 }
0x2919   : > { %v4542_v30 = vpop.f32.mrb[6].mxu1 }
0x291a   : > { %v4545_v41 = vadd.f32 %v4540_v63, %v4169_v10  ;;  %v7629_v21 = vpop.f32.mrb[7].mxu1 }
0x291c   : > { %v4548_v13 = vpack.c.bf16 %v4545_v41, %v4545_v41 }
0x291e   : > { %7647 = vmatmul.mubr.bf16.vlgmr.msra.gmra.mrb[8].mxu0 %v4548_v13  ;;  %v6153_v13 = vld [vmem:[%s10591_s11] ss:$0 sm:$0xff] }
0x291f   : > { %7671 = vmatpush3.bf16.msra.mxu0 %v9948_v32  ;;  %7686 = vmatprep.mubr.msk.bf16.mxu0 %vm8412_vm13, %v8396_v29 }
0x2920   : > { %7672 = vmatprep.subr.bf16.mxu0 %v8396_v29 }
0x2923   : > { %7673 = vmatpush3.bf16.msra.mxu0 %v9957_v60 }
0x2924   : > { %7674 = vmatprep.subr.bf16.mxu0 %v8396_v29 }
0x2927   : > { %7675 = vmatpush3.bf16.msra.mxu0 %v9964_v27 }
0x2928   : > { %7676 = vmatprep.subr.bf16.mxu0 %v8396_v29 }
0x292b   : > { %7677 = vmatpush3.bf16.msra.mxu0 %v9971_v38 }
0x292c   : > { %7678 = vmatprep.subr.bf16.mxu0 %v8396_v29 }
0x292f   : > { %7679 = vmatpush3.bf16.msra.mxu0 %v9978_v59 }
0x2930   : > { %7680 = vmatprep.subr.bf16.mxu0 %v8396_v29 }
0x2933   : > { %7681 = vmatpush3.bf16.msra.mxu0 %v9985_v25 }
0x2934   : > { %7682 = vmatprep.subr.bf16.mxu0 %v8396_v29 }
0x2937   : > { %7683 = vmatpush3.bf16.msra.mxu0 %v9992_v40 }
0x2938   : > { %7684 = vmatprep.subr.bf16.mxu0 %v8396_v29 }
0x293b   : > { %7685 = vmatpush3.bf16.msra.mxu0 %v10024_v45 }
0x293c   : > { %7710 = vmatprep.subr.bf16.mxu0 %v8396_v29 }
0x29f1   : > { %v4583_v11 = vpop.f32.mrb[8].mxu0 }
0x29f2   : > { %v4589_v12 = vsub.f32 %v4545_v41, %v4583_v11  ;;  %v7648_v19 = vpop.f32.mrb[9].mxu0 }
0x29f3   : > { %v4586_v39 = vpop.f32.mrb[10].mxu0 }
0x29f4   : > { %v4590_v31 = vmul.f32 %v4589_v12, %v4589_v12  ;;  %v7649_v55 = vpop.f32.mrb[11].mxu0 }
0x29f6   : > { %v4591_v24 = vpack.c.bf16 %v4590_v31, %v4590_v31 }
0x29f8   : > { %7667 = vmatmul.mubr.bf16.vlgmr.msra.gmra.mrb[8].mxu1 %v4591_v24 }
0x29f9   : > { %7691 = vmatpush3.bf16.msra.mxu1 %v9948_v32  ;;  %7706 = vmatprep.mubr.msk.bf16.mxu1 %vm8412_vm13, %v8396_v29 }
0x29fa   : > { %7692 = vmatprep.subr.bf16.mxu1 %v8396_v29 }
0x29fd   : > { %7693 = vmatpush3.bf16.msra.mxu1 %v9957_v60 }
0x29fe   : > { %7694 = vmatprep.subr.bf16.mxu1 %v8396_v29 }
0x2a01   : > { %7695 = vmatpush3.bf16.msra.mxu1 %v9964_v27 }
0x2a02   : > { %7696 = vmatprep.subr.bf16.mxu1 %v8396_v29 }
0x2a05   : > { %7697 = vmatpush3.bf16.msra.mxu1 %v9971_v38 }
0x2a06   : > { %7698 = vmatprep.subr.bf16.mxu1 %v8396_v29 }
0x2a09   : > { %7699 = vmatpush3.bf16.msra.mxu1 %v9978_v59 }
0x2a0a   : > { %7700 = vmatprep.subr.bf16.mxu1 %v8396_v29 }
0x2a0d   : > { %7701 = vmatpush3.bf16.msra.mxu1 %v9985_v25 }
0x2a0e   : > { %7702 = vmatprep.subr.bf16.mxu1 %v8396_v29 }
0x2a11   : > { %7703 = vmatpush3.bf16.msra.mxu1 %v9992_v40 }
0x2a12   : > { %7704 = vmatprep.subr.bf16.mxu1 %v8396_v29 }
0x2a15   : > { %7705 = vmatpush3.bf16.msra.mxu1 %v10024_v45 }
0x2a16   : > { %7730 = vmatprep.subr.bf16.mxu1 %v8396_v29 }
0x2acb   : > { %v4626_v58 = vpop.f32.mrb[8].mxu1 }
0x2acc   : > { %v4627_v20 = vadd.f32 1e-05, %v4626_v58  ;;  %v7668_v34 = vpop.f32.mrb[9].mxu1 }
0x2acd   : > { %v4629_v4 = vpop.f32.mrb[10].mxu1 }
0x2ace   : > { %8254 = vrsqrt.f32 %v4627_v20  ;;  %v7669_v48 = vpop.f32.mrb[11].mxu1 }
0x2ad8   : > { %v8255_v9 = vpop.eup %8254 }
0x2ad9   : > { %v4633_v15 = vmul.f32 %v8255_v9, %v4589_v12  ;;  %v6154_v12 = vld [vmem:[%s10592_s12] ss:$0 sm:$0xff] }
0x2adb   : > { %v4640_v51 = vmul.f32 %v6151_v49, %v4633_v15 }
0x2add   : > { %v4647_v26 = vadd.f32 %v6152_v50, %v4640_v51 }
0x2adf   : > { %v4648_v43 = vadd.f32 %v4647_v26, %v9997_v22 }
0x2ae1   : > { %v4649_v53 = vmax.f32 %v4648_v43, 0.0  ;;  %v8200_v43 = vld [vmem:[#allocation13 + $0x40] sm:$0xff]  }
0x2ae3   : > { %v4652_v16 = vpack.c.bf16 %v4649_v53, %v4649_v53 }
0x2ae5   : > { %7687 = vmatmul.mubr.bf16.vlgmr.msra.gmra.mrb[12].mxu0 %v4652_v16  ;;  %v8203_v16 = vld [vmem:[#allocation13 + $0x58] sm:$0xff]  }
0x2ae6   : > { %7711 = vmatpush3.bf16.msra.mxu0 %v8192_v42  ;;  %7726 = vmatprep.mubr.msk.bf16.mxu0 %vm8412_vm13, %v8396_v29  ;;  %v8202_v42 = vld [vmem:[#allocation13 + $0x50] sm:$0xff]  }
0x2ae7   : > { %7712 = vmatprep.subr.bf16.mxu0 %v8396_v29 }
0x2aea   : > { %7713 = vmatpush3.bf16.msra.mxu0 %v8193_v18  ;;  %v8204_v18 = vld [vmem:[#allocation13 + $0x60] sm:$0xff]  }
0x2aeb   : > { %7714 = vmatprep.subr.bf16.mxu0 %v8396_v29 }
0x2aee   : > { %7715 = vmatpush3.bf16.msra.mxu0 %v8194_v7  ;;  %v8205_v7 = vld [vmem:[#allocation13 + $0x68] sm:$0xff]  }
0x2aef   : > { %7716 = vmatprep.subr.bf16.mxu0 %v8396_v29 }
0x2af2   : > { %7717 = vmatpush3.bf16.msra.mxu0 %v8195_v54  ;;  %v8206_v54 = vld [vmem:[#allocation13 + $0x70] sm:$0xff]  }
0x2af3   : > { %7718 = vmatprep.subr.bf16.mxu0 %v8396_v29 }
0x2af6   : > { %7719 = vmatpush3.bf16.msra.mxu0 %v8196_v56  ;;  %v8207_v56 = vld [vmem:[#allocation13 + $0x78] sm:$0xff]  }
0x2af7   : > { %7720 = vmatprep.subr.bf16.mxu0 %v8396_v29 }
0x2afa   : > { %7721 = vmatpush3.bf16.msra.mxu0 %v8197_v57 }
0x2afb   : > { %7722 = vmatprep.subr.bf16.mxu0 %v8396_v29 }
0x2afe   : > { %7723 = vmatpush3.bf16.msra.mxu0 %v8198_v23 }
0x2aff   : > { %7724 = vmatprep.subr.bf16.mxu0 %v8396_v29 }
0x2b02   : > { %7725 = vmatpush3.bf16.msra.mxu0 %v8199_v0 }
0x2b03   : > { %7750 = vmatprep.subr.bf16.mxu0 %v8396_v29 }
0x2b05   : > { %7727 = vmatmul.mubr.bf16.vlgmr.msra.gmra.mrb[16].mxu0 %v4776_v47 }
0x2b06   : > { %7751 = vmatpush3.bf16.msra.mxu0 %v9948_v32  ;;  %7766 = vmatprep.mubr.msk.bf16.mxu0 %vm8412_vm13, %v8396_v29 }
0x2b07   : > { %7752 = vmatprep.subr.bf16.mxu0 %v8396_v29 }
0x2b0a   : > { %7753 = vmatpush3.bf16.msra.mxu0 %v9957_v60 }
0x2b0b   : > { %7754 = vmatprep.subr.bf16.mxu0 %v8396_v29 }
0x2b0e   : > { %7755 = vmatpush3.bf16.msra.mxu0 %v9964_v27 }
0x2b0f   : > { %7756 = vmatprep.subr.bf16.mxu0 %v8396_v29 }
0x2b12   : > { %7757 = vmatpush3.bf16.msra.mxu0 %v9971_v38 }
0x2b13   : > { %7758 = vmatprep.subr.bf16.mxu0 %v8396_v29 }
0x2b16   : > { %7759 = vmatpush3.bf16.msra.mxu0 %v9978_v59 }
0x2b17   : > { %7760 = vmatprep.subr.bf16.mxu0 %v8396_v29 }
0x2b1a   : > { %7761 = vmatpush3.bf16.msra.mxu0 %v9985_v25 }
0x2b1b   : > { %7762 = vmatprep.subr.bf16.mxu0 %v8396_v29 }
0x2b1e   : > { %7763 = vmatpush3.bf16.msra.mxu0 %v9992_v40 }
0x2b1f   : > { %7764 = vmatprep.subr.bf16.mxu0 %v8396_v29 }
0x2b22   : > { %7765 = vmatpush3.bf16.msra.mxu0 %v10024_v45 }
0x2b23   : > { %7790 = vmatprep.subr.bf16.mxu0 %v8396_v29 }
0x2bb8   : > { %v4687_v61 = vpop.f32.mrb[12].mxu0 }
0x2bb9   : > { %v4693_v17 = vsub.f32 %v4649_v53, %v4687_v61  ;;  %v7688_v46 = vpop.f32.mrb[13].mxu0  ;;  %v8201_v53 = vld [vmem:[#allocation13 + $0x48] sm:$0xff]  }
0x2bba   : > { %v4690_v37 = vpop.f32.mrb[14].mxu0  ;;  %v6168_v46 = vld [vmem:[%s10587_s7 + $0x1] ss:$0 sm:$0xff] }
0x2bbb   : > { %v4694_v44 = vmul.f32 %v4693_v17, %v4693_v17  ;;  %v7689_v5 = vpop.f32.mrb[15].mxu0 }
0x2bbd   : > { %v4695_v28 = vpack.c.bf16 %v4694_v44, %v4694_v44  ;;  %v6169_v44 = vld [vmem:[%s10588_s8 + $0x1] ss:$0 sm:$0xff] }
0x2bbf   : > { %7707 = vmatmul.mubr.bf16.vlgmr.msra.gmra.mrb[12].mxu1 %v4695_v28 }
0x2bc0   : > { %7731 = vmatpush3.bf16.msra.mxu1 %v9948_v32  ;;  %7746 = vmatprep.mubr.msk.bf16.mxu1 %vm8412_vm13, %v8396_v29 }
0x2bc1   : > { %7732 = vmatprep.subr.bf16.mxu1 %v8396_v29 }
0x2bc4   : > { %7733 = vmatpush3.bf16.msra.mxu1 %v9957_v60 }
0x2bc5   : > { %7734 = vmatprep.subr.bf16.mxu1 %v8396_v29 }
0x2bc8   : > { %7735 = vmatpush3.bf16.msra.mxu1 %v9964_v27 }
0x2bc9   : > { %7736 = vmatprep.subr.bf16.mxu1 %v8396_v29 }
0x2bcc   : > { %7737 = vmatpush3.bf16.msra.mxu1 %v9971_v38 }
0x2bcd   : > { %7738 = vmatprep.subr.bf16.mxu1 %v8396_v29 }
0x2bd0   : > { %7739 = vmatpush3.bf16.msra.mxu1 %v9978_v59 }
0x2bd1   : > { %7740 = vmatprep.subr.bf16.mxu1 %v8396_v29 }
0x2bd4   : > { %7741 = vmatpush3.bf16.msra.mxu1 %v9985_v25 }
0x2bd5   : > { %7742 = vmatprep.subr.bf16.mxu1 %v8396_v29 }
0x2bd8   : > { %v4865_v8 = vpop.f32.mrb[16].mxu0  ;;  %7743 = vmatpush3.bf16.msra.mxu1 %v9992_v40 }
0x2bd9   : > { %v4866_v3 = vadd.f32 %v6157_v6, %v4865_v8  ;;  %v7728_v35 = vpop.f32.mrb[17].mxu0  ;;  %7744 = vmatprep.subr.bf16.mxu1 %v8396_v29 }
0x2bda   : > { %v4868_v36 = vpop.f32.mrb[18].mxu0  ;;  %v4758_v35 = vld [vmem:[%s10620_s26 + $0x8] sm:$0xff] }
0x2bdb   : > { %v7729_v62 = vpop.f32.mrb[19].mxu0  ;;  %v4873_v10 = vpack.c.bf16 %v4866_v3, %v4866_v3 }
0x2bdc   : > { %7745 = vmatpush3.bf16.msra.mxu1 %v10024_v45 }
0x2bdd   : > { %7770 = vmatprep.subr.bf16.mxu1 %v8396_v29 }
0x2bdf   : > { %7747 = vmatmul.mubr.bf16.vlgmr.msra.gmra.mrb[16].mxu1 %v4873_v10 }
0x2be0   : > { %7786 = vmatprep.mubr.msk.bf16.mxu1 %vm8412_vm13, %v8396_v29  ;;  %7771 = vmatpush3.bf16.msra.mxu1 %v8200_v43 }
0x2be1   : > { %7772 = vmatprep.subr.bf16.mxu1 %v8396_v29 }
0x2be4   : > { %7773 = vmatpush3.bf16.msra.mxu1 %v8201_v53  ;;  %v8210_v53 = vld [vmem:[#allocation15 + $0x10] sm:$0xff]  }
0x2be5   : > { %7774 = vmatprep.subr.bf16.mxu1 %v8396_v29 }
0x2be8   : > { %7775 = vmatpush3.bf16.msra.mxu1 %v8202_v42  ;;  %v8211_v42 = vld [vmem:[#allocation15 + $0x18] sm:$0xff]  }
0x2be9   : > { %7776 = vmatprep.subr.bf16.mxu1 %v8396_v29 }
0x2bec   : > { %7777 = vmatpush3.bf16.msra.mxu1 %v8203_v16  ;;  %v8212_v16 = vld [vmem:[#allocation15 + $0x20] sm:$0xff]  }
0x2bed   : > { %7778 = vmatprep.subr.bf16.mxu1 %v8396_v29 }
0x2bf0   : > { %7779 = vmatpush3.bf16.msra.mxu1 %v8204_v18  ;;  %v8213_v18 = vld [vmem:[#allocation15 + $0x28] sm:$0xff]  }
0x2bf1   : > { %7780 = vmatprep.subr.bf16.mxu1 %v8396_v29 }
0x2bf4   : > { %7781 = vmatpush3.bf16.msra.mxu1 %v8205_v7  ;;  %v8214_v7 = vld [vmem:[#allocation15 + $0x30] sm:$0xff]  }
0x2bf5   : > { %7782 = vmatprep.subr.bf16.mxu1 %v8396_v29 }
0x2bf8   : > { %7783 = vmatpush3.bf16.msra.mxu1 %v8206_v54  ;;  %v8215_v54 = vld [vmem:[#allocation15 + $0x38] sm:$0xff]  }
0x2bf9   : > { %7784 = vmatprep.subr.bf16.mxu1 %v8396_v29 }
0x2bfc   : > { %7785 = vmatpush3.bf16.msra.mxu1 %v8207_v56 }
0x2bfd   : > { %7810 = vmatprep.subr.bf16.mxu1 %v8396_v29 }
0x2c92   : > { %v4730_v2 = vpop.f32.mrb[12].mxu1 }
0x2c93   : > { %v4731_v63 = vadd.f32 1e-05, %v4730_v2  ;;  %v7708_v1 = vpop.f32.mrb[13].mxu1 }
0x2c94   : > { %v4733_v30 = vpop.f32.mrb[14].mxu1 }
0x2c95   : > { %8256 = vrsqrt.f32 %v4731_v63  ;;  %v7709_v41 = vpop.f32.mrb[15].mxu1 }
0x2c9f   : > { %v8257_v21 = vpop.eup %8256 }
0x2ca0   : > { %v4737_v11 = vmul.f32 %v8257_v21, %v4693_v17 }
0x2ca2   : > { %v4744_v19 = vmul.f32 %v6153_v13, %v4737_v11 }
0x2ca4   : > { %v10199_v39 = vadd.f32 %v6154_v12, %v4744_v19 }
0x2ca6   : > { %4755 = vst [vmem:[%s10201_s28] sm:$0xff] %v10199_v39  ;;  %v5665_v31 = vmul.f32 %v10199_v39, %v10199_v39  ;;  %v10209_v55 = vsub.f32 %v10199_v39, %v9997_v22 }
0x2ca8   : > { %5666 = vadd.xlane.f32.xlu0 %v5665_v31  ;;  %5634 = vst [vmem:[%s10211_s1] sm:$0xff] %v10209_v55 }
0x2caf   : > { %v5640_v24 = vld [vmem:[#allocation3 + $0x18] sm:$0xff]  ;;  %v5635_v58 = vld [vmem:[#allocation3] sm:$0xff]  ;;  %v5645_v48 = vld [vmem:[#allocation3 + $0x30] sm:$0xff] }
0x2cb0   : > { %v5641_v20 = vmul.f32 %v5640_v24, %v10209_v55  ;;  %v5636_v34 = vmul.f32 %v5635_v58, %v10209_v55  ;;  %v5646_v51 = vmul.f32 %v5645_v48, %v10209_v55 }
0x2cb2   : > { %v4908_v4 = vpop.f32.mrb[16].mxu1  ;;  %5642 = vadd.xlane.f32.xlu1 %v5641_v20  ;;  %5637 = vadd.xlane.f32.xlu0 %v5636_v34 }
0x2cb3   : > { %v4914_v9 = vsub.f32 %v4866_v3, %v4908_v4  ;;  %v7748_v49 = vpop.f32.mrb[17].mxu1  ;;  %v6171_v3 = vld [vmem:[%s10586_s6 + $0x1] ss:$0 sm:$0xff] }
0x2cb4   : > { %v4911_v22 = vpop.f32.mrb[18].mxu1  ;;  %v8209_v49 = vld [vmem:[#allocation15 + $0x8] sm:$0xff]  }
0x2cb5   : > { %v4915_v15 = vmul.f32 %v4914_v9, %v4914_v9  ;;  %v7749_v50 = vpop.f32.mrb[19].mxu1 }
0x2cb6   : > { %5647 = vadd.xlane.f32.xlu0 %v5646_v51 }
0x2cb7   : > { %v4916_v26 = vpack.c.bf16 %v4915_v15, %v4915_v15 }
0x2cb9   : > { %7767 = vmatmul.mubr.bf16.vlgmr.msra.gmra.mrb[20].mxu0 %v4916_v26 }
0x2cba   : > { %7791 = vmatpush3.bf16.msra.mxu0 %v9948_v32  ;;  %7806 = vmatprep.mubr.msk.bf16.mxu0 %vm8412_vm13, %v8396_v29 }
0x2cbb   : > { %7792 = vmatprep.subr.bf16.mxu0 %v8396_v29 }
0x2cbe   : > { %7793 = vmatpush3.bf16.msra.mxu0 %v9957_v60 }
0x2cbf   : > { %7794 = vmatprep.subr.bf16.mxu0 %v8396_v29 }
0x2cc2   : > { %7795 = vmatpush3.bf16.msra.mxu0 %v9964_v27 }
0x2cc3   : > { %7796 = vmatprep.subr.bf16.mxu0 %v8396_v29 }
0x2cc6   : > { %7797 = vmatpush3.bf16.msra.mxu0 %v9971_v38 }
0x2cc7   : > { %7798 = vmatprep.subr.bf16.mxu0 %v8396_v29 }
0x2cca   : > { %7799 = vmatpush3.bf16.msra.mxu0 %v9978_v59 }
0x2ccb   : > { %7800 = vmatprep.subr.bf16.mxu0 %v8396_v29 }
0x2cce   : > { %7801 = vmatpush3.bf16.msra.mxu0 %v9985_v25 }
0x2ccf   : > { %7802 = vmatprep.subr.bf16.mxu0 %v8396_v29 }
0x2cd2   : > { %7803 = vmatpush3.bf16.msra.mxu0 %v9992_v40 }
0x2cd3   : > { %7804 = vmatprep.subr.bf16.mxu0 %v8396_v29 }
0x2cd6   : > { %7805 = vmatpush3.bf16.msra.mxu0 %v10024_v45 }
0x2cd7   : > { %7830 = vmatprep.subr.bf16.mxu0 %v8396_v29 }
0x2d8c   : > { %v4951_v57 = vpop.f32.mrb[20].mxu0 }
0x2d8d   : > { %v4952_v23 = vadd.f32 1e-05, %v4951_v57  ;;  %v7768_v0 = vpop.f32.mrb[21].mxu0 }
0x2d8e   : > { %v4954_v47 = vpop.f32.mrb[22].mxu0 }
0x2d8f   : > { %8258 = vrsqrt.f32 %v4952_v23  ;;  %v7769_v61 = vpop.f32.mrb[23].mxu0 }
0x2d99   : > { %v8259_v17 = vpop.eup %8258 }
0x2d9a   : > { %v4958_v37 = vmul.f32 %v8259_v17, %v4914_v9  ;;  %v8208_v9 = vld [vmem:[#allocation15] sm:$0xff]   ;;  %v6186_v17 = vld [vmem:[%s10591_s11 + $0x1] ss:$0 sm:$0xff] }
0x2d9c   : > { %v4965_v5 = vmul.f32 %v6168_v46, %v4958_v37  ;;  %v6187_v37 = vld [vmem:[%s10592_s12 + $0x1] ss:$0 sm:$0xff] }
0x2d9e   : > { %v4972_v28 = vadd.f32 %v6169_v44, %v4965_v5  ;;  %v10335_v5 = vld [vmem:[#allocation4 + $0x10] sm:$0xff] }
0x2da0   : > { %v4973_v6 = vmax.f32 %v4972_v28, 0.0 }
0x2da2   : > { %v4991_v8 = vpack.c.bf16 %v4973_v6, %v4973_v6  ;;  %v5670_v6 = vld [vmem:[#allocation4 + $0x8] sm:$0xff] }
0x2da4   : > { %7787 = vmatmul.mubr.bf16.vlgmr.msra.gmra.mrb[20].mxu1 %v4991_v8 }
0x2da5   : > { %7811 = vmatpush3.bf16.msra.mxu1 %v9948_v32  ;;  %7826 = vmatprep.mubr.msk.bf16.mxu1 %vm8412_vm13, %v8396_v29 }
0x2da6   : > { %7812 = vmatprep.subr.bf16.mxu1 %v8396_v29 }
0x2da9   : > { %7813 = vmatpush3.bf16.msra.mxu1 %v9957_v60 }
0x2daa   : > { %7814 = vmatprep.subr.bf16.mxu1 %v8396_v29 }
0x2dad   : > { %7815 = vmatpush3.bf16.msra.mxu1 %v9964_v27 }
0x2dae   : > { %7816 = vmatprep.subr.bf16.mxu1 %v8396_v29 }
0x2db1   : > { %7817 = vmatpush3.bf16.msra.mxu1 %v9971_v38 }
0x2db2   : > { %7818 = vmatprep.subr.bf16.mxu1 %v8396_v29 }
0x2db5   : > { %7819 = vmatpush3.bf16.msra.mxu1 %v9978_v59 }
0x2db6   : > { %7820 = vmatprep.subr.bf16.mxu1 %v8396_v29 }
0x2db9   : > { %7821 = vmatpush3.bf16.msra.mxu1 %v9985_v25 }
0x2dba   : > { %7822 = vmatprep.subr.bf16.mxu1 %v8396_v29 }
0x2dbd   : > { %7823 = vmatpush3.bf16.msra.mxu1 %v9992_v40 }
0x2dbe   : > { %7824 = vmatprep.subr.bf16.mxu1 %v8396_v29 }
0x2dc1   : > { %7825 = vmatpush3.bf16.msra.mxu1 %v10024_v45 }
0x2dc2   : > { %7850 = vmatprep.subr.bf16.mxu1 %v8396_v29 }
0x2e77   : > { %v5080_v36 = vpop.f32.mrb[20].mxu1 }
0x2e78   : > { %v5081_v62 = vadd.f32 %v6171_v3, %v5080_v36  ;;  %v7788_v10 = vpop.f32.mrb[21].mxu1  ;;  %v5295_v3 = vmul.f32 2.0, %v10335_v5 }
0x2e79   : > { %v5083_v2 = vpop.f32.mrb[22].mxu1  ;;  %v5655_v10 = vld [vmem:[#allocation3 + $0x60] sm:$0xff] }
0x2e7a   : > { %v5086_v63 = vadd.f32 %v5081_v62, %v4758_v35  ;;  %v7789_v1 = vpop.f32.mrb[23].mxu1  ;;  %v10342_v62 = vld [vmem:[#allocation3 + $0x48] sm:$0xff]  ;;  %v10344_v2 = vld [vmem:[#allocation3 + $0x78] sm:$0xff] }
0x2e7c   : > { %v5089_v30 = vpack.c.bf16 %v5086_v63, %v5086_v63 }
0x2e7e   : > { %7807 = vmatmul.mubr.bf16.vlgmr.msra.gmra.mrb[24].mxu0 %v5089_v30 }
0x2e7f   : > { %7831 = vmatpush3.bf16.msra.mxu0 %v9948_v32  ;;  %7846 = vmatprep.mubr.msk.bf16.mxu0 %vm8412_vm13, %v8396_v29 }
0x2e80   : > { %7832 = vmatprep.subr.bf16.mxu0 %v8396_v29 }
0x2e83   : > { %7833 = vmatpush3.bf16.msra.mxu0 %v9957_v60 }
0x2e84   : > { %7834 = vmatprep.subr.bf16.mxu0 %v8396_v29 }
0x2e87   : > { %7835 = vmatpush3.bf16.msra.mxu0 %v9964_v27 }
0x2e88   : > { %7836 = vmatprep.subr.bf16.mxu0 %v8396_v29 }
0x2e8b   : > { %7837 = vmatpush3.bf16.msra.mxu0 %v9971_v38 }
0x2e8c   : > { %7838 = vmatprep.subr.bf16.mxu0 %v8396_v29 }
0x2e8f   : > { %7839 = vmatpush3.bf16.msra.mxu0 %v9978_v59 }
0x2e90   : > { %7840 = vmatprep.subr.bf16.mxu0 %v8396_v29 }
0x2e93   : > { %7841 = vmatpush3.bf16.msra.mxu0 %v9985_v25 }
0x2e94   : > { %7842 = vmatprep.subr.bf16.mxu0 %v8396_v29 }
0x2e97   : > { %7843 = vmatpush3.bf16.msra.mxu0 %v9992_v40 }
0x2e98   : > { %7844 = vmatprep.subr.bf16.mxu0 %v8396_v29 }
0x2e9b   : > { %7845 = vmatpush3.bf16.msra.mxu0 %v10024_v45 }
0x2e9c   : > { %7870 = vmatprep.subr.bf16.mxu0 %v8396_v29 }
0x2f51   : > { %v5124_v41 = vpop.f32.mrb[24].mxu0 }
0x2f52   : > { %v5130_v21 = vsub.f32 %v5086_v63, %v5124_v41  ;;  %v7808_v13 = vpop.f32.mrb[25].mxu0 }
0x2f53   : > { %v5127_v11 = vpop.f32.mrb[26].mxu0 }
0x2f54   : > { %v5131_v12 = vmul.f32 %v5130_v21, %v5130_v21  ;;  %v7809_v19 = vpop.f32.mrb[27].mxu0 }
0x2f56   : > { %v5132_v31 = vpack.c.bf16 %v5131_v12, %v5131_v12  ;;  %v10362_v12 = vld [vmem:[%s10618_s29 + $0x8] sm:$0xff]  }
0x2f58   : > { %7827 = vmatmul.mubr.bf16.vlgmr.msra.gmra.mrb[24].mxu1 %v5132_v31 }
0x2f59   : > { %7851 = vmatpush3.bf16.msra.mxu1 %v9948_v32  ;;  %7866 = vmatprep.mubr.msk.bf16.mxu1 %vm8412_vm13, %v8396_v29 }
0x2f5a   : > { %7852 = vmatprep.subr.bf16.mxu1 %v8396_v29 }
0x2f5d   : > { %7853 = vmatpush3.bf16.msra.mxu1 %v9957_v60 }
0x2f5e   : > { %7854 = vmatprep.subr.bf16.mxu1 %v8396_v29 }
0x2f61   : > { %7855 = vmatpush3.bf16.msra.mxu1 %v9964_v27 }
0x2f62   : > { %7856 = vmatprep.subr.bf16.mxu1 %v8396_v29 }
0x2f65   : > { %7857 = vmatpush3.bf16.msra.mxu1 %v9971_v38 }
0x2f66   : > { %7858 = vmatprep.subr.bf16.mxu1 %v8396_v29 }
0x2f69   : > { %7859 = vmatpush3.bf16.msra.mxu1 %v9978_v59 }
0x2f6a   : > { %7860 = vmatprep.subr.bf16.mxu1 %v8396_v29 }
0x2f6d   : > { %7861 = vmatpush3.bf16.msra.mxu1 %v9985_v25  ;;  %v6182_v25 = vld [vmem:[%s10589_s9 + $0x1] ss:$0 sm:$0xff] }
0x2f6e   : > { %7862 = vmatprep.subr.bf16.mxu1 %v8396_v29 }
0x2f71   : > { %7863 = vmatpush3.bf16.msra.mxu1 %v9992_v40  ;;  %v6183_v40 = vld [vmem:[%s10590_s10 + $0x1] ss:$0 sm:$0xff] }
0x2f72   : > { %7864 = vmatprep.subr.bf16.mxu1 %v8396_v29 }
0x2f75   : > { %7865 = vmatpush3.bf16.msra.mxu1 %v10024_v45 }
0x2f76   : > { %7890 = vmatprep.subr.bf16.mxu1 %v8396_v29 }
0x302b   : > { %v5167_v32 = vpop.f32.mrb[24].mxu1 }
0x302c   : > { %v5168_v60 = vadd.f32 1e-05, %v5167_v32  ;;  %v7828_v27 = vpop.f32.mrb[25].mxu1  ;;  %v10370_v32 = vld [vmem:[%s10618_s29 + $0x10] sm:$0xff]  }
0x302d   : > { %v5170_v38 = vpop.f32.mrb[26].mxu1  ;;  %v8273_v27 = vld [vmem:[%s10618_s29 + $0x18] sm:$0xff]  }
0x302e   : > { %8260 = vrsqrt.f32 %v5168_v60  ;;  %v7829_v59 = vpop.f32.mrb[27].mxu1  ;;  %v5656_v38 = vmul.f32 %v5655_v10, %v10209_v55 }
0x3038   : > { %v8261_v24 = vpop.eup %8260 }
0x3039   : > { %v5174_v58 = vmul.f32 %v8261_v24, %v5130_v21  ;;  %v8274_v24 = vld [vmem:[%s10618_s29 + $0x20] sm:$0xff]  }
0x303b   : > { %v5181_v20 = vmul.f32 %v6182_v25, %v5174_v58  ;;  %v8275_v58 = vld [vmem:[%s10618_s29 + $0x28] sm:$0xff]  }
0x303d   : > { %v5188_v45 = vadd.f32 %v6183_v40, %v5181_v20  ;;  %v8276_v40 = vld [vmem:[%s10618_s29 + $0x30] sm:$0xff]   ;;  %v8277_v20 = vld [vmem:[%s10618_s29 + $0x38] sm:$0xff]  }
0x303f   : > { %v5189_v34 = vadd.f32 %v5188_v45, %v9999_v14  ;;  %v8216_v45 = vld [vmem:[#allocation16] sm:$0xff]  }
0x3041   : > { %v5190_v4 = vmax.f32 %v5189_v34, 0.0  ;;  %v8217_v34 = vld [vmem:[#allocation16 + $0x8] sm:$0xff]  }
0x3043   : > { %v5193_v48 = vpack.c.bf16 %v5190_v4, %v5190_v4 }
0x3045   : > { %7847 = vmatmul.mubr.bf16.vlgmr.msra.gmra.mrb[28].mxu0 %v5193_v48  ;;  %v8219_v48 = vld [vmem:[#allocation16 + $0x18] sm:$0xff]  }
0x3046   : > { %7886 = vmatprep.mubr.msk.bf16.mxu0 %vm8412_vm13, %v8396_v29  ;;  %7871 = vmatpush3.bf16.msra.mxu0 %v8208_v9  ;;  %v8220_v9 = vld [vmem:[#allocation16 + $0x20] sm:$0xff]  }
0x3047   : > { %7872 = vmatprep.subr.bf16.mxu0 %v8396_v29 }
0x304a   : > { %7873 = vmatpush3.bf16.msra.mxu0 %v8209_v49  ;;  %v8221_v49 = vld [vmem:[#allocation16 + $0x28] sm:$0xff]  }
0x304b   : > { %7874 = vmatprep.subr.bf16.mxu0 %v8396_v29 }
0x304e   : > { %7875 = vmatpush3.bf16.msra.mxu0 %v8210_v53 }
0x304f   : > { %7876 = vmatprep.subr.bf16.mxu0 %v8396_v29 }
0x3052   : > { %7877 = vmatpush3.bf16.msra.mxu0 %v8211_v42 }
0x3053   : > { %7878 = vmatprep.subr.bf16.mxu0 %v8396_v29 }
0x3056   : > { %7879 = vmatpush3.bf16.msra.mxu0 %v8212_v16 }
0x3057   : > { %7880 = vmatprep.subr.bf16.mxu0 %v8396_v29 }
0x305a   : > { %7881 = vmatpush3.bf16.msra.mxu0 %v8213_v18 }
0x305b   : > { %7882 = vmatprep.subr.bf16.mxu0 %v8396_v29 }
0x305e   : > { %7883 = vmatpush3.bf16.msra.mxu0 %v8214_v7 }
0x305f   : > { %7884 = vmatprep.subr.bf16.mxu0 %v8396_v29 }
0x3062   : > { %7885 = vmatpush3.bf16.msra.mxu0 %v8215_v54  ;;  %v6196_v54 = vld [vmem:[%s10596_s16] ss:$0 sm:$0xff] }
0x3063   : > { %7910 = vmatprep.subr.bf16.mxu0 %v8396_v29 }
0x3118   : > { %v5228_v22 = vpop.f32.mrb[28].mxu0 }
0x3119   : > { %v5234_v15 = vsub.f32 %v5190_v4, %v5228_v22  ;;  %v7848_v50 = vpop.f32.mrb[29].mxu0  ;;  %v8218_v4 = vld [vmem:[#allocation16 + $0x10] sm:$0xff]  }
0x311a   : > { %v5231_v51 = vpop.f32.mrb[30].mxu0  ;;  %v8222_v22 = vld [vmem:[#allocation16 + $0x30] sm:$0xff]  }
0x311b   : > { %v5235_v26 = vmul.f32 %v5234_v15, %v5234_v15  ;;  %v7849_v14 = vpop.f32.mrb[31].mxu0  ;;  %v5314_v50 = vld [vmem:[%s10594_s14] sm:$0x1] }
0x311c   : > { %v5315_v51 = vmul.f32 2.0, %v5314_v50 }
0x311d   : > { %v5236_v43 = vpack.c.bf16 %v5235_v26, %v5235_v26 }
0x311e   : > { %v5320_v26 = vrot.slane %v5315_v51, %v9078_v52 }
0x311f   : > { %7867 = vmatmul.mubr.bf16.vlgmr.msra.gmra.mrb[28].mxu1 %v5236_v43 }
0x3120   : > { %7906 = vmatprep.mubr.msk.bf16.mxu1 %vm8412_vm13, %v8396_v29  ;;  %7891 = vmatpush3.bf16.msra.mxu1 %v8216_v45 }
0x3121   : > { %7892 = vmatprep.subr.bf16.mxu1 %v8396_v29 }
0x3124   : > { %7893 = vmatpush3.bf16.msra.mxu1 %v8217_v34 }
0x3125   : > { %7894 = vmatprep.subr.bf16.mxu1 %v8396_v29 }
0x3128   : > { %7895 = vmatpush3.bf16.msra.mxu1 %v8218_v4 }
0x3129   : > { %7896 = vmatprep.subr.bf16.mxu1 %v8396_v29 }
0x312c   : > { %7897 = vmatpush3.bf16.msra.mxu1 %v8219_v48 }
0x312d   : > { %7898 = vmatprep.subr.bf16.mxu1 %v8396_v29 }
0x3130   : > { %7899 = vmatpush3.bf16.msra.mxu1 %v8220_v9  ;;  %v5643_v9 = vpop.xlane.xlu1 %5642 }
0x3131   : > { %7900 = vmatprep.subr.bf16.mxu1 %v8396_v29 }
0x3134   : > { %7901 = vmatpush3.bf16.msra.mxu1 %v8221_v49 }
0x3135   : > { %7902 = vmatprep.subr.bf16.mxu1 %v8396_v29 }
0x3138   : > { %7903 = vmatpush3.bf16.msra.mxu1 %v8222_v22 }
0x3139   : > { %7904 = vmatprep.subr.bf16.mxu1 %v8396_v29 }
0x31f2   : > { %v5271_v56 = vpop.f32.mrb[28].mxu1 }
0x31f3   : > { %v5272_v57 = vadd.f32 1e-05, %v5271_v56  ;;  %v7868_v23 = vpop.f32.mrb[29].mxu1 }
0x31f4   : > { %v5274_v0 = vpop.f32.mrb[30].mxu1 }
0x31f5   : > { %8262 = vrsqrt.f32 %v5272_v57  ;;  %v7869_v47 = vpop.f32.mrb[31].mxu1  ;;  %v5523_v57 = vld [vmem:[%s10620_s26 + $0x10] sm:$0xff]  ;;  %s10474_s26 = ssub.f32 1.0, %s5768_s5 }
0x31ff   : > { %v8263_v61 = vpop.eup %8262 }
0x3200   : > { %v5278_v46 = vmul.f32 %v8263_v61, %v5234_v15  ;;  %v8223_v15 = vld [vmem:[#allocation16 + $0x38] sm:$0xff]  }
0x3201   : > { %7905 = vmatpush3.bf16.msra.mxu1 %v8223_v15 }
0x3202   : > { %v5285_v44 = vmul.f32 %v6186_v17, %v5278_v46  ;;  %7930 = vmatprep.subr.bf16.mxu1 %v8396_v29 }
0x3204   : > { %v5292_v28 = vadd.f32 %v6187_v37, %v5285_v44 }
0x3206   : > { %v5294_v8 = vadd.f32 %v5292_v28, %v10199_v39  ;;  %5293 = vst [vmem:[%s10201_s28 + $0x8] sm:$0xff] %v5292_v28  ;;  %v5703_v35 = vmul.f32 %v5292_v28, %v5292_v28  ;;  %v10340_v36 = vsub.f32 %v5292_v28, %v5670_v6  ;;  %v10351_v39 = vld [vmem:[%s10618_s29] sm:$0xff]   ;;  %s10462_s29 = scalar_select %p5754_p1, 1, 0 }
0x3208   : > { %v5296_v63 = vadd.f32 %v5295_v3, %v5294_v8  ;;  %5704 = vadd.xlane.f32.xlu1 %v5703_v35  ;;  %5672 = vst [vmem:[%s10211_s1 + $0x8] sm:$0xff] %v10340_v36  ;;  %s5756_s20 = scvt.s32.f32 %s10462_s29 }
0x320a   : > { %v5297_v1 = vpack.c.bf16 %v5296_v63, %v5296_v63 }
0x320c   : > { %7887 = vmatmul.mubr.bf16.vlgmr.msra.gmra.mrb[32].mxu0 %v5297_v1 }
0x320d   : > { %7911 = vmatpush3.bf16.msra.mxu0 %v10351_v39  ;;  %7926 = vmatprep.mubr.msk.bf16.mxu0 %vm8412_vm13, %v8396_v29 }
0x320e   : > { %7912 = vmatprep.subr.bf16.mxu0 %v8396_v29 }
0x320f   : > { %v5678_v30 = vld [vmem:[#allocation3 + $0x20] sm:$0xff]  ;;  %v5673_v41 = vld [vmem:[#allocation3 + $0x8] sm:$0xff]  ;;  %v5683_v11 = vld [vmem:[#allocation3 + $0x38] sm:$0xff] }
0x3210   : > { %v5679_v21 = vmul.f32 %v5678_v30, %v10340_v36  ;;  %v5674_v13 = vmul.f32 %v5673_v41, %v10340_v36  ;;  %v5684_v19 = vmul.f32 %v5683_v11, %v10340_v36  ;;  %v5688_v31 = vld [vmem:[#allocation3 + $0x50] sm:$0xff]  ;;  %v5698_v59 = vld [vmem:[#allocation3 + $0x80] sm:$0xff] }
0x3211   : > { %7913 = vmatpush3.bf16.msra.mxu0 %v10362_v12  ;;  %v5689_v60 = vmul.f32 %v5688_v31, %v10340_v36  ;;  %v5699_v25 = vmul.f32 %v5698_v59, %v10340_v36  ;;  %v6206_v11 = vld [vmem:[%s10598_s18] ss:$0 sm:$0xff] }
0x3212   : > { %5680 = vadd.xlane.f32.xlu1 %v5679_v21  ;;  %5675 = vadd.xlane.f32.xlu0 %v5674_v13  ;;  %v6205_v21 = vld [vmem:[%s10597_s17] ss:$0 sm:$0xff] }
0x3213   : > { %7914 = vmatprep.subr.bf16.mxu0 %v8396_v29 }
0x3215   : > { %7915 = vmatpush3.bf16.msra.mxu0 %v10370_v32 }
0x3216   : > { %5685 = vadd.xlane.f32.xlu1 %v5684_v19  ;;  %7916 = vmatprep.subr.bf16.mxu0 %v8396_v29 }
0x3219   : > { %7917 = vmatpush3.bf16.msra.mxu0 %v8273_v27 }
0x321a   : > { %5690 = vadd.xlane.f32.xlu1 %v5689_v60  ;;  %7918 = vmatprep.subr.bf16.mxu0 %v8396_v29  ;;  %v5693_v60 = vld [vmem:[#allocation3 + $0x68] sm:$0xff] }
0x321d   : > { %7919 = vmatpush3.bf16.msra.mxu0 %v8274_v24 }
0x321e   : > { %5657 = vadd.xlane.f32.xlu1 %v5656_v38  ;;  %7920 = vmatprep.subr.bf16.mxu0 %v8396_v29  ;;  %v5694_v38 = vmul.f32 %v5693_v60, %v10340_v36 }
0x3221   : > { %7921 = vmatpush3.bf16.msra.mxu0 %v8275_v58 }
0x3222   : > { %5700 = vadd.xlane.f32.xlu1 %v5699_v25  ;;  %7922 = vmatprep.subr.bf16.mxu0 %v8396_v29 }
0x3225   : > { %7923 = vmatpush3.bf16.msra.mxu0 %v8276_v40 }
0x3226   : > { %7924 = vmatprep.subr.bf16.mxu0 %v8396_v29 }
0x3229   : > { %7925 = vmatpush3.bf16.msra.mxu0 %v8277_v20 }
0x3295   : > { %v5705_v49 = vpop.xlane.xlu1 %5704 }
0x32df   : > { %v5404_v14 = vpop.f32.mrb[32].mxu0 }
0x32e0   : > { %v5405_v43 = vadd.f32 %v5404_v14, %v5320_v26  ;;  %v7888_v53 = vpop.f32.mrb[33].mxu0 }
0x32e1   : > { %v5407_v42 = vpop.f32.mrb[34].mxu0  ;;  %v10448_v53 = vld [vmem:[%s10621_s15] sm:$0xff]  ;;  %s10512_s15 = ssub.f32 1.0, %s5804_s13 }
0x32e2   : > { %v5410_v16 = vmul.f32 %v5405_v43, %v10335_v5  ;;  %v7889_v18 = vpop.f32.mrb[35].mxu0 }
0x32e4   : > { %v5428_v7 = vpack.c.bf16 %v5410_v16, %v5410_v16 }
0x32e6   : > { %7907 = vmatmul.mubr.bf16.vlgmr.msra.gmra.mrb[32].mxu1 %v5428_v7 }
0x32e7   : > { %7931 = vmatpush3.bf16.msra.mxu1 %v10351_v39  ;;  %7946 = vmatprep.mubr.msk.bf16.mxu1 %vm8412_vm13, %v8396_v29 }
0x32e8   : > { %7932 = vmatprep.subr.bf16.mxu1 %v8396_v29 }
0x32eb   : > { %7933 = vmatpush3.bf16.msra.mxu1 %v10362_v12 }
0x32ec   : > { %7934 = vmatprep.subr.bf16.mxu1 %v8396_v29 }
0x32ef   : > { %7935 = vmatpush3.bf16.msra.mxu1 %v10370_v32 }
0x32f0   : > { %7936 = vmatprep.subr.bf16.mxu1 %v8396_v29 }
0x32f3   : > { %7937 = vmatpush3.bf16.msra.mxu1 %v8273_v27  ;;  %v5651_v27 = vmul.f32 %v10342_v62, %v10209_v55 }
0x32f4   : > { %7938 = vmatprep.subr.bf16.mxu1 %v8396_v29 }
0x32f7   : > { %7939 = vmatpush3.bf16.msra.mxu1 %v8274_v24 }
0x32f8   : > { %7940 = vmatprep.subr.bf16.mxu1 %v8396_v29 }
0x32fb   : > { %7941 = vmatpush3.bf16.msra.mxu1 %v8275_v58  ;;  %v5661_v58 = vmul.f32 %v10344_v2, %v10209_v55  ;;  %v5667_v55 = vpop.xlane.xlu0 %5666  ;;  %v5681_v2 = vpop.xlane.xlu1 %5680 }
0x32fc   : > { %7942 = vmatprep.subr.bf16.mxu1 %v8396_v29  ;;  %v5706_v14 = vadd.f32 %v5705_v49, %v5667_v55 }
0x32ff   : > { %7943 = vmatpush3.bf16.msra.mxu1 %v8276_v40  ;;  %v5638_v22 = vpop.xlane.xlu0 %5637  ;;  %v5686_v15 = vpop.xlane.xlu1 %5685 }
0x3300   : > { %7944 = vmatprep.subr.bf16.mxu1 %v8396_v29 }
0x3303   : > { %7945 = vmatpush3.bf16.msra.mxu1 %v8277_v20  ;;  %v5648_v50 = vpop.xlane.xlu0 %5647  ;;  %v5691_v51 = vpop.xlane.xlu1 %5690 }
0x3307   : > { %v5676_v26 = vpop.xlane.xlu0 %5675  ;;  %v10443_v43 = vpop.xlane.xlu1 %5657 }
0x33b9   : > { %v5517_v56 = vpop.f32.mrb[32].mxu1 }
0x33ba   : > { %v5518_v23 = vadd.f32 %v6196_v54, %v5517_v56  ;;  %v7908_v0 = vpop.f32.mrb[33].mxu1  ;;  %v5701_v56 = vpop.xlane.xlu1 %5700 }
0x33bb   : > { %v5520_v47 = vpop.f32.mrb[34].mxu1 }
0x33bc   : > { %v5524_v61 = vadd.f32 %v5523_v57, %v5518_v23  ;;  %v7909_v17 = vpop.f32.mrb[35].mxu1 }
0x33be   : > { %v5525_v46 = vmax.f32 %v5524_v61, 0.0 }
0x33c0   : > { %v5528_v37 = vpack.c.bf16 %v5525_v46, %v5525_v46 }
0x33c2   : > { %7927 = vmatmul.mubr.bf16.vlgmr.msra.gmra.mrb[36].mxu0 %v5528_v37  ;;  %v5682_v37 = vadd.f32 %v5681_v2, %v5643_v9  ;;  %v5812_v2 = vld [vmem:[#allocation5 + $0x28] sm:$0xff] }
0x3495   : > { %v5563_v44 = vpop.f32.mrb[36].mxu0 }
0x3496   : > { %v5569_v29 = vsub.f32 %v5525_v46, %v5563_v44  ;;  %v7928_v28 = vpop.f32.mrb[37].mxu0  ;;  %v5750_v44 = vstv %s10628_s21  ;;  %s10489_s21 = ssub.f32 1.0, %s5816_s22 }
0x3497   : > { %v5566_v6 = vpop.f32.mrb[38].mxu0  ;;  %vm10494_vm14 = vcmp.eq.s32.totalorder %v9254_v33, %v5750_v44 }
0x3498   : > { %v5570_v8 = vmul.f32 %v5569_v29, %v5569_v29  ;;  %v7929_v3 = vpop.f32.mrb[39].mxu0  ;;  %v5677_v6 = vadd.f32 %v5676_v26, %v5638_v22  ;;  %v5776_v22 = vld [vmem:[#allocation5 + $0x10] sm:$0xff] }
0x349a   : > { %v5571_v35 = vpack.c.bf16 %v5570_v8, %v5570_v8  ;;  %v5687_v8 = vadd.f32 %v5686_v15, %v5648_v50 }
0x349c   : > { %7947 = vmatmul.mubr.bf16.vlgmr.msra.gmra.mrb[36].mxu1 %v5571_v35 }
0x356f   : > { %v5606_v10 = vpop.f32.mrb[36].mxu1 }
0x3570   : > { %v5607_v63 = vadd.f32 1e-05, %v5606_v10  ;;  %v7948_v1 = vpop.f32.mrb[37].mxu1 }
0x3571   : > { %v5609_v39 = vpop.f32.mrb[38].mxu1  ;;  %v5764_v1 = vld [vmem:[#allocation5 + $0x8] sm:$0xff] }
0x3572   : > { %8264 = vrsqrt.f32 %v5607_v63  ;;  %v7949_v30 = vpop.f32.mrb[39].mxu1  ;;  %v10500_v39 = vstv %s5768_s5 }
0x357c   : > { %v8265_v41 = vpop.eup %8264 }
0x357d   : > { %v5613_v13 = vmul.f32 %v8265_v41, %v5569_v29  ;;  %v5772_v41 = vstv %s10474_s26 }
0x357f   : > { %v5620_v12 = vmul.f32 %v6205_v21, %v5613_v13  ;;  %v5793_v21 = vstv %s5792_s4  ;;  %v5796_v13 = vstv %s10480_s3 }
0x3581   : > { %v5627_v19 = vadd.f32 %v6206_v11, %v5620_v12 }
0x3583   : > { %5628 = vst [vmem:[%s10201_s28 + $0x10] sm:$0xff] %v5627_v19  ;;  %v5741_v31 = vmul.f32 %v5627_v19, %v5627_v19  ;;  %v5709_v32 = vsub.f32 %v5627_v19, %v10335_v5  ;;  %s10485_s28 = ssub.f32 1.0, %s5756_s20  ;;  %v5757_v19 = vstv %s5756_s20 }
0x3585   : > { %5742 = vadd.xlane.f32.xlu0 %v5741_v31  ;;  %5710 = vst [vmem:[%s10211_s1 + $0x10] sm:$0xff] %v5709_v32  ;;  %s10504_s1 = ssub.f32 1.0, %s5780_s23  ;;  %v5817_v31 = vstv %s5816_s22 }
0x3589   : > { %5652 = vadd.xlane.f32.xlu0 %v5651_v27 }
0x358c   : > { %v5716_v59 = vld [vmem:[#allocation3 + $0x28] sm:$0xff]  ;;  %v5726_v25 = vld [vmem:[#allocation3 + $0x58] sm:$0xff]  ;;  %v5711_v40 = vld [vmem:[#allocation3 + $0x10] sm:$0xff] }
0x358d   : > { %5695 = vadd.xlane.f32.xlu0 %v5694_v38  ;;  %v5717_v24 = vmul.f32 %v5716_v59, %v5709_v32  ;;  %v5727_v5 = vmul.f32 %v5726_v25, %v5709_v32  ;;  %v5736_v20 = vld [vmem:[#allocation3 + $0x88] sm:$0xff]  ;;  %v5712_v45 = vmul.f32 %v5711_v40, %v5709_v32  ;;  %v5721_v34 = vld [vmem:[#allocation3 + $0x40] sm:$0xff]  ;;  %v5731_v4 = vld [vmem:[#allocation3 + $0x70] sm:$0xff]  ;;  %v5760_v59 = vstv %s10485_s28 }
0x358e   : > { %v5737_v62 = vmul.f32 %v5736_v20, %v5709_v32  ;;  %v5722_v36 = vmul.f32 %v5721_v34, %v5709_v32  ;;  %v5732_v48 = vmul.f32 %v5731_v4, %v5709_v32  ;;  %v5788_v38 = vld [vmem:[#allocation5 + $0x18] sm:$0xff]  ;;  %v5752_v25 = vld [vmem:[#allocation5] sm:$0xff]  ;;  %v5781_v40 = vstv %s5780_s23 }
0x358f   : > { %5718 = vadd.xlane.f32.xlu1 %v5717_v24  ;;  %v5808_v4 = vstv %s10512_s15 }
0x3591   : > { %5662 = vadd.xlane.f32.xlu0 %v5661_v58  ;;  %v5820_v58 = vstv %s10489_s21 }
0x3593   : > { %5728 = vadd.xlane.f32.xlu1 %v5727_v5  ;;  %v5784_v5 = vstv %s10504_s1 }
0x3595   : > { %5713 = vadd.xlane.f32.xlu0 %v5712_v45  ;;  %v5805_v45 = vstv %s5804_s13 }
0x3597   : > { %5738 = vadd.xlane.f32.xlu1 %v5737_v62 }
0x3599   : > { %5723 = vadd.xlane.f32.xlu0 %v5722_v36 }
0x359d   : > { %5733 = vadd.xlane.f32.xlu0 %v5732_v48 }
0x3612   : > { %v5743_v42 = vpop.xlane.xlu0 %5742 }
0x3613   : > { %v5744_v16 = vadd.f32 %v5743_v42, %v5706_v14  ;;  %v5800_v42 = vld [vmem:[#allocation5 + $0x20] sm:$0xff] }
0x3615   : > { %v5845_v18 = vmul.f32 %v10448_v53, %v5744_v16 }
0x3616   : > { %v5653_v7 = vpop.xlane.xlu0 %5652 }
0x3617   : > { %v5846_v54 = vsel %vm1771_vm3, %v5845_v18, 0.0  ;;  %v5692_v10 = vadd.f32 %v5691_v51, %v5653_v7 }
0x3618   : > { %v5847_v57 = vrot.slane %v5846_v54, 4 }
0x361a   : > { %v5848_v23 = vadd.f32 %v5847_v57, %v5846_v54  ;;  %v5696_v0 = vpop.xlane.xlu0 %5695 }
0x361b   : > { %v5697_v48 = vadd.f32 %v5696_v0, %v10443_v43 }
0x361c   : > { %v5849_v47 = vrot.slane %v5848_v23, 2  ;;  %v5719_v61 = vpop.xlane.xlu1 %5718 }
0x361d   : > { %v5720_v3 = vadd.f32 %v5719_v61, %v5682_v37 }
0x361e   : > { %v5850_v17 = vadd.f32 %v5849_v47, %v5848_v23  ;;  %v5663_v46 = vpop.xlane.xlu0 %5662 }
0x361f   : > { %v5765_v60 = vsel %vm10494_vm14, %v5720_v3, %v5764_v1  ;;  %v5702_v27 = vadd.f32 %v5701_v56, %v5663_v46  ;;  %v5826_v34 = vmul.f32 %v10500_v39, %v5720_v3 }
0x3620   : > { %v5851_v29 = vrot.slane %v5850_v17, 1  ;;  %v5729_v28 = vpop.xlane.xlu1 %5728  ;;  %v5773_v9 = vmul.f32 %v5772_v41, %v5765_v60 }
0x3621   : > { %v5730_v12 = vadd.f32 %v5729_v28, %v5692_v10 }
0x3622   : > { %v10491_v35 = vadd.f32 %v5851_v29, %v5850_v17  ;;  %v5714_v30 = vpop.xlane.xlu0 %5713 }
0x3623   : > { %v5715_v11 = vadd.f32 %v5714_v30, %v5677_v6  ;;  %v5789_v49 = vsel %vm10494_vm14, %v5730_v12, %v5788_v38  ;;  %v5830_v43 = vmul.f32 %v5793_v21, %v5730_v12 }
0x3624   : > { %8266 = vrsqrt.f32 %v10491_v35  ;;  %v5739_v32 = vpop.xlane.xlu1 %5738  ;;  %vm5855_vm15 = vcmp.eq.f32.partialorder %v10491_v35, inf  ;;  %vm5857_vm0 = vcmp.eq.f32.partialorder %v10491_v35, 0.0  ;;  %v5858_v14 = vand.u32 2147483648, %v10491_v35 }
0x3625   : > { %v5824_v24 = vmul.f32 %v5757_v19, %v5715_v11  ;;  %v5740_v62 = vadd.f32 %v5739_v32, %v5702_v27  ;;  %v5745_v55 = vsel %vm1771_vm3, %v5715_v11, %v5720_v3  ;;  %v5753_v15 = vsel %vm10494_vm14, %v5715_v11, %v5752_v25 }
0x3626   : > { %v5724_v20 = vpop.xlane.xlu0 %5723  ;;  %v5797_v57 = vmul.f32 %v5796_v13, %v5789_v49  ;;  %v5761_v23 = vmul.f32 %v5760_v59, %v5753_v15 }
0x3627   : > { %v5725_v36 = vadd.f32 %v5724_v20, %v5687_v8  ;;  %v5827_v50 = vadd.f32 %v5826_v34, %v5824_v24  ;;  %v5813_v18 = vsel %vm10494_vm14, %v5740_v62, %v5812_v2  ;;  %v5834_v0 = vmul.f32 %v5817_v31, %v5740_v62 }
0x3628   : > { %v5821_v29 = vmul.f32 %v5820_v58, %v5813_v18 }
0x3629   : > { %v5746_v51 = vsel %vm1773_vm4, %v5745_v55, %v5725_v36  ;;  %v5828_v26 = vmul.f32 %v5781_v40, %v5725_v36  ;;  %v5777_v7 = vsel %vm10494_vm14, %v5725_v36, %v5776_v22 }
0x362a   : > { %v5734_v16 = vpop.xlane.xlu0 %5733  ;;  %v5747_v47 = vsel %vm1775_vm5, %v5746_v51, %v5730_v12  ;;  %v5785_v28 = vmul.f32 %v5784_v5, %v5777_v7 }
0x362b   : > { %v5829_v54 = vadd.f32 %v5828_v26, %v5827_v50  ;;  %v5735_v56 = vadd.f32 %v5734_v16, %v5697_v48 }
0x362d   : > { %v5831_v61 = vadd.f32 %v5830_v43, %v5829_v54  ;;  %v5748_v17 = vsel %vm1777_vm6, %v5747_v47, %v5735_v56  ;;  %v5801_v46 = vsel %vm10494_vm14, %v5735_v56, %v5800_v42  ;;  %v5832_v37 = vmul.f32 %v5805_v45, %v5735_v56 }
0x362e   : > { %v8267_v44 = vpop.eup %8266  ;;  %v5749_v6 = vsel %vm1779_vm7, %v5748_v17, %v5740_v62  ;;  %v5809_v8 = vmul.f32 %v5808_v4, %v5801_v46 }
0x362f   : > { %v5854_v3 = vmul.f32 %v8267_v44, %v10491_v35  ;;  %v5758_v10 = vmul.f32 %v5757_v19, %v5749_v6  ;;  %v5770_v1 = vmul.f32 %v10500_v39, %v5749_v6  ;;  %v5782_v30 = vmul.f32 %v5781_v40, %v5749_v6 }
0x3630   : > { %v5794_v41 = vmul.f32 %v5793_v21, %v5749_v6  ;;  %v5806_v13 = vmul.f32 %v5805_v45, %v5749_v6  ;;  %v5818_v11 = vmul.f32 %v5817_v31, %v5749_v6  ;;  %v5833_v12 = vadd.f32 %v5832_v37, %v5831_v61 }
0x3631   : > { %v5856_v63 = vsel %vm5855_vm15, %v10491_v35, %v5854_v3  ;;  %v5762_v32 = vadd.f32 %v5761_v23, %v5758_v10  ;;  %v5774_v60 = vadd.f32 %v5773_v9, %v5770_v1  ;;  %v5786_v27 = vadd.f32 %v5785_v28, %v5782_v30 }
0x3632   : > { %v5859_v38 = vsel %vm5857_vm0, %v5858_v14, %v5856_v63  ;;  %v5798_v59 = vadd.f32 %v5797_v57, %v5794_v41  ;;  %v5810_v24 = vadd.f32 %v5809_v8, %v5806_v13  ;;  %v5822_v19 = vadd.f32 %v5821_v29, %v5818_v11 }
0x3633   : > { %v5860_v25 = vadd.f32 1e-05, %v5859_v38  ;;  %5763 = vst.msk [vmem:[#allocation5] sm:$0xff] %vm158_vm1, %v5762_v32  ;;  %5775 = vst.msk [vmem:[#allocation5 + $0x8] sm:$0xff] %vm158_vm1, %v5774_v60  ;;  %v5835_v39 = vadd.f32 %v5834_v0, %v5833_v12 }
0x3634   : > { %5787 = vst.msk [vmem:[#allocation5 + $0x10] sm:$0xff] %vm158_vm1, %v5786_v27  ;;  %5799 = vst.msk [vmem:[#allocation5 + $0x18] sm:$0xff] %vm158_vm1, %v5798_v59 }
0x3635   : > { %5811 = vst.msk [vmem:[#allocation5 + $0x20] sm:$0xff] %vm158_vm1, %v5810_v24  ;;  %5823 = vst.msk [vmem:[#allocation5 + $0x28] sm:$0xff] %vm158_vm1, %v5822_v19  ;;  %v5861_v21 = vmul.f32 %v5860_v25, %v5860_v25  ;;  %v5837_v35 = vmul.f32 %v10448_v53, %v5835_v39 }
0x3637   : > { %8268 = vrcp.f32 %v5861_v21  ;;  %v5838_v31 = vsel %vm1771_vm3, %v5837_v35, 0.0 }
0x3638   : > { %v5839_v58 = vrot.slane %v5838_v31, 4 }
0x363a   : > { %v5840_v40 = vadd.f32 %v5839_v58, %v5838_v31 }
0x363c   : > { %v5841_v5 = vrot.slane %v5840_v40, 2 }
0x363e   : > { %v5842_v20 = vadd.f32 %v5841_v5, %v5840_v40 }
0x3640   : > { %v5843_v45 = vrot.slane %v5842_v20, 1 }
0x3641   : > { %v8269_v34 = vpop.eup %8268 }
0x3642   : > { %v5844_v62 = vadd.f32 %v5843_v45, %v5842_v20 }
0x3644   : > { %v5863_v36 = vmul.f32 %v8269_v34, %v5844_v62  ;;  %5865 = vst.msk [vmem:[#allocation6] sm:$0x1] %vm5864_vm9, %v5844_v62 }
0x3646   : > { %5866 = vst.msk [vmem:[#allocation6 + $0x1] sm:$0x1] %vm5864_vm9, %v5863_v36 }
0x364b   : > { %v5867_v4 = vld [vmem:[#allocation6] sm:$0x1] }
0x364c   : > { %7950 = vpush %v5867_v4 }
0x364d   : > { %v5869_v48 = vld [vmem:[#allocation6 + $0x1] sm:$0x1] }
0x364e   : > { %7952 = vpush %v5869_v48 }
0x367d   : > { %s7951_s5 = spop %7950 }
0x367e   : > { %p5872_p5 = scmp.lt.f32.partialorder %s7951_s5, %s5871_s0 }
0x367f   : > { %s7953_s4 = spop %7952  ;;  %v5883_v53 = vld [vmem:[#allocation4] sm:$0xff] (%p5872_p5)  ;;  %v5884_v9 = vld [vmem:[#allocation4 + $0x8] sm:$0xff] (%p5872_p5)  ;;  %v5885_v49 = vld [vmem:[#allocation4 + $0x10] sm:$0xff] (%p5872_p5)  ;;  %5889 = sst [smem:[#allocation9]] (%p5872_p5), %s8382_s27 }
0x3680   : > { %s5875_s29 = scalar_select %p5872_p5, %s7951_s5, %s5871_s0  ;;  %5886 = vst [vmem:[%s10599_s19] sm:$0xff] (%p5872_p5), %v5883_v53  ;;  %5887 = vst [vmem:[%s10599_s19 + $0x8] sm:$0xff] (%p5872_p5), %v5884_v9 }
0x3681   : > { %p5874_p6 = scmp.lt.f32.partialorder %s7953_s4, %s5873_s2  ;;  %5882 = sbr.rel (!%p5872_p5) target bundleno = 13960 (0x3688), region = 108  ;;  %5888 = vst [vmem:[%s10599_s19 + $0x10] sm:$0xff] (%p5872_p5), %v5885_v49 }
0x3682   : > { %5876 = sst [smem:[#allocation7]] %s5875_s29 }
0x3683   : > { %s10630_s4 = smov (!%p5874_p6, %s7953_s4), %s5873_s2 }
0x3684   : > { %5879 = sst [smem:[#allocation8]] %s10630_s4 }
0x3688 PF: > { %p5890_p7 = scmp.lt.f32.partialorder %s7951_s5, 1e-06 }
0x368a   : > { %s5891_s23 = scalar_select %p5890_p7, 1, 0 }
0x368c   : > { %5892 = sst [smem:[#allocation10]] %s5891_s23 }
0x368d PF: > { %s3434_s27 = sadd.s32 1, %s8382_s27  }
0x368e   : > { %p3431_p8 = scmp.ge.s32.totalorder %s3434_s27, 55  }
0x368f   :  { %s5893_s3 = sld [smem:[#allocation7]] (%p3431_p8)  ;;  %vm5914_vm14 = vcmask (%p3431_p8), 1040384   ;;  %vm5916_vm1 = vcmask (%p3431_p8), 1041408   ;;  %vm5918_vm2 = vcmask (%p3431_p8), 1042432   ;;  %s10624_s8 = sld [smem:[#allocation26_spill]] (%p3431_p8) }
0x3690   :  { %3433 = sbr.rel (!%p3431_p8) target bundleno = 7987 (0x1f33), region = 166  ;;  %s5902_s13 = sld [smem:[#allocation8]] (%p3431_p8) }
0x3691   :  { %s5911_s28 = sld [smem:[#allocation9]] (%p3431_p8) }
0x3695   :  { %v5894_v55 = vstv (%p3431_p8), %s5893_s3 }
0x3696   :  { %v5903_v2 = vstv (%p3431_p8), %s5902_s13  ;;  %8278 = vrsqrt.f32 (%p3431_p8), %v5894_v55  ;;  %vm5897_vm10 = vcmp.eq.f32.partialorder (%p3431_p8), %v5894_v55, inf  ;;  %v5900_v15 = vand.u32 (%p3431_p8), 2147483648, %v5894_v55 }
0x3697   :  { %8280 = vrsqrt.f32 %v5903_v2  ;;  %s5912_s21 = scvt.s32.f32 %s5911_s28  ;;  %vm5899_vm11 = vcmp.eq.f32.partialorder %v5894_v55, 0.0  ;;  %vm5906_vm12 = vcmp.eq.f32.partialorder %v5903_v2, inf  ;;  %v5909_v26 = vand.u32 2147483648, %v5903_v2 }
0x3698   :  { %vm5908_vm13 = vcmp.eq.f32.partialorder %v5903_v2, 0.0 }
0x3699   :  { %v5913_v42 = vstv %s5912_s21 }
0x36a0   :  { %v8279_v22 = vpop.eup %8278 }
0x36a1   :  { %v8281_v50 = vpop.eup %8280  ;;  %v5896_v51 = vmul.f32 %v8279_v22, %v5894_v55 }
0x36a2   :  { %v5905_v14 = vmul.f32 %v8281_v50, %v5903_v2 }
0x36a3   :  { %v5898_v43 = vsel %vm5897_vm10, %v5894_v55, %v5896_v51 }
0x36a4   :  { %v5901_v52 = vsel %vm5899_vm11, %v5900_v15, %v5898_v43  ;;  %v5907_v33 = vsel %vm5906_vm12, %v5903_v2, %v5905_v14 }
0x36a5   :  { %v5910_v16 = vsel %vm5908_vm13, %v5909_v26, %v5907_v33 }
0x36a6   :  { %v5915_v18 = vsel %vm5914_vm14, %v5901_v52, %v5910_v16 }
0x36a7   :  { %v5917_v7 = vsel %vm5916_vm1, %v5915_v18, %v5913_v42 }
0x36a8   :  { %v5919_v54 = vsel %vm5918_vm2, %v5917_v7, 0.0 }
0x36a9   :  { %5920 = vst [vmem:[%s10624_s8] sm:$0xff] %v5919_v54 }
0x36aa   :  { %5929 = vsyncpa [#allocation12], 1 }
0x36ab   :  { %5930 = vsyncpa [#allocation14], 1 }
0x36ac   :  { %5931 = vsyncpa [#allocation17], 1 }

</bundles_post_ra>
